<compile_context>
chip_gen: v7x
topology: tpu7x:2x2x1
jax: 0.10.0
libtpu: 0.0.40
codegen_flags: <defaults>
</compile_context>

<pallas_src>
import functools

import jax
import jax.numpy as jnp
from jax import lax
from jax.experimental import pallas as pl
from jax.experimental.pallas import tpu as pltpu


def _round_up(n, m):
    return ((n + m - 1) // m) * m


def _sigmoid(x):
    # Numerically stable sigmoid on the tanh/EUP path (no divide, no exp overflow).
    return 0.5 * (jnp.tanh(0.5 * x) + 1.0)


def lstm_actor_kernel(x_ref, wih_ref, whh_ref, b_ref, w2_ref, b2_ref,
                      w3_ref, b3_ref, ma_ref,
                      out_ref,
                      h_ref, c_ref, gx_ref, hs_ref,
                      *, unroll):
    """One time-chunk of the lstmActor forward.

    x_ref   : (Tc*Bp, D)   f32   time-major flattened input chunk
    wih_ref : (D, 4Hp)     bf16  LSTM input weights (gate blocks [i|f|g|o])
    whh_ref : (Hp, 4Hp)    bf16  LSTM recurrent weights
    b_ref   : (1, 4Hp)     f32   b_ih + b_hh
    w2_ref  : (Hp, Hp)     bf16, b2_ref (1, Hp) f32
    w3_ref  : (Hp, Ap)     bf16, b3_ref (1, Ap) f32
    ma_ref  : (1, Ap)      f32   max_action (zero padded)
    out_ref : (Tc*Bp, Ap)  f32
    h_ref/c_ref : (Bp, Hp) f32   recurrent state, carried across grid steps
    gx_ref  : (Tc*Bp, 4Hp) f32   hoisted input-projection scratch
    hs_ref  : (Tc*Bp, Hp)  f32   per-step relu(hidden) (head MLP input)
    """
    Bp, Hp = h_ref.shape
    rows = x_ref.shape[0]
    Tc = rows // Bp

    @pl.when(pl.program_id(0) == 0)
    def _init():
        h_ref[...] = jnp.zeros_like(h_ref)
        c_ref[...] = jnp.zeros_like(c_ref)

    # (1) Hoisted input projection + folded bias: one big MXU matmul per chunk.
    gx_ref[...] = (
        jnp.dot(x_ref[...].astype(jnp.bfloat16), wih_ref[...],
                preferred_element_type=jnp.float32)
        + b_ref[...])

    # (2) Serial recurrence. h/c live in vregs as loop-carried values; only
    #     the relu'd hidden state is stored per step (needed by the head MLP).
    #     NOTE: h is cast to bf16 for h @ W_hh; rounding compounds over very
    #     long sequences -- validate at production T or switch to f32 weights
    #     if drift matters.
    #     NOTE: when H < Hp the padded f-gate lanes see sigmoid(0)=0.5, but the
    #     padded lanes of c/h stay exactly zero because c starts at 0 and
    #     i*g = 0.5*tanh(0) = 0 there (zero weight/bias padding). Do not break
    #     this invariant (e.g. with a nonzero initial hc) without re-checking.
    def step(tt, carry):
        h, c = carry
        row = pl.multiple_of(tt * Bp, Bp)
        gates = gx_ref[pl.ds(row, Bp), :] + jnp.dot(
            h.astype(jnp.bfloat16), whh_ref[...],
            preferred_element_type=jnp.float32)
        i_g = _sigmoid(gates[:, 0 * Hp:1 * Hp])
        f_g = _sigmoid(gates[:, 1 * Hp:2 * Hp])
        g_g = jnp.tanh(gates[:, 2 * Hp:3 * Hp])
        o_g = _sigmoid(gates[:, 3 * Hp:4 * Hp])
        c_new = f_g * c + i_g * g_g
        h_new = o_g * jnp.tanh(c_new)
        # relu is off the h/c dependency chain: free filler under the MXU work.
        hs_ref[pl.ds(row, Bp), :] = jnp.maximum(h_new, 0.0)
        return (h_new, c_new)

    h_fin, c_fin = lax.fori_loop(0, Tc, step, (h_ref[...], c_ref[...]),
                                 unroll=unroll)
    # Write the recurrent state back once per chunk (cross-grid-step carry).
    # These carry padded timesteps' zero-input updates past T; outputs for the
    # padded region are sliced off by the wrapper, so results are unaffected.
    h_ref[...] = h_fin
    c_ref[...] = c_fin

    # (3) Hoisted head MLP over all Tc*Bp rows; one lane-dense store.
    a2 = jnp.maximum(
        jnp.dot(hs_ref[...].astype(jnp.bfloat16), w2_ref[...],
                preferred_element_type=jnp.float32)
        + b2_ref[...], 0.0)                                          # relu(l2)
    a3 = (jnp.dot(a2.astype(jnp.bfloat16), w3_ref[...],
                  preferred_element_type=jnp.float32) + b3_ref[...]) # l3
    out_ref[...] = (ma_ref[...] * jnp.tanh(a3)).astype(out_ref.dtype)


def lstm_actor_forward(x, params, *, t_chunk=None, unroll=8):
    """x: (B, T, state_dim + action_dim) float32, PyTorch batch_first layout.

    Returns (B*T, action_dim), matching lstm_out.view((-1, hidden_dim)) row
    ordering (row b*T + t). Initial hidden state hc=None (zeros).
    """
    B, T, D = x.shape
    H = params["w_hh"].shape[1]
    A = params["w3"].shape[0]

    LANE, SUB = 128, 8
    Hp = _round_up(H, LANE)
    Ap = _round_up(A, LANE)
    Bp = _round_up(B, SUB)

    # Default chunk fills the MXU M dimension of the hoisted matmuls:
    # t_chunk * Bp >= 256 rows (one 256-row M-tile on v6e/v7x, 2x128 on v5e),
    # clamped to the real sequence length. Per-step grid overhead ~0.35 us.
    if t_chunk is None:
        t_chunk = pl.cdiv(256, Bp)
    t_chunk = max(1, min(t_chunk, T))
    Tp = _round_up(T, t_chunk)
    num_chunks = Tp // t_chunk
    unroll = max(1, min(int(unroll), t_chunk))

    def pad_to(a, shape):
        return jnp.pad(a, [(0, s - d) for d, s in zip(a.shape, shape)])

    # --- LSTM weights: gate blocks [i, f, g, o]; pad each gate block to Hp. ---
    w_ih = pad_to(params["w_ih"].astype(jnp.float32).reshape(4, H, D), (4, Hp, D))
    w_hh = pad_to(params["w_hh"].astype(jnp.float32).reshape(4, H, H), (4, Hp, Hp))
    bias = pad_to((params["b_ih"] + params["b_hh"]).astype(jnp.float32).reshape(4, H),
                  (4, Hp))
    wih_t = jnp.transpose(w_ih.reshape(4 * Hp, D)).astype(jnp.bfloat16)   # (D, 4Hp)
    whh_t = jnp.transpose(w_hh.reshape(4 * Hp, Hp)).astype(jnp.bfloat16)  # (Hp, 4Hp)
    b = bias.reshape(1, 4 * Hp)                                           # f32

    # --- Head MLP weights (zero padding keeps semantics exactly). ---
    w2_t = jnp.transpose(pad_to(params["w2"].astype(jnp.float32), (Hp, Hp))
                         ).astype(jnp.bfloat16)                           # (Hp, Hp)
    b2 = pad_to(params["b2"].astype(jnp.float32), (Hp,)).reshape(1, Hp)
    w3_t = jnp.transpose(pad_to(params["w3"].astype(jnp.float32), (Ap, Hp))
                         ).astype(jnp.bfloat16)                           # (Hp, Ap)
    b3 = pad_to(params["b3"].astype(jnp.float32), (Ap,)).reshape(1, Ap)
    ma = pad_to(params["max_action"].astype(jnp.float32), (Ap,)).reshape(1, Ap)

    # --- Input: pad batch to sublane multiple, time to chunk multiple; ---
    # --- flatten time-major so each chunk is one contiguous row block.  ---
    x_p = pad_to(x.astype(jnp.float32), (Bp, Tp, D))
    x_tm = jnp.transpose(x_p, (1, 0, 2)).reshape(Tp * Bp, D)

    full = lambda shape: pl.BlockSpec(shape, lambda t: (0,) * len(shape))

    kernel = functools.partial(lstm_actor_kernel, unroll=unroll)

    out_flat = pl.pallas_call(
        kernel,
        out_shape=jax.ShapeDtypeStruct((Tp * Bp, Ap), jnp.float32),
        grid_spec=pltpu.PrefetchScalarGridSpec(
            num_scalar_prefetch=0,
            grid=(num_chunks,),
            in_specs=[
                pl.BlockSpec((t_chunk * Bp, D), lambda t: (t, 0)),   # x chunk (streamed)
                full(wih_t.shape), full(whh_t.shape), full(b.shape),
                full(w2_t.shape), full(b2.shape),
                full(w3_t.shape), full(b3.shape), full(ma.shape),
            ],
            out_specs=pl.BlockSpec((t_chunk * Bp, Ap), lambda t: (t, 0)),
            scratch_shapes=[
                pltpu.VMEM((Bp, Hp), jnp.float32),                  # h carry
                pltpu.VMEM((Bp, Hp), jnp.float32),                  # c carry
                pltpu.VMEM((t_chunk * Bp, 4 * Hp), jnp.float32),    # hoisted gates_x
                pltpu.VMEM((t_chunk * Bp, Hp), jnp.float32),        # relu(hidden) history
            ]),
        compiler_params=pltpu.CompilerParams(
            dimension_semantics=("arbitrary",),        # serial time recurrence
            vmem_limit_bytes=32 * 1024 * 1024),        # safe on v7x (64 MiB phys)
    )(x_tm, wih_t, whh_t, b, w2_t, b2, w3_t, b3, ma)

    # PyTorch view((-1, H)) on a batch_first tensor flattens batch-major.
    out = out_flat.reshape(Tp, Bp, Ap)
    out = jnp.transpose(out, (1, 0, 2))[:B, :T, :A]
    return out.reshape(B * T, A)


def lstm_actor_reference(x, params):
    """Pure-JAX f32 reference (mirrors the PyTorch module)."""
    B, T, _ = x.shape
    H = params["w_hh"].shape[1]
    wih, whh = params["w_ih"], params["w_hh"]
    bias = params["b_ih"] + params["b_hh"]

    def cell(carry, x_t):
        h, c = carry
        gates = x_t @ wih.T + h @ whh.T + bias
        i = jax.nn.sigmoid(gates[:, 0:H])
        f = jax.nn.sigmoid(gates[:, H:2 * H])
        g = jnp.tanh(gates[:, 2 * H:3 * H])
        o = jax.nn.sigmoid(gates[:, 3 * H:4 * H])
        c = f * c + i * g
        h = o * jnp.tanh(c)
        return (h, c), h

    x_tm = jnp.transpose(x.astype(jnp.float32), (1, 0, 2))
    init = (jnp.zeros((B, H), jnp.float32), jnp.zeros((B, H), jnp.float32))
    _, hs = lax.scan(cell, init, x_tm)
    hs = jnp.transpose(hs, (1, 0, 2)).reshape(B * T, H)
    a1 = jnp.maximum(hs, 0.0)
    a2 = jnp.maximum(a1 @ params["w2"].T + params["b2"], 0.0)
    return params["max_action"] * jnp.tanh(a2 @ params["w3"].T + params["b3"])


def init_params(key, state_dim, action_dim, hidden_dim):
    """Deterministic parameter init mirroring PyTorch shapes."""
    d_in = state_dim + action_dim
    k = 1.0 / jnp.sqrt(hidden_dim)
    keys = jax.random.split(key, 8)
    u = lambda kk, shape: jax.random.uniform(kk, shape, jnp.float32, -k, k)
    return {
        "w_ih": u(keys[0], (4 * hidden_dim, d_in)),
        "w_hh": u(keys[1], (4 * hidden_dim, hidden_dim)),
        "b_ih": u(keys[2], (4 * hidden_dim,)),
        "b_hh": u(keys[3], (4 * hidden_dim,)),
        "w2": u(keys[4], (hidden_dim, hidden_dim)),
        "b2": u(keys[5], (hidden_dim,)),
        "w3": u(keys[6], (action_dim, hidden_dim)),
        "b3": u(keys[7], (action_dim,)),
        # default max_action = torch.ones(action_dim)
        "max_action": jnp.ones((action_dim,), jnp.float32),
    }


if __name__ == "__main__":
    state_dim, action_dim, hidden_dim = 12, 4, 256   # module default hidden_dim=256
    B, T = 2, 8

    key = jax.random.PRNGKey(0)
    pkey, xkey = jax.random.split(key)
    params = init_params(pkey, state_dim, action_dim, hidden_dim)

    # forward input x has feature dim = state_dim + action_dim (per __init__).
    x = jax.random.normal(xkey, (B, T, state_dim + action_dim), jnp.float32)

    ref = jax.block_until_ready(lstm_actor_reference(x, params))

    # Default t_chunk: whole sequence in one chunk at these shapes (big-M path).
    out = jax.block_until_ready(lstm_actor_forward(x, params))
    assert out.shape == (B * T, action_dim)
    assert bool(jnp.all(jnp.isfinite(out)))
    err = float(jnp.max(jnp.abs(out - ref)))
    assert err < 0.1, f"kernel/reference mismatch: max abs err {err}"

    # Small chunk: exercises the cross-grid-step h/c carry and partial unroll.
    out2 = jax.block_until_ready(lstm_actor_forward(x, params, t_chunk=4, unroll=4))
    err2 = float(jnp.max(jnp.abs(out2 - ref)))
    assert err2 < 0.1, f"chunked kernel/reference mismatch: max abs err {err2}"

    print("KERNEL_OK")
</pallas_src>

<mosaic_0001>
module attributes {stable_mosaic.version = 11 : i64} {
  func.func @lstm_actor_kernel(%arg0: i32, %arg1: memref<64x16xf32, #tpu.memory_space<vmem>>, %arg2: memref<16x1024xbf16, #tpu.memory_space<vmem>>, %arg3: memref<256x1024xbf16, #tpu.memory_space<vmem>>, %arg4: memref<1x1024xf32, #tpu.memory_space<vmem>>, %arg5: memref<256x256xbf16, #tpu.memory_space<vmem>>, %arg6: memref<1x256xf32, #tpu.memory_space<vmem>>, %arg7: memref<256x128xbf16, #tpu.memory_space<vmem>>, %arg8: memref<1x128xf32, #tpu.memory_space<vmem>>, %arg9: memref<1x128xf32, #tpu.memory_space<vmem>>, %arg10: memref<64x128xf32, #tpu.memory_space<vmem>>, %arg11: memref<8x256xf32, #tpu.memory_space<vmem>>, %arg12: memref<8x256xf32, #tpu.memory_space<vmem>>, %arg13: memref<64x1024xf32, #tpu.memory_space<vmem>>, %arg14: memref<64x256xf32, #tpu.memory_space<vmem>>) attributes {dimension_semantics = [#tpu.dimension_semantics<arbitrary>], iteration_bounds = array<i64: 1>, scalar_prefetch = 0 : i64, scratch_operands = 4 : i64, tpu.core_type = #tpu.core_type<tc>, window_params = [{transform_indices = @transform_0, window_bounds = array<i64: 64, 16>}, {pipeline_mode = #tpu.pipeline_mode<synchronous>, transform_indices = @transform_1, window_bounds = array<i64: 16, 1024>}, {pipeline_mode = #tpu.pipeline_mode<synchronous>, transform_indices = @transform_2, window_bounds = array<i64: 256, 1024>}, {pipeline_mode = #tpu.pipeline_mode<synchronous>, transform_indices = @transform_3, window_bounds = array<i64: 1, 1024>}, {pipeline_mode = #tpu.pipeline_mode<synchronous>, transform_indices = @transform_4, window_bounds = array<i64: 256, 256>}, {pipeline_mode = #tpu.pipeline_mode<synchronous>, transform_indices = @transform_5, window_bounds = array<i64: 1, 256>}, {pipeline_mode = #tpu.pipeline_mode<synchronous>, transform_indices = @transform_6, window_bounds = array<i64: 256, 128>}, {pipeline_mode = #tpu.pipeline_mode<synchronous>, transform_indices = @transform_7, window_bounds = array<i64: 1, 128>}, {pipeline_mode = #tpu.pipeline_mode<synchronous>, transform_indices = @transform_8, window_bounds = array<i64: 1, 128>}, {transform_indices = @transform_9, window_bounds = array<i64: 64, 128>}]} {
    %c0_i32 = arith.constant 0 : i32
    %0 = arith.cmpi eq, %arg0, %c0_i32 : i32
    %1 = arith.extui %0 : i1 to i32
    %c0_i32_0 = arith.constant 0 : i32
    %2 = arith.cmpi ne, %1, %c0_i32_0 : i32
    scf.if %2 {
      %cst_162 = arith.constant 0.000000e+00 : f32
      %379 = vector.broadcast %cst_162 : f32 to vector<8x256xf32>
      %c0_163 = arith.constant 0 : index
      %c0_164 = arith.constant 0 : index
      %380 = vector.load %arg11[%c0_163, %c0_164] : memref<8x256xf32, #tpu.memory_space<vmem>>, vector<8x256xf32>
      tpu.vector_store %arg11[%c0_163, %c0_164], %379 {strides = array<i32>} : memref<8x256xf32, #tpu.memory_space<vmem>>, vector<8x256xf32>,
      %cst_165 = arith.constant 0.000000e+00 : f32
      %381 = vector.broadcast %cst_165 : f32 to vector<8x256xf32>
      %c0_166 = arith.constant 0 : index
      %c0_167 = arith.constant 0 : index
      %382 = vector.load %arg12[%c0_166, %c0_167] : memref<8x256xf32, #tpu.memory_space<vmem>>, vector<8x256xf32>
      tpu.vector_store %arg12[%c0_166, %c0_167], %381 {strides = array<i32>} : memref<8x256xf32, #tpu.memory_space<vmem>>, vector<8x256xf32>,
    } else {
    }
    %c0 = arith.constant 0 : index
    %c0_1 = arith.constant 0 : index
    %3 = vector.load %arg1[%c0, %c0_1] : memref<64x16xf32, #tpu.memory_space<vmem>>, vector<64x16xf32>
    %4 = arith.truncf %3 : vector<64x16xf32> to vector<64x16xbf16>
    %c0_2 = arith.constant 0 : index
    %c0_3 = arith.constant 0 : index
    %5 = vector.load %arg2[%c0_2, %c0_3] : memref<16x1024xbf16, #tpu.memory_space<vmem>>, vector<16x1024xbf16>
    %cst = arith.constant dense<0.000000e+00> : vector<64x1024xf32>
    %6 = tpu.matmul %4, %5, %cst {dimension_numbers = #tpu.dot_dimension_numbers<[1], [0], [0], [1], [0, 0, 1, 1], [], []>} : vector<64x16xbf16>, vector<16x1024xbf16>, vector<64x1024xf32> -> vector<64x1024xf32>
    %c0_4 = arith.constant 0 : index
    %c0_5 = arith.constant 0 : index
    %7 = vector.load %arg4[%c0_4, %c0_5] : memref<1x1024xf32, #tpu.memory_space<vmem>>, vector<1x1024xf32>
    %8 = vector.broadcast %7 : vector<1x1024xf32> to vector<64x1024xf32>
    %9 = arith.addf %6, %8 : vector<64x1024xf32>
    %c0_6 = arith.constant 0 : index
    %c0_7 = arith.constant 0 : index
    %10 = vector.load %arg13[%c0_6, %c0_7] : memref<64x1024xf32, #tpu.memory_space<vmem>>, vector<64x1024xf32>
    tpu.vector_store %arg13[%c0_6, %c0_7], %9 {strides = array<i32>} : memref<64x1024xf32, #tpu.memory_space<vmem>>, vector<64x1024xf32>,
    %c0_8 = arith.constant 0 : index
    %c0_9 = arith.constant 0 : index
    %11 = vector.load %arg11[%c0_8, %c0_9] : memref<8x256xf32, #tpu.memory_space<vmem>>, vector<8x256xf32>
    %c0_10 = arith.constant 0 : index
    %c0_11 = arith.constant 0 : index
    %12 = vector.load %arg12[%c0_10, %c0_11] : memref<8x256xf32, #tpu.memory_space<vmem>>, vector<8x256xf32>
    %c0_i32_12 = arith.constant 0 : i32
    %c8_i32 = arith.constant 8 : i32
    %13 = arith.muli %c0_i32_12, %c8_i32 : i32
    %14 = tpu.assume_multiple %13, 8 : i32
    %15 = arith.index_cast %14 : i32 to index
    %c0_13 = arith.constant 0 : index
    %16 = vector.load %arg13[%15, %c0_13] : memref<64x1024xf32, #tpu.memory_space<vmem>>, vector<8x1024xf32>
    %17 = arith.truncf %11 : vector<8x256xf32> to vector<8x256xbf16>
    %c0_14 = arith.constant 0 : index
    %c0_15 = arith.constant 0 : index
    %18 = vector.load %arg3[%c0_14, %c0_15] : memref<256x1024xbf16, #tpu.memory_space<vmem>>, vector<256x1024xbf16>
    %cst_16 = arith.constant dense<0.000000e+00> : vector<8x1024xf32>
    %19 = tpu.matmul %17, %18, %cst_16 {dimension_numbers = #tpu.dot_dimension_numbers<[1], [0], [0], [1], [0, 0, 1, 1], [], []>} : vector<8x256xbf16>, vector<256x1024xbf16>, vector<8x1024xf32> -> vector<8x1024xf32>
    %20 = arith.addf %16, %19 : vector<8x1024xf32>
    %21 = vector.extract_strided_slice %20 {offsets = [0, 0], sizes = [8, 256], strides = [1, 1]} : vector<8x1024xf32> to vector<8x256xf32>
    %cst_17 = arith.constant 5.000000e-01 : f32
    %22 = vector.broadcast %cst_17 : f32 to vector<8x256xf32>
    %23 = arith.mulf %22, %21 : vector<8x256xf32>
    %24 = math.tanh %23 : vector<8x256xf32>
    %cst_18 = arith.constant 1.000000e+00 : f32
    %25 = vector.broadcast %cst_18 : f32 to vector<8x256xf32>
    %26 = arith.addf %24, %25 : vector<8x256xf32>
    %cst_19 = arith.constant 5.000000e-01 : f32
    %27 = vector.broadcast %cst_19 : f32 to vector<8x256xf32>
    %28 = arith.mulf %27, %26 : vector<8x256xf32>
    %29 = vector.extract_strided_slice %20 {offsets = [0, 256], sizes = [8, 256], strides = [1, 1]} : vector<8x1024xf32> to vector<8x256xf32>
    %cst_20 = arith.constant 5.000000e-01 : f32
    %30 = vector.broadcast %cst_20 : f32 to vector<8x256xf32>
    %31 = arith.mulf %30, %29 : vector<8x256xf32>
    %32 = math.tanh %31 : vector<8x256xf32>
    %cst_21 = arith.constant 1.000000e+00 : f32
    %33 = vector.broadcast %cst_21 : f32 to vector<8x256xf32>
    %34 = arith.addf %32, %33 : vector<8x256xf32>
    %cst_22 = arith.constant 5.000000e-01 : f32
    %35 = vector.broadcast %cst_22 : f32 to vector<8x256xf32>
    %36 = arith.mulf %35, %34 : vector<8x256xf32>
    %37 = vector.extract_strided_slice %20 {offsets = [0, 512], sizes = [8, 256], strides = [1, 1]} : vector<8x1024xf32> to vector<8x256xf32>
    %38 = math.tanh %37 : vector<8x256xf32>
    %39 = vector.extract_strided_slice %20 {offsets = [0, 768], sizes = [8, 256], strides = [1, 1]} : vector<8x1024xf32> to vector<8x256xf32>
    %cst_23 = arith.constant 5.000000e-01 : f32
    %40 = vector.broadcast %cst_23 : f32 to vector<8x256xf32>
    %41 = arith.mulf %40, %39 : vector<8x256xf32>
    %42 = math.tanh %41 : vector<8x256xf32>
    %cst_24 = arith.constant 1.000000e+00 : f32
    %43 = vector.broadcast %cst_24 : f32 to vector<8x256xf32>
    %44 = arith.addf %42, %43 : vector<8x256xf32>
    %cst_25 = arith.constant 5.000000e-01 : f32
    %45 = vector.broadcast %cst_25 : f32 to vector<8x256xf32>
    %46 = arith.mulf %45, %44 : vector<8x256xf32>
    %47 = arith.mulf %36, %12 : vector<8x256xf32>
    %48 = arith.mulf %28, %38 : vector<8x256xf32>
    %49 = arith.addf %47, %48 : vector<8x256xf32>
    %50 = math.tanh %49 : vector<8x256xf32>
    %51 = arith.mulf %46, %50 : vector<8x256xf32>
    %cst_26 = arith.constant 0.000000e+00 : f32
    %52 = vector.broadcast %cst_26 : f32 to vector<8x256xf32>
    %53 = arith.maximumf %51, %52 : vector<8x256xf32>
    %54 = arith.index_cast %14 : i32 to index
    %c0_27 = arith.constant 0 : index
    %55 = vector.load %arg14[%54, %c0_27] : memref<64x256xf32, #tpu.memory_space<vmem>>, vector<8x256xf32>
    tpu.vector_store %arg14[%54, %c0_27], %53 {strides = array<i32>} : memref<64x256xf32, #tpu.memory_space<vmem>>, vector<8x256xf32>,
    %c1_i32 = arith.constant 1 : i32
    %c8_i32_28 = arith.constant 8 : i32
    %56 = arith.muli %c1_i32, %c8_i32_28 : i32
    %57 = tpu.assume_multiple %56, 8 : i32
    %58 = arith.index_cast %57 : i32 to index
    %c0_29 = arith.constant 0 : index
    %59 = vector.load %arg13[%58, %c0_29] : memref<64x1024xf32, #tpu.memory_space<vmem>>, vector<8x1024xf32>
    %60 = arith.truncf %51 : vector<8x256xf32> to vector<8x256xbf16>
    %c0_30 = arith.constant 0 : index
    %c0_31 = arith.constant 0 : index
    %61 = vector.load %arg3[%c0_30, %c0_31] : memref<256x1024xbf16, #tpu.memory_space<vmem>>, vector<256x1024xbf16>
    %cst_32 = arith.constant dense<0.000000e+00> : vector<8x1024xf32>
    %62 = tpu.matmul %60, %61, %cst_32 {dimension_numbers = #tpu.dot_dimension_numbers<[1], [0], [0], [1], [0, 0, 1, 1], [], []>} : vector<8x256xbf16>, vector<256x1024xbf16>, vector<8x1024xf32> -> vector<8x1024xf32>
    %63 = arith.addf %59, %62 : vector<8x1024xf32>
    %64 = vector.extract_strided_slice %63 {offsets = [0, 0], sizes = [8, 256], strides = [1, 1]} : vector<8x1024xf32> to vector<8x256xf32>
    %cst_33 = arith.constant 5.000000e-01 : f32
    %65 = vector.broadcast %cst_33 : f32 to vector<8x256xf32>
    %66 = arith.mulf %65, %64 : vector<8x256xf32>
    %67 = math.tanh %66 : vector<8x256xf32>
    %cst_34 = arith.constant 1.000000e+00 : f32
    %68 = vector.broadcast %cst_34 : f32 to vector<8x256xf32>
    %69 = arith.addf %67, %68 : vector<8x256xf32>
    %cst_35 = arith.constant 5.000000e-01 : f32
    %70 = vector.broadcast %cst_35 : f32 to vector<8x256xf32>
    %71 = arith.mulf %70, %69 : vector<8x256xf32>
    %72 = vector.extract_strided_slice %63 {offsets = [0, 256], sizes = [8, 256], strides = [1, 1]} : vector<8x1024xf32> to vector<8x256xf32>
    %cst_36 = arith.constant 5.000000e-01 : f32
    %73 = vector.broadcast %cst_36 : f32 to vector<8x256xf32>
    %74 = arith.mulf %73, %72 : vector<8x256xf32>
    %75 = math.tanh %74 : vector<8x256xf32>
    %cst_37 = arith.constant 1.000000e+00 : f32
    %76 = vector.broadcast %cst_37 : f32 to vector<8x256xf32>
    %77 = arith.addf %75, %76 : vector<8x256xf32>
    %cst_38 = arith.constant 5.000000e-01 : f32
    %78 = vector.broadcast %cst_38 : f32 to vector<8x256xf32>
    %79 = arith.mulf %78, %77 : vector<8x256xf32>
    %80 = vector.extract_strided_slice %63 {offsets = [0, 512], sizes = [8, 256], strides = [1, 1]} : vector<8x1024xf32> to vector<8x256xf32>
    %81 = math.tanh %80 : vector<8x256xf32>
    %82 = vector.extract_strided_slice %63 {offsets = [0, 768], sizes = [8, 256], strides = [1, 1]} : vector<8x1024xf32> to vector<8x256xf32>
    %cst_39 = arith.constant 5.000000e-01 : f32
    %83 = vector.broadcast %cst_39 : f32 to vector<8x256xf32>
    %84 = arith.mulf %83, %82 : vector<8x256xf32>
    %85 = math.tanh %84 : vector<8x256xf32>
    %cst_40 = arith.constant 1.000000e+00 : f32
    %86 = vector.broadcast %cst_40 : f32 to vector<8x256xf32>
    %87 = arith.addf %85, %86 : vector<8x256xf32>
    %cst_41 = arith.constant 5.000000e-01 : f32
    %88 = vector.broadcast %cst_41 : f32 to vector<8x256xf32>
    %89 = arith.mulf %88, %87 : vector<8x256xf32>
    %90 = arith.mulf %79, %49 : vector<8x256xf32>
    %91 = arith.mulf %71, %81 : vector<8x256xf32>
    %92 = arith.addf %90, %91 : vector<8x256xf32>
    %93 = math.tanh %92 : vector<8x256xf32>
    %94 = arith.mulf %89, %93 : vector<8x256xf32>
    %cst_42 = arith.constant 0.000000e+00 : f32
    %95 = vector.broadcast %cst_42 : f32 to vector<8x256xf32>
    %96 = arith.maximumf %94, %95 : vector<8x256xf32>
    %97 = arith.index_cast %57 : i32 to index
    %c0_43 = arith.constant 0 : index
    %98 = vector.load %arg14[%97, %c0_43] : memref<64x256xf32, #tpu.memory_space<vmem>>, vector<8x256xf32>
    tpu.vector_store %arg14[%97, %c0_43], %96 {strides = array<i32>} : memref<64x256xf32, #tpu.memory_space<vmem>>, vector<8x256xf32>,
    %c2_i32 = arith.constant 2 : i32
    %c8_i32_44 = arith.constant 8 : i32
    %99 = arith.muli %c2_i32, %c8_i32_44 : i32
    %100 = tpu.assume_multiple %99, 8 : i32
    %101 = arith.index_cast %100 : i32 to index
    %c0_45 = arith.constant 0 : index
    %102 = vector.load %arg13[%101, %c0_45] : memref<64x1024xf32, #tpu.memory_space<vmem>>, vector<8x1024xf32>
    %103 = arith.truncf %94 : vector<8x256xf32> to vector<8x256xbf16>
    %c0_46 = arith.constant 0 : index
    %c0_47 = arith.constant 0 : index
    %104 = vector.load %arg3[%c0_46, %c0_47] : memref<256x1024xbf16, #tpu.memory_space<vmem>>, vector<256x1024xbf16>
    %cst_48 = arith.constant dense<0.000000e+00> : vector<8x1024xf32>
    %105 = tpu.matmul %103, %104, %cst_48 {dimension_numbers = #tpu.dot_dimension_numbers<[1], [0], [0], [1], [0, 0, 1, 1], [], []>} : vector<8x256xbf16>, vector<256x1024xbf16>, vector<8x1024xf32> -> vector<8x1024xf32>
    %106 = arith.addf %102, %105 : vector<8x1024xf32>
    %107 = vector.extract_strided_slice %106 {offsets = [0, 0], sizes = [8, 256], strides = [1, 1]} : vector<8x1024xf32> to vector<8x256xf32>
    %cst_49 = arith.constant 5.000000e-01 : f32
    %108 = vector.broadcast %cst_49 : f32 to vector<8x256xf32>
    %109 = arith.mulf %108, %107 : vector<8x256xf32>
    %110 = math.tanh %109 : vector<8x256xf32>
    %cst_50 = arith.constant 1.000000e+00 : f32
    %111 = vector.broadcast %cst_50 : f32 to vector<8x256xf32>
    %112 = arith.addf %110, %111 : vector<8x256xf32>
    %cst_51 = arith.constant 5.000000e-01 : f32
    %113 = vector.broadcast %cst_51 : f32 to vector<8x256xf32>
    %114 = arith.mulf %113, %112 : vector<8x256xf32>
    %115 = vector.extract_strided_slice %106 {offsets = [0, 256], sizes = [8, 256], strides = [1, 1]} : vector<8x1024xf32> to vector<8x256xf32>
    %cst_52 = arith.constant 5.000000e-01 : f32
    %116 = vector.broadcast %cst_52 : f32 to vector<8x256xf32>
    %117 = arith.mulf %116, %115 : vector<8x256xf32>
    %118 = math.tanh %117 : vector<8x256xf32>
    %cst_53 = arith.constant 1.000000e+00 : f32
    %119 = vector.broadcast %cst_53 : f32 to vector<8x256xf32>
    %120 = arith.addf %118, %119 : vector<8x256xf32>
    %cst_54 = arith.constant 5.000000e-01 : f32
    %121 = vector.broadcast %cst_54 : f32 to vector<8x256xf32>
    %122 = arith.mulf %121, %120 : vector<8x256xf32>
    %123 = vector.extract_strided_slice %106 {offsets = [0, 512], sizes = [8, 256], strides = [1, 1]} : vector<8x1024xf32> to vector<8x256xf32>
    %124 = math.tanh %123 : vector<8x256xf32>
    %125 = vector.extract_strided_slice %106 {offsets = [0, 768], sizes = [8, 256], strides = [1, 1]} : vector<8x1024xf32> to vector<8x256xf32>
    %cst_55 = arith.constant 5.000000e-01 : f32
    %126 = vector.broadcast %cst_55 : f32 to vector<8x256xf32>
    %127 = arith.mulf %126, %125 : vector<8x256xf32>
    %128 = math.tanh %127 : vector<8x256xf32>
    %cst_56 = arith.constant 1.000000e+00 : f32
    %129 = vector.broadcast %cst_56 : f32 to vector<8x256xf32>
    %130 = arith.addf %128, %129 : vector<8x256xf32>
    %cst_57 = arith.constant 5.000000e-01 : f32
    %131 = vector.broadcast %cst_57 : f32 to vector<8x256xf32>
    %132 = arith.mulf %131, %130 : vector<8x256xf32>
    %133 = arith.mulf %122, %92 : vector<8x256xf32>
    %134 = arith.mulf %114, %124 : vector<8x256xf32>
    %135 = arith.addf %133, %134 : vector<8x256xf32>
    %136 = math.tanh %135 : vector<8x256xf32>
    %137 = arith.mulf %132, %136 : vector<8x256xf32>
    %cst_58 = arith.constant 0.000000e+00 : f32
    %138 = vector.broadcast %cst_58 : f32 to vector<8x256xf32>
    %139 = arith.maximumf %137, %138 : vector<8x256xf32>
    %140 = arith.index_cast %100 : i32 to index
    %c0_59 = arith.constant 0 : index
    %141 = vector.load %arg14[%140, %c0_59] : memref<64x256xf32, #tpu.memory_space<vmem>>, vector<8x256xf32>
    tpu.vector_store %arg14[%140, %c0_59], %139 {strides = array<i32>} : memref<64x256xf32, #tpu.memory_space<vmem>>, vector<8x256xf32>,
    %c3_i32 = arith.constant 3 : i32
    %c8_i32_60 = arith.constant 8 : i32
    %142 = arith.muli %c3_i32, %c8_i32_60 : i32
    %143 = tpu.assume_multiple %142, 8 : i32
    %144 = arith.index_cast %143 : i32 to index
    %c0_61 = arith.constant 0 : index
    %145 = vector.load %arg13[%144, %c0_61] : memref<64x1024xf32, #tpu.memory_space<vmem>>, vector<8x1024xf32>
    %146 = arith.truncf %137 : vector<8x256xf32> to vector<8x256xbf16>
    %c0_62 = arith.constant 0 : index
    %c0_63 = arith.constant 0 : index
    %147 = vector.load %arg3[%c0_62, %c0_63] : memref<256x1024xbf16, #tpu.memory_space<vmem>>, vector<256x1024xbf16>
    %cst_64 = arith.constant dense<0.000000e+00> : vector<8x1024xf32>
    %148 = tpu.matmul %146, %147, %cst_64 {dimension_numbers = #tpu.dot_dimension_numbers<[1], [0], [0], [1], [0, 0, 1, 1], [], []>} : vector<8x256xbf16>, vector<256x1024xbf16>, vector<8x1024xf32> -> vector<8x1024xf32>
    %149 = arith.addf %145, %148 : vector<8x1024xf32>
    %150 = vector.extract_strided_slice %149 {offsets = [0, 0], sizes = [8, 256], strides = [1, 1]} : vector<8x1024xf32> to vector<8x256xf32>
    %cst_65 = arith.constant 5.000000e-01 : f32
    %151 = vector.broadcast %cst_65 : f32 to vector<8x256xf32>
    %152 = arith.mulf %151, %150 : vector<8x256xf32>
    %153 = math.tanh %152 : vector<8x256xf32>
    %cst_66 = arith.constant 1.000000e+00 : f32
    %154 = vector.broadcast %cst_66 : f32 to vector<8x256xf32>
    %155 = arith.addf %153, %154 : vector<8x256xf32>
    %cst_67 = arith.constant 5.000000e-01 : f32
    %156 = vector.broadcast %cst_67 : f32 to vector<8x256xf32>
    %157 = arith.mulf %156, %155 : vector<8x256xf32>
    %158 = vector.extract_strided_slice %149 {offsets = [0, 256], sizes = [8, 256], strides = [1, 1]} : vector<8x1024xf32> to vector<8x256xf32>
    %cst_68 = arith.constant 5.000000e-01 : f32
    %159 = vector.broadcast %cst_68 : f32 to vector<8x256xf32>
    %160 = arith.mulf %159, %158 : vector<8x256xf32>
    %161 = math.tanh %160 : vector<8x256xf32>
    %cst_69 = arith.constant 1.000000e+00 : f32
    %162 = vector.broadcast %cst_69 : f32 to vector<8x256xf32>
    %163 = arith.addf %161, %162 : vector<8x256xf32>
    %cst_70 = arith.constant 5.000000e-01 : f32
    %164 = vector.broadcast %cst_70 : f32 to vector<8x256xf32>
    %165 = arith.mulf %164, %163 : vector<8x256xf32>
    %166 = vector.extract_strided_slice %149 {offsets = [0, 512], sizes = [8, 256], strides = [1, 1]} : vector<8x1024xf32> to vector<8x256xf32>
    %167 = math.tanh %166 : vector<8x256xf32>
    %168 = vector.extract_strided_slice %149 {offsets = [0, 768], sizes = [8, 256], strides = [1, 1]} : vector<8x1024xf32> to vector<8x256xf32>
    %cst_71 = arith.constant 5.000000e-01 : f32
    %169 = vector.broadcast %cst_71 : f32 to vector<8x256xf32>
    %170 = arith.mulf %169, %168 : vector<8x256xf32>
    %171 = math.tanh %170 : vector<8x256xf32>
    %cst_72 = arith.constant 1.000000e+00 : f32
    %172 = vector.broadcast %cst_72 : f32 to vector<8x256xf32>
    %173 = arith.addf %171, %172 : vector<8x256xf32>
    %cst_73 = arith.constant 5.000000e-01 : f32
    %174 = vector.broadcast %cst_73 : f32 to vector<8x256xf32>
    %175 = arith.mulf %174, %173 : vector<8x256xf32>
    %176 = arith.mulf %165, %135 : vector<8x256xf32>
    %177 = arith.mulf %157, %167 : vector<8x256xf32>
    %178 = arith.addf %176, %177 : vector<8x256xf32>
    %179 = math.tanh %178 : vector<8x256xf32>
    %180 = arith.mulf %175, %179 : vector<8x256xf32>
    %cst_74 = arith.constant 0.000000e+00 : f32
    %181 = vector.broadcast %cst_74 : f32 to vector<8x256xf32>
    %182 = arith.maximumf %180, %181 : vector<8x256xf32>
    %183 = arith.index_cast %143 : i32 to index
    %c0_75 = arith.constant 0 : index
    %184 = vector.load %arg14[%183, %c0_75] : memref<64x256xf32, #tpu.memory_space<vmem>>, vector<8x256xf32>
    tpu.vector_store %arg14[%183, %c0_75], %182 {strides = array<i32>} : memref<64x256xf32, #tpu.memory_space<vmem>>, vector<8x256xf32>,
    %c4_i32 = arith.constant 4 : i32
    %c8_i32_76 = arith.constant 8 : i32
    %185 = arith.muli %c4_i32, %c8_i32_76 : i32
    %186 = tpu.assume_multiple %185, 8 : i32
    %187 = arith.index_cast %186 : i32 to index
    %c0_77 = arith.constant 0 : index
    %188 = vector.load %arg13[%187, %c0_77] : memref<64x1024xf32, #tpu.memory_space<vmem>>, vector<8x1024xf32>
    %189 = arith.truncf %180 : vector<8x256xf32> to vector<8x256xbf16>
    %c0_78 = arith.constant 0 : index
    %c0_79 = arith.constant 0 : index
    %190 = vector.load %arg3[%c0_78, %c0_79] : memref<256x1024xbf16, #tpu.memory_space<vmem>>, vector<256x1024xbf16>
    %cst_80 = arith.constant dense<0.000000e+00> : vector<8x1024xf32>
    %191 = tpu.matmul %189, %190, %cst_80 {dimension_numbers = #tpu.dot_dimension_numbers<[1], [0], [0], [1], [0, 0, 1, 1], [], []>} : vector<8x256xbf16>, vector<256x1024xbf16>, vector<8x1024xf32> -> vector<8x1024xf32>
    %192 = arith.addf %188, %191 : vector<8x1024xf32>
    %193 = vector.extract_strided_slice %192 {offsets = [0, 0], sizes = [8, 256], strides = [1, 1]} : vector<8x1024xf32> to vector<8x256xf32>
    %cst_81 = arith.constant 5.000000e-01 : f32
    %194 = vector.broadcast %cst_81 : f32 to vector<8x256xf32>
    %195 = arith.mulf %194, %193 : vector<8x256xf32>
    %196 = math.tanh %195 : vector<8x256xf32>
    %cst_82 = arith.constant 1.000000e+00 : f32
    %197 = vector.broadcast %cst_82 : f32 to vector<8x256xf32>
    %198 = arith.addf %196, %197 : vector<8x256xf32>
    %cst_83 = arith.constant 5.000000e-01 : f32
    %199 = vector.broadcast %cst_83 : f32 to vector<8x256xf32>
    %200 = arith.mulf %199, %198 : vector<8x256xf32>
    %201 = vector.extract_strided_slice %192 {offsets = [0, 256], sizes = [8, 256], strides = [1, 1]} : vector<8x1024xf32> to vector<8x256xf32>
    %cst_84 = arith.constant 5.000000e-01 : f32
    %202 = vector.broadcast %cst_84 : f32 to vector<8x256xf32>
    %203 = arith.mulf %202, %201 : vector<8x256xf32>
    %204 = math.tanh %203 : vector<8x256xf32>
    %cst_85 = arith.constant 1.000000e+00 : f32
    %205 = vector.broadcast %cst_85 : f32 to vector<8x256xf32>
    %206 = arith.addf %204, %205 : vector<8x256xf32>
    %cst_86 = arith.constant 5.000000e-01 : f32
    %207 = vector.broadcast %cst_86 : f32 to vector<8x256xf32>
    %208 = arith.mulf %207, %206 : vector<8x256xf32>
    %209 = vector.extract_strided_slice %192 {offsets = [0, 512], sizes = [8, 256], strides = [1, 1]} : vector<8x1024xf32> to vector<8x256xf32>
    %210 = math.tanh %209 : vector<8x256xf32>
    %211 = vector.extract_strided_slice %192 {offsets = [0, 768], sizes = [8, 256], strides = [1, 1]} : vector<8x1024xf32> to vector<8x256xf32>
    %cst_87 = arith.constant 5.000000e-01 : f32
    %212 = vector.broadcast %cst_87 : f32 to vector<8x256xf32>
    %213 = arith.mulf %212, %211 : vector<8x256xf32>
    %214 = math.tanh %213 : vector<8x256xf32>
    %cst_88 = arith.constant 1.000000e+00 : f32
    %215 = vector.broadcast %cst_88 : f32 to vector<8x256xf32>
    %216 = arith.addf %214, %215 : vector<8x256xf32>
    %cst_89 = arith.constant 5.000000e-01 : f32
    %217 = vector.broadcast %cst_89 : f32 to vector<8x256xf32>
    %218 = arith.mulf %217, %216 : vector<8x256xf32>
    %219 = arith.mulf %208, %178 : vector<8x256xf32>
    %220 = arith.mulf %200, %210 : vector<8x256xf32>
    %221 = arith.addf %219, %220 : vector<8x256xf32>
    %222 = math.tanh %221 : vector<8x256xf32>
    %223 = arith.mulf %218, %222 : vector<8x256xf32>
    %cst_90 = arith.constant 0.000000e+00 : f32
    %224 = vector.broadcast %cst_90 : f32 to vector<8x256xf32>
    %225 = arith.maximumf %223, %224 : vector<8x256xf32>
    %226 = arith.index_cast %186 : i32 to index
    %c0_91 = arith.constant 0 : index
    %227 = vector.load %arg14[%226, %c0_91] : memref<64x256xf32, #tpu.memory_space<vmem>>, vector<8x256xf32>
    tpu.vector_store %arg14[%226, %c0_91], %225 {strides = array<i32>} : memref<64x256xf32, #tpu.memory_space<vmem>>, vector<8x256xf32>,
    %c5_i32 = arith.constant 5 : i32
    %c8_i32_92 = arith.constant 8 : i32
    %228 = arith.muli %c5_i32, %c8_i32_92 : i32
    %229 = tpu.assume_multiple %228, 8 : i32
    %230 = arith.index_cast %229 : i32 to index
    %c0_93 = arith.constant 0 : index
    %231 = vector.load %arg13[%230, %c0_93] : memref<64x1024xf32, #tpu.memory_space<vmem>>, vector<8x1024xf32>
    %232 = arith.truncf %223 : vector<8x256xf32> to vector<8x256xbf16>
    %c0_94 = arith.constant 0 : index
    %c0_95 = arith.constant 0 : index
    %233 = vector.load %arg3[%c0_94, %c0_95] : memref<256x1024xbf16, #tpu.memory_space<vmem>>, vector<256x1024xbf16>
    %cst_96 = arith.constant dense<0.000000e+00> : vector<8x1024xf32>
    %234 = tpu.matmul %232, %233, %cst_96 {dimension_numbers = #tpu.dot_dimension_numbers<[1], [0], [0], [1], [0, 0, 1, 1], [], []>} : vector<8x256xbf16>, vector<256x1024xbf16>, vector<8x1024xf32> -> vector<8x1024xf32>
    %235 = arith.addf %231, %234 : vector<8x1024xf32>
    %236 = vector.extract_strided_slice %235 {offsets = [0, 0], sizes = [8, 256], strides = [1, 1]} : vector<8x1024xf32> to vector<8x256xf32>
    %cst_97 = arith.constant 5.000000e-01 : f32
    %237 = vector.broadcast %cst_97 : f32 to vector<8x256xf32>
    %238 = arith.mulf %237, %236 : vector<8x256xf32>
    %239 = math.tanh %238 : vector<8x256xf32>
    %cst_98 = arith.constant 1.000000e+00 : f32
    %240 = vector.broadcast %cst_98 : f32 to vector<8x256xf32>
    %241 = arith.addf %239, %240 : vector<8x256xf32>
    %cst_99 = arith.constant 5.000000e-01 : f32
    %242 = vector.broadcast %cst_99 : f32 to vector<8x256xf32>
    %243 = arith.mulf %242, %241 : vector<8x256xf32>
    %244 = vector.extract_strided_slice %235 {offsets = [0, 256], sizes = [8, 256], strides = [1, 1]} : vector<8x1024xf32> to vector<8x256xf32>
    %cst_100 = arith.constant 5.000000e-01 : f32
    %245 = vector.broadcast %cst_100 : f32 to vector<8x256xf32>
    %246 = arith.mulf %245, %244 : vector<8x256xf32>
    %247 = math.tanh %246 : vector<8x256xf32>
    %cst_101 = arith.constant 1.000000e+00 : f32
    %248 = vector.broadcast %cst_101 : f32 to vector<8x256xf32>
    %249 = arith.addf %247, %248 : vector<8x256xf32>
    %cst_102 = arith.constant 5.000000e-01 : f32
    %250 = vector.broadcast %cst_102 : f32 to vector<8x256xf32>
    %251 = arith.mulf %250, %249 : vector<8x256xf32>
    %252 = vector.extract_strided_slice %235 {offsets = [0, 512], sizes = [8, 256], strides = [1, 1]} : vector<8x1024xf32> to vector<8x256xf32>
    %253 = math.tanh %252 : vector<8x256xf32>
    %254 = vector.extract_strided_slice %235 {offsets = [0, 768], sizes = [8, 256], strides = [1, 1]} : vector<8x1024xf32> to vector<8x256xf32>
    %cst_103 = arith.constant 5.000000e-01 : f32
    %255 = vector.broadcast %cst_103 : f32 to vector<8x256xf32>
    %256 = arith.mulf %255, %254 : vector<8x256xf32>
    %257 = math.tanh %256 : vector<8x256xf32>
    %cst_104 = arith.constant 1.000000e+00 : f32
    %258 = vector.broadcast %cst_104 : f32 to vector<8x256xf32>
    %259 = arith.addf %257, %258 : vector<8x256xf32>
    %cst_105 = arith.constant 5.000000e-01 : f32
    %260 = vector.broadcast %cst_105 : f32 to vector<8x256xf32>
    %261 = arith.mulf %260, %259 : vector<8x256xf32>
    %262 = arith.mulf %251, %221 : vector<8x256xf32>
    %263 = arith.mulf %243, %253 : vector<8x256xf32>
    %264 = arith.addf %262, %263 : vector<8x256xf32>
    %265 = math.tanh %264 : vector<8x256xf32>
    %266 = arith.mulf %261, %265 : vector<8x256xf32>
    %cst_106 = arith.constant 0.000000e+00 : f32
    %267 = vector.broadcast %cst_106 : f32 to vector<8x256xf32>
    %268 = arith.maximumf %266, %267 : vector<8x256xf32>
    %269 = arith.index_cast %229 : i32 to index
    %c0_107 = arith.constant 0 : index
    %270 = vector.load %arg14[%269, %c0_107] : memref<64x256xf32, #tpu.memory_space<vmem>>, vector<8x256xf32>
    tpu.vector_store %arg14[%269, %c0_107], %268 {strides = array<i32>} : memref<64x256xf32, #tpu.memory_space<vmem>>, vector<8x256xf32>,
    %c6_i32 = arith.constant 6 : i32
    %c8_i32_108 = arith.constant 8 : i32
    %271 = arith.muli %c6_i32, %c8_i32_108 : i32
    %272 = tpu.assume_multiple %271, 8 : i32
    %273 = arith.index_cast %272 : i32 to index
    %c0_109 = arith.constant 0 : index
    %274 = vector.load %arg13[%273, %c0_109] : memref<64x1024xf32, #tpu.memory_space<vmem>>, vector<8x1024xf32>
    %275 = arith.truncf %266 : vector<8x256xf32> to vector<8x256xbf16>
    %c0_110 = arith.constant 0 : index
    %c0_111 = arith.constant 0 : index
    %276 = vector.load %arg3[%c0_110, %c0_111] : memref<256x1024xbf16, #tpu.memory_space<vmem>>, vector<256x1024xbf16>
    %cst_112 = arith.constant dense<0.000000e+00> : vector<8x1024xf32>
    %277 = tpu.matmul %275, %276, %cst_112 {dimension_numbers = #tpu.dot_dimension_numbers<[1], [0], [0], [1], [0, 0, 1, 1], [], []>} : vector<8x256xbf16>, vector<256x1024xbf16>, vector<8x1024xf32> -> vector<8x1024xf32>
    %278 = arith.addf %274, %277 : vector<8x1024xf32>
    %279 = vector.extract_strided_slice %278 {offsets = [0, 0], sizes = [8, 256], strides = [1, 1]} : vector<8x1024xf32> to vector<8x256xf32>
    %cst_113 = arith.constant 5.000000e-01 : f32
    %280 = vector.broadcast %cst_113 : f32 to vector<8x256xf32>
    %281 = arith.mulf %280, %279 : vector<8x256xf32>
    %282 = math.tanh %281 : vector<8x256xf32>
    %cst_114 = arith.constant 1.000000e+00 : f32
    %283 = vector.broadcast %cst_114 : f32 to vector<8x256xf32>
    %284 = arith.addf %282, %283 : vector<8x256xf32>
    %cst_115 = arith.constant 5.000000e-01 : f32
    %285 = vector.broadcast %cst_115 : f32 to vector<8x256xf32>
    %286 = arith.mulf %285, %284 : vector<8x256xf32>
    %287 = vector.extract_strided_slice %278 {offsets = [0, 256], sizes = [8, 256], strides = [1, 1]} : vector<8x1024xf32> to vector<8x256xf32>
    %cst_116 = arith.constant 5.000000e-01 : f32
    %288 = vector.broadcast %cst_116 : f32 to vector<8x256xf32>
    %289 = arith.mulf %288, %287 : vector<8x256xf32>
    %290 = math.tanh %289 : vector<8x256xf32>
    %cst_117 = arith.constant 1.000000e+00 : f32
    %291 = vector.broadcast %cst_117 : f32 to vector<8x256xf32>
    %292 = arith.addf %290, %291 : vector<8x256xf32>
    %cst_118 = arith.constant 5.000000e-01 : f32
    %293 = vector.broadcast %cst_118 : f32 to vector<8x256xf32>
    %294 = arith.mulf %293, %292 : vector<8x256xf32>
    %295 = vector.extract_strided_slice %278 {offsets = [0, 512], sizes = [8, 256], strides = [1, 1]} : vector<8x1024xf32> to vector<8x256xf32>
    %296 = math.tanh %295 : vector<8x256xf32>
    %297 = vector.extract_strided_slice %278 {offsets = [0, 768], sizes = [8, 256], strides = [1, 1]} : vector<8x1024xf32> to vector<8x256xf32>
    %cst_119 = arith.constant 5.000000e-01 : f32
    %298 = vector.broadcast %cst_119 : f32 to vector<8x256xf32>
    %299 = arith.mulf %298, %297 : vector<8x256xf32>
    %300 = math.tanh %299 : vector<8x256xf32>
    %cst_120 = arith.constant 1.000000e+00 : f32
    %301 = vector.broadcast %cst_120 : f32 to vector<8x256xf32>
    %302 = arith.addf %300, %301 : vector<8x256xf32>
    %cst_121 = arith.constant 5.000000e-01 : f32
    %303 = vector.broadcast %cst_121 : f32 to vector<8x256xf32>
    %304 = arith.mulf %303, %302 : vector<8x256xf32>
    %305 = arith.mulf %294, %264 : vector<8x256xf32>
    %306 = arith.mulf %286, %296 : vector<8x256xf32>
    %307 = arith.addf %305, %306 : vector<8x256xf32>
    %308 = math.tanh %307 : vector<8x256xf32>
    %309 = arith.mulf %304, %308 : vector<8x256xf32>
    %cst_122 = arith.constant 0.000000e+00 : f32
    %310 = vector.broadcast %cst_122 : f32 to vector<8x256xf32>
    %311 = arith.maximumf %309, %310 : vector<8x256xf32>
    %312 = arith.index_cast %272 : i32 to index
    %c0_123 = arith.constant 0 : index
    %313 = vector.load %arg14[%312, %c0_123] : memref<64x256xf32, #tpu.memory_space<vmem>>, vector<8x256xf32>
    tpu.vector_store %arg14[%312, %c0_123], %311 {strides = array<i32>} : memref<64x256xf32, #tpu.memory_space<vmem>>, vector<8x256xf32>,
    %c7_i32 = arith.constant 7 : i32
    %c8_i32_124 = arith.constant 8 : i32
    %314 = arith.muli %c7_i32, %c8_i32_124 : i32
    %315 = tpu.assume_multiple %314, 8 : i32
    %316 = arith.index_cast %315 : i32 to index
    %c0_125 = arith.constant 0 : index
    %317 = vector.load %arg13[%316, %c0_125] : memref<64x1024xf32, #tpu.memory_space<vmem>>, vector<8x1024xf32>
    %318 = arith.truncf %309 : vector<8x256xf32> to vector<8x256xbf16>
    %c0_126 = arith.constant 0 : index
    %c0_127 = arith.constant 0 : index
    %319 = vector.load %arg3[%c0_126, %c0_127] : memref<256x1024xbf16, #tpu.memory_space<vmem>>, vector<256x1024xbf16>
    %cst_128 = arith.constant dense<0.000000e+00> : vector<8x1024xf32>
    %320 = tpu.matmul %318, %319, %cst_128 {dimension_numbers = #tpu.dot_dimension_numbers<[1], [0], [0], [1], [0, 0, 1, 1], [], []>} : vector<8x256xbf16>, vector<256x1024xbf16>, vector<8x1024xf32> -> vector<8x1024xf32>
    %321 = arith.addf %317, %320 : vector<8x1024xf32>
    %322 = vector.extract_strided_slice %321 {offsets = [0, 0], sizes = [8, 256], strides = [1, 1]} : vector<8x1024xf32> to vector<8x256xf32>
    %cst_129 = arith.constant 5.000000e-01 : f32
    %323 = vector.broadcast %cst_129 : f32 to vector<8x256xf32>
    %324 = arith.mulf %323, %322 : vector<8x256xf32>
    %325 = math.tanh %324 : vector<8x256xf32>
    %cst_130 = arith.constant 1.000000e+00 : f32
    %326 = vector.broadcast %cst_130 : f32 to vector<8x256xf32>
    %327 = arith.addf %325, %326 : vector<8x256xf32>
    %cst_131 = arith.constant 5.000000e-01 : f32
    %328 = vector.broadcast %cst_131 : f32 to vector<8x256xf32>
    %329 = arith.mulf %328, %327 : vector<8x256xf32>
    %330 = vector.extract_strided_slice %321 {offsets = [0, 256], sizes = [8, 256], strides = [1, 1]} : vector<8x1024xf32> to vector<8x256xf32>
    %cst_132 = arith.constant 5.000000e-01 : f32
    %331 = vector.broadcast %cst_132 : f32 to vector<8x256xf32>
    %332 = arith.mulf %331, %330 : vector<8x256xf32>
    %333 = math.tanh %332 : vector<8x256xf32>
    %cst_133 = arith.constant 1.000000e+00 : f32
    %334 = vector.broadcast %cst_133 : f32 to vector<8x256xf32>
    %335 = arith.addf %333, %334 : vector<8x256xf32>
    %cst_134 = arith.constant 5.000000e-01 : f32
    %336 = vector.broadcast %cst_134 : f32 to vector<8x256xf32>
    %337 = arith.mulf %336, %335 : vector<8x256xf32>
    %338 = vector.extract_strided_slice %321 {offsets = [0, 512], sizes = [8, 256], strides = [1, 1]} : vector<8x1024xf32> to vector<8x256xf32>
    %339 = math.tanh %338 : vector<8x256xf32>
    %340 = vector.extract_strided_slice %321 {offsets = [0, 768], sizes = [8, 256], strides = [1, 1]} : vector<8x1024xf32> to vector<8x256xf32>
    %cst_135 = arith.constant 5.000000e-01 : f32
    %341 = vector.broadcast %cst_135 : f32 to vector<8x256xf32>
    %342 = arith.mulf %341, %340 : vector<8x256xf32>
    %343 = math.tanh %342 : vector<8x256xf32>
    %cst_136 = arith.constant 1.000000e+00 : f32
    %344 = vector.broadcast %cst_136 : f32 to vector<8x256xf32>
    %345 = arith.addf %343, %344 : vector<8x256xf32>
    %cst_137 = arith.constant 5.000000e-01 : f32
    %346 = vector.broadcast %cst_137 : f32 to vector<8x256xf32>
    %347 = arith.mulf %346, %345 : vector<8x256xf32>
    %348 = arith.mulf %337, %307 : vector<8x256xf32>
    %349 = arith.mulf %329, %339 : vector<8x256xf32>
    %350 = arith.addf %348, %349 : vector<8x256xf32>
    %351 = math.tanh %350 : vector<8x256xf32>
    %352 = arith.mulf %347, %351 : vector<8x256xf32>
    %cst_138 = arith.constant 0.000000e+00 : f32
    %353 = vector.broadcast %cst_138 : f32 to vector<8x256xf32>
    %354 = arith.maximumf %352, %353 : vector<8x256xf32>
    %355 = arith.index_cast %315 : i32 to index
    %c0_139 = arith.constant 0 : index
    %356 = vector.load %arg14[%355, %c0_139] : memref<64x256xf32, #tpu.memory_space<vmem>>, vector<8x256xf32>
    tpu.vector_store %arg14[%355, %c0_139], %354 {strides = array<i32>} : memref<64x256xf32, #tpu.memory_space<vmem>>, vector<8x256xf32>,
    %c8_i32_140 = arith.constant 8 : i32
    %c0_141 = arith.constant 0 : index
    %c0_142 = arith.constant 0 : index
    %357 = vector.load %arg11[%c0_141, %c0_142] : memref<8x256xf32, #tpu.memory_space<vmem>>, vector<8x256xf32>
    tpu.vector_store %arg11[%c0_141, %c0_142], %352 {strides = array<i32>} : memref<8x256xf32, #tpu.memory_space<vmem>>, vector<8x256xf32>,
    %c0_143 = arith.constant 0 : index
    %c0_144 = arith.constant 0 : index
    %358 = vector.load %arg12[%c0_143, %c0_144] : memref<8x256xf32, #tpu.memory_space<vmem>>, vector<8x256xf32>
    tpu.vector_store %arg12[%c0_143, %c0_144], %350 {strides = array<i32>} : memref<8x256xf32, #tpu.memory_space<vmem>>, vector<8x256xf32>,
    %c0_145 = arith.constant 0 : index
    %c0_146 = arith.constant 0 : index
    %359 = vector.load %arg14[%c0_145, %c0_146] : memref<64x256xf32, #tpu.memory_space<vmem>>, vector<64x256xf32>
    %360 = arith.truncf %359 : vector<64x256xf32> to vector<64x256xbf16>
    %c0_147 = arith.constant 0 : index
    %c0_148 = arith.constant 0 : index
    %361 = vector.load %arg5[%c0_147, %c0_148] : memref<256x256xbf16, #tpu.memory_space<vmem>>, vector<256x256xbf16>
    %cst_149 = arith.constant dense<0.000000e+00> : vector<64x256xf32>
    %362 = tpu.matmul %360, %361, %cst_149 {dimension_numbers = #tpu.dot_dimension_numbers<[1], [0], [0], [1], [0, 0, 1, 1], [], []>} : vector<64x256xbf16>, vector<256x256xbf16>, vector<64x256xf32> -> vector<64x256xf32>
    %c0_150 = arith.constant 0 : index
    %c0_151 = arith.constant 0 : index
    %363 = vector.load %arg6[%c0_150, %c0_151] : memref<1x256xf32, #tpu.memory_space<vmem>>, vector<1x256xf32>
    %364 = vector.broadcast %363 : vector<1x256xf32> to vector<64x256xf32>
    %365 = arith.addf %362, %364 : vector<64x256xf32>
    %cst_152 = arith.constant 0.000000e+00 : f32
    %366 = vector.broadcast %cst_152 : f32 to vector<64x256xf32>
    %367 = arith.maximumf %365, %366 : vector<64x256xf32>
    %368 = arith.truncf %367 : vector<64x256xf32> to vector<64x256xbf16>
    %c0_153 = arith.constant 0 : index
    %c0_154 = arith.constant 0 : index
    %369 = vector.load %arg7[%c0_153, %c0_154] : memref<256x128xbf16, #tpu.memory_space<vmem>>, vector<256x128xbf16>
    %cst_155 = arith.constant dense<0.000000e+00> : vector<64x128xf32>
    %370 = tpu.matmul %368, %369, %cst_155 {dimension_numbers = #tpu.dot_dimension_numbers<[1], [0], [0], [1], [0, 0, 1, 1], [], []>} : vector<64x256xbf16>, vector<256x128xbf16>, vector<64x128xf32> -> vector<64x128xf32>
    %c0_156 = arith.constant 0 : index
    %c0_157 = arith.constant 0 : index
    %371 = vector.load %arg8[%c0_156, %c0_157] : memref<1x128xf32, #tpu.memory_space<vmem>>, vector<1x128xf32>
    %372 = vector.broadcast %371 : vector<1x128xf32> to vector<64x128xf32>
    %373 = arith.addf %370, %372 : vector<64x128xf32>
    %c0_158 = arith.constant 0 : index
    %c0_159 = arith.constant 0 : index
    %374 = vector.load %arg9[%c0_158, %c0_159] : memref<1x128xf32, #tpu.memory_space<vmem>>, vector<1x128xf32>
    %375 = math.tanh %373 : vector<64x128xf32>
    %376 = vector.broadcast %374 : vector<1x128xf32> to vector<64x128xf32>
    %377 = arith.mulf %376, %375 : vector<64x128xf32>
    %c0_160 = arith.constant 0 : index
    %c0_161 = arith.constant 0 : index
    %378 = vector.load %arg10[%c0_160, %c0_161] : memref<64x128xf32, #tpu.memory_space<vmem>>, vector<64x128xf32>
    tpu.vector_store %arg10[%c0_160, %c0_161], %377 {strides = array<i32>} : memref<64x128xf32, #tpu.memory_space<vmem>>, vector<64x128xf32>,
    return
  }
  func.func @transform_0(%arg0: i32) -> (i32, i32) {
    %c0_i32 = arith.constant 0 : i32
    %c0_i32_0 = arith.constant 0 : i32
    return %arg0, %c0_i32 : i32, i32
  }
  func.func @transform_1(%arg0: i32) -> (i32, i32) {
    %c0_i32 = arith.constant 0 : i32
    %c0_i32_0 = arith.constant 0 : i32
    %c0_i32_1 = arith.constant 0 : i32
    return %c0_i32, %c0_i32_0 : i32, i32
  }
  func.func @transform_2(%arg0: i32) -> (i32, i32) {
    %c0_i32 = arith.constant 0 : i32
    %c0_i32_0 = arith.constant 0 : i32
    %c0_i32_1 = arith.constant 0 : i32
    return %c0_i32, %c0_i32_0 : i32, i32
  }
  func.func @transform_3(%arg0: i32) -> (i32, i32) {
    %c0_i32 = arith.constant 0 : i32
    %c0_i32_0 = arith.constant 0 : i32
    %c0_i32_1 = arith.constant 0 : i32
    return %c0_i32, %c0_i32_0 : i32, i32
  }
  func.func @transform_4(%arg0: i32) -> (i32, i32) {
    %c0_i32 = arith.constant 0 : i32
    %c0_i32_0 = arith.constant 0 : i32
    %c0_i32_1 = arith.constant 0 : i32
    return %c0_i32, %c0_i32_0 : i32, i32
  }
  func.func @transform_5(%arg0: i32) -> (i32, i32) {
    %c0_i32 = arith.constant 0 : i32
    %c0_i32_0 = arith.constant 0 : i32
    %c0_i32_1 = arith.constant 0 : i32
    return %c0_i32, %c0_i32_0 : i32, i32
  }
  func.func @transform_6(%arg0: i32) -> (i32, i32) {
    %c0_i32 = arith.constant 0 : i32
    %c0_i32_0 = arith.constant 0 : i32
    %c0_i32_1 = arith.constant 0 : i32
    return %c0_i32, %c0_i32_0 : i32, i32
  }
  func.func @transform_7(%arg0: i32) -> (i32, i32) {
    %c0_i32 = arith.constant 0 : i32
    %c0_i32_0 = arith.constant 0 : i32
    %c0_i32_1 = arith.constant 0 : i32
    return %c0_i32, %c0_i32_0 : i32, i32
  }
  func.func @transform_8(%arg0: i32) -> (i32, i32) {
    %c0_i32 = arith.constant 0 : i32
    %c0_i32_0 = arith.constant 0 : i32
    %c0_i32_1 = arith.constant 0 : i32
    return %c0_i32, %c0_i32_0 : i32, i32
  }
  func.func @transform_9(%arg0: i32) -> (i32, i32) {
    %c0_i32 = arith.constant 0 : i32
    %c0_i32_0 = arith.constant 0 : i32
    return %arg0, %c0_i32 : i32, i32
  }
}

</mosaic_0001>

<bundles_post_ra>
// kernel: tpu_custom_call.1
= control target key start
LH: loop header
LB: loop body
LE: loop exit
PB: predicated region body
PF: predicated region fallthrough
CT: control target
= control target key end

     0   :  { %14 = vsyncpa [#allocation7], 0  ;;  %s12866_s0 = inlined_call_operand.vmem [shape: f32[64,16], index: 0, kind: input, shape index: {}]   ;;  %s12867_s1 = inlined_call_operand.vmem [shape: bf16[16,1024], index: 1, kind: input, shape index: {}]   ;;  %s12868_s2 = inlined_call_operand.hbm [shape: bf16[256,1024], index: 2, kind: input, shape index: {}]   ;;  %s12869_s3 = inlined_call_operand.vmem [shape: f32[1,1024], index: 3, kind: input, shape index: {}]   ;;  %s12870_s4 = inlined_call_operand.hbm [shape: bf16[256,256], index: 4, kind: input, shape index: {}]   ;;  %s12871_s5 = inlined_call_operand.vmem [shape: f32[1,256], index: 5, kind: input, shape index: {}]   ;;  %s12872_s6 = inlined_call_operand.hbm [shape: bf16[256,128], index: 6, kind: input, shape index: {}]   ;;  %s12873_s7 = inlined_call_operand.vmem [shape: f32[1,128], index: 7, kind: input, shape index: {}]   ;;  %s12874_s8 = inlined_call_operand.vmem [shape: f32[1,128], index: 8, kind: input, shape index: {}]   ;;  %s12875_s9 = inlined_call_operand.hbm [shape: f32[64,128], index: 9, kind: output, shape index: {}]  }
   0x1   :  { %15 = vsyncpa [#allocation10], 0 }
   0x2   :  { %16 = vsyncpa [#allocation8], 0  ;;  %s10604_s30 = smov [#allocation9]   ;;  %s10510_s13 = scalar_lea.hbm %s12870_s4, 4096 }
   0x3   :  { %s40_s10 = sshll.u32 %s10604_s30, 4  ;;  %p10511_p0 = scmp.ne.s32.totalorder %s12870_s4, %s10510_s13  ;;  %s41_s10 = int_to_ptr.vmem [resolvable:$true] %s40_s10 }
   0x4   :  { %p10514_p1 = scmp.lt.u32.totalorder %s10510_s13, %s12870_s4 }
   0x6   :  { %p10516_p2 = pnand %p10514_p1, %p10511_p0 }
   0x8   :  { %10519 = shalt.err (!%p10516_p2)
}
   0x9   :  { %s10520_s18 = scalar_lea.vmem %s41_s10, 4096  ;;  %p10525_p4 = scmp.lt.s32.totalorder %s41_s10, %s41_s10 }
   0xa   :  { %p10521_p3 = scmp.ne.s32.totalorder %s41_s10, %s10520_s18  ;;  %p10526_p5 = scmp.lt.s32.totalorder %s10520_s18, %s10520_s18 }
   0xc   :  { %p10527_p6 = por %p10526_p5, %p10525_p4 }
   0xe   :  { %p10528_p7 = pnand %p10527_p6, %p10521_p3 }
  0x10   :  { %10531 = shalt.err (!%p10528_p7)
}
  0x11   :  { %s10605_s19 = smov 128   ;;  %s10606_s20 = smov 8  }
  0x12   :  { %46 = dma.hbm_to_vmem [thread:$0]  %s12870_s4, 4096, %s41_s10, [#allocation10], %s10605_s19, %s10605_s19, %s10606_s20  }
  0x13   :  { %s10607_s23 = smov [#allocation6]   ;;  %s10532_s27 = scalar_lea.hbm %s12868_s2, 16384 }
  0x14   :  { %s26_s24 = sshll.u32 %s10607_s23, 4  ;;  %p10533_p8 = scmp.ne.s32.totalorder %s12868_s2, %s10532_s27  ;;  %s27_s24 = int_to_ptr.vmem [resolvable:$true] %s26_s24 }
  0x15   :  { %p10536_p9 = scmp.lt.u32.totalorder %s10532_s27, %s12868_s2 }
  0x17   :  { %p10538_p10 = pnand %p10536_p9, %p10533_p8 }
  0x19   :  { %10541 = shalt.err (!%p10538_p10)
}
  0x1a   :  { %s10542_s12 = scalar_lea.vmem %s27_s24, 16384  ;;  %p10547_p12 = scmp.lt.s32.totalorder %s27_s24, %s27_s24 }
  0x1b   :  { %p10543_p11 = scmp.ne.s32.totalorder %s27_s24, %s10542_s12  ;;  %p10548_p13 = scmp.lt.s32.totalorder %s10542_s12, %s10542_s12 }
  0x1d   :  { %p10549_p0 = por %p10548_p13, %p10547_p12 }
  0x1f   :  { %p10550_p1 = pnand %p10549_p0, %p10543_p11 }
  0x21   :  { %10553 = shalt.err (!%p10550_p1)
}
  0x22   :  { %s10608_s4 = smov 512   ;;  %s10609_s10 = smov 32  }
  0x23   :  { %32 = dma.hbm_to_vmem [thread:$0]  %s12868_s2, 16384, %s27_s24, [#allocation7], %s10608_s4, %s10608_s4, %s10609_s10  }
  0x24   :  { %s10610_s15 = smov [#allocation11]   ;;  %s10554_s21 = scalar_lea.hbm %s12872_s6, 2048 }
  0x25   :  { %s54_s16 = sshll.u32 %s10610_s15, 4  ;;  %p10555_p2 = scmp.ne.s32.totalorder %s12872_s6, %s10554_s21  ;;  %s55_s16 = int_to_ptr.vmem [resolvable:$true] %s54_s16 }
  0x26   :  { %p10558_p3 = scmp.lt.u32.totalorder %s10554_s21, %s12872_s6 }
  0x28   :  { %p10560_p4 = pnand %p10558_p3, %p10555_p2 }
  0x2a   :  { %10563 = shalt.err (!%p10560_p4)
}
  0x2b   :  { %s10564_s27 = scalar_lea.vmem %s55_s16, 2048  ;;  %p10569_p6 = scmp.lt.s32.totalorder %s55_s16, %s55_s16 }
  0x2c   :  { %p10565_p5 = scmp.ne.s32.totalorder %s55_s16, %s10564_s27  ;;  %p10570_p7 = scmp.lt.s32.totalorder %s10564_s27, %s10564_s27 }
  0x2e   :  { %p10571_p8 = por %p10570_p7, %p10569_p6 }
  0x30   :  { %p10572_p9 = pnand %p10571_p8, %p10565_p5 }
  0x32   :  { %10575 = shalt.err (!%p10572_p9)
}
  0x33   :  { %s10611_s2 = smov 64   ;;  %s10612_s24 = smov 4  }
  0x34   :  { %60 = dma.hbm_to_vmem [thread:$0]  %s12872_s6, 2048, %s55_s16, [#allocation10], %s10611_s2, %s10611_s2, %s10612_s24  }
  0x35   :  { %10598 = dma.done.wait [#allocation7], 16384  }
  0x36   :  { %10599 = vsyncadd [#allocation7], 4294950912 }
  0x37   :  { %10600 = dma.done.wait [#allocation10], 6144  }
  0x38   :  { %10601 = vsyncadd [#allocation10], 4294961152  ;;  %v10613_v0 = vmov 0   ;;  %v95_v1 = vld [vmem:[%s12867_s1] sm:$0xff]  ;;  %v84_v6 = vld [vmem:[%s12866_s0 + $0x8] sm:$0xff]  ;;  %vm185_vm0 = vcmask 130048  }
  0x39   :  { %230 = vmatprep.mubr.bf16.mxu0 %v10613_v0  ;;  %250 = vmatprep.mubr.bf16.mxu1 %v10613_v0  ;;  %v99_v2 = vld [vmem:[%s12867_s1 + $0x20] sm:$0xff]  ;;  %v88_v8 = vld [vmem:[%s12866_s0 + $0x28] sm:$0xff]  ;;  %v97_v15 = vld [vmem:[%s12867_s1 + $0x10] sm:$0xff] }
  0x3a   :  { %v83_v3 = vld [vmem:[%s12866_s0] sm:$0xff]  ;;  %v9119_v4 = vcombine.high %v95_v1, %v99_v2  ;;  %v9118_v5 = vcombine.low %v95_v1, %v99_v2  ;;  %v96_v9 = vld [vmem:[%s12867_s1 + $0x8] sm:$0xff]  ;;  %v101_v16 = vld [vmem:[%s12867_s1 + $0x30] sm:$0xff] }
  0x3b   :  { %v87_v7 = vld [vmem:[%s12866_s0 + $0x20] sm:$0xff]  ;;  %v100_v10 = vld [vmem:[%s12867_s1 + $0x28] sm:$0xff]  ;;  %v10731_v11 = vpack.c.bf16 %v84_v6, %v83_v3  ;;  %v9123_v18 = vcombine.high %v97_v15, %v101_v16  ;;  %v98_v20 = vld [vmem:[%s12867_s1 + $0x18] sm:$0xff]  ;;  %v9122_v22 = vcombine.low %v97_v15, %v101_v16 }
  0x3c   :  { %198 = vmatprep.subr.bf16.mxu0 %v9119_v4  ;;  %10256 = vmatprep.subr.bf16.mxu1 %v9119_v4  ;;  %v10733_v12 = vpack.c.bf16 %v88_v8, %v87_v7  ;;  %v9121_v13 = vcombine.high %v96_v9, %v100_v10  ;;  %v9120_v14 = vcombine.low %v96_v9, %v100_v10  ;;  %v571_v17 = vld [vmem:[#allocation6] sm:$0xff]  ;;  %v102_v21 = vld [vmem:[%s12867_s1 + $0x38] sm:$0xff]  ;;  %v85_v24 = vld [vmem:[%s12866_s0 + $0x10] sm:$0xff]  ;;  %v10614_v8 = vmov 0.0|0.0  }
  0x3d   :  { %199 = vmatpush1.bf16.msra.mxu0 %v9118_v5  ;;  %10257 = vmatpush1.bf16.msra.mxu1 %v9118_v5  ;;  %v575_v19 = vld [vmem:[#allocation6 + $0x20] sm:$0xff]  ;;  %v9125_v23 = vcombine.high %v98_v20, %v102_v21  ;;  %v86_v26 = vld [vmem:[%s12866_s0 + $0x18] sm:$0xff]  ;;  %v89_v27 = vld [vmem:[%s12866_s0 + $0x30] sm:$0xff]  ;;  %v9124_v36 = vcombine.low %v98_v20, %v102_v21 }
  0x3e   :  { %271 = vmatprep.subr.bf16.mxu1 %v9121_v13  ;;  %v9143_v25 = vcombine.high %v571_v17, %v575_v19  ;;  %v90_v28 = vld [vmem:[%s12866_s0 + $0x38] sm:$0xff]  ;;  %344 = vmatprep.subr.bf16.mxu0 %v9123_v18  ;;  %v10765_v29 = vpack.c.bf16 %v86_v26, %v85_v24  ;;  %v579_v31 = vld [vmem:[#allocation6 + $0x40] sm:$0xff]  ;;  %v10775_v33 = vld [vmem:[#allocation6 + $0x8] sm:$0xff]  ;;  %v9142_v35 = vcombine.low %v571_v17, %v575_v19 }
  0x3f   :  { %v10767_v30 = vpack.c.bf16 %v90_v28, %v89_v27  ;;  %v583_v32 = vld [vmem:[#allocation6 + $0x60] sm:$0xff]  ;;  %v10777_v34 = vld [vmem:[#allocation6 + $0x28] sm:$0xff] }
  0x40   :  { %9126 = vmatmul.mubr.msk.bf16.vlgmr.msra.gmra.mrb[0].mxu0 %vm185_vm0, %v10731_v11  ;;  %9128 = vmatmul.mubr.msk.bf16.vlgmr.msra.gmra.mrb[0].mxu1 %vm185_vm0, %v10733_v12  ;;  %v9151_v37 = vcombine.high %v579_v31, %v583_v32  ;;  %v587_v38 = vld [vmem:[#allocation6 + $0x80] sm:$0xff]  ;;  %v9145_v40 = vcombine.high %v10775_v33, %v10777_v34  ;;  %v9150_v41 = vcombine.low %v579_v31, %v583_v32  ;;  %v580_v5 = vld [vmem:[#allocation6 + $0x48] sm:$0xff] }
  0x41   :  { %272 = vmatpush1.bf16.msra.mxu1 %v9120_v14  ;;  %240 = vmatprep.mubr.bf16.mxu0 %v10613_v0  ;;  %v591_v39 = vld [vmem:[#allocation6 + $0xa0] sm:$0xff]  ;;  %v584_v6 = vld [vmem:[#allocation6 + $0x68] sm:$0xff]  ;;  %v9144_v10 = vcombine.low %v10775_v33, %v10777_v34 }
  0x42   :  { %260 = vmatprep.mubr.bf16.mxu1 %v10613_v0  ;;  %345 = vmatpush1.bf16.msra.mxu0 %v9122_v22  ;;  %v9159_v42 = vcombine.high %v587_v38, %v591_v39  ;;  %v595_v43 = vld [vmem:[#allocation6 + $0xc0] sm:$0xff]  ;;  %v9158_v45 = vcombine.low %v587_v38, %v591_v39  ;;  %v588_v15 = vld [vmem:[#allocation6 + $0x88] sm:$0xff]  ;;  %v9153_v18 = vcombine.high %v580_v5, %v584_v6 }
  0x43   :  { %417 = vmatprep.subr.bf16.mxu1 %v9125_v23  ;;  %1339 = vmatprep.subr.bf16.mxu0 %v9143_v25  ;;  %v599_v44 = vld [vmem:[#allocation6 + $0xe0] sm:$0xff]  ;;  %v592_v16 = vld [vmem:[#allocation6 + $0xa8] sm:$0xff]  ;;  %v9152_v20 = vcombine.low %v580_v5, %v584_v6 }
  0x44   :  { %v9167_v46 = vcombine.high %v595_v43, %v599_v44  ;;  %v603_v47 = vld [vmem:[#allocation6 + $0x100] sm:$0xff]  ;;  %v9166_v49 = vcombine.low %v595_v43, %v599_v44  ;;  %v596_v23 = vld [vmem:[#allocation6 + $0xc8] sm:$0xff]  ;;  %v9161_v26 = vcombine.high %v588_v15, %v592_v16  ;;  %v9160_v28 = vcombine.low %v588_v15, %v592_v16 }
  0x45   :  { %v607_v48 = vld [vmem:[#allocation6 + $0x120] sm:$0xff]  ;;  %v600_v24 = vld [vmem:[#allocation6 + $0xe8] sm:$0xff] }
  0x46   :  { %v9175_v50 = vcombine.high %v603_v47, %v607_v48  ;;  %v611_v51 = vld [vmem:[#allocation6 + $0x140] sm:$0xff]  ;;  %v9174_v53 = vcombine.low %v603_v47, %v607_v48  ;;  %v604_v32 = vld [vmem:[#allocation6 + $0x108] sm:$0xff] }
  0x47   :  { %v615_v52 = vld [vmem:[#allocation6 + $0x160] sm:$0xff]  ;;  %v608_v33 = vld [vmem:[#allocation6 + $0x128] sm:$0xff] }
  0x48   :  { %9127 = vmatmul.mubr.msk.bf16.gmra.mrb[4].mxu0 %vm185_vm0, %v10765_v29  ;;  %9129 = vmatmul.mubr.msk.bf16.gmra.mrb[4].mxu1 %vm185_vm0, %v10767_v30  ;;  %v9183_v54 = vcombine.high %v611_v51, %v615_v52  ;;  %v619_v55 = vld [vmem:[#allocation6 + $0x180] sm:$0xff]  ;;  %v9182_v57 = vcombine.low %v611_v51, %v615_v52  ;;  %v9177_v43 = vcombine.high %v604_v32, %v608_v33  ;;  %v644_v6 = vld [vmem:[#allocation6 + $0x248] sm:$0xff] }
  0x49   :  { %303 = vmatprep.mubr.bf16.mxu1 %v10613_v0  ;;  %376 = vmatprep.mubr.bf16.mxu0 %v10613_v0  ;;  %v623_v56 = vld [vmem:[#allocation6 + $0x1a0] sm:$0xff]  ;;  %v652_v16 = vld [vmem:[#allocation6 + $0x288] sm:$0xff] }
  0x4a   :  { %v9191_v58 = vcombine.high %v619_v55, %v623_v56  ;;  %v627_v59 = vld [vmem:[#allocation6 + $0x1c0] sm:$0xff]  ;;  %v9190_v61 = vcombine.low %v619_v55, %v623_v56 }
  0x4b   :  { %v631_v60 = vld [vmem:[#allocation6 + $0x1e0] sm:$0xff] }
  0x4c   :  { %v9199_v62 = vcombine.high %v627_v59, %v631_v60  ;;  %v635_v63 = vld [vmem:[#allocation6 + $0x200] sm:$0xff]  ;;  %v9198_v2 = vcombine.low %v627_v59, %v631_v60 }
  0x4d   :  { %v639_v1 = vld [vmem:[#allocation6 + $0x220] sm:$0xff] }
  0x4e   :  { %v643_v3 = vld [vmem:[#allocation6 + $0x240] sm:$0xff]  ;;  %v9207_v7 = vcombine.high %v635_v63, %v639_v1  ;;  %v9206_v9 = vcombine.low %v635_v63, %v639_v1  ;;  %v640_v63 = vld [vmem:[#allocation6 + $0x228] sm:$0xff]  ;;  %v573_v1 = vld [vmem:[#allocation6 + $0x10] sm:$0xff] }
  0x4f   :  { %v647_v4 = vld [vmem:[#allocation6 + $0x260] sm:$0xff] }
  0x50   :  { %9130 = vmatmul.mubr.msk.bf16.vlgmr.msra.gmra.mrb[8].mxu1 %vm185_vm0, %v10731_v11  ;;  %9134 = vmatmul.mubr.msk.bf16.vlgmr.msra.gmra.mrb[8].mxu0 %vm185_vm0, %v10731_v11  ;;  %v651_v13 = vld [vmem:[#allocation6 + $0x280] sm:$0xff]  ;;  %v9215_v17 = vcombine.high %v643_v3, %v647_v4  ;;  %v9214_v19 = vcombine.low %v643_v3, %v647_v4 }
  0x51   :  { %1340 = vmatpush1.bf16.msra.mxu0 %v9142_v35  ;;  %418 = vmatpush1.bf16.msra.mxu1 %v9124_v36  ;;  %v655_v14 = vld [vmem:[#allocation6 + $0x2a0] sm:$0xff]  ;;  %v9169_v35 = vcombine.high %v596_v23, %v600_v24 }
  0x52   :  { %1341 = vmatprep.subr.bf16.mxu0 %v9151_v37  ;;  %313 = vmatprep.mubr.bf16.mxu1 %v10613_v0  ;;  %v659_v21 = vld [vmem:[#allocation6 + $0x2c0] sm:$0xff]  ;;  %v9223_v25 = vcombine.high %v651_v13, %v655_v14  ;;  %v9222_v27 = vcombine.low %v651_v13, %v655_v14  ;;  %v9168_v37 = vcombine.low %v596_v23, %v600_v24  ;;  %v660_v24 = vld [vmem:[#allocation6 + $0x2c8] sm:$0xff] }
  0x53   :  { %1380 = vmatprep.subr.bf16.mxu1 %v9145_v40  ;;  %386 = vmatprep.mubr.bf16.mxu0 %v10613_v0  ;;  %v663_v22 = vld [vmem:[#allocation6 + $0x2e0] sm:$0xff]  ;;  %v612_v40 = vld [vmem:[#allocation6 + $0x148] sm:$0xff] }
  0x54   :  { %v667_v31 = vld [vmem:[#allocation6 + $0x300] sm:$0xff]  ;;  %v9231_v34 = vcombine.high %v659_v21, %v663_v22  ;;  %v9230_v36 = vcombine.low %v659_v21, %v663_v22 }
  0x55   :  { %1342 = vmatpush1.bf16.msra.mxu0 %v9150_v41  ;;  %v675_v38 = vld [vmem:[#allocation6 + $0x340] sm:$0xff]  ;;  %v616_v41 = vld [vmem:[#allocation6 + $0x168] sm:$0xff] }
  0x56   :  { %1343 = vmatprep.subr.bf16.mxu0 %v9159_v42  ;;  %v679_v39 = vld [vmem:[#allocation6 + $0x360] sm:$0xff]  ;;  %v9185_v47 = vcombine.high %v612_v40, %v616_v41  ;;  %v9184_v52 = vcombine.low %v612_v40, %v616_v41  ;;  %v676_v41 = vld [vmem:[#allocation6 + $0x348] sm:$0xff] }
  0x57   :  { %v687_v48 = vld [vmem:[#allocation6 + $0x3a0] sm:$0xff]  ;;  %v9246_v51 = vcombine.low %v675_v38, %v679_v39 }
  0x58   :  { %9131 = vmatmul.mubr.msk.bf16.gmra.mrb[12].mxu1 %vm185_vm0, %v10765_v29  ;;  %9135 = vmatmul.mubr.msk.bf16.gmra.mrb[12].mxu0 %vm185_vm0, %v10765_v29  ;;  %v691_v55 = vld [vmem:[#allocation6 + $0x3c0] sm:$0xff] }
  0x59   :  { %1344 = vmatpush1.bf16.msra.mxu0 %v9158_v45  ;;  %323 = vmatprep.mubr.bf16.mxu1 %v10613_v0  ;;  %v9176_v45 = vcombine.low %v604_v32, %v608_v33  ;;  %v695_v56 = vld [vmem:[#allocation6 + $0x3e0] sm:$0xff]  ;;  %v668_v33 = vld [vmem:[#allocation6 + $0x308] sm:$0xff] }
  0x5a   :  { %1345 = vmatprep.subr.bf16.mxu0 %v9167_v46  ;;  %396 = vmatprep.mubr.bf16.mxu0 %v10613_v0  ;;  %v683_v46 = vld [vmem:[#allocation6 + $0x380] sm:$0xff]  ;;  %v9262_v3 = vcombine.low %v691_v55, %v695_v56 }
  0x5b   :  { %v9254_v59 = vcombine.low %v683_v46, %v687_v48 }
  0x5d   :  { %1346 = vmatpush1.bf16.msra.mxu0 %v9166_v49  ;;  %v620_v49 = vld [vmem:[#allocation6 + $0x188] sm:$0xff] }
  0x5e   :  { %1347 = vmatprep.subr.bf16.mxu0 %v9175_v50  ;;  %v624_v50 = vld [vmem:[#allocation6 + $0x1a8] sm:$0xff] }
  0x5f   :  { %v9192_v60 = vcombine.low %v620_v49, %v624_v50 }
  0x60   :  { %9132 = vmatmul.mubr.msk.bf16.gmra.mrb[16].mxu1 %vm185_vm0, %v10733_v12  ;;  %9136 = vmatmul.mubr.msk.bf16.gmra.mrb[16].mxu0 %vm185_vm0, %v10733_v12 }
  0x61   :  { %1348 = vmatpush1.bf16.msra.mxu0 %v9174_v53  ;;  %333 = vmatprep.mubr.bf16.mxu1 %v10613_v0  ;;  %v9255_v53 = vcombine.high %v683_v46, %v687_v48  ;;  %v684_v48 = vld [vmem:[#allocation6 + $0x388] sm:$0xff] }
  0x62   :  { %1349 = vmatprep.subr.bf16.mxu0 %v9183_v54  ;;  %406 = vmatprep.mubr.bf16.mxu0 %v10613_v0  ;;  %v9193_v54 = vcombine.high %v620_v49, %v624_v50  ;;  %v688_v49 = vld [vmem:[#allocation6 + $0x3a8] sm:$0xff]  ;;  %v621_v50 = vld [vmem:[#allocation6 + $0x190] sm:$0xff] }
  0x65   :  { %1350 = vmatpush1.bf16.msra.mxu0 %v9182_v57  ;;  %v628_v57 = vld [vmem:[#allocation6 + $0x1c8] sm:$0xff] }
  0x66   :  { %1351 = vmatprep.subr.bf16.mxu0 %v9191_v58  ;;  %v632_v58 = vld [vmem:[#allocation6 + $0x1e8] sm:$0xff] }
  0x67   :  { %v9200_v4 = vcombine.low %v628_v57, %v632_v58 }
  0x68   :  { %9133 = vmatmul.mubr.msk.bf16.gmra.mrb[20].mxu1 %vm185_vm0, %v10767_v30  ;;  %9137 = vmatmul.mubr.msk.bf16.gmra.mrb[20].mxu0 %vm185_vm0, %v10767_v30 }
  0x69   :  { %1352 = vmatpush1.bf16.msra.mxu0 %v9190_v61  ;;  %449 = vmatprep.mubr.bf16.mxu1 %v10613_v0  ;;  %v9201_v61 = vcombine.high %v628_v57, %v632_v58  ;;  %v696_v57 = vld [vmem:[#allocation6 + $0x3e8] sm:$0xff]  ;;  %v629_v58 = vld [vmem:[#allocation6 + $0x1d0] sm:$0xff] }
  0x6a   :  { %1353 = vmatprep.subr.bf16.mxu0 %v9199_v62  ;;  %1371 = vmatprep.mubr.bf16.mxu0 %v10614_v8  ;;  %v636_v62 = vld [vmem:[#allocation6 + $0x208] sm:$0xff] }
  0x6b   :  { %v9208_v13 = vcombine.low %v636_v62, %v640_v63 }
  0x6d   :  { %1354 = vmatpush1.bf16.msra.mxu0 %v9198_v2  ;;  %v577_v2 = vld [vmem:[#allocation6 + $0x30] sm:$0xff] }
  0x6e   :  { %1355 = vmatprep.subr.bf16.mxu0 %v9207_v7  ;;  %v9147_v5 = vcombine.high %v573_v1, %v577_v2  ;;  %v648_v7 = vld [vmem:[#allocation6 + $0x268] sm:$0xff]  ;;  %v9146_v14 = vcombine.low %v573_v1, %v577_v2  ;;  %v641_v1 = vld [vmem:[#allocation6 + $0x230] sm:$0xff]  ;;  %v574_v2 = vld [vmem:[#allocation6 + $0x18] sm:$0xff] }
  0x70   :  { %9138 = vmatmul.mubr.msk.bf16.vlgmr.msra.gmra.mrb[24].mxu1 %vm185_vm0, %v10731_v11  ;;  %v671_v11 = vld [vmem:[#allocation6 + $0x320] sm:$0xff] }
  0x71   :  { %1356 = vmatpush1.bf16.msra.mxu0 %v9206_v9  ;;  %1381 = vmatpush1.bf16.msra.mxu1 %v9144_v10  ;;  %v9239_v42 = vcombine.high %v667_v31, %v671_v11  ;;  %v9238_v44 = vcombine.low %v667_v31, %v671_v11  ;;  %v581_v9 = vld [vmem:[#allocation6 + $0x50] sm:$0xff] }
  0x72   :  { %1357 = vmatprep.subr.bf16.mxu0 %v9215_v17  ;;  %1382 = vmatprep.subr.bf16.mxu1 %v9153_v18  ;;  %v585_v10 = vld [vmem:[#allocation6 + $0x70] sm:$0xff]  ;;  %v656_v17 = vld [vmem:[#allocation6 + $0x2a8] sm:$0xff] }
  0x73   :  { %459 = vmatprep.mubr.bf16.mxu1 %v10613_v0  ;;  %v9155_v15 = vcombine.high %v581_v9, %v585_v10  ;;  %v589_v18 = vld [vmem:[#allocation6 + $0x90] sm:$0xff]  ;;  %v9154_v21 = vcombine.low %v581_v9, %v585_v10  ;;  %v9225_v22 = vcombine.high %v652_v16, %v656_v17  ;;  %v582_v10 = vld [vmem:[#allocation6 + $0x58] sm:$0xff] }
  0x74   :  { %v649_v9 = vld [vmem:[#allocation6 + $0x270] sm:$0xff] }
  0x75   :  { %1358 = vmatpush1.bf16.msra.mxu0 %v9214_v19  ;;  %1383 = vmatpush1.bf16.msra.mxu1 %v9152_v20  ;;  %v593_v19 = vld [vmem:[#allocation6 + $0xb0] sm:$0xff]  ;;  %v9216_v20 = vcombine.low %v644_v6, %v648_v7 }
  0x76   :  { %1359 = vmatprep.subr.bf16.mxu0 %v9223_v25  ;;  %1384 = vmatprep.subr.bf16.mxu1 %v9161_v26  ;;  %v9163_v23 = vcombine.high %v589_v18, %v593_v19  ;;  %v664_v25 = vld [vmem:[#allocation6 + $0x2e8] sm:$0xff]  ;;  %v597_v26 = vld [vmem:[#allocation6 + $0xd0] sm:$0xff]  ;;  %v9162_v31 = vcombine.low %v589_v18, %v593_v19  ;;  %v590_v19 = vld [vmem:[#allocation6 + $0x98] sm:$0xff] }
  0x77   :  { %v9233_v11 = vcombine.high %v660_v24, %v664_v25  ;;  %v657_v18 = vld [vmem:[#allocation6 + $0x2b0] sm:$0xff] }
  0x78   :  { %9139 = vmatmul.mubr.msk.bf16.gmra.mrb[28].mxu1 %vm185_vm0, %v10765_v29  ;;  %v9247_v29 = vcombine.high %v675_v38, %v679_v39 }
  0x79   :  { %1360 = vmatpush1.bf16.msra.mxu0 %v9222_v27  ;;  %1385 = vmatpush1.bf16.msra.mxu1 %v9160_v28  ;;  %v601_v27 = vld [vmem:[#allocation6 + $0xf0] sm:$0xff]  ;;  %v9224_v28 = vcombine.low %v652_v16, %v656_v17 }
  0x7a   :  { %1361 = vmatprep.subr.bf16.mxu0 %v9231_v34  ;;  %1386 = vmatprep.subr.bf16.mxu1 %v9169_v35  ;;  %v9171_v32 = vcombine.high %v597_v26, %v601_v27  ;;  %v672_v34 = vld [vmem:[#allocation6 + $0x328] sm:$0xff]  ;;  %v605_v35 = vld [vmem:[#allocation6 + $0x110] sm:$0xff]  ;;  %v9170_v38 = vcombine.low %v597_v26, %v601_v27  ;;  %v598_v27 = vld [vmem:[#allocation6 + $0xd8] sm:$0xff] }
  0x7b   :  { %469 = vmatprep.mubr.bf16.mxu1 %v10613_v0  ;;  %v9241_v39 = vcombine.high %v668_v33, %v672_v34  ;;  %v653_v17 = vld [vmem:[#allocation6 + $0x290] sm:$0xff] }
  0x7c   :  { %v665_v26 = vld [vmem:[#allocation6 + $0x2f0] sm:$0xff] }
  0x7d   :  { %1362 = vmatpush1.bf16.msra.mxu0 %v9230_v36  ;;  %1387 = vmatpush1.bf16.msra.mxu1 %v9168_v37  ;;  %v609_v36 = vld [vmem:[#allocation6 + $0x130] sm:$0xff]  ;;  %v9232_v37 = vcombine.low %v660_v24, %v664_v25 }
  0x7e   :  { %1363 = vmatprep.subr.bf16.mxu0 %v9239_v42  ;;  %1388 = vmatprep.subr.bf16.mxu1 %v9177_v43  ;;  %v9179_v40 = vcombine.high %v605_v35, %v609_v36  ;;  %v680_v42 = vld [vmem:[#allocation6 + $0x368] sm:$0xff]  ;;  %v613_v43 = vld [vmem:[#allocation6 + $0x150] sm:$0xff]  ;;  %v9178_v46 = vcombine.low %v605_v35, %v609_v36  ;;  %v606_v36 = vld [vmem:[#allocation6 + $0x118] sm:$0xff] }
  0x7f   :  { %v661_v25 = vld [vmem:[#allocation6 + $0x2d0] sm:$0xff] }
  0x80   :  { %9140 = vmatmul.mubr.msk.bf16.gmra.mrb[32].mxu1 %vm185_vm0, %v10733_v12  ;;  %v9263_v12 = vcombine.high %v691_v55, %v695_v56  ;;  %v692_v56 = vld [vmem:[#allocation6 + $0x3c8] sm:$0xff]  ;;  %v673_v35 = vld [vmem:[#allocation6 + $0x330] sm:$0xff] }
  0x81   :  { %1364 = vmatpush1.bf16.msra.mxu0 %v9238_v44  ;;  %1389 = vmatpush1.bf16.msra.mxu1 %v9176_v45  ;;  %v617_v44 = vld [vmem:[#allocation6 + $0x170] sm:$0xff]  ;;  %v9240_v45 = vcombine.low %v668_v33, %v672_v34 }
  0x82   :  { %1365 = vmatprep.subr.bf16.mxu0 %v9247_v29  ;;  %1390 = vmatprep.subr.bf16.mxu1 %v9185_v47  ;;  %v9249_v29 = vcombine.high %v676_v41, %v680_v42  ;;  %v9187_v47 = vcombine.high %v613_v43, %v617_v44  ;;  %v669_v34 = vld [vmem:[#allocation6 + $0x310] sm:$0xff] }
  0x83   :  { %479 = vmatprep.mubr.bf16.mxu1 %v10613_v0  ;;  %v9209_v0 = vcombine.high %v636_v62, %v640_v63  ;;  %v637_v63 = vld [vmem:[#allocation6 + $0x210] sm:$0xff] }
  0x85   :  { %1366 = vmatpush1.bf16.msra.mxu0 %v9246_v51  ;;  %1391 = vmatpush1.bf16.msra.mxu1 %v9184_v52  ;;  %v625_v51 = vld [vmem:[#allocation6 + $0x1b0] sm:$0xff]  ;;  %v9248_v52 = vcombine.low %v676_v41, %v680_v42 }
  0x86   :  { %1367 = vmatprep.subr.bf16.mxu0 %v9255_v53  ;;  %1392 = vmatprep.subr.bf16.mxu1 %v9193_v54  ;;  %v9186_v53 = vcombine.low %v613_v43, %v617_v44  ;;  %v9257_v54 = vcombine.high %v684_v48, %v688_v49  ;;  %v9195_v55 = vcombine.high %v621_v50, %v625_v51  ;;  %v677_v42 = vld [vmem:[#allocation6 + $0x350] sm:$0xff]  ;;  %v614_v44 = vld [vmem:[#allocation6 + $0x158] sm:$0xff] }
  0x87   :  { %v681_v43 = vld [vmem:[#allocation6 + $0x370] sm:$0xff] }
  0x88   :  { %9141 = vmatmul.mubr.msk.bf16.gmra.mrb[36].mxu1 %vm185_vm0, %v10767_v30  ;;  %v9217_v30 = vcombine.high %v644_v6, %v648_v7  ;;  %v645_v7 = vld [vmem:[#allocation6 + $0x250] sm:$0xff] }
  0x89   :  { %1368 = vmatpush1.bf16.msra.mxu0 %v9254_v59  ;;  %1393 = vmatpush1.bf16.msra.mxu1 %v9192_v60  ;;  %v633_v59 = vld [vmem:[#allocation6 + $0x1f0] sm:$0xff]  ;;  %v9256_v60 = vcombine.low %v684_v48, %v688_v49 }
  0x8a   :  { %1369 = vmatprep.subr.bf16.mxu0 %v9263_v12  ;;  %1394 = vmatprep.subr.bf16.mxu1 %v9201_v61  ;;  %v9194_v12 = vcombine.low %v621_v50, %v625_v51  ;;  %v9265_v61 = vcombine.high %v692_v56, %v696_v57  ;;  %v9203_v62 = vcombine.high %v629_v58, %v633_v59  ;;  %v685_v49 = vld [vmem:[#allocation6 + $0x390] sm:$0xff]  ;;  %v622_v51 = vld [vmem:[#allocation6 + $0x198] sm:$0xff] }
  0x8b   :  { %1412 = vmatprep.mubr.bf16.mxu1 %v10614_v8  ;;  %v689_v50 = vld [vmem:[#allocation6 + $0x3b0] sm:$0xff] }
  0x8d   :  { %1370 = vmatpush1.bf16.msra.mxu0 %v9262_v3  ;;  %1395 = vmatpush1.bf16.msra.mxu1 %v9200_v4  ;;  %v578_v3 = vld [vmem:[#allocation6 + $0x38] sm:$0xff]  ;;  %v9264_v4 = vcombine.low %v692_v56, %v696_v57  ;;  %v693_v57 = vld [vmem:[#allocation6 + $0x3d0] sm:$0xff] }
  0x8e   :  { %1396 = vmatprep.subr.bf16.mxu1 %v9209_v0  ;;  %1421 = vmatprep.subr.bf16.mxu0 %v9147_v5  ;;  %v9202_v0 = vcombine.low %v629_v58, %v633_v59  ;;  %v9211_v5 = vcombine.high %v637_v63, %v641_v1  ;;  %v9149_v6 = vcombine.high %v574_v2, %v578_v3  ;;  %v697_v58 = vld [vmem:[#allocation6 + $0x3f0] sm:$0xff]  ;;  %v630_v59 = vld [vmem:[#allocation6 + $0x1d8] sm:$0xff] }
  0x90   :  { %1372 = vmatmul.mubr.bf16.vlgmr.msra.gmra.mrb[24].mxu0 %v10614_v8 }
  0x91   :  { %1397 = vmatpush1.bf16.msra.mxu1 %v9208_v13  ;;  %1422 = vmatpush1.bf16.msra.mxu0 %v9146_v14  ;;  %v586_v13 = vld [vmem:[#allocation6 + $0x78] sm:$0xff]  ;;  %v9210_v14 = vcombine.low %v637_v63, %v641_v1 }
  0x92   :  { %1398 = vmatprep.subr.bf16.mxu1 %v9217_v30  ;;  %1423 = vmatprep.subr.bf16.mxu0 %v9155_v15  ;;  %v9148_v30 = vcombine.low %v574_v2, %v578_v3  ;;  %v9219_v15 = vcombine.high %v645_v7, %v649_v9  ;;  %v9157_v16 = vcombine.high %v582_v10, %v586_v13  ;;  %v638_v1 = vld [vmem:[#allocation6 + $0x218] sm:$0xff] }
  0x93   :  { %1453 = vmatprep.mubr.bf16.mxu0 %v10614_v8  ;;  %v642_v2 = vld [vmem:[#allocation6 + $0x238] sm:$0xff]  ;;  %v9266_v3 = vcombine.low %v693_v57, %v697_v58 }
  0x95   :  { %1399 = vmatpush1.bf16.msra.mxu1 %v9216_v20  ;;  %1424 = vmatpush1.bf16.msra.mxu0 %v9154_v21  ;;  %v594_v20 = vld [vmem:[#allocation6 + $0xb8] sm:$0xff]  ;;  %v9218_v21 = vcombine.low %v645_v7, %v649_v9  ;;  %v9212_v7 = vcombine.low %v638_v1, %v642_v2 }
  0x96   :  { %1400 = vmatprep.subr.bf16.mxu1 %v9225_v22  ;;  %1425 = vmatprep.subr.bf16.mxu0 %v9163_v23  ;;  %v9156_v22 = vcombine.low %v582_v10, %v586_v13  ;;  %v9227_v23 = vcombine.high %v653_v17, %v657_v18  ;;  %v9165_v24 = vcombine.high %v590_v19, %v594_v20  ;;  %v654_v10 = vld [vmem:[#allocation6 + $0x298] sm:$0xff] }
  0x97   :  { %v658_v13 = vld [vmem:[#allocation6 + $0x2b8] sm:$0xff] }
  0x99   :  { %1401 = vmatpush1.bf16.msra.mxu1 %v9224_v28  ;;  %1426 = vmatpush1.bf16.msra.mxu0 %v9162_v31  ;;  %v602_v28 = vld [vmem:[#allocation6 + $0xf8] sm:$0xff]  ;;  %v9226_v31 = vcombine.low %v653_v17, %v657_v18  ;;  %v9228_v17 = vcombine.low %v654_v10, %v658_v13 }
  0x9a   :  { %1402 = vmatprep.subr.bf16.mxu1 %v9233_v11  ;;  %1427 = vmatprep.subr.bf16.mxu0 %v9171_v32  ;;  %v9164_v11 = vcombine.low %v590_v19, %v594_v20  ;;  %v9235_v32 = vcombine.high %v661_v25, %v665_v26  ;;  %v9173_v33 = vcombine.high %v598_v27, %v602_v28  ;;  %v670_v19 = vld [vmem:[#allocation6 + $0x318] sm:$0xff] }
  0x9b   :  { %v674_v20 = vld [vmem:[#allocation6 + $0x338] sm:$0xff] }
  0x9d   :  { %1403 = vmatpush1.bf16.msra.mxu1 %v9232_v37  ;;  %1428 = vmatpush1.bf16.msra.mxu0 %v9170_v38  ;;  %v610_v37 = vld [vmem:[#allocation6 + $0x138] sm:$0xff]  ;;  %v9234_v38 = vcombine.low %v661_v25, %v665_v26  ;;  %v9244_v25 = vcombine.low %v670_v19, %v674_v20 }
  0x9e   :  { %1404 = vmatprep.subr.bf16.mxu1 %v9241_v39  ;;  %1429 = vmatprep.subr.bf16.mxu0 %v9179_v40  ;;  %v9172_v39 = vcombine.low %v598_v27, %v602_v28  ;;  %v9243_v40 = vcombine.high %v669_v34, %v673_v35  ;;  %v9181_v41 = vcombine.high %v606_v36, %v610_v37  ;;  %v686_v27 = vld [vmem:[#allocation6 + $0x398] sm:$0xff] }
  0x9f   :  { %v690_v28 = vld [vmem:[#allocation6 + $0x3b8] sm:$0xff] }
  0xa1   :  { %1405 = vmatpush1.bf16.msra.mxu1 %v9240_v45  ;;  %1430 = vmatpush1.bf16.msra.mxu0 %v9178_v46  ;;  %v618_v45 = vld [vmem:[#allocation6 + $0x178] sm:$0xff]  ;;  %v9242_v46 = vcombine.low %v669_v34, %v673_v35  ;;  %v9260_v34 = vcombine.low %v686_v27, %v690_v28 }
  0xa2   :  { %1406 = vmatprep.subr.bf16.mxu1 %v9249_v29  ;;  %1431 = vmatprep.subr.bf16.mxu0 %v9187_v47  ;;  %v9180_v29 = vcombine.low %v606_v36, %v610_v37  ;;  %v9251_v47 = vcombine.high %v677_v42, %v681_v43  ;;  %v9189_v48 = vcombine.high %v614_v44, %v618_v45  ;;  %v105_v37 = vlaneseq }
  0xa5   :  { %1407 = vmatpush1.bf16.msra.mxu1 %v9248_v52  ;;  %1432 = vmatpush1.bf16.msra.mxu0 %v9186_v53  ;;  %v626_v52 = vld [vmem:[#allocation6 + $0x1b8] sm:$0xff]  ;;  %v9250_v53 = vcombine.low %v677_v42, %v681_v43 }
  0xa6   :  { %1408 = vmatprep.subr.bf16.mxu1 %v9257_v54  ;;  %1433 = vmatprep.subr.bf16.mxu0 %v9195_v55  ;;  %v9188_v54 = vcombine.low %v614_v44, %v618_v45  ;;  %v9259_v55 = vcombine.high %v685_v49, %v689_v50  ;;  %v9197_v56 = vcombine.high %v622_v51, %v626_v52 }
  0xa9   :  { %1409 = vmatpush1.bf16.msra.mxu1 %v9256_v60  ;;  %1434 = vmatpush1.bf16.msra.mxu0 %v9194_v12  ;;  %v634_v60 = vld [vmem:[#allocation6 + $0x1f8] sm:$0xff]  ;;  %v9258_v12 = vcombine.low %v685_v49, %v689_v50 }
  0xaa   :  { %1410 = vmatprep.subr.bf16.mxu1 %v9265_v61  ;;  %1435 = vmatprep.subr.bf16.mxu0 %v9203_v62  ;;  %v9196_v61 = vcombine.low %v622_v51, %v626_v52  ;;  %v9267_v62 = vcombine.high %v693_v57, %v697_v58  ;;  %v9205_v63 = vcombine.high %v630_v59, %v634_v60  ;;  %v1571_v57 = vld [vmem:[#allocation6 + $0x20] sm:$0xff]  ;;  %v1568_v58 = vld [vmem:[#allocation6 + $0x8] sm:$0xff] }
  0xad   :  { %1411 = vmatpush1.bf16.msra.mxu1 %v9264_v4  ;;  %1436 = vmatpush1.bf16.msra.mxu0 %v9202_v0  ;;  %v9204_v4 = vcombine.low %v630_v59, %v634_v60  ;;  %v9213_v0 = vcombine.high %v638_v1, %v642_v2 }
  0xae   :  { %1437 = vmatprep.subr.bf16.mxu0 %v9211_v5  ;;  %1462 = vmatprep.subr.bf16.mxu1 %v9149_v6  ;;  %v646_v5 = vld [vmem:[#allocation6 + $0x258] sm:$0xff] }
  0xaf   :  { %v650_v6 = vld [vmem:[#allocation6 + $0x278] sm:$0xff] }
  0xb0   :  { %1413 = vmatmul.mubr.bf16.vlgmr.msra.gmra.mrb[40].mxu1 %v10614_v8  ;;  %v9221_v9 = vcombine.high %v646_v5, %v650_v6 }
  0xb1   :  { %1438 = vmatpush1.bf16.msra.mxu0 %v9210_v14  ;;  %1463 = vmatpush1.bf16.msra.mxu1 %v9148_v30  ;;  %v9220_v14 = vcombine.low %v646_v5, %v650_v6  ;;  %v9229_v30 = vcombine.high %v654_v10, %v658_v13 }
  0xb2   :  { %1439 = vmatprep.subr.bf16.mxu0 %v9219_v15  ;;  %1464 = vmatprep.subr.bf16.mxu1 %v9157_v16  ;;  %v662_v15 = vld [vmem:[#allocation6 + $0x2d8] sm:$0xff] }
  0xb3   :  { %1494 = vmatprep.mubr.bf16.mxu1 %v10614_v8  ;;  %v666_v16 = vld [vmem:[#allocation6 + $0x2f8] sm:$0xff] }
  0xb4   :  { %v9237_v18 = vcombine.high %v662_v15, %v666_v16 }
  0xb5   :  { %1440 = vmatpush1.bf16.msra.mxu0 %v9218_v21  ;;  %1465 = vmatpush1.bf16.msra.mxu1 %v9156_v22  ;;  %v9236_v21 = vcombine.low %v662_v15, %v666_v16  ;;  %v9245_v22 = vcombine.high %v670_v19, %v674_v20 }
  0xb6   :  { %1441 = vmatprep.subr.bf16.mxu0 %v9227_v23  ;;  %1466 = vmatprep.subr.bf16.mxu1 %v9165_v24  ;;  %v678_v23 = vld [vmem:[#allocation6 + $0x358] sm:$0xff] }
  0xb7   :  { %v682_v24 = vld [vmem:[#allocation6 + $0x378] sm:$0xff] }
  0xb8   :  { %v9253_v26 = vcombine.high %v678_v23, %v682_v24 }
  0xb9   :  { %1442 = vmatpush1.bf16.msra.mxu0 %v9226_v31  ;;  %1467 = vmatpush1.bf16.msra.mxu1 %v9164_v11  ;;  %v9252_v31 = vcombine.low %v678_v23, %v682_v24  ;;  %v9261_v11 = vcombine.high %v686_v27, %v690_v28 }
  0xba   :  { %1443 = vmatprep.subr.bf16.mxu0 %v9235_v32  ;;  %1468 = vmatprep.subr.bf16.mxu1 %v9173_v33  ;;  %v694_v32 = vld [vmem:[#allocation6 + $0x3d8] sm:$0xff] }
  0xbb   :  { %v698_v33 = vld [vmem:[#allocation6 + $0x3f8] sm:$0xff] }
  0xbc   :  { %v9269_v35 = vcombine.high %v694_v32, %v698_v33  ;;  %v9268_v36 = vcombine.low %v694_v32, %v698_v33  ;;  %v1584_v32 = vld [vmem:[#allocation6 + $0x88] sm:$0xff] }
  0xbd   :  { %1444 = vmatpush1.bf16.msra.mxu0 %v9234_v38  ;;  %1469 = vmatpush1.bf16.msra.mxu1 %v9172_v39  ;;  %v10825_v38 = vshrl.u32 %v105_v37, 7 }
  0xbe   :  { %1445 = vmatprep.subr.bf16.mxu0 %v9243_v40  ;;  %1470 = vmatprep.subr.bf16.mxu1 %v9181_v41  ;;  %v10831_v40 = vld [vmem:[%s12869_s3] sm:$0xff] }
  0xbf   :  { %13111 = vst [vmem:[#allocation16_spill] sm:$0xff] %v10825_v38  ;;  %v12877_v39 = vsub.s32 0, %v10825_v38  ;;  %v12876_v41 = vsub.s32 1, %v10825_v38  ;;  %v123_v23 = vsub.s32 4, %v10825_v38  ;;  %v115_v27 = vsub.s32 2, %v10825_v38 }
  0xc0   :  { %v119_v28 = vsub.s32 3, %v10825_v38 }
  0xc1   :  { %1446 = vmatpush1.bf16.msra.mxu0 %v9242_v46  ;;  %1471 = vmatpush1.bf16.msra.mxu1 %v9180_v29  ;;  %v10837_v42 = vrot.slane %v10831_v40, %v12877_v39  ;;  %v10919_v33 = vrot.slane %v10831_v40, %v123_v23 }
  0xc2   :  { %1447 = vmatprep.subr.bf16.mxu0 %v9251_v47  ;;  %1472 = vmatprep.subr.bf16.mxu1 %v9189_v48 }
  0xc5   :  { %1448 = vmatpush1.bf16.msra.mxu0 %v9250_v53  ;;  %1473 = vmatpush1.bf16.msra.mxu1 %v9188_v54 }
  0xc6   :  { %1449 = vmatprep.subr.bf16.mxu0 %v9259_v55  ;;  %1474 = vmatprep.subr.bf16.mxu1 %v9197_v56  ;;  %v1567_v56 = vld [vmem:[#allocation6] sm:$0xff] }
  0xc7   :  { %v10866_v59 = vcombine.low %v1567_v56, %v1571_v57  ;;  %v10868_v60 = vcombine.high %v1567_v56, %v1571_v57  ;;  %v10945_v57 = vrot.slane %v10831_v40, %v119_v28  ;;  %v1603_v28 = vld [vmem:[#allocation6 + $0x120] sm:$0xff] }
  0xc9   :  { %1450 = vmatpush1.bf16.msra.mxu0 %v9258_v12  ;;  %1475 = vmatpush1.bf16.msra.mxu1 %v9196_v61  ;;  %v1572_v12 = vld [vmem:[#allocation6 + $0x28] sm:$0xff]  ;;  %v1575_v61 = vld [vmem:[#allocation6 + $0x40] sm:$0xff] }
  0xca   :  { %1451 = vmatprep.subr.bf16.mxu0 %v9267_v62  ;;  %1476 = vmatprep.subr.bf16.mxu1 %v9205_v63  ;;  %v1579_v62 = vld [vmem:[#allocation6 + $0x60] sm:$0xff]  ;;  %v10870_v63 = vcombine.low %v1568_v58, %v1572_v12  ;;  %v10872_v1 = vcombine.high %v1568_v58, %v1572_v12 }
  0xcb   :  { %v10874_v2 = vcombine.high %v1575_v61, %v1579_v62 }
  0xcd   :  { %1452 = vmatpush1.bf16.msra.mxu0 %v9266_v3  ;;  %1477 = vmatpush1.bf16.msra.mxu1 %v9204_v4  ;;  %v1576_v3 = vld [vmem:[#allocation6 + $0x48] sm:$0xff] }
  0xce   :  { %1478 = vmatprep.subr.bf16.mxu1 %v9213_v0  ;;  %v1580_v4 = vld [vmem:[#allocation6 + $0x68] sm:$0xff]  ;;  %2335 = vmatprep.subr.bf16.mxu0 %v10868_v60 }
  0xcf   :  { %v10877_v6 = vcombine.high %v1576_v3, %v1580_v4 }
  0xd0   :  { %1454 = vmatmul.mubr.bf16.vlgmr.msra.gmra.mrb[28].mxu0 %v10614_v8 }
  0xd1   :  { %1479 = vmatpush1.bf16.msra.mxu1 %v9212_v7  ;;  %2336 = vmatpush1.bf16.msra.mxu0 %v10866_v59 }
  0xd2   :  { %1480 = vmatprep.subr.bf16.mxu1 %v9221_v9  ;;  %2337 = vmatprep.subr.bf16.mxu0 %v10874_v2 }
  0xd5   :  { %1481 = vmatpush1.bf16.msra.mxu1 %v9220_v14  ;;  %v10887_v14 = vcombine.low %v1575_v61, %v1579_v62  ;;  %v1591_v61 = vld [vmem:[#allocation6 + $0xc0] sm:$0xff] }
  0xd6   :  { %1482 = vmatprep.subr.bf16.mxu1 %v9229_v30  ;;  %v1595_v62 = vld [vmem:[#allocation6 + $0xe0] sm:$0xff] }
  0xd7   :  { %2338 = vmatpush1.bf16.msra.mxu0 %v10887_v14 }
  0xd9   :  { %1483 = vmatpush1.bf16.msra.mxu1 %v9228_v17 }
  0xda   :  { %1484 = vmatprep.subr.bf16.mxu1 %v9237_v18  ;;  %v10897_v18 = vcombine.low %v1576_v3, %v1580_v4  ;;  %v1592_v3 = vld [vmem:[#allocation6 + $0xc8] sm:$0xff] }
  0xdd   :  { %1485 = vmatpush1.bf16.msra.mxu1 %v9236_v21 }
  0xde   :  { %1486 = vmatprep.subr.bf16.mxu1 %v9245_v22 }
  0xe1   :  { %1487 = vmatpush1.bf16.msra.mxu1 %v9244_v25 }
  0xe2   :  { %1488 = vmatprep.subr.bf16.mxu1 %v9253_v26  ;;  %v127_v26 = vsub.s32 5, %v10825_v38 }
  0xe5   :  { %1489 = vmatpush1.bf16.msra.mxu1 %v9252_v31  ;;  %v1583_v31 = vld [vmem:[#allocation6 + $0x80] sm:$0xff] }
  0xe6   :  { %1490 = vmatprep.subr.bf16.mxu1 %v9261_v11  ;;  %v1587_v11 = vld [vmem:[#allocation6 + $0xa0] sm:$0xff] }
  0xe9   :  { %1491 = vmatpush1.bf16.msra.mxu1 %v9260_v34  ;;  %v10921_v34 = vcombine.high %v1583_v31, %v1587_v11 }
  0xea   :  { %1492 = vmatprep.subr.bf16.mxu1 %v9269_v35  ;;  %v1588_v35 = vld [vmem:[#allocation6 + $0xa8] sm:$0xff] }
  0xeb   :  { %2339 = vmatprep.subr.bf16.mxu0 %v10921_v34 }
  0xed   :  { %1493 = vmatpush1.bf16.msra.mxu1 %v9268_v36 }
  0xee   :  { %2376 = vmatprep.subr.bf16.mxu1 %v10872_v1 }
  0xf0   :  { %1495 = vmatmul.mubr.bf16.vlgmr.msra.gmra.mrb[44].mxu1 %v10614_v8  ;;  %v10842_v8 = vrot.slane %v10831_v40, %v12876_v41 }
  0xf1   :  { %2377 = vmatpush1.bf16.msra.mxu1 %v10870_v63 }
  0xf2   :  { %2378 = vmatprep.subr.bf16.mxu1 %v10877_v6 }
  0xf5   :  { %2379 = vmatpush1.bf16.msra.mxu1 %v10897_v18 }
 0x113   :  { %v252_v43 = vpop.f32.mrb[0].mxu1  ;;  %v10844_v44 = vpop.f32.mrb[0].mxu0 }
 0x114   :  { %v10847_v45 = vadd.f32 %v252_v43, %v10837_v42  ;;  %v254_v46 = vpop.f32.mrb[1].mxu1  ;;  %v10849_v29 = vpop.f32.mrb[1].mxu0  ;;  %v10928_v43 = vrot.slane %v10831_v40, %v127_v26 }
 0x115   :  { %v10852_v47 = vadd.f32 %v254_v46, %v10842_v8  ;;  %v256_v48 = vpop.f32.mrb[2].mxu1  ;;  %v236_v49 = vpop.f32.mrb[2].mxu0  ;;  %v10930_v46 = vcombine.low %v1583_v31, %v1587_v11  ;;  %v1600_v31 = vld [vmem:[#allocation6 + $0x108] sm:$0xff] }
 0x116   :  { %13112 = vst [vmem:[#allocation17_spill] sm:$0xff] %v10847_v45  ;;  %v10855_v50 = vadd.f32 %v256_v48, %v10837_v42  ;;  %v258_v51 = vpop.f32.mrb[3].mxu1  ;;  %v10858_v52 = vadd.f32 %v236_v49, %v10837_v42  ;;  %v238_v53 = vpop.f32.mrb[3].mxu0  ;;  %v10932_v48 = vcombine.low %v1584_v32, %v1588_v35  ;;  %v10934_v49 = vcombine.high %v1584_v32, %v1588_v35  ;;  %v1604_v32 = vld [vmem:[#allocation6 + $0x128] sm:$0xff]  ;;  %v1619_v45 = vld [vmem:[#allocation6 + $0x1a0] sm:$0xff] }
 0x117   :  { %13113 = vst [vmem:[#allocation18_spill] sm:$0xff] %v10852_v47  ;;  %v10861_v54 = vadd.f32 %v258_v51, %v10842_v8  ;;  %v10864_v55 = vadd.f32 %v238_v53, %v10842_v8  ;;  %v10937_v51 = vrot.slane %v10831_v40, %v115_v27  ;;  %2340 = vmatpush1.bf16.msra.mxu0 %v10930_v46  ;;  %v1599_v27 = vld [vmem:[#allocation6 + $0x100] sm:$0xff] }
 0x118   :  { %13114 = vst [vmem:[#allocation19_spill] sm:$0xff] %v10855_v50  ;;  %13115 = vst [vmem:[#allocation20_spill] sm:$0xff] %v10858_v52  ;;  %2380 = vmatprep.subr.bf16.mxu1 %v10934_v49  ;;  %v10973_v11 = vcombine.high %v1599_v27, %v1603_v28  ;;  %v1615_v47 = vld [vmem:[#allocation6 + $0x180] sm:$0xff] }
 0x119   :  { %13116 = vst [vmem:[#allocation21_spill] sm:$0xff] %v10861_v54  ;;  %13117 = vst [vmem:[#allocation22_spill] sm:$0xff] %v10864_v55  ;;  %2381 = vmatpush1.bf16.msra.mxu1 %v10932_v48 }
 0x11b   :  { %v262_v0 = vpop.f32.mrb[4].mxu1  ;;  %v242_v5 = vpop.f32.mrb[4].mxu0 }
 0x11c   :  { %v10880_v7 = vadd.f32 %v262_v0, %v10837_v42  ;;  %v264_v9 = vpop.f32.mrb[5].mxu1  ;;  %v10883_v10 = vadd.f32 %v242_v5, %v10837_v42  ;;  %v244_v13 = vpop.f32.mrb[5].mxu0 }
 0x11d   :  { %v10890_v30 = vadd.f32 %v264_v9, %v10842_v8  ;;  %v266_v15 = vpop.f32.mrb[6].mxu1  ;;  %v10893_v16 = vadd.f32 %v244_v13, %v10842_v8  ;;  %v246_v17 = vpop.f32.mrb[6].mxu0  ;;  %v10956_v13 = vcombine.high %v1591_v61, %v1595_v62 }
 0x11e   :  { %13118 = vst [vmem:[#allocation23_spill] sm:$0xff] %v10880_v7  ;;  %13119 = vst [vmem:[#allocation24_spill] sm:$0xff] %v10883_v10  ;;  %v10900_v19 = vadd.f32 %v266_v15, %v10837_v42  ;;  %v268_v20 = vpop.f32.mrb[7].mxu1  ;;  %v10903_v21 = vadd.f32 %v246_v17, %v10837_v42  ;;  %v248_v22 = vpop.f32.mrb[7].mxu0  ;;  %v1596_v15 = vld [vmem:[#allocation6 + $0xe8] sm:$0xff] }
 0x11f   :  { %13120 = vst [vmem:[#allocation25_spill] sm:$0xff] %v10890_v30  ;;  %13121 = vst [vmem:[#allocation26_spill] sm:$0xff] %v10893_v16  ;;  %v10908_v24 = vadd.f32 %v268_v20, %v10842_v8  ;;  %v10911_v25 = vadd.f32 %v248_v22, %v10842_v8  ;;  %v10964_v22 = vcombine.low %v1591_v61, %v1595_v62  ;;  %2341 = vmatprep.subr.bf16.mxu0 %v10956_v13  ;;  %v1635_v16 = vld [vmem:[#allocation6 + $0x220] sm:$0xff] }
 0x120   :  { %13122 = vst [vmem:[#allocation27_spill] sm:$0xff] %v10900_v19  ;;  %13123 = vst [vmem:[#allocation28_spill] sm:$0xff] %v10903_v21  ;;  %v10966_v23 = vcombine.low %v1592_v3, %v1596_v15  ;;  %v10969_v26 = vcombine.high %v1592_v3, %v1596_v15  ;;  %v10978_v61 = vcombine.low %v1600_v31, %v1604_v32 }
 0x121   :  { %13124 = vst [vmem:[#allocation29_spill] sm:$0xff] %v10908_v24  ;;  %13125 = vst [vmem:[#allocation30_spill] sm:$0xff] %v10911_v25  ;;  %2342 = vmatpush1.bf16.msra.mxu0 %v10964_v22  ;;  %v10980_v62 = vcombine.high %v1600_v31, %v1604_v32  ;;  %v1607_v31 = vld [vmem:[#allocation6 + $0x140] sm:$0xff] }
 0x122   :  { %2382 = vmatprep.subr.bf16.mxu1 %v10969_v26  ;;  %2343 = vmatprep.subr.bf16.mxu0 %v10973_v11  ;;  %v1611_v32 = vld [vmem:[#allocation6 + $0x160] sm:$0xff] }
 0x123   :  { %v10923_v36 = vpop.f32.mrb[8].mxu1  ;;  %v10925_v37 = vpop.f32.mrb[8].mxu0  ;;  %2383 = vmatpush1.bf16.msra.mxu1 %v10966_v23  ;;  %v11003_v30 = vcombine.high %v1607_v31, %v1611_v32  ;;  %v11012_v50 = vcombine.low %v1607_v31, %v1611_v32  ;;  %v11024_v31 = vcombine.low %v1615_v47, %v1619_v45 }
 0x124   :  { %v10939_v53 = vpop.f32.mrb[9].mxu1  ;;  %v10941_v56 = vpop.f32.mrb[9].mxu0  ;;  %2384 = vmatprep.subr.bf16.mxu1 %v10980_v62 }
 0x125   :  { %v309_v58 = vpop.f32.mrb[10].mxu1  ;;  %v382_v12 = vpop.f32.mrb[10].mxu0 }
 0x126   :  { %v10950_v4 = vadd.f32 %v309_v58, %v10937_v51  ;;  %v311_v0 = vpop.f32.mrb[11].mxu1  ;;  %v10953_v5 = vadd.f32 %v382_v12, %v10919_v33  ;;  %v384_v9 = vpop.f32.mrb[11].mxu0  ;;  %v10976_v12 = vcombine.low %v1599_v27, %v1603_v28 }
 0x127   :  { %v10959_v17 = vadd.f32 %v311_v0, %v10945_v57  ;;  %v10962_v20 = vadd.f32 %v384_v9, %v10928_v43  ;;  %2385 = vmatpush1.bf16.msra.mxu1 %v10978_v61 }
 0x128   :  { %13126 = vst [vmem:[#allocation31_spill] sm:$0xff] %v10950_v4  ;;  %13127 = vst [vmem:[#allocation32_spill] sm:$0xff] %v10953_v5  ;;  %2344 = vmatpush1.bf16.msra.mxu0 %v10976_v12 }
 0x129   :  { %13128 = vst [vmem:[#allocation33_spill] sm:$0xff] %v10959_v17  ;;  %13129 = vst [vmem:[#allocation34_spill] sm:$0xff] %v10962_v20  ;;  %2345 = vmatprep.subr.bf16.mxu0 %v11003_v30  ;;  %v1639_v20 = vld [vmem:[#allocation6 + $0x240] sm:$0xff] }
 0x12b   :  { %v315_v35 = vpop.f32.mrb[12].mxu1  ;;  %v388_v58 = vpop.f32.mrb[12].mxu0 }
 0x12c   :  { %v10983_v3 = vadd.f32 %v315_v35, %v10937_v51  ;;  %v317_v0 = vpop.f32.mrb[13].mxu1  ;;  %v10986_v9 = vadd.f32 %v388_v58, %v10919_v33  ;;  %v390_v15 = vpop.f32.mrb[13].mxu0  ;;  %v1608_v35 = vld [vmem:[#allocation6 + $0x148] sm:$0xff]  ;;  %2346 = vmatpush1.bf16.msra.mxu0 %v11012_v50 }
 0x12d   :  { %v10990_v41 = vadd.f32 %v317_v0, %v10945_v57  ;;  %v319_v39 = vpop.f32.mrb[14].mxu1  ;;  %v10993_v27 = vadd.f32 %v390_v15, %v10928_v43  ;;  %v392_v28 = vpop.f32.mrb[14].mxu0  ;;  %v1612_v15 = vld [vmem:[#allocation6 + $0x168] sm:$0xff] }
 0x12e   :  { %13130 = vst [vmem:[#allocation35_spill] sm:$0xff] %v10983_v3  ;;  %13131 = vst [vmem:[#allocation36_spill] sm:$0xff] %v10986_v9  ;;  %v10998_v58 = vadd.f32 %v319_v39, %v10937_v51  ;;  %v321_v24 = vpop.f32.mrb[15].mxu1  ;;  %v11001_v19 = vadd.f32 %v392_v28, %v10919_v33  ;;  %v394_v0 = vpop.f32.mrb[15].mxu0  ;;  %v11014_v39 = vcombine.low %v1608_v35, %v1612_v15 }
 0x12f   :  { %13132 = vst [vmem:[#allocation37_spill] sm:$0xff] %v10990_v41  ;;  %13133 = vst [vmem:[#allocation38_spill] sm:$0xff] %v10993_v27  ;;  %v11006_v7 = vadd.f32 %v321_v24, %v10945_v57  ;;  %v11009_v54 = vadd.f32 %v394_v0, %v10928_v43  ;;  %v11017_v28 = vcombine.high %v1608_v35, %v1612_v15  ;;  %v1620_v0 = vld [vmem:[#allocation6 + $0x1a8] sm:$0xff]  ;;  %v1631_v41 = vld [vmem:[#allocation6 + $0x200] sm:$0xff] }
 0x130   :  { %13134 = vst [vmem:[#allocation39_spill] sm:$0xff] %v10998_v58  ;;  %13135 = vst [vmem:[#allocation40_spill] sm:$0xff] %v11001_v19  ;;  %v1616_v19 = vld [vmem:[#allocation6 + $0x188] sm:$0xff]  ;;  %v11021_v24 = vcombine.high %v1615_v47, %v1619_v45 }
 0x131   :  { %13136 = vst [vmem:[#allocation41_spill] sm:$0xff] %v11006_v7  ;;  %13137 = vst [vmem:[#allocation42_spill] sm:$0xff] %v11009_v54  ;;  %2386 = vmatprep.subr.bf16.mxu1 %v11017_v28  ;;  %v11026_v32 = vcombine.low %v1616_v19, %v1620_v0  ;;  %v11028_v35 = vcombine.high %v1616_v19, %v1620_v0  ;;  %v1627_v19 = vld [vmem:[#allocation6 + $0x1e0] sm:$0xff]  ;;  %v1624_v0 = vld [vmem:[#allocation6 + $0x1c8] sm:$0xff] }
 0x132   :  { %2387 = vmatpush1.bf16.msra.mxu1 %v11014_v39  ;;  %2347 = vmatprep.subr.bf16.mxu0 %v11021_v24 }
 0x133   :  { %v325_v54 = vpop.f32.mrb[16].mxu1  ;;  %v398_v7 = vpop.f32.mrb[16].mxu0  ;;  %2388 = vmatprep.subr.bf16.mxu1 %v11028_v35  ;;  %2348 = vmatpush1.bf16.msra.mxu0 %v11024_v31 }
 0x134   :  { %v11031_v15 = vadd.f32 %v325_v54, %v10937_v51  ;;  %v327_v25 = vpop.f32.mrb[17].mxu1  ;;  %v11034_v58 = vadd.f32 %v398_v7, %v10919_v33  ;;  %v400_v21 = vpop.f32.mrb[17].mxu0  ;;  %v1623_v54 = vld [vmem:[#allocation6 + $0x1c0] sm:$0xff] }
 0x135   :  { %v11038_v27 = vadd.f32 %v327_v25, %v10945_v57  ;;  %v329_v9 = vpop.f32.mrb[18].mxu1  ;;  %v11041_v45 = vadd.f32 %v400_v21, %v10928_v43  ;;  %v402_v47 = vpop.f32.mrb[18].mxu0  ;;  %v11053_v21 = vcombine.high %v1623_v54, %v1627_v19 }
 0x136   :  { %13138 = vst [vmem:[#allocation43_spill] sm:$0xff] %v11031_v15  ;;  %13139 = vst [vmem:[#allocation44_spill] sm:$0xff] %v11034_v58  ;;  %v11046_v7 = vadd.f32 %v329_v9, %v10937_v51  ;;  %v331_v58 = vpop.f32.mrb[19].mxu1  ;;  %v11049_v15 = vadd.f32 %v402_v47, %v10919_v33  ;;  %v404_v25 = vpop.f32.mrb[19].mxu0  ;;  %2389 = vmatpush1.bf16.msra.mxu1 %v11026_v32 }
 0x137   :  { %13140 = vst [vmem:[#allocation45_spill] sm:$0xff] %v11038_v27  ;;  %13141 = vst [vmem:[#allocation46_spill] sm:$0xff] %v11041_v45  ;;  %v11051_v27 = vcombine.low %v1623_v54, %v1627_v19  ;;  %v1628_v45 = vld [vmem:[#allocation6 + $0x1e8] sm:$0xff]  ;;  %v11056_v3 = vadd.f32 %v331_v58, %v10945_v57  ;;  %v11059_v10 = vadd.f32 %v404_v25, %v10928_v43  ;;  %2349 = vmatprep.subr.bf16.mxu0 %v11053_v21  ;;  %v1643_v58 = vld [vmem:[#allocation6 + $0x260] sm:$0xff] }
 0x138   :  { %13142 = vst [vmem:[#allocation47_spill] sm:$0xff] %v11046_v7  ;;  %13143 = vst [vmem:[#allocation48_spill] sm:$0xff] %v11049_v15  ;;  %v11062_v9 = vcombine.low %v1624_v0, %v1628_v45  ;;  %v11064_v47 = vcombine.high %v1624_v0, %v1628_v45  ;;  %v1632_v15 = vld [vmem:[#allocation6 + $0x208] sm:$0xff]  ;;  %v11067_v54 = vcombine.high %v1631_v41, %v1635_v16 }
 0x139   :  { %13144 = vst [vmem:[#allocation49_spill] sm:$0xff] %v11051_v27  ;;  %13145 = vst [vmem:[#allocation50_spill] sm:$0xff] %v11056_v3  ;;  %v1636_v7 = vld [vmem:[#allocation6 + $0x228] sm:$0xff]  ;;  %2350 = vmatpush1.bf16.msra.mxu0 %v11051_v27  ;;  %v11073_v25 = vcombine.low %v1631_v41, %v1635_v16  ;;  %v11076_v45 = vcombine.high %v1639_v20, %v1643_v58 }
 0x13a   :  { %13146 = vst [vmem:[#allocation51_spill] sm:$0xff] %v11059_v10  ;;  %13147 = vst [vmem:[#allocation52_spill] sm:$0xff] %v11062_v9  ;;  %v11069_v19 = vcombine.high %v1632_v15, %v1636_v7  ;;  %2390 = vmatprep.subr.bf16.mxu1 %v11064_v47  ;;  %v1640_v10 = vld [vmem:[#allocation6 + $0x248] sm:$0xff]  ;;  %2351 = vmatprep.subr.bf16.mxu0 %v11067_v54  ;;  %v11079_v17 = vcombine.low %v1632_v15, %v1636_v7 }
 0x13b   :  { %13148 = vst [vmem:[#allocation53_spill] sm:$0xff] %v11067_v54  ;;  %13149 = vst [vmem:[#allocation54_spill] sm:$0xff] %v11073_v25  ;;  %v1644_v3 = vld [vmem:[#allocation6 + $0x268] sm:$0xff]  ;;  %v335_v0 = vpop.f32.mrb[20].mxu1  ;;  %v408_v5 = vpop.f32.mrb[20].mxu0  ;;  %2391 = vmatpush1.bf16.msra.mxu1 %v11062_v9  ;;  %v11097_v7 = vcombine.low %v1639_v20, %v1643_v58  ;;  %v135_v58 = vsub.s32 7, %v10825_v38 }
 0x13c   :  { %13150 = vst [vmem:[#allocation55_spill] sm:$0xff] %v11076_v45  ;;  %13151 = vst [vmem:[#allocation56_spill] sm:$0xff] %v11079_v17  ;;  %v11082_v55 = vadd.f32 %v335_v0, %v10937_v51  ;;  %v337_v4 = vpop.f32.mrb[21].mxu1  ;;  %v11085_v52 = vadd.f32 %v408_v5, %v10919_v33  ;;  %v410_v41 = vpop.f32.mrb[21].mxu0  ;;  %2392 = vmatprep.subr.bf16.mxu1 %v11069_v19  ;;  %v11088_v16 = vcombine.high %v1640_v10, %v1644_v3 }
 0x13d   :  { %v11091_v54 = vadd.f32 %v337_v4, %v10945_v57  ;;  %v339_v27 = vpop.f32.mrb[22].mxu1  ;;  %v11094_v9 = vadd.f32 %v410_v41, %v10928_v43  ;;  %v412_v15 = vpop.f32.mrb[22].mxu0  ;;  %2352 = vmatpush1.bf16.msra.mxu0 %v11073_v25  ;;  %13157 = vst [vmem:[#allocation62_spill] sm:$0xff] %v11097_v7  ;;  %v11113_v20 = vcombine.low %v1640_v10, %v1644_v3 }
 0x13e   :  { %13152 = vst [vmem:[#allocation57_spill] sm:$0xff] %v11082_v55  ;;  %13153 = vst [vmem:[#allocation58_spill] sm:$0xff] %v11085_v52  ;;  %v11100_v5 = vadd.f32 %v339_v27, %v10937_v51  ;;  %v341_v0 = vpop.f32.mrb[23].mxu1  ;;  %v11103_v52 = vadd.f32 %v412_v15, %v10919_v33  ;;  %v414_v55 = vpop.f32.mrb[23].mxu0  ;;  %2353 = vmatprep.subr.bf16.mxu0 %v11076_v45  ;;  %v131_v27 = vsub.s32 6, %v10825_v38  ;;  %v1647_v15 = vld [vmem:[#allocation6 + $0x280] sm:$0xff] }
 0x13f   :  { %13154 = vst [vmem:[#allocation59_spill] sm:$0xff] %v11088_v16  ;;  %13155 = vst [vmem:[#allocation60_spill] sm:$0xff] %v11091_v54  ;;  %v11107_v4 = vadd.f32 %v341_v0, %v10945_v57  ;;  %v11110_v41 = vadd.f32 %v414_v55, %v10928_v43  ;;  %2393 = vmatpush1.bf16.msra.mxu1 %v11079_v17  ;;  %v11137_v54 = vrot.slane %v10831_v40, %v135_v58 }
 0x140   :  { %13156 = vst [vmem:[#allocation61_spill] sm:$0xff] %v11094_v9  ;;  %13158 = vst [vmem:[#allocation63_spill] sm:$0xff] %v11100_v5  ;;  %2394 = vmatprep.subr.bf16.mxu1 %v11088_v16  ;;  %v1648_v5 = vld [vmem:[#allocation6 + $0x288] sm:$0xff]  ;;  %v11131_v38 = vrot.slane %v10831_v40, %v131_v27 }
 0x141   :  { %13159 = vst [vmem:[#allocation64_spill] sm:$0xff] %v11103_v52  ;;  %13160 = vst [vmem:[#allocation65_spill] sm:$0xff] %v11107_v4  ;;  %2354 = vmatpush1.bf16.msra.mxu0 %v11097_v7  ;;  %v1651_v52 = vld [vmem:[#allocation6 + $0x2a0] sm:$0xff]  ;;  %v1652_v4 = vld [vmem:[#allocation6 + $0x2a8] sm:$0xff] }
 0x142   :  { %13161 = vst [vmem:[#allocation66_spill] sm:$0xff] %v11110_v41  ;;  %13162 = vst [vmem:[#allocation67_spill] sm:$0xff] %v11113_v20  ;;  %v11119_v0 = vcombine.high %v1647_v15, %v1651_v52  ;;  %v11124_v10 = vcombine.low %v1647_v15, %v1651_v52  ;;  %v11126_v3 = vcombine.low %v1648_v5, %v1652_v4  ;;  %v1655_v52 = vld [vmem:[#allocation6 + $0x2c0] sm:$0xff]  ;;  %v1660_v16 = vld [vmem:[#allocation6 + $0x2e8] sm:$0xff] }
 0x143   :  { %v11121_v55 = vpop.f32.mrb[24].mxu1  ;;  %2395 = vmatpush1.bf16.msra.mxu1 %v11113_v20  ;;  %v11128_v41 = vcombine.high %v1648_v5, %v1652_v4  ;;  %v1659_v15 = vld [vmem:[#allocation6 + $0x2e0] sm:$0xff]  ;;  %v1656_v20 = vld [vmem:[#allocation6 + $0x2c8] sm:$0xff] }
 0x144   :  { %13163 = vst [vmem:[#allocation68_spill] sm:$0xff] %v11119_v0  ;;  %13164 = vst [vmem:[#allocation69_spill] sm:$0xff] %v11124_v10  ;;  %v11133_v9 = vpop.f32.mrb[25].mxu1  ;;  %2355 = vmatprep.subr.bf16.mxu0 %v11119_v0  ;;  %v11144_v27 = vcombine.high %v1655_v52, %v1659_v15  ;;  %v11150_v40 = vcombine.low %v1655_v52, %v1659_v15  ;;  %v11152_v58 = vcombine.low %v1656_v20, %v1660_v16 }
 0x145   :  { %13165 = vst [vmem:[#allocation70_spill] sm:$0xff] %v11126_v3  ;;  %13166 = vst [vmem:[#allocation71_spill] sm:$0xff] %v11128_v41  ;;  %v455_v7 = vpop.f32.mrb[26].mxu1  ;;  %2396 = vmatprep.subr.bf16.mxu1 %v11128_v41  ;;  %2356 = vmatpush1.bf16.msra.mxu0 %v11124_v10  ;;  %v11154_v10 = vcombine.high %v1656_v20, %v1660_v16  ;;  %v1664_v41 = vld [vmem:[#allocation6 + $0x308] sm:$0xff] }
 0x146   :  { %v11142_v5 = vadd.f32 %v455_v7, %v11131_v38  ;;  %v457_v4 = vpop.f32.mrb[27].mxu1  ;;  %13168 = vst [vmem:[#allocation73_spill] sm:$0xff] %v11144_v27  ;;  %13170 = vst [vmem:[#allocation75_spill] sm:$0xff] %v11150_v40  ;;  %2357 = vmatprep.subr.bf16.mxu0 %v11144_v27  ;;  %v1663_v7 = vld [vmem:[#allocation6 + $0x300] sm:$0xff] }
 0x147   :  { %v11147_v0 = vadd.f32 %v457_v4, %v11137_v54  ;;  %2397 = vmatpush1.bf16.msra.mxu1 %v11126_v3  ;;  %13171 = vst [vmem:[#allocation76_spill] sm:$0xff] %v11152_v58  ;;  %13172 = vst [vmem:[#allocation77_spill] sm:$0xff] %v11154_v10  ;;  %v1668_v4 = vld [vmem:[#allocation6 + $0x328] sm:$0xff] }
 0x148   :  { %13167 = vst [vmem:[#allocation72_spill] sm:$0xff] %v11142_v5  ;;  %2398 = vmatprep.subr.bf16.mxu1 %v11154_v10  ;;  %v1667_v5 = vld [vmem:[#allocation6 + $0x320] sm:$0xff]  ;;  %v11164_v15 = vcombine.low %v1664_v41, %v1668_v4  ;;  %v11166_v16 = vcombine.high %v1664_v41, %v1668_v4 }
 0x149   :  { %13169 = vst [vmem:[#allocation74_spill] sm:$0xff] %v11147_v0  ;;  %2358 = vmatpush1.bf16.msra.mxu0 %v11150_v40  ;;  %v11159_v45 = vcombine.high %v1663_v7, %v1667_v5  ;;  %v11162_v52 = vcombine.low %v1663_v7, %v1667_v5  ;;  %v1671_v5 = vld [vmem:[#allocation6 + $0x340] sm:$0xff] }
 0x14a   :  { %13175 = vst [vmem:[#allocation80_spill] sm:$0xff] %v11164_v15  ;;  %13176 = vst [vmem:[#allocation81_spill] sm:$0xff] %v11166_v16  ;;  %v1675_v7 = vld [vmem:[#allocation6 + $0x360] sm:$0xff] }
 0x14b   :  { %13173 = vst [vmem:[#allocation78_spill] sm:$0xff] %v11159_v45  ;;  %v461_v0 = vpop.f32.mrb[28].mxu1  ;;  %2399 = vmatpush1.bf16.msra.mxu1 %v11152_v58  ;;  %13174 = vst [vmem:[#allocation79_spill] sm:$0xff] %v11162_v52  ;;  %2359 = vmatprep.subr.bf16.mxu0 %v11159_v45  ;;  %v1672_v58 = vld [vmem:[#allocation6 + $0x348] sm:$0xff] }
 0x14c   :  { %v11169_v20 = vadd.f32 %v461_v0, %v11131_v38  ;;  %v463_v10 = vpop.f32.mrb[29].mxu1  ;;  %2400 = vmatprep.subr.bf16.mxu1 %v11166_v16  ;;  %v11180_v0 = vcombine.high %v1671_v5, %v1675_v7  ;;  %v1680_v16 = vld [vmem:[#allocation6 + $0x388] sm:$0xff] }
 0x14d   :  { %v11173_v40 = vadd.f32 %v463_v10, %v11137_v54  ;;  %v465_v27 = vpop.f32.mrb[30].mxu1  ;;  %2360 = vmatpush1.bf16.msra.mxu0 %v11162_v52  ;;  %v11186_v10 = vcombine.low %v1671_v5, %v1675_v7 }
 0x14e   :  { %13177 = vst [vmem:[#allocation82_spill] sm:$0xff] %v11169_v20  ;;  %v11178_v41 = vadd.f32 %v465_v27, %v11131_v38  ;;  %v467_v4 = vpop.f32.mrb[31].mxu1  ;;  %13180 = vst [vmem:[#allocation85_spill] sm:$0xff] %v11180_v0  ;;  %v1676_v20 = vld [vmem:[#allocation6 + $0x368] sm:$0xff]  ;;  %2361 = vmatprep.subr.bf16.mxu0 %v11180_v0  ;;  %v1679_v27 = vld [vmem:[#allocation6 + $0x380] sm:$0xff] }
 0x14f   :  { %13178 = vst [vmem:[#allocation83_spill] sm:$0xff] %v11173_v40  ;;  %v11183_v45 = vadd.f32 %v467_v4, %v11137_v54  ;;  %2401 = vmatpush1.bf16.msra.mxu1 %v11164_v15  ;;  %13182 = vst [vmem:[#allocation87_spill] sm:$0xff] %v11186_v10  ;;  %v11188_v40 = vcombine.low %v1672_v58, %v1676_v20  ;;  %v11190_v52 = vcombine.high %v1672_v58, %v1676_v20  ;;  %v1684_v4 = vld [vmem:[#allocation6 + $0x3a8] sm:$0xff] }
 0x150   :  { %13179 = vst [vmem:[#allocation84_spill] sm:$0xff] %v11178_v41  ;;  %v1683_v41 = vld [vmem:[#allocation6 + $0x3a0] sm:$0xff]  ;;  %v11200_v7 = vcombine.low %v1680_v16, %v1684_v4  ;;  %v11202_v58 = vcombine.high %v1680_v16, %v1684_v4 }
 0x151   :  { %13181 = vst [vmem:[#allocation86_spill] sm:$0xff] %v11183_v45  ;;  %13183 = vst [vmem:[#allocation88_spill] sm:$0xff] %v11188_v40  ;;  %2402 = vmatprep.subr.bf16.mxu1 %v11190_v52  ;;  %2362 = vmatpush1.bf16.msra.mxu0 %v11186_v10  ;;  %v11195_v3 = vcombine.high %v1679_v27, %v1683_v41  ;;  %v11198_v5 = vcombine.low %v1679_v27, %v1683_v41  ;;  %v1687_v41 = vld [vmem:[#allocation6 + $0x3c0] sm:$0xff] }
 0x152   :  { %13184 = vst [vmem:[#allocation89_spill] sm:$0xff] %v11190_v52  ;;  %13187 = vst [vmem:[#allocation92_spill] sm:$0xff] %v11200_v7  ;;  %v1691_v27 = vld [vmem:[#allocation6 + $0x3e0] sm:$0xff] }
 0x153   :  { %13185 = vst [vmem:[#allocation90_spill] sm:$0xff] %v11195_v3  ;;  %v471_v45 = vpop.f32.mrb[32].mxu1  ;;  %2403 = vmatpush1.bf16.msra.mxu1 %v11188_v40  ;;  %13186 = vst [vmem:[#allocation91_spill] sm:$0xff] %v11198_v5  ;;  %2363 = vmatprep.subr.bf16.mxu0 %v11195_v3  ;;  %v1688_v40 = vld [vmem:[#allocation6 + $0x3c8] sm:$0xff] }
 0x154   :  { %13188 = vst [vmem:[#allocation93_spill] sm:$0xff] %v11202_v58  ;;  %v11205_v20 = vadd.f32 %v471_v45, %v11131_v38  ;;  %v473_v52 = vpop.f32.mrb[33].mxu1  ;;  %2404 = vmatprep.subr.bf16.mxu1 %v11202_v58  ;;  %v11216_v45 = vcombine.high %v1687_v41, %v1691_v27  ;;  %v1570_v58 = vld [vmem:[#allocation6 + $0x18] sm:$0xff] }
 0x155   :  { %v11209_v10 = vadd.f32 %v473_v52, %v11137_v54  ;;  %v475_v0 = vpop.f32.mrb[34].mxu1  ;;  %2364 = vmatpush1.bf16.msra.mxu0 %v11198_v5  ;;  %v11222_v52 = vcombine.low %v1687_v41, %v1691_v27 }
 0x156   :  { %13189 = vst [vmem:[#allocation94_spill] sm:$0xff] %v11205_v20  ;;  %v11214_v16 = vadd.f32 %v475_v0, %v11131_v38  ;;  %v477_v4 = vpop.f32.mrb[35].mxu1  ;;  %13192 = vst [vmem:[#allocation97_spill] sm:$0xff] %v11216_v45  ;;  %v1692_v20 = vld [vmem:[#allocation6 + $0x3e8] sm:$0xff]  ;;  %2365 = vmatprep.subr.bf16.mxu0 %v11216_v45  ;;  %v1569_v0 = vld [vmem:[#allocation6 + $0x10] sm:$0xff] }
 0x157   :  { %13190 = vst [vmem:[#allocation95_spill] sm:$0xff] %v11209_v10  ;;  %v11219_v3 = vadd.f32 %v477_v4, %v11137_v54  ;;  %2405 = vmatpush1.bf16.msra.mxu1 %v11200_v7  ;;  %13194 = vst [vmem:[#allocation99_spill] sm:$0xff] %v11222_v52  ;;  %v11224_v10 = vcombine.low %v1688_v40, %v1692_v20  ;;  %v11226_v5 = vcombine.high %v1688_v40, %v1692_v20  ;;  %v1574_v4 = vld [vmem:[#allocation6 + $0x38] sm:$0xff] }
 0x158   :  { %13191 = vst [vmem:[#allocation96_spill] sm:$0xff] %v11214_v16  ;;  %v1573_v16 = vld [vmem:[#allocation6 + $0x30] sm:$0xff]  ;;  %v11236_v27 = vcombine.low %v1570_v58, %v1574_v4  ;;  %v11238_v40 = vcombine.high %v1570_v58, %v1574_v4  ;;  %v235_v58 = vadd.f32 %v10849_v29, %v10842_v8 }
 0x159   :  { %13193 = vst [vmem:[#allocation98_spill] sm:$0xff] %v11219_v3  ;;  %13195 = vst [vmem:[#allocation100_spill] sm:$0xff] %v11224_v10  ;;  %2406 = vmatprep.subr.bf16.mxu1 %v11226_v5  ;;  %2366 = vmatpush1.bf16.msra.mxu0 %v11222_v52  ;;  %v11231_v15 = vcombine.high %v1569_v0, %v1573_v16  ;;  %v11234_v41 = vcombine.low %v1569_v0, %v1573_v16 }
 0x15a   :  { %13196 = vst [vmem:[#allocation101_spill] sm:$0xff] %v11226_v5  ;;  %13198 = vst [vmem:[#allocation103_spill] sm:$0xff] %v11238_v40 }
 0x15b   :  { %13197 = vst [vmem:[#allocation102_spill] sm:$0xff] %v11231_v15  ;;  %v481_v3 = vpop.f32.mrb[36].mxu1  ;;  %2407 = vmatpush1.bf16.msra.mxu1 %v11224_v10  ;;  %2417 = vmatprep.subr.bf16.mxu0 %v11231_v15 }
 0x15c   :  { %v11241_v20 = vadd.f32 %v481_v3, %v11131_v38  ;;  %v483_v5 = vpop.f32.mrb[37].mxu1  ;;  %2458 = vmatprep.subr.bf16.mxu1 %v11238_v40  ;;  %v233_v3 = vadd.f32 %v10844_v44, %v10837_v42 }
 0x15d   :  { %v11245_v52 = vadd.f32 %v483_v5, %v11137_v54  ;;  %v485_v45 = vpop.f32.mrb[38].mxu1 }
 0x15e   :  { %13199 = vst [vmem:[#allocation104_spill] sm:$0xff] %v11241_v20  ;;  %v11249_v10 = vadd.f32 %v485_v45, %v11131_v38  ;;  %v487_v16 = vpop.f32.mrb[39].mxu1  ;;  %v306_v45 = vadd.f32 %v10923_v36, %v10937_v51  ;;  %v379_v36 = vadd.f32 %v10925_v37, %v10919_v33  ;;  %v381_v51 = vadd.f32 %v10941_v56, %v10928_v43 }
 0x15f   :  { %13200 = vst [vmem:[#allocation105_spill] sm:$0xff] %v11245_v52  ;;  %v11252_v0 = vadd.f32 %v487_v16, %v11137_v54 }
 0x160   :  { %13201 = vst [vmem:[#allocation106_spill] sm:$0xff] %v11249_v10  ;;  %v308_v10 = vadd.f32 %v10939_v53, %v10945_v57 }
 0x161   :  { %13202 = vst [vmem:[#allocation107_spill] sm:$0xff] %v11252_v0 }
 0x163   :  { %v1373_v4 = vpop.f32.mrb[24].mxu0 }
 0x164   :  { %v1503_v20 = vadd.f32 %v1373_v4, %v233_v3  ;;  %v1375_v5 = vpop.f32.mrb[25].mxu0 }
 0x165   :  { %v1504_v52 = vadd.f32 %v1375_v5, %v235_v58  ;;  %v1377_v15 = vpop.f32.mrb[26].mxu0 }
 0x166   :  { %v1378_v7 = vpop.f32.mrb[27].mxu0  ;;  %v1511_v29 = vmul.f32 0.5, %v1503_v20 }
 0x167   :  { %v1512_v3 = vmul.f32 0.5, %v1504_v52 }
 0x183   :  { %v1414_v16 = vpop.f32.mrb[40].mxu1 }
 0x184   :  { %v1505_v0 = vadd.f32 %v1414_v16, %v306_v45  ;;  %v1416_v40 = vpop.f32.mrb[41].mxu1 }
 0x185   :  { %v1506_v17 = vadd.f32 %v1416_v40, %v308_v10  ;;  %v1418_v42 = vpop.f32.mrb[42].mxu1 }
 0x186   :  { %v1419_v44 = vpop.f32.mrb[43].mxu1  ;;  %v1519_v25 = vmul.f32 0.5, %v1505_v0 }
 0x187   :  { %v1520_v8 = vmul.f32 0.5, %v1506_v17 }
 0x188   :  { %10334 = vtanh.f32 %v1519_v25 }
 0x189   :  { %10336 = vtanh.f32 %v1520_v8 }
 0x18a   :  { %10338 = vtanh.f32 %v1511_v29 }
 0x18b   :  { %10340 = vtanh.f32 %v1512_v3 }
 0x192   :  { %v10335_v40 = vpop.eup %10334 }
 0x193   :  { %v10337_v20 = vpop.eup %10336  ;;  %v1523_v0 = vadd.f32 1.0, %v10335_v40 }
 0x194   :  { %v10339_v25 = vpop.eup %10338  ;;  %v1524_v58 = vadd.f32 1.0, %v10337_v20 }
 0x195   :  { %v10341_v52 = vpop.eup %10340  ;;  %v1515_v4 = vadd.f32 1.0, %v10339_v25  ;;  %v1525_v33 = vmul.f32 0.5, %v1523_v0 }
 0x196   :  { %v1516_v5 = vadd.f32 1.0, %v10341_v52  ;;  %v1526_v37 = vmul.f32 0.5, %v1524_v58 }
 0x197   :  { %v1517_v45 = vmul.f32 0.5, %v1515_v4  ;;  %v1537_v42 = vmul.f32 0.0, %v1525_v33 }
 0x198   :  { %v1518_v56 = vmul.f32 0.5, %v1516_v5  ;;  %v1538_v8 = vmul.f32 0.0, %v1526_v37  ;;  %v1577_v37 = vld [vmem:[#allocation6 + $0x50] sm:$0xff] }
 0x1a3   :  { %v1455_v53 = vpop.f32.mrb[28].mxu0 }
 0x1a4   :  { %v1507_v57 = vadd.f32 %v1455_v53, %v379_v36  ;;  %v1457_v15 = vpop.f32.mrb[29].mxu0  ;;  %v454_v53 = vadd.f32 %v11133_v9, %v11137_v54 }
 0x1a5   :  { %v1508_v10 = vadd.f32 %v1457_v15, %v381_v51  ;;  %v1459_v7 = vpop.f32.mrb[30].mxu0  ;;  %v452_v51 = vadd.f32 %v11121_v55, %v11131_v38 }
 0x1a6   :  { %10342 = vtanh.f32 %v1507_v57  ;;  %v1460_v17 = vpop.f32.mrb[31].mxu0 }
 0x1a7   :  { %10344 = vtanh.f32 %v1508_v10 }
 0x1b0   :  { %v10343_v43 = vpop.eup %10342 }
 0x1b1   :  { %v10345_v16 = vpop.eup %10344  ;;  %v1539_v44 = vmul.f32 %v10343_v43, %v1517_v45  ;;  %v1581_v45 = vld [vmem:[#allocation6 + $0x70] sm:$0xff]  ;;  %v1578_v43 = vld [vmem:[#allocation6 + $0x58] sm:$0xff] }
 0x1b2   :  { %v1540_v29 = vmul.f32 %v10345_v16, %v1518_v56  ;;  %v1582_v56 = vld [vmem:[#allocation6 + $0x78] sm:$0xff] }
 0x1b3   :  { %v11266_v3 = vadd.f32 %v1539_v44, %v1537_v42  ;;  %v1585_v44 = vld [vmem:[#allocation6 + $0x90] sm:$0xff] }
 0x1b4   :  { %v11268_v36 = vadd.f32 %v1540_v29, %v1538_v8  ;;  %v11286_v8 = vcombine.high %v1577_v37, %v1581_v45  ;;  %v11288_v29 = vcombine.high %v1578_v43, %v1582_v56 }
 0x1c3   :  { %v1496_v57 = vpop.f32.mrb[44].mxu1 }
 0x1c4   :  { %v1509_v15 = vadd.f32 %v1496_v57, %v452_v51  ;;  %v1498_v10 = vpop.f32.mrb[45].mxu1  ;;  %v1589_v51 = vld [vmem:[#allocation6 + $0xb0] sm:$0xff]  ;;  %v1590_v57 = vld [vmem:[#allocation6 + $0xb8] sm:$0xff] }
 0x1c5   :  { %v1510_v7 = vadd.f32 %v1498_v10, %v454_v53  ;;  %v1500_v40 = vpop.f32.mrb[46].mxu1  ;;  %v1586_v53 = vld [vmem:[#allocation6 + $0x98] sm:$0xff]  ;;  %v11296_v10 = vcombine.low %v1578_v43, %v1582_v56 }
 0x1c6   :  { %v1529_v17 = vmul.f32 0.5, %v1509_v15  ;;  %v1501_v20 = vpop.f32.mrb[47].mxu1  ;;  %v11294_v15 = vcombine.low %v1577_v37, %v1581_v45  ;;  %v11300_v40 = vcombine.high %v1586_v53, %v1590_v57  ;;  %v1606_v37 = vld [vmem:[#allocation6 + $0x138] sm:$0xff] }
 0x1c7   :  { %v1530_v25 = vmul.f32 0.5, %v1510_v7  ;;  %v11298_v7 = vcombine.high %v1585_v44, %v1589_v51  ;;  %v1597_v20 = vld [vmem:[#allocation6 + $0xf0] sm:$0xff] }
 0x1c8   :  { %10346 = vtanh.f32 %v1529_v17  ;;  %v1593_v17 = vld [vmem:[#allocation6 + $0xd0] sm:$0xff] }
 0x1c9   :  { %10348 = vtanh.f32 %v1530_v25  ;;  %v1594_v25 = vld [vmem:[#allocation6 + $0xd8] sm:$0xff]  ;;  %v11318_v45 = vcombine.low %v1593_v17, %v1597_v20 }
 0x1ca   :  { %10350 = vtanh.f32 %v11266_v3 }
 0x1cb   :  { %10352 = vtanh.f32 %v11268_v36  ;;  %13207 = vst [vmem:[#allocation112_spill] sm:$0xff] %v11318_v45 }
 0x1d2   :  { %v10347_v52 = vpop.eup %10346 }
 0x1d3   :  { %v10349_v0 = vpop.eup %10348  ;;  %v1533_v38 = vadd.f32 1.0, %v10347_v52  ;;  %v1598_v52 = vld [vmem:[#allocation6 + $0xf8] sm:$0xff] }
 0x1d4   :  { %v1534_v55 = vadd.f32 1.0, %v10349_v0  ;;  %v10351_v9 = vpop.eup %10350  ;;  %v11306_v0 = vcombine.low %v1585_v44, %v1589_v51  ;;  %v11320_v43 = vcombine.low %v1594_v25, %v1598_v52  ;;  %v1609_v44 = vld [vmem:[#allocation6 + $0x150] sm:$0xff] }
 0x1d5   :  { %v1535_v58 = vmul.f32 0.5, %v1533_v38  ;;  %v10353_v4 = vpop.eup %10352  ;;  %v11308_v38 = vcombine.low %v1586_v53, %v1590_v57  ;;  %v1613_v51 = vld [vmem:[#allocation6 + $0x170] sm:$0xff]  ;;  %v1610_v53 = vld [vmem:[#allocation6 + $0x158] sm:$0xff] }
 0x1d6   :  { %v1536_v54 = vmul.f32 0.5, %v1534_v55  ;;  %13203 = vst [vmem:[#allocation108_spill] sm:$0xff] %v11306_v0  ;;  %v11312_v55 = vcombine.high %v1593_v17, %v1597_v20  ;;  %13208 = vst [vmem:[#allocation113_spill] sm:$0xff] %v11320_v43  ;;  %v1614_v57 = vld [vmem:[#allocation6 + $0x178] sm:$0xff] }
 0x1d7   :  { %v11276_v5 = vmul.f32 %v10351_v9, %v1535_v58  ;;  %13204 = vst [vmem:[#allocation109_spill] sm:$0xff] %v11308_v38  ;;  %v11314_v58 = vcombine.high %v1594_v25, %v1598_v52  ;;  %v1601_v9 = vld [vmem:[#allocation6 + $0x110] sm:$0xff]  ;;  %v11336_v25 = vcombine.high %v1609_v44, %v1613_v51  ;;  %v11338_v52 = vcombine.high %v1610_v53, %v1614_v57 }
 0x1d8   :  { %v11278_v33 = vmul.f32 %v10353_v4, %v1536_v54  ;;  %13205 = vst [vmem:[#allocation110_spill] sm:$0xff] %v11312_v55  ;;  %v1605_v54 = vld [vmem:[#allocation6 + $0x130] sm:$0xff]  ;;  %v1602_v4 = vld [vmem:[#allocation6 + $0x118] sm:$0xff] }
 0x1d9   :  { %v11284_v42 = vpack.c.bf16 %v11276_v5, %v11276_v5  ;;  %13206 = vst [vmem:[#allocation111_spill] sm:$0xff] %v11314_v58  ;;  %v11324_v56 = vcombine.high %v1601_v9, %v1605_v54  ;;  %v11330_v17 = vcombine.low %v1601_v9, %v1605_v54  ;;  %v11332_v20 = vcombine.low %v1602_v4, %v1606_v37 }
 0x1da   :  { %v1566_v16 = vpack.c.bf16 %v11278_v33, %v11278_v33  ;;  %13213 = vst [vmem:[#allocation118_spill] sm:$0xff] %v11336_v25  ;;  %13214 = vst [vmem:[#allocation119_spill] sm:$0xff] %v11338_v52  ;;  %v11342_v9 = vcombine.low %v1609_v44, %v1613_v51  ;;  %v11344_v54 = vcombine.low %v1610_v53, %v1614_v57 }
 0x1db   :  { %13209 = vst [vmem:[#allocation114_spill] sm:$0xff] %v11324_v56  ;;  %13211 = vst [vmem:[#allocation116_spill] sm:$0xff] %v11330_v17 }
 0x1dc   :  { %2367 = vmatprep.mubr.bf16.mxu0 %v1566_v16  ;;  %2408 = vmatprep.mubr.bf16.mxu1 %v1566_v16  ;;  %13212 = vst [vmem:[#allocation117_spill] sm:$0xff] %v11332_v20  ;;  %13215 = vst [vmem:[#allocation120_spill] sm:$0xff] %v11342_v9 }
 0x1dd   :  { %2368 = vmatmul.mubr.bf16.vlgmr.msra.gmra.mrb[32].mxu0 %v11284_v42  ;;  %2409 = vmatmul.mubr.bf16.vlgmr.msra.gmra.mrb[48].mxu1 %v11284_v42  ;;  %13216 = vst [vmem:[#allocation121_spill] sm:$0xff] %v11344_v54 }
 0x1de   :  { %2418 = vmatpush1.bf16.msra.mxu0 %v11234_v41  ;;  %2459 = vmatpush1.bf16.msra.mxu1 %v11236_v27 }
 0x1df   :  { %2449 = vmatprep.mubr.bf16.mxu0 %v1566_v16  ;;  %2490 = vmatprep.mubr.bf16.mxu1 %v1566_v16  ;;  %v11326_v16 = vcombine.high %v1602_v4, %v1606_v37 }
 0x1e0   :  { %2419 = vmatprep.subr.bf16.mxu0 %v11286_v8  ;;  %2460 = vmatprep.subr.bf16.mxu1 %v11288_v29 }
 0x1e1   :  { %13210 = vst [vmem:[#allocation115_spill] sm:$0xff] %v11326_v16 }
 0x1e2   :  { %2420 = vmatpush1.bf16.msra.mxu0 %v11294_v15  ;;  %2461 = vmatpush1.bf16.msra.mxu1 %v11296_v10 }
 0x1e3   :  { %2421 = vmatprep.subr.bf16.mxu0 %v11298_v7  ;;  %2462 = vmatprep.subr.bf16.mxu1 %v11300_v40 }
 0x1e6   :  { %2422 = vmatpush1.bf16.msra.mxu0 %v11306_v0  ;;  %2463 = vmatpush1.bf16.msra.mxu1 %v11308_v38  ;;  %v1618_v38 = vld [vmem:[#allocation6 + $0x198] sm:$0xff] }
 0x1e7   :  { %2423 = vmatprep.subr.bf16.mxu0 %v11312_v55  ;;  %2464 = vmatprep.subr.bf16.mxu1 %v11314_v58  ;;  %v1617_v58 = vld [vmem:[#allocation6 + $0x190] sm:$0xff]  ;;  %v1622_v0 = vld [vmem:[#allocation6 + $0x1b8] sm:$0xff] }
 0x1e8   :  { %v1621_v55 = vld [vmem:[#allocation6 + $0x1b0] sm:$0xff]  ;;  %v11350_v37 = vcombine.high %v1618_v38, %v1622_v0  ;;  %v11356_v51 = vcombine.low %v1618_v38, %v1622_v0 }
 0x1e9   :  { %v11348_v4 = vcombine.high %v1617_v58, %v1621_v55  ;;  %v11354_v44 = vcombine.low %v1617_v58, %v1621_v55 }
 0x1ea   :  { %2424 = vmatpush1.bf16.msra.mxu0 %v11318_v45  ;;  %2465 = vmatpush1.bf16.msra.mxu1 %v11320_v43  ;;  %13218 = vst [vmem:[#allocation123_spill] sm:$0xff] %v11350_v37  ;;  %v1626_v43 = vld [vmem:[#allocation6 + $0x1d8] sm:$0xff]  ;;  %13220 = vst [vmem:[#allocation125_spill] sm:$0xff] %v11356_v51 }
 0x1eb   :  { %2425 = vmatprep.subr.bf16.mxu0 %v11324_v56  ;;  %2466 = vmatprep.subr.bf16.mxu1 %v11326_v16  ;;  %13217 = vst [vmem:[#allocation122_spill] sm:$0xff] %v11348_v4  ;;  %v1625_v16 = vld [vmem:[#allocation6 + $0x1d0] sm:$0xff]  ;;  %v1630_v45 = vld [vmem:[#allocation6 + $0x1f8] sm:$0xff]  ;;  %13219 = vst [vmem:[#allocation124_spill] sm:$0xff] %v11354_v44 }
 0x1ec   :  { %v1629_v56 = vld [vmem:[#allocation6 + $0x1f0] sm:$0xff]  ;;  %v11362_v57 = vcombine.high %v1626_v43, %v1630_v45  ;;  %v11368_v0 = vcombine.low %v1626_v43, %v1630_v45 }
 0x1ed   :  { %v11360_v53 = vcombine.high %v1625_v16, %v1629_v56  ;;  %v11366_v55 = vcombine.low %v1625_v16, %v1629_v56 }
 0x1ee   :  { %2426 = vmatpush1.bf16.msra.mxu0 %v11330_v17  ;;  %2467 = vmatpush1.bf16.msra.mxu1 %v11332_v20  ;;  %13222 = vst [vmem:[#allocation127_spill] sm:$0xff] %v11362_v57  ;;  %v1634_v20 = vld [vmem:[#allocation6 + $0x218] sm:$0xff]  ;;  %13224 = vst [vmem:[#allocation129_spill] sm:$0xff] %v11368_v0 }
 0x1ef   :  { %2427 = vmatprep.subr.bf16.mxu0 %v11336_v25  ;;  %2468 = vmatprep.subr.bf16.mxu1 %v11338_v52  ;;  %13221 = vst [vmem:[#allocation126_spill] sm:$0xff] %v11360_v53  ;;  %v1633_v52 = vld [vmem:[#allocation6 + $0x210] sm:$0xff]  ;;  %v1638_v17 = vld [vmem:[#allocation6 + $0x238] sm:$0xff]  ;;  %13223 = vst [vmem:[#allocation128_spill] sm:$0xff] %v11366_v55 }
 0x1f0   :  { %v1637_v25 = vld [vmem:[#allocation6 + $0x230] sm:$0xff]  ;;  %v11374_v58 = vcombine.high %v1634_v20, %v1638_v17  ;;  %v11380_v45 = vcombine.low %v1634_v20, %v1638_v17 }
 0x1f1   :  { %v11372_v38 = vcombine.high %v1633_v52, %v1637_v25  ;;  %v11378_v56 = vcombine.low %v1633_v52, %v1637_v25 }
 0x1f2   :  { %2428 = vmatpush1.bf16.msra.mxu0 %v11342_v9  ;;  %2469 = vmatpush1.bf16.msra.mxu1 %v11344_v54  ;;  %13226 = vst [vmem:[#allocation131_spill] sm:$0xff] %v11374_v58  ;;  %v1642_v54 = vld [vmem:[#allocation6 + $0x258] sm:$0xff]  ;;  %13228 = vst [vmem:[#allocation133_spill] sm:$0xff] %v11380_v45 }
 0x1f3   :  { %2429 = vmatprep.subr.bf16.mxu0 %v11348_v4  ;;  %2470 = vmatprep.subr.bf16.mxu1 %v11350_v37  ;;  %13225 = vst [vmem:[#allocation130_spill] sm:$0xff] %v11372_v38  ;;  %v1641_v37 = vld [vmem:[#allocation6 + $0x250] sm:$0xff]  ;;  %v1646_v9 = vld [vmem:[#allocation6 + $0x278] sm:$0xff]  ;;  %13227 = vst [vmem:[#allocation132_spill] sm:$0xff] %v11378_v56 }
 0x1f4   :  { %v1645_v4 = vld [vmem:[#allocation6 + $0x270] sm:$0xff]  ;;  %v11386_v16 = vcombine.high %v1642_v54, %v1646_v9  ;;  %v11392_v17 = vcombine.low %v1642_v54, %v1646_v9 }
 0x1f5   :  { %v11384_v43 = vcombine.high %v1641_v37, %v1645_v4  ;;  %v11390_v25 = vcombine.low %v1641_v37, %v1645_v4 }
 0x1f6   :  { %2430 = vmatpush1.bf16.msra.mxu0 %v11354_v44  ;;  %2471 = vmatpush1.bf16.msra.mxu1 %v11356_v51  ;;  %13230 = vst [vmem:[#allocation135_spill] sm:$0xff] %v11386_v16  ;;  %v1650_v51 = vld [vmem:[#allocation6 + $0x298] sm:$0xff]  ;;  %13232 = vst [vmem:[#allocation137_spill] sm:$0xff] %v11392_v17 }
 0x1f7   :  { %2431 = vmatprep.subr.bf16.mxu0 %v11360_v53  ;;  %2472 = vmatprep.subr.bf16.mxu1 %v11362_v57  ;;  %13229 = vst [vmem:[#allocation134_spill] sm:$0xff] %v11384_v43  ;;  %v1649_v57 = vld [vmem:[#allocation6 + $0x290] sm:$0xff]  ;;  %v1654_v44 = vld [vmem:[#allocation6 + $0x2b8] sm:$0xff]  ;;  %13231 = vst [vmem:[#allocation136_spill] sm:$0xff] %v11390_v25 }
 0x1f8   :  { %v1653_v53 = vld [vmem:[#allocation6 + $0x2b0] sm:$0xff]  ;;  %v11398_v52 = vcombine.high %v1650_v51, %v1654_v44  ;;  %v11404_v9 = vcombine.low %v1650_v51, %v1654_v44 }
 0x1f9   :  { %v11396_v20 = vcombine.high %v1649_v57, %v1653_v53  ;;  %v11402_v4 = vcombine.low %v1649_v57, %v1653_v53 }
 0x1fa   :  { %2432 = vmatpush1.bf16.msra.mxu0 %v11366_v55  ;;  %2473 = vmatpush1.bf16.msra.mxu1 %v11368_v0  ;;  %13234 = vst [vmem:[#allocation139_spill] sm:$0xff] %v11398_v52  ;;  %v1658_v0 = vld [vmem:[#allocation6 + $0x2d8] sm:$0xff]  ;;  %13236 = vst [vmem:[#allocation141_spill] sm:$0xff] %v11404_v9 }
 0x1fb   :  { %2433 = vmatprep.subr.bf16.mxu0 %v11372_v38  ;;  %2474 = vmatprep.subr.bf16.mxu1 %v11374_v58  ;;  %13233 = vst [vmem:[#allocation138_spill] sm:$0xff] %v11396_v20  ;;  %v1657_v58 = vld [vmem:[#allocation6 + $0x2d0] sm:$0xff]  ;;  %v1662_v55 = vld [vmem:[#allocation6 + $0x2f8] sm:$0xff]  ;;  %13235 = vst [vmem:[#allocation140_spill] sm:$0xff] %v11402_v4 }
 0x1fc   :  { %v1661_v38 = vld [vmem:[#allocation6 + $0x2f0] sm:$0xff]  ;;  %v11410_v37 = vcombine.high %v1658_v0, %v1662_v55  ;;  %v11416_v44 = vcombine.low %v1658_v0, %v1662_v55 }
 0x1fd   :  { %v11408_v54 = vcombine.high %v1657_v58, %v1661_v38  ;;  %v11414_v53 = vcombine.low %v1657_v58, %v1661_v38 }
 0x1fe   :  { %2434 = vmatpush1.bf16.msra.mxu0 %v11378_v56  ;;  %2475 = vmatpush1.bf16.msra.mxu1 %v11380_v45  ;;  %13238 = vst [vmem:[#allocation143_spill] sm:$0xff] %v11410_v37  ;;  %v1666_v45 = vld [vmem:[#allocation6 + $0x318] sm:$0xff]  ;;  %13240 = vst [vmem:[#allocation145_spill] sm:$0xff] %v11416_v44 }
 0x1ff   :  { %2435 = vmatprep.subr.bf16.mxu0 %v11384_v43  ;;  %2476 = vmatprep.subr.bf16.mxu1 %v11386_v16  ;;  %13237 = vst [vmem:[#allocation142_spill] sm:$0xff] %v11408_v54  ;;  %v1665_v16 = vld [vmem:[#allocation6 + $0x310] sm:$0xff]  ;;  %v1670_v56 = vld [vmem:[#allocation6 + $0x338] sm:$0xff]  ;;  %13239 = vst [vmem:[#allocation144_spill] sm:$0xff] %v11414_v53 }
 0x200   :  { %v1669_v43 = vld [vmem:[#allocation6 + $0x330] sm:$0xff]  ;;  %v11422_v57 = vcombine.high %v1666_v45, %v1670_v56  ;;  %v11428_v55 = vcombine.low %v1666_v45, %v1670_v56 }
 0x201   :  { %v11420_v51 = vcombine.high %v1665_v16, %v1669_v43  ;;  %v11426_v38 = vcombine.low %v1665_v16, %v1669_v43 }
 0x202   :  { %2436 = vmatpush1.bf16.msra.mxu0 %v11390_v25  ;;  %2477 = vmatpush1.bf16.msra.mxu1 %v11392_v17  ;;  %13242 = vst [vmem:[#allocation147_spill] sm:$0xff] %v11422_v57  ;;  %v1674_v17 = vld [vmem:[#allocation6 + $0x358] sm:$0xff] }
 0x203   :  { %2437 = vmatprep.subr.bf16.mxu0 %v11396_v20  ;;  %2478 = vmatprep.subr.bf16.mxu1 %v11398_v52  ;;  %13241 = vst [vmem:[#allocation146_spill] sm:$0xff] %v11420_v51  ;;  %v1673_v52 = vld [vmem:[#allocation6 + $0x350] sm:$0xff]  ;;  %v1678_v25 = vld [vmem:[#allocation6 + $0x378] sm:$0xff] }
 0x204   :  { %v1677_v20 = vld [vmem:[#allocation6 + $0x370] sm:$0xff]  ;;  %v11434_v58 = vcombine.high %v1674_v17, %v1678_v25  ;;  %v11440_v56 = vcombine.low %v1674_v17, %v1678_v25 }
 0x205   :  { %v11432_v0 = vcombine.high %v1673_v52, %v1677_v20  ;;  %v11438_v43 = vcombine.low %v1673_v52, %v1677_v20 }
 0x206   :  { %2438 = vmatpush1.bf16.msra.mxu0 %v11402_v4  ;;  %2479 = vmatpush1.bf16.msra.mxu1 %v11404_v9  ;;  %13243 = vst [vmem:[#allocation148_spill] sm:$0xff] %v11434_v58  ;;  %v1682_v9 = vld [vmem:[#allocation6 + $0x398] sm:$0xff] }
 0x207   :  { %2439 = vmatprep.subr.bf16.mxu0 %v11408_v54  ;;  %2480 = vmatprep.subr.bf16.mxu1 %v11410_v37  ;;  %v1681_v37 = vld [vmem:[#allocation6 + $0x390] sm:$0xff]  ;;  %v1686_v4 = vld [vmem:[#allocation6 + $0x3b8] sm:$0xff]  ;;  %13244 = vst [vmem:[#allocation149_spill] sm:$0xff] %v11438_v43 }
 0x208   :  { %v1685_v54 = vld [vmem:[#allocation6 + $0x3b0] sm:$0xff]  ;;  %v11446_v16 = vcombine.high %v1682_v9, %v1686_v4  ;;  %v11452_v25 = vcombine.low %v1682_v9, %v1686_v4  ;;  %v13277_v4 = vld [vmem:[#allocation100_spill] sm:$0xff] }
 0x209   :  { %v11444_v45 = vcombine.high %v1681_v37, %v1685_v54  ;;  %v11450_v20 = vcombine.low %v1681_v37, %v1685_v54  ;;  %v13278_v9 = vld [vmem:[#allocation102_spill] sm:$0xff]  ;;  %v13279_v54 = vld [vmem:[#allocation103_spill] sm:$0xff] }
 0x20a   :  { %2440 = vmatpush1.bf16.msra.mxu0 %v11414_v53  ;;  %2481 = vmatpush1.bf16.msra.mxu1 %v11416_v44  ;;  %v1690_v44 = vld [vmem:[#allocation6 + $0x3d8] sm:$0xff] }
 0x20b   :  { %2441 = vmatprep.subr.bf16.mxu0 %v11420_v51  ;;  %2482 = vmatprep.subr.bf16.mxu1 %v11422_v57  ;;  %v1689_v57 = vld [vmem:[#allocation6 + $0x3d0] sm:$0xff]  ;;  %v1694_v53 = vld [vmem:[#allocation6 + $0x3f8] sm:$0xff] }
 0x20c   :  { %v1693_v51 = vld [vmem:[#allocation6 + $0x3f0] sm:$0xff]  ;;  %v11458_v52 = vcombine.high %v1690_v44, %v1694_v53 }
 0x20d   :  { %v11456_v17 = vcombine.high %v1689_v57, %v1693_v51 }
 0x20e   :  { %2442 = vmatpush1.bf16.msra.mxu0 %v11426_v38  ;;  %2483 = vmatpush1.bf16.msra.mxu1 %v11428_v55 }
 0x20f   :  { %2443 = vmatprep.subr.bf16.mxu0 %v11432_v0  ;;  %2484 = vmatprep.subr.bf16.mxu1 %v11434_v58  ;;  %v11462_v58 = vcombine.low %v1689_v57, %v1693_v51  ;;  %v13281_v57 = vld [vmem:[#allocation31_spill] sm:$0xff] }
 0x212   :  { %2444 = vmatpush1.bf16.msra.mxu0 %v11438_v43  ;;  %2485 = vmatpush1.bf16.msra.mxu1 %v11440_v56  ;;  %v11464_v43 = vcombine.low %v1690_v44, %v1694_v53  ;;  %v13280_v44 = vld [vmem:[#allocation20_spill] sm:$0xff] }
 0x213   :  { %2445 = vmatprep.subr.bf16.mxu0 %v11444_v45  ;;  %2486 = vmatprep.subr.bf16.mxu1 %v11446_v16 }
 0x216   :  { %2446 = vmatpush1.bf16.msra.mxu0 %v11450_v20  ;;  %2487 = vmatpush1.bf16.msra.mxu1 %v11452_v25 }
 0x217   :  { %2447 = vmatprep.subr.bf16.mxu0 %v11456_v17  ;;  %2488 = vmatprep.subr.bf16.mxu1 %v11458_v52 }
 0x21a   :  { %2448 = vmatpush1.bf16.msra.mxu0 %v11462_v58  ;;  %2489 = vmatpush1.bf16.msra.mxu1 %v11464_v43 }
 0x21b   :  { %3331 = vmatprep.subr.bf16.mxu0 %v10868_v60  ;;  %3372 = vmatprep.subr.bf16.mxu1 %v10872_v1  ;;  %v13246_v60 = vld [vmem:[#allocation52_spill] sm:$0xff] }
 0x21c   :  { %v13249_v1 = vld [vmem:[#allocation56_spill] sm:$0xff] }
 0x21d   :  { %2450 = vmatmul.mubr.bf16.vlgmr.msra.gmra.mrb[36].mxu0 %v11284_v42  ;;  %2491 = vmatmul.mubr.bf16.vlgmr.msra.gmra.mrb[52].mxu1 %v11284_v42  ;;  %v13276_v42 = vld [vmem:[#allocation99_spill] sm:$0xff] }
 0x21e   :  { %3332 = vmatpush1.bf16.msra.mxu0 %v10866_v59  ;;  %3373 = vmatpush1.bf16.msra.mxu1 %v10870_v63  ;;  %v13245_v59 = vld [vmem:[#allocation49_spill] sm:$0xff] }
 0x21f   :  { %3333 = vmatprep.subr.bf16.mxu0 %v10874_v2  ;;  %3374 = vmatprep.subr.bf16.mxu1 %v10877_v6  ;;  %v13247_v63 = vld [vmem:[#allocation53_spill] sm:$0xff]  ;;  %v13250_v2 = vld [vmem:[#allocation55_spill] sm:$0xff] }
 0x220   :  { %v13251_v6 = vld [vmem:[#allocation59_spill] sm:$0xff] }
 0x222   :  { %3334 = vmatpush1.bf16.msra.mxu0 %v10887_v14  ;;  %3375 = vmatpush1.bf16.msra.mxu1 %v10897_v18  ;;  %v13252_v14 = vld [vmem:[#allocation62_spill] sm:$0xff]  ;;  %v13254_v18 = vld [vmem:[#allocation68_spill] sm:$0xff] }
 0x223   :  { %3335 = vmatprep.subr.bf16.mxu0 %v10921_v34  ;;  %3376 = vmatprep.subr.bf16.mxu1 %v10934_v49  ;;  %v13255_v34 = vld [vmem:[#allocation71_spill] sm:$0xff]  ;;  %v13258_v49 = vld [vmem:[#allocation73_spill] sm:$0xff] }
 0x226   :  { %3336 = vmatpush1.bf16.msra.mxu0 %v10930_v46  ;;  %3377 = vmatpush1.bf16.msra.mxu1 %v10932_v48  ;;  %v13256_v46 = vld [vmem:[#allocation69_spill] sm:$0xff]  ;;  %v13257_v48 = vld [vmem:[#allocation70_spill] sm:$0xff] }
 0x227   :  { %3337 = vmatprep.subr.bf16.mxu0 %v10956_v13  ;;  %3378 = vmatprep.subr.bf16.mxu1 %v10969_v26  ;;  %v13259_v13 = vld [vmem:[#allocation77_spill] sm:$0xff]  ;;  %v13262_v26 = vld [vmem:[#allocation78_spill] sm:$0xff] }
 0x22a   :  { %3338 = vmatpush1.bf16.msra.mxu0 %v10964_v22  ;;  %3379 = vmatpush1.bf16.msra.mxu1 %v10966_v23  ;;  %v13260_v22 = vld [vmem:[#allocation75_spill] sm:$0xff]  ;;  %v13261_v23 = vld [vmem:[#allocation76_spill] sm:$0xff] }
 0x22b   :  { %3339 = vmatprep.subr.bf16.mxu0 %v10973_v11  ;;  %3380 = vmatprep.subr.bf16.mxu1 %v10980_v62  ;;  %v13263_v11 = vld [vmem:[#allocation81_spill] sm:$0xff] }
 0x22c   :  { %v13266_v62 = vld [vmem:[#allocation85_spill] sm:$0xff] }
 0x22e   :  { %3340 = vmatpush1.bf16.msra.mxu0 %v10976_v12  ;;  %3381 = vmatpush1.bf16.msra.mxu1 %v10978_v61  ;;  %v13264_v12 = vld [vmem:[#allocation79_spill] sm:$0xff]  ;;  %v13265_v61 = vld [vmem:[#allocation80_spill] sm:$0xff] }
 0x22f   :  { %3341 = vmatprep.subr.bf16.mxu0 %v11003_v30  ;;  %3382 = vmatprep.subr.bf16.mxu1 %v11017_v28  ;;  %v13253_v30 = vld [vmem:[#allocation67_spill] sm:$0xff] }
 0x230   :  { %v13268_v28 = vld [vmem:[#allocation87_spill] sm:$0xff] }
 0x232   :  { %3342 = vmatpush1.bf16.msra.mxu0 %v11012_v50  ;;  %3383 = vmatpush1.bf16.msra.mxu1 %v11014_v39  ;;  %v13248_v50 = vld [vmem:[#allocation54_spill] sm:$0xff]  ;;  %v13267_v39 = vld [vmem:[#allocation89_spill] sm:$0xff] }
 0x233   :  { %3343 = vmatprep.subr.bf16.mxu0 %v11021_v24  ;;  %3384 = vmatprep.subr.bf16.mxu1 %v11028_v35  ;;  %v13269_v24 = vld [vmem:[#allocation88_spill] sm:$0xff]  ;;  %v13272_v35 = vld [vmem:[#allocation91_spill] sm:$0xff] }
 0x236   :  { %3344 = vmatpush1.bf16.msra.mxu0 %v11024_v31  ;;  %3385 = vmatpush1.bf16.msra.mxu1 %v11026_v32  ;;  %v13270_v31 = vld [vmem:[#allocation90_spill] sm:$0xff]  ;;  %v13271_v32 = vld [vmem:[#allocation93_spill] sm:$0xff] }
 0x237   :  { %3345 = vmatprep.subr.bf16.mxu0 %v11053_v21  ;;  %3386 = vmatprep.subr.bf16.mxu1 %v11064_v47  ;;  %v13273_v21 = vld [vmem:[#allocation92_spill] sm:$0xff]  ;;  %v13274_v47 = vld [vmem:[#allocation97_spill] sm:$0xff] }
 0x23a   :  { %3346 = vmatpush1.bf16.msra.mxu0 %v13245_v59  ;;  %3387 = vmatpush1.bf16.msra.mxu1 %v13246_v60 }
 0x23b   :  { %3347 = vmatprep.subr.bf16.mxu0 %v13247_v63  ;;  %3388 = vmatprep.subr.bf16.mxu1 %v11069_v19  ;;  %v13275_v19 = vld [vmem:[#allocation101_spill] sm:$0xff] }
 0x23e   :  { %3348 = vmatpush1.bf16.msra.mxu0 %v13248_v50  ;;  %3389 = vmatpush1.bf16.msra.mxu1 %v13249_v1  ;;  %v13282_v50 = vld [vmem:[#allocation22_spill] sm:$0xff] }
 0x23f   :  { %3349 = vmatprep.subr.bf16.mxu0 %v13250_v2  ;;  %3390 = vmatprep.subr.bf16.mxu1 %v13251_v6  ;;  %v13283_v2 = vld [vmem:[#allocation33_spill] sm:$0xff] }
 0x242   :  { %3350 = vmatpush1.bf16.msra.mxu0 %v13252_v14  ;;  %3391 = vmatpush1.bf16.msra.mxu1 %v13253_v30 }
 0x243   :  { %3351 = vmatprep.subr.bf16.mxu0 %v13254_v18  ;;  %3392 = vmatprep.subr.bf16.mxu1 %v13255_v34 }
 0x246   :  { %3352 = vmatpush1.bf16.msra.mxu0 %v13256_v46  ;;  %3393 = vmatpush1.bf16.msra.mxu1 %v13257_v48 }
 0x247   :  { %3353 = vmatprep.subr.bf16.mxu0 %v13258_v49  ;;  %3394 = vmatprep.subr.bf16.mxu1 %v13259_v13 }
 0x24a   :  { %3354 = vmatpush1.bf16.msra.mxu0 %v13260_v22  ;;  %3395 = vmatpush1.bf16.msra.mxu1 %v13261_v23 }
 0x24b   :  { %3355 = vmatprep.subr.bf16.mxu0 %v13262_v26  ;;  %3396 = vmatprep.subr.bf16.mxu1 %v13263_v11  ;;  %v13284_v26 = vld [vmem:[#allocation32_spill] sm:$0xff] }
 0x24e   :  { %3356 = vmatpush1.bf16.msra.mxu0 %v13264_v12  ;;  %3397 = vmatpush1.bf16.msra.mxu1 %v13265_v61  ;;  %v13285_v12 = vld [vmem:[#allocation72_spill] sm:$0xff] }
 0x24f   :  { %3357 = vmatprep.subr.bf16.mxu0 %v13266_v62  ;;  %3398 = vmatprep.subr.bf16.mxu1 %v13267_v39 }
 0x252   :  { %3358 = vmatpush1.bf16.msra.mxu0 %v13268_v28  ;;  %3399 = vmatpush1.bf16.msra.mxu1 %v13269_v24  ;;  %v13286_v28 = vld [vmem:[#allocation34_spill] sm:$0xff] }
 0x253   :  { %3359 = vmatprep.subr.bf16.mxu0 %v13270_v31  ;;  %3400 = vmatprep.subr.bf16.mxu1 %v13271_v32  ;;  %v13287_v31 = vld [vmem:[#allocation74_spill] sm:$0xff] }
 0x256   :  { %3360 = vmatpush1.bf16.msra.mxu0 %v13272_v35  ;;  %3401 = vmatpush1.bf16.msra.mxu1 %v13273_v21 }
 0x257   :  { %3361 = vmatprep.subr.bf16.mxu0 %v13274_v47  ;;  %3402 = vmatprep.subr.bf16.mxu1 %v13275_v19 }
 0x25a   :  { %3362 = vmatpush1.bf16.msra.mxu0 %v13276_v42  ;;  %3403 = vmatpush1.bf16.msra.mxu1 %v13277_v4 }
 0x25b   :  { %3413 = vmatprep.subr.bf16.mxu0 %v13278_v9  ;;  %3454 = vmatprep.subr.bf16.mxu1 %v13279_v54 }
 0x2b0   :  { %v2369_v37 = vpop.f32.mrb[32].mxu0  ;;  %v2410_v53 = vpop.f32.mrb[48].mxu1 }
 0x2b1   :  { %v2499_v51 = vadd.f32 %v2369_v37, %v13280_v44  ;;  %v2501_v59 = vadd.f32 %v2410_v53, %v13281_v57  ;;  %v2371_v60 = vpop.f32.mrb[33].mxu0  ;;  %v2412_v63 = vpop.f32.mrb[49].mxu1 }
 0x2b2   :  { %v2500_v1 = vadd.f32 %v2371_v60, %v13282_v50  ;;  %v2502_v6 = vadd.f32 %v2412_v63, %v13283_v2  ;;  %v2373_v14 = vpop.f32.mrb[34].mxu0  ;;  %v2414_v30 = vpop.f32.mrb[50].mxu1 }
 0x2b3   :  { %v2374_v18 = vpop.f32.mrb[35].mxu0  ;;  %v2415_v34 = vpop.f32.mrb[51].mxu1  ;;  %v2515_v46 = vmul.f32 0.5, %v2501_v59  ;;  %v2507_v49 = vmul.f32 0.5, %v2499_v51 }
 0x2b4   :  { %v2516_v48 = vmul.f32 0.5, %v2502_v6  ;;  %v2508_v13 = vmul.f32 0.5, %v2500_v1 }
 0x2b5   :  { %10354 = vtanh.f32 %v2515_v46 }
 0x2b6   :  { %10356 = vtanh.f32 %v2516_v48 }
 0x2b7   :  { %10358 = vtanh.f32 %v2507_v49 }
 0x2b8   :  { %10360 = vtanh.f32 %v2508_v13 }
 0x2bf   :  { %v10355_v47 = vpop.eup %10354 }
 0x2c0   :  { %v10357_v4 = vpop.eup %10356  ;;  %v2519_v37 = vadd.f32 1.0, %v10355_v47  ;;  %v13294_v47 = vld [vmem:[#allocation112_spill] sm:$0xff] }
 0x2c1   :  { %v10359_v9 = vpop.eup %10358  ;;  %v2520_v44 = vadd.f32 1.0, %v10357_v4  ;;  %v13303_v4 = vld [vmem:[#allocation121_spill] sm:$0xff] }
 0x2c2   :  { %v10361_v54 = vpop.eup %10360  ;;  %v2511_v57 = vadd.f32 1.0, %v10359_v9  ;;  %v2521_v60 = vmul.f32 0.5, %v2519_v37  ;;  %v13304_v9 = vld [vmem:[#allocation122_spill] sm:$0xff]  ;;  %v13306_v37 = vld [vmem:[#allocation124_spill] sm:$0xff] }
 0x2c3   :  { %v2512_v59 = vadd.f32 1.0, %v10361_v54  ;;  %v2522_v63 = vmul.f32 0.5, %v2520_v44  ;;  %v13305_v54 = vld [vmem:[#allocation123_spill] sm:$0xff]  ;;  %v13308_v44 = vld [vmem:[#allocation126_spill] sm:$0xff] }
 0x2c4   :  { %v2513_v50 = vmul.f32 0.5, %v2511_v57  ;;  %v2533_v14 = vmul.f32 %v2521_v60, %v11266_v3  ;;  %v13310_v57 = vld [vmem:[#allocation128_spill] sm:$0xff]  ;;  %v13312_v60 = vld [vmem:[#allocation130_spill] sm:$0xff] }
 0x2c5   :  { %v2514_v2 = vmul.f32 0.5, %v2512_v59  ;;  %v2534_v18 = vmul.f32 %v2522_v63, %v11268_v36  ;;  %v1547_v36 = vmax.f32 %v11276_v5, 0.0  ;;  %v13290_v5 = vld [vmem:[#allocation108_spill] sm:$0xff]  ;;  %v13311_v59 = vld [vmem:[#allocation129_spill] sm:$0xff]  ;;  %v13313_v63 = vld [vmem:[#allocation131_spill] sm:$0xff] }
 0x2f0   :  { %v2451_v22 = vpop.f32.mrb[36].mxu0  ;;  %v2492_v23 = vpop.f32.mrb[52].mxu1 }
 0x2f1   :  { %v2503_v11 = vadd.f32 %v2451_v22, %v13284_v26  ;;  %v2505_v61 = vadd.f32 %v2492_v23, %v13285_v12  ;;  %v2453_v62 = vpop.f32.mrb[37].mxu0  ;;  %v2494_v39 = vpop.f32.mrb[53].mxu1 }
 0x2f2   :  { %v2504_v24 = vadd.f32 %v2453_v62, %v13286_v28  ;;  %v2506_v32 = vadd.f32 %v2494_v39, %v13287_v31  ;;  %v2455_v35 = vpop.f32.mrb[38].mxu0  ;;  %v2496_v21 = vpop.f32.mrb[54].mxu1 }
 0x2f3   :  { %10362 = vtanh.f32 %v2503_v11  ;;  %v2456_v19 = vpop.f32.mrb[39].mxu0  ;;  %v2497_v42 = vpop.f32.mrb[55].mxu1  ;;  %v2525_v53 = vmul.f32 0.5, %v2505_v61 }
 0x2f4   :  { %10364 = vtanh.f32 %v2504_v24  ;;  %v2526_v51 = vmul.f32 0.5, %v2506_v32  ;;  %v1548_v24 = vmax.f32 %v11278_v33, 0.0  ;;  %v13291_v33 = vld [vmem:[#allocation109_spill] sm:$0xff]  ;;  %v13301_v19 = vld [vmem:[#allocation119_spill] sm:$0xff]  ;;  %v13302_v42 = vld [vmem:[#allocation120_spill] sm:$0xff] }
 0x2f5   :  { %10366 = vtanh.f32 %v2525_v53  ;;  %v13307_v53 = vld [vmem:[#allocation125_spill] sm:$0xff] }
 0x2f6   :  { %10368 = vtanh.f32 %v2526_v51  ;;  %v13309_v51 = vld [vmem:[#allocation127_spill] sm:$0xff] }
 0x2fd   :  { %v10363_v1 = vpop.eup %10362 }
 0x2fe   :  { %v10365_v6 = vpop.eup %10364  ;;  %v2535_v30 = vmul.f32 %v10363_v1, %v2513_v50  ;;  %v13314_v50 = vld [vmem:[#allocation132_spill] sm:$0xff]  ;;  %v13315_v1 = vld [vmem:[#allocation133_spill] sm:$0xff] }
 0x2ff   :  { %v2536_v34 = vmul.f32 %v10365_v6, %v2514_v2  ;;  %v10367_v49 = vpop.eup %10366  ;;  %v13316_v2 = vld [vmem:[#allocation134_spill] sm:$0xff]  ;;  %v13317_v6 = vld [vmem:[#allocation135_spill] sm:$0xff] }
 0x300   :  { %v11548_v46 = vadd.f32 %v2535_v30, %v2533_v14  ;;  %v10369_v13 = vpop.eup %10368  ;;  %v2529_v22 = vadd.f32 1.0, %v10367_v49  ;;  %v13318_v14 = vld [vmem:[#allocation136_spill] sm:$0xff]  ;;  %v13319_v30 = vld [vmem:[#allocation137_spill] sm:$0xff] }
 0x301   :  { %v11550_v48 = vadd.f32 %v2536_v34, %v2534_v18  ;;  %v2530_v23 = vadd.f32 1.0, %v10369_v13  ;;  %v13320_v18 = vld [vmem:[#allocation138_spill] sm:$0xff]  ;;  %v13321_v34 = vld [vmem:[#allocation139_spill] sm:$0xff]  ;;  %v13322_v49 = vld [vmem:[#allocation140_spill] sm:$0xff] }
 0x302   :  { %10370 = vtanh.f32 %v11548_v46  ;;  %v2531_v26 = vmul.f32 0.5, %v2529_v22  ;;  %v13323_v13 = vld [vmem:[#allocation141_spill] sm:$0xff]  ;;  %v13324_v22 = vld [vmem:[#allocation142_spill] sm:$0xff] }
 0x303   :  { %10372 = vtanh.f32 %v11550_v48  ;;  %v2532_v12 = vmul.f32 0.5, %v2530_v23  ;;  %v13325_v23 = vld [vmem:[#allocation143_spill] sm:$0xff] }
 0x30c   :  { %v10371_v11 = vpop.eup %10370 }
 0x30d   :  { %v10373_v3 = vpop.eup %10372  ;;  %v2541_v61 = vmul.f32 %v10371_v11, %v2531_v26  ;;  %v13326_v26 = vld [vmem:[#allocation144_spill] sm:$0xff]  ;;  %v13327_v11 = vld [vmem:[#allocation145_spill] sm:$0xff] }
 0x30e   :  { %v2542_v62 = vmul.f32 %v10373_v3, %v2532_v12  ;;  %v13328_v12 = vld [vmem:[#allocation146_spill] sm:$0xff]  ;;  %v13329_v3 = vld [vmem:[#allocation147_spill] sm:$0xff] }
 0x30f   :  { %v2543_v39 = vmax.f32 %v2541_v61, 0.0  ;;  %v11556_v32 = vpack.c.bf16 %v2541_v61, %v2541_v61  ;;  %v13330_v61 = vld [vmem:[#allocation148_spill] sm:$0xff] }
 0x310   :  { %v2562_v28 = vpack.c.bf16 %v2542_v62, %v2542_v62  ;;  %v2544_v31 = vmax.f32 %v2542_v62, 0.0  ;;  %v13331_v62 = vld [vmem:[#allocation149_spill] sm:$0xff] }
 0x311   :  { %v11558_v35 = vpack.c.bf16 %v2543_v39, %v1547_v36  ;;  %v3572_v36 = vld [vmem:[#allocation6 + $0x68] sm:$0xff]  ;;  %v3575_v39 = vld [vmem:[#allocation6 + $0x80] sm:$0xff] }
 0x312   :  { %3363 = vmatprep.mubr.bf16.mxu0 %v2562_v28  ;;  %3404 = vmatprep.mubr.bf16.mxu1 %v2562_v28  ;;  %v11560_v21 = vpack.c.bf16 %v2544_v31, %v1548_v24  ;;  %v3579_v24 = vld [vmem:[#allocation6 + $0xa0] sm:$0xff]  ;;  %v3576_v31 = vld [vmem:[#allocation6 + $0x88] sm:$0xff] }
 0x313   :  { %13288 = vst [vmem:[#allocation49_spill] sm:$0xff] %v11558_v35  ;;  %3364 = vmatmul.mubr.bf16.vlgmr.msra.gmra.mrb[40].mxu0 %v11556_v32  ;;  %3405 = vmatmul.mubr.bf16.vlgmr.msra.gmra.mrb[56].mxu1 %v11556_v32  ;;  %v3668_v35 = vld [vmem:[#allocation6 + $0x368] sm:$0xff] }
 0x314   :  { %13289 = vst [vmem:[#allocation52_spill] sm:$0xff] %v11560_v21  ;;  %3414 = vmatpush1.bf16.msra.mxu0 %v11234_v41  ;;  %3455 = vmatpush1.bf16.msra.mxu1 %v11236_v27  ;;  %v13292_v41 = vld [vmem:[#allocation110_spill] sm:$0xff]  ;;  %v13293_v27 = vld [vmem:[#allocation111_spill] sm:$0xff]  ;;  %v3675_v21 = vld [vmem:[#allocation6 + $0x3a0] sm:$0xff] }
 0x315   :  { %3445 = vmatprep.mubr.bf16.mxu0 %v2562_v28  ;;  %3486 = vmatprep.mubr.bf16.mxu1 %v2562_v28 }
 0x316   :  { %3415 = vmatprep.subr.bf16.mxu0 %v11286_v8  ;;  %3456 = vmatprep.subr.bf16.mxu1 %v11288_v29  ;;  %v13295_v8 = vld [vmem:[#allocation113_spill] sm:$0xff]  ;;  %v13296_v29 = vld [vmem:[#allocation114_spill] sm:$0xff] }
 0x318   :  { %3416 = vmatpush1.bf16.msra.mxu0 %v11294_v15  ;;  %3457 = vmatpush1.bf16.msra.mxu1 %v11296_v10  ;;  %v13297_v15 = vld [vmem:[#allocation115_spill] sm:$0xff]  ;;  %v13298_v10 = vld [vmem:[#allocation116_spill] sm:$0xff] }
 0x319   :  { %3417 = vmatprep.subr.bf16.mxu0 %v11298_v7  ;;  %3458 = vmatprep.subr.bf16.mxu1 %v11300_v40  ;;  %v13299_v7 = vld [vmem:[#allocation117_spill] sm:$0xff]  ;;  %v13300_v40 = vld [vmem:[#allocation118_spill] sm:$0xff] }
 0x31c   :  { %3418 = vmatpush1.bf16.msra.mxu0 %v13290_v5  ;;  %3459 = vmatpush1.bf16.msra.mxu1 %v13291_v33 }
 0x31d   :  { %3419 = vmatprep.subr.bf16.mxu0 %v13292_v41  ;;  %3460 = vmatprep.subr.bf16.mxu1 %v13293_v27  ;;  %v11649_v41 = vcombine.high %v3575_v39, %v3579_v24 }
 0x320   :  { %3420 = vmatpush1.bf16.msra.mxu0 %v13294_v47  ;;  %3461 = vmatpush1.bf16.msra.mxu1 %v13295_v8  ;;  %v3583_v47 = vld [vmem:[#allocation6 + $0xc0] sm:$0xff] }
 0x321   :  { %3421 = vmatprep.subr.bf16.mxu0 %v13296_v29  ;;  %3462 = vmatprep.subr.bf16.mxu1 %v13297_v15  ;;  %v3587_v8 = vld [vmem:[#allocation6 + $0xe0] sm:$0xff]  ;;  %v3584_v29 = vld [vmem:[#allocation6 + $0xc8] sm:$0xff] }
 0x322   :  { %v3588_v15 = vld [vmem:[#allocation6 + $0xe8] sm:$0xff] }
 0x324   :  { %3422 = vmatpush1.bf16.msra.mxu0 %v13298_v10  ;;  %3463 = vmatpush1.bf16.msra.mxu1 %v13299_v7  ;;  %v11655_v10 = vcombine.low %v3575_v39, %v3579_v24  ;;  %v3628_v39 = vld [vmem:[#allocation6 + $0x228] sm:$0xff] }
 0x325   :  { %3423 = vmatprep.subr.bf16.mxu0 %v13300_v40  ;;  %3464 = vmatprep.subr.bf16.mxu1 %v13301_v19  ;;  %v11661_v40 = vcombine.high %v3583_v47, %v3587_v8  ;;  %v11664_v19 = vcombine.high %v3584_v29, %v3588_v15 }
 0x328   :  { %3424 = vmatpush1.bf16.msra.mxu0 %v13302_v42  ;;  %3465 = vmatpush1.bf16.msra.mxu1 %v13303_v4  ;;  %v3591_v42 = vld [vmem:[#allocation6 + $0x100] sm:$0xff] }
 0x329   :  { %3425 = vmatprep.subr.bf16.mxu0 %v13304_v9  ;;  %3466 = vmatprep.subr.bf16.mxu1 %v13305_v54  ;;  %v3595_v4 = vld [vmem:[#allocation6 + $0x120] sm:$0xff]  ;;  %v3592_v9 = vld [vmem:[#allocation6 + $0x108] sm:$0xff] }
 0x32a   :  { %v3596_v54 = vld [vmem:[#allocation6 + $0x128] sm:$0xff] }
 0x32c   :  { %3426 = vmatpush1.bf16.msra.mxu0 %v13306_v37  ;;  %3467 = vmatpush1.bf16.msra.mxu1 %v13307_v53  ;;  %v11667_v37 = vcombine.low %v3583_v47, %v3587_v8  ;;  %v11671_v53 = vcombine.low %v3584_v29, %v3588_v15  ;;  %v3631_v47 = vld [vmem:[#allocation6 + $0x240] sm:$0xff]  ;;  %v3632_v29 = vld [vmem:[#allocation6 + $0x248] sm:$0xff] }
 0x32d   :  { %3427 = vmatprep.subr.bf16.mxu0 %v13308_v44  ;;  %3468 = vmatprep.subr.bf16.mxu1 %v13309_v51  ;;  %v11673_v44 = vcombine.high %v3591_v42, %v3595_v4  ;;  %v11676_v51 = vcombine.high %v3592_v9, %v3596_v54  ;;  %v3635_v8 = vld [vmem:[#allocation6 + $0x260] sm:$0xff] }
 0x32e   :  { %v11736_v15 = vcombine.high %v3631_v47, %v3635_v8 }
 0x330   :  { %3428 = vmatpush1.bf16.msra.mxu0 %v13310_v57  ;;  %3469 = vmatpush1.bf16.msra.mxu1 %v13311_v59  ;;  %v3599_v57 = vld [vmem:[#allocation6 + $0x140] sm:$0xff] }
 0x331   :  { %3429 = vmatprep.subr.bf16.mxu0 %v13312_v60  ;;  %3470 = vmatprep.subr.bf16.mxu1 %v13313_v63  ;;  %v3603_v59 = vld [vmem:[#allocation6 + $0x160] sm:$0xff]  ;;  %v3600_v60 = vld [vmem:[#allocation6 + $0x148] sm:$0xff] }
 0x332   :  { %v3604_v63 = vld [vmem:[#allocation6 + $0x168] sm:$0xff] }
 0x334   :  { %3430 = vmatpush1.bf16.msra.mxu0 %v13314_v50  ;;  %3471 = vmatpush1.bf16.msra.mxu1 %v13315_v1  ;;  %v11679_v50 = vcombine.low %v3591_v42, %v3595_v4  ;;  %v11683_v1 = vcombine.low %v3592_v9, %v3596_v54  ;;  %v3636_v42 = vld [vmem:[#allocation6 + $0x268] sm:$0xff]  ;;  %v11738_v4 = vcombine.low %v3631_v47, %v3635_v8  ;;  %v3655_v47 = vld [vmem:[#allocation6 + $0x300] sm:$0xff] }
 0x335   :  { %3431 = vmatprep.subr.bf16.mxu0 %v13316_v2  ;;  %3472 = vmatprep.subr.bf16.mxu1 %v13317_v6  ;;  %v11685_v2 = vcombine.high %v3599_v57, %v3603_v59  ;;  %v11688_v6 = vcombine.high %v3600_v60, %v3604_v63  ;;  %v11740_v9 = vcombine.low %v3632_v29, %v3636_v42  ;;  %v3659_v8 = vld [vmem:[#allocation6 + $0x320] sm:$0xff] }
 0x336   :  { %13332 = vst [vmem:[#allocation53_spill] sm:$0xff] %v11738_v4  ;;  %v11742_v54 = vcombine.high %v3632_v29, %v3636_v42  ;;  %v3656_v29 = vld [vmem:[#allocation6 + $0x308] sm:$0xff]  ;;  %v11772_v42 = vcombine.high %v3655_v47, %v3659_v8 }
 0x337   :  { %13333 = vst [vmem:[#allocation54_spill] sm:$0xff] %v11740_v9 }
 0x338   :  { %3432 = vmatpush1.bf16.msra.mxu0 %v13318_v14  ;;  %3473 = vmatpush1.bf16.msra.mxu1 %v13319_v30  ;;  %v3607_v14 = vld [vmem:[#allocation6 + $0x180] sm:$0xff]  ;;  %13334 = vst [vmem:[#allocation56_spill] sm:$0xff] %v11742_v54  ;;  %13343 = vst [vmem:[#allocation73_spill] sm:$0xff] %v11772_v42 }
 0x339   :  { %3433 = vmatprep.subr.bf16.mxu0 %v13320_v18  ;;  %3474 = vmatprep.subr.bf16.mxu1 %v13321_v34  ;;  %v3611_v30 = vld [vmem:[#allocation6 + $0x1a0] sm:$0xff]  ;;  %v3608_v18 = vld [vmem:[#allocation6 + $0x188] sm:$0xff] }
 0x33a   :  { %v3612_v34 = vld [vmem:[#allocation6 + $0x1a8] sm:$0xff] }
 0x33c   :  { %3434 = vmatpush1.bf16.msra.mxu0 %v13322_v49  ;;  %3475 = vmatpush1.bf16.msra.mxu1 %v13323_v13  ;;  %v11691_v49 = vcombine.low %v3599_v57, %v3603_v59  ;;  %v11695_v13 = vcombine.low %v3600_v60, %v3604_v63  ;;  %v3639_v57 = vld [vmem:[#allocation6 + $0x280] sm:$0xff]  ;;  %v3640_v60 = vld [vmem:[#allocation6 + $0x288] sm:$0xff] }
 0x33d   :  { %3435 = vmatprep.subr.bf16.mxu0 %v13324_v22  ;;  %3476 = vmatprep.subr.bf16.mxu1 %v13325_v23  ;;  %v11697_v22 = vcombine.high %v3607_v14, %v3611_v30  ;;  %v11700_v23 = vcombine.high %v3608_v18, %v3612_v34  ;;  %v3643_v59 = vld [vmem:[#allocation6 + $0x2a0] sm:$0xff] }
 0x33e   :  { %v11748_v63 = vcombine.high %v3639_v57, %v3643_v59 }
 0x340   :  { %3436 = vmatpush1.bf16.msra.mxu0 %v13326_v26  ;;  %3477 = vmatpush1.bf16.msra.mxu1 %v13327_v11  ;;  %v3615_v26 = vld [vmem:[#allocation6 + $0x1c0] sm:$0xff]  ;;  %13335 = vst [vmem:[#allocation55_spill] sm:$0xff] %v11748_v63 }
 0x341   :  { %3437 = vmatprep.subr.bf16.mxu0 %v13328_v12  ;;  %3478 = vmatprep.subr.bf16.mxu1 %v13329_v3  ;;  %v3619_v11 = vld [vmem:[#allocation6 + $0x1e0] sm:$0xff]  ;;  %v3616_v12 = vld [vmem:[#allocation6 + $0x1c8] sm:$0xff] }
 0x342   :  { %v3620_v3 = vld [vmem:[#allocation6 + $0x1e8] sm:$0xff] }
 0x344   :  { %3438 = vmatpush1.bf16.msra.mxu0 %v11426_v38  ;;  %3479 = vmatpush1.bf16.msra.mxu1 %v11428_v55  ;;  %v3559_v38 = vld [vmem:[#allocation6] sm:$0xff] }
 0x345   :  { %3439 = vmatprep.subr.bf16.mxu0 %v11432_v0  ;;  %3480 = vmatprep.subr.bf16.mxu1 %v13330_v61  ;;  %v3563_v55 = vld [vmem:[#allocation6 + $0x20] sm:$0xff]  ;;  %v3560_v0 = vld [vmem:[#allocation6 + $0x8] sm:$0xff]  ;;  %v11703_v61 = vcombine.low %v3607_v14, %v3611_v30  ;;  %v11750_v30 = vcombine.low %v3639_v57, %v3643_v59  ;;  %v11774_v59 = vcombine.low %v3655_v47, %v3659_v8 }
 0x346   :  { %v3644_v14 = vld [vmem:[#allocation6 + $0x2a8] sm:$0xff] }
 0x347   :  { %13336 = vst [vmem:[#allocation59_spill] sm:$0xff] %v11750_v30  ;;  %v3660_v57 = vld [vmem:[#allocation6 + $0x328] sm:$0xff]  ;;  %13344 = vst [vmem:[#allocation77_spill] sm:$0xff] %v11774_v59 }
 0x348   :  { %3440 = vmatpush1.bf16.msra.mxu0 %v13331_v62  ;;  %3481 = vmatpush1.bf16.msra.mxu1 %v11440_v56  ;;  %v11628_v56 = vcombine.low %v3559_v38, %v3563_v55  ;;  %v11707_v62 = vcombine.low %v3608_v18, %v3612_v34  ;;  %v11752_v18 = vcombine.low %v3640_v60, %v3644_v14 }
 0x349   :  { %3441 = vmatprep.subr.bf16.mxu0 %v11444_v45  ;;  %3482 = vmatprep.subr.bf16.mxu1 %v11446_v16  ;;  %v11630_v45 = vcombine.high %v3559_v38, %v3563_v55  ;;  %v3564_v16 = vld [vmem:[#allocation6 + $0x28] sm:$0xff]  ;;  %v11709_v38 = vcombine.high %v3615_v26, %v3619_v11  ;;  %v11712_v55 = vcombine.high %v3616_v12, %v3620_v3 }
 0x34a   :  { %13337 = vst [vmem:[#allocation62_spill] sm:$0xff] %v11752_v18  ;;  %v11754_v34 = vcombine.high %v3640_v60, %v3644_v14  ;;  %v11776_v60 = vcombine.low %v3656_v29, %v3660_v57  ;;  %v11778_v14 = vcombine.high %v3656_v29, %v3660_v57  ;;  %v3671_v57 = vld [vmem:[#allocation6 + $0x380] sm:$0xff] }
 0x34c   :  { %3442 = vmatpush1.bf16.msra.mxu0 %v11450_v20  ;;  %3483 = vmatpush1.bf16.msra.mxu1 %v11452_v25  ;;  %v3567_v20 = vld [vmem:[#allocation6 + $0x40] sm:$0xff]  ;;  %13338 = vst [vmem:[#allocation67_spill] sm:$0xff] %v11754_v34  ;;  %13345 = vst [vmem:[#allocation75_spill] sm:$0xff] %v11776_v60 }
 0x34d   :  { %3443 = vmatprep.subr.bf16.mxu0 %v11456_v17  ;;  %3484 = vmatprep.subr.bf16.mxu1 %v11458_v52  ;;  %v3571_v25 = vld [vmem:[#allocation6 + $0x60] sm:$0xff]  ;;  %v11632_v17 = vcombine.low %v3560_v0, %v3564_v16  ;;  %v11634_v52 = vcombine.high %v3560_v0, %v3564_v16  ;;  %v11715_v0 = vcombine.low %v3615_v26, %v3619_v11 }
 0x34e   :  { %v11643_v5 = vcombine.low %v3567_v20, %v3571_v25  ;;  %v11719_v16 = vcombine.low %v3616_v12, %v3620_v3  ;;  %v3647_v26 = vld [vmem:[#allocation6 + $0x2c0] sm:$0xff]  ;;  %v3648_v12 = vld [vmem:[#allocation6 + $0x2c8] sm:$0xff]  ;;  %13346 = vst [vmem:[#allocation76_spill] sm:$0xff] %v11778_v14 }
 0x34f   :  { %v3651_v11 = vld [vmem:[#allocation6 + $0x2e0] sm:$0xff] }
 0x350   :  { %3444 = vmatpush1.bf16.msra.mxu0 %v11462_v58  ;;  %3485 = vmatpush1.bf16.msra.mxu1 %v11464_v43  ;;  %v11636_v58 = vcombine.high %v3567_v20, %v3571_v25  ;;  %v3568_v43 = vld [vmem:[#allocation6 + $0x48] sm:$0xff]  ;;  %v3623_v20 = vld [vmem:[#allocation6 + $0x200] sm:$0xff]  ;;  %v11760_v3 = vcombine.high %v3647_v26, %v3651_v11 }
 0x351   :  { %4327 = vmatprep.subr.bf16.mxu0 %v11630_v45  ;;  %v11639_v28 = vcombine.high %v3568_v43, %v3572_v36  ;;  %4368 = vmatprep.subr.bf16.mxu1 %v11634_v52  ;;  %v11647_v33 = vcombine.low %v3568_v43, %v3572_v36  ;;  %v3627_v25 = vld [vmem:[#allocation6 + $0x220] sm:$0xff]  ;;  %v3624_v43 = vld [vmem:[#allocation6 + $0x208] sm:$0xff] }
 0x352   :  { %v11724_v36 = vcombine.high %v3623_v20, %v3627_v25  ;;  %v11726_v24 = vcombine.low %v3623_v20, %v3627_v25  ;;  %13339 = vst [vmem:[#allocation68_spill] sm:$0xff] %v11760_v3  ;;  %v3652_v20 = vld [vmem:[#allocation6 + $0x2e8] sm:$0xff]  ;;  %v11762_v25 = vcombine.low %v3647_v26, %v3651_v11  ;;  %v3663_v26 = vld [vmem:[#allocation6 + $0x340] sm:$0xff] }
 0x353   :  { %3446 = vmatmul.mubr.bf16.vlgmr.msra.gmra.mrb[44].mxu0 %v11556_v32  ;;  %3487 = vmatmul.mubr.bf16.vlgmr.msra.gmra.mrb[60].mxu1 %v11556_v32  ;;  %v3580_v32 = vld [vmem:[#allocation6 + $0xa8] sm:$0xff]  ;;  %v3667_v11 = vld [vmem:[#allocation6 + $0x360] sm:$0xff] }
 0x354   :  { %4328 = vmatpush1.bf16.msra.mxu0 %v11628_v56  ;;  %4369 = vmatpush1.bf16.msra.mxu1 %v11632_v17  ;;  %v11652_v27 = vcombine.high %v3576_v31, %v3580_v32  ;;  %v11659_v7 = vcombine.low %v3576_v31, %v3580_v32  ;;  %v11728_v31 = vcombine.low %v3624_v43, %v3628_v39 }
 0x355   :  { %4329 = vmatprep.subr.bf16.mxu0 %v11636_v58  ;;  %4370 = vmatprep.subr.bf16.mxu1 %v11639_v28  ;;  %v11730_v32 = vcombine.high %v3624_v43, %v3628_v39  ;;  %13340 = vst [vmem:[#allocation71_spill] sm:$0xff] %v11762_v25  ;;  %v11764_v43 = vcombine.low %v3648_v12, %v3652_v20 }
 0x356   :  { %v11766_v39 = vcombine.high %v3648_v12, %v3652_v20  ;;  %v3664_v12 = vld [vmem:[#allocation6 + $0x348] sm:$0xff]  ;;  %v11784_v20 = vcombine.high %v3663_v26, %v3667_v11  ;;  %v11786_v47 = vcombine.low %v3663_v26, %v3667_v11  ;;  %v11798_v26 = vcombine.low %v3671_v57, %v3675_v21 }
 0x357   :  { %13341 = vst [vmem:[#allocation69_spill] sm:$0xff] %v11764_v43  ;;  %v11788_v8 = vcombine.low %v3664_v12, %v3668_v35  ;;  %v11790_v29 = vcombine.high %v3664_v12, %v3668_v35  ;;  %v3679_v12 = vld [vmem:[#allocation6 + $0x3c0] sm:$0xff] }
 0x358   :  { %4330 = vmatpush1.bf16.msra.mxu0 %v11643_v5  ;;  %4371 = vmatpush1.bf16.msra.mxu1 %v11647_v33  ;;  %13342 = vst [vmem:[#allocation70_spill] sm:$0xff] %v11766_v39  ;;  %13347 = vst [vmem:[#allocation78_spill] sm:$0xff] %v11784_v20 }
 0x359   :  { %4331 = vmatprep.subr.bf16.mxu0 %v11649_v41  ;;  %4372 = vmatprep.subr.bf16.mxu1 %v11652_v27  ;;  %13348 = vst [vmem:[#allocation81_spill] sm:$0xff] %v11786_v47  ;;  %13349 = vst [vmem:[#allocation79_spill] sm:$0xff] %v11788_v8 }
 0x35a   :  { %13350 = vst [vmem:[#allocation80_spill] sm:$0xff] %v11790_v29  ;;  %13352 = vst [vmem:[#allocation89_spill] sm:$0xff] %v11798_v26 }
 0x35c   :  { %4332 = vmatpush1.bf16.msra.mxu0 %v11655_v10  ;;  %4373 = vmatpush1.bf16.msra.mxu1 %v11659_v7 }
 0x35d   :  { %4333 = vmatprep.subr.bf16.mxu0 %v11661_v40  ;;  %4374 = vmatprep.subr.bf16.mxu1 %v11664_v19 }
 0x360   :  { %4334 = vmatpush1.bf16.msra.mxu0 %v11667_v37  ;;  %4375 = vmatpush1.bf16.msra.mxu1 %v11671_v53 }
 0x361   :  { %4335 = vmatprep.subr.bf16.mxu0 %v11673_v44  ;;  %4376 = vmatprep.subr.bf16.mxu1 %v11676_v51 }
 0x364   :  { %4336 = vmatpush1.bf16.msra.mxu0 %v11679_v50  ;;  %4377 = vmatpush1.bf16.msra.mxu1 %v11683_v1 }
 0x365   :  { %4337 = vmatprep.subr.bf16.mxu0 %v11685_v2  ;;  %4378 = vmatprep.subr.bf16.mxu1 %v11688_v6 }
 0x368   :  { %4338 = vmatpush1.bf16.msra.mxu0 %v11691_v49  ;;  %4379 = vmatpush1.bf16.msra.mxu1 %v11695_v13 }
 0x369   :  { %4339 = vmatprep.subr.bf16.mxu0 %v11697_v22  ;;  %4380 = vmatprep.subr.bf16.mxu1 %v11700_v23 }
 0x36c   :  { %4340 = vmatpush1.bf16.msra.mxu0 %v11703_v61  ;;  %4381 = vmatpush1.bf16.msra.mxu1 %v11707_v62 }
 0x36d   :  { %4341 = vmatprep.subr.bf16.mxu0 %v11709_v38  ;;  %4382 = vmatprep.subr.bf16.mxu1 %v11712_v55 }
 0x370   :  { %4342 = vmatpush1.bf16.msra.mxu0 %v11715_v0  ;;  %4383 = vmatpush1.bf16.msra.mxu1 %v11719_v16 }
 0x371   :  { %4343 = vmatprep.subr.bf16.mxu0 %v11724_v36  ;;  %4384 = vmatprep.subr.bf16.mxu1 %v11730_v32 }
 0x374   :  { %4344 = vmatpush1.bf16.msra.mxu0 %v11726_v24  ;;  %4385 = vmatpush1.bf16.msra.mxu1 %v11728_v31 }
 0x375   :  { %4345 = vmatprep.subr.bf16.mxu0 %v11736_v15  ;;  %4386 = vmatprep.subr.bf16.mxu1 %v11742_v54 }
 0x378   :  { %4346 = vmatpush1.bf16.msra.mxu0 %v11738_v4  ;;  %4387 = vmatpush1.bf16.msra.mxu1 %v11740_v9  ;;  %v13366_v9 = vld [vmem:[#allocation82_spill] sm:$0xff] }
 0x379   :  { %4347 = vmatprep.subr.bf16.mxu0 %v11748_v63  ;;  %4388 = vmatprep.subr.bf16.mxu1 %v11754_v34 }
 0x37c   :  { %4348 = vmatpush1.bf16.msra.mxu0 %v11750_v30  ;;  %4389 = vmatpush1.bf16.msra.mxu1 %v11752_v18 }
 0x37d   :  { %4349 = vmatprep.subr.bf16.mxu0 %v11760_v3  ;;  %4390 = vmatprep.subr.bf16.mxu1 %v11766_v39  ;;  %v13363_v39 = vld [vmem:[#allocation26_spill] sm:$0xff] }
 0x380   :  { %4350 = vmatpush1.bf16.msra.mxu0 %v11762_v25  ;;  %4391 = vmatpush1.bf16.msra.mxu1 %v11764_v43 }
 0x381   :  { %4351 = vmatprep.subr.bf16.mxu0 %v11772_v42  ;;  %4392 = vmatprep.subr.bf16.mxu1 %v11778_v14  ;;  %v3676_v14 = vld [vmem:[#allocation6 + $0x3a8] sm:$0xff]  ;;  %v13362_v42 = vld [vmem:[#allocation35_spill] sm:$0xff] }
 0x384   :  { %4352 = vmatpush1.bf16.msra.mxu0 %v11774_v59  ;;  %4393 = vmatpush1.bf16.msra.mxu1 %v11776_v60  ;;  %v3672_v59 = vld [vmem:[#allocation6 + $0x388] sm:$0xff]  ;;  %v11796_v60 = vcombine.high %v3671_v57, %v3675_v21 }
 0x385   :  { %4353 = vmatprep.subr.bf16.mxu0 %v11784_v20  ;;  %4394 = vmatprep.subr.bf16.mxu1 %v11790_v29  ;;  %v11800_v11 = vcombine.low %v3672_v59, %v3676_v14  ;;  %v11802_v35 = vcombine.high %v3672_v59, %v3676_v14  ;;  %v3680_v29 = vld [vmem:[#allocation6 + $0x3c8] sm:$0xff]  ;;  %v3561_v14 = vld [vmem:[#allocation6 + $0x10] sm:$0xff] }
 0x386   :  { %13351 = vst [vmem:[#allocation85_spill] sm:$0xff] %v11796_v60  ;;  %v3684_v20 = vld [vmem:[#allocation6 + $0x3e8] sm:$0xff] }
 0x387   :  { %13353 = vst [vmem:[#allocation87_spill] sm:$0xff] %v11800_v11  ;;  %13354 = vst [vmem:[#allocation88_spill] sm:$0xff] %v11802_v35  ;;  %v11812_v57 = vcombine.low %v3680_v29, %v3684_v20  ;;  %v11814_v59 = vcombine.high %v3680_v29, %v3684_v20 }
 0x388   :  { %4354 = vmatpush1.bf16.msra.mxu0 %v11786_v47  ;;  %4395 = vmatpush1.bf16.msra.mxu1 %v11788_v8  ;;  %v3683_v47 = vld [vmem:[#allocation6 + $0x3e0] sm:$0xff] }
 0x389   :  { %4355 = vmatprep.subr.bf16.mxu0 %v11796_v60  ;;  %4396 = vmatprep.subr.bf16.mxu1 %v11802_v35  ;;  %v11808_v8 = vcombine.high %v3679_v12, %v3683_v47  ;;  %v11810_v21 = vcombine.low %v3679_v12, %v3683_v47  ;;  %13357 = vst [vmem:[#allocation91_spill] sm:$0xff] %v11812_v57  ;;  %13358 = vst [vmem:[#allocation92_spill] sm:$0xff] %v11814_v59  ;;  %v3562_v35 = vld [vmem:[#allocation6 + $0x18] sm:$0xff] }
 0x38a   :  { %v3566_v60 = vld [vmem:[#allocation6 + $0x38] sm:$0xff] }
 0x38b   :  { %13355 = vst [vmem:[#allocation90_spill] sm:$0xff] %v11808_v8  ;;  %13356 = vst [vmem:[#allocation93_spill] sm:$0xff] %v11810_v21  ;;  %v11824_v12 = vcombine.low %v3562_v35, %v3566_v60  ;;  %v11826_v20 = vcombine.high %v3562_v35, %v3566_v60 }
 0x38c   :  { %4356 = vmatpush1.bf16.msra.mxu0 %v11798_v26  ;;  %4397 = vmatpush1.bf16.msra.mxu1 %v11800_v11  ;;  %v3565_v26 = vld [vmem:[#allocation6 + $0x30] sm:$0xff] }
 0x38d   :  { %4357 = vmatprep.subr.bf16.mxu0 %v11808_v8  ;;  %4398 = vmatprep.subr.bf16.mxu1 %v11814_v59  ;;  %v11820_v11 = vcombine.high %v3561_v14, %v3565_v26  ;;  %v11822_v47 = vcombine.low %v3561_v14, %v3565_v26  ;;  %13360 = vst [vmem:[#allocation101_spill] sm:$0xff] %v11826_v20  ;;  %v13361_v59 = vld [vmem:[#allocation24_spill] sm:$0xff]  ;;  %v13364_v26 = vld [vmem:[#allocation37_spill] sm:$0xff] }
 0x38f   :  { %13359 = vst [vmem:[#allocation97_spill] sm:$0xff] %v11820_v11 }
 0x390   :  { %4358 = vmatpush1.bf16.msra.mxu0 %v11810_v21  ;;  %4399 = vmatpush1.bf16.msra.mxu1 %v11812_v57 }
 0x391   :  { %4409 = vmatprep.subr.bf16.mxu0 %v11820_v11  ;;  %4450 = vmatprep.subr.bf16.mxu1 %v11826_v20 }
 0x3e6   :  { %v3365_v29 = vpop.f32.mrb[40].mxu0  ;;  %v3406_v21 = vpop.f32.mrb[56].mxu1 }
 0x3e7   :  { %v3495_v8 = vadd.f32 %v3365_v29, %v13361_v59  ;;  %v3497_v43 = vadd.f32 %v3406_v21, %v13362_v42  ;;  %v3367_v57 = vpop.f32.mrb[41].mxu0  ;;  %v3408_v25 = vpop.f32.mrb[57].mxu1  ;;  %v13365_v21 = vld [vmem:[#allocation36_spill] sm:$0xff] }
 0x3e8   :  { %v3496_v3 = vadd.f32 %v3367_v57, %v13363_v39  ;;  %v3498_v14 = vadd.f32 %v3408_v25, %v13364_v26  ;;  %v3369_v18 = vpop.f32.mrb[42].mxu0  ;;  %v3410_v30 = vpop.f32.mrb[58].mxu1  ;;  %v13368_v26 = vld [vmem:[#allocation83_spill] sm:$0xff] }
 0x3e9   :  { %v3370_v60 = vpop.f32.mrb[43].mxu0  ;;  %v3411_v35 = vpop.f32.mrb[59].mxu1  ;;  %v3511_v34 = vmul.f32 0.5, %v3497_v43  ;;  %v3503_v63 = vmul.f32 0.5, %v3495_v8  ;;  %v13367_v18 = vld [vmem:[#allocation38_spill] sm:$0xff] }
 0x3ea   :  { %v3512_v11 = vmul.f32 0.5, %v3498_v14  ;;  %v3504_v20 = vmul.f32 0.5, %v3496_v3 }
 0x3eb   :  { %10374 = vtanh.f32 %v3511_v34 }
 0x3ec   :  { %10376 = vtanh.f32 %v3512_v11 }
 0x3ed   :  { %10378 = vtanh.f32 %v3503_v63 }
 0x3ee   :  { %10380 = vtanh.f32 %v3504_v20 }
 0x3f5   :  { %v10375_v8 = vpop.eup %10374 }
 0x3f6   :  { %v10377_v63 = vpop.eup %10376  ;;  %v3515_v35 = vadd.f32 1.0, %v10375_v8 }
 0x3f7   :  { %v10379_v11 = vpop.eup %10378 }
 0x3f8   :  { %v10381_v20 = vpop.eup %10380  ;;  %v3517_v54 = vmul.f32 0.5, %v3515_v35 }
 0x3f9   :  { %v3508_v4 = vadd.f32 1.0, %v10381_v20 }
 0x426   :  { %v3447_v59 = vpop.f32.mrb[44].mxu0  ;;  %v3488_v42 = vpop.f32.mrb[60].mxu1 }
 0x427   :  { %v3499_v29 = vadd.f32 %v3447_v59, %v13365_v21  ;;  %v3501_v39 = vadd.f32 %v3488_v42, %v13366_v9  ;;  %v3449_v57 = vpop.f32.mrb[45].mxu0  ;;  %v3490_v25 = vpop.f32.mrb[61].mxu1  ;;  %v3516_v21 = vadd.f32 1.0, %v10377_v63  ;;  %v3507_v42 = vadd.f32 1.0, %v10379_v11 }
 0x428   :  { %v3500_v30 = vadd.f32 %v3449_v57, %v13367_v18  ;;  %v3502_v60 = vadd.f32 %v3490_v25, %v13368_v26  ;;  %v3451_v43 = vpop.f32.mrb[46].mxu0  ;;  %v3492_v14 = vpop.f32.mrb[62].mxu1  ;;  %v3510_v26 = vmul.f32 0.5, %v3508_v4 }
 0x429   :  { %10382 = vtanh.f32 %v3499_v29  ;;  %v3452_v34 = vpop.f32.mrb[47].mxu0  ;;  %v3493_v3 = vpop.f32.mrb[63].mxu1  ;;  %v3521_v59 = vmul.f32 0.5, %v3501_v39  ;;  %v3518_v57 = vmul.f32 0.5, %v3516_v21  ;;  %v3509_v25 = vmul.f32 0.5, %v3507_v42  ;;  %v3573_v21 = vld [vmem:[#allocation6 + $0x70] sm:$0xff] }
 0x42a   :  { %10384 = vtanh.f32 %v3500_v30  ;;  %v3522_v9 = vmul.f32 0.5, %v3502_v60  ;;  %v3529_v43 = vmul.f32 %v3517_v54, %v11548_v46  ;;  %v3574_v42 = vld [vmem:[#allocation6 + $0x78] sm:$0xff] }
 0x42b   :  { %10386 = vtanh.f32 %v3521_v59  ;;  %v3530_v30 = vmul.f32 %v3518_v57, %v11550_v48  ;;  %v3569_v59 = vld [vmem:[#allocation6 + $0x50] sm:$0xff] }
 0x42c   :  { %10388 = vtanh.f32 %v3522_v9  ;;  %v3570_v9 = vld [vmem:[#allocation6 + $0x58] sm:$0xff] }
 0x433   :  { %v10383_v18 = vpop.eup %10382 }
 0x434   :  { %v10385_v29 = vpop.eup %10384  ;;  %v3531_v14 = vmul.f32 %v10383_v18, %v3509_v25  ;;  %v3577_v18 = vld [vmem:[#allocation6 + $0x90] sm:$0xff] }
 0x435   :  { %v3532_v34 = vmul.f32 %v10385_v29, %v3510_v26  ;;  %v10387_v60 = vpop.eup %10386  ;;  %v11856_v26 = vcombine.high %v3569_v59, %v3573_v21  ;;  %v11858_v29 = vcombine.high %v3570_v9, %v3574_v42 }
 0x436   :  { %v11840_v8 = vadd.f32 %v3531_v14, %v3529_v43  ;;  %v10389_v3 = vpop.eup %10388  ;;  %v3525_v63 = vadd.f32 1.0, %v10387_v60  ;;  %v3581_v43 = vld [vmem:[#allocation6 + $0xb0] sm:$0xff]  ;;  %v3578_v14 = vld [vmem:[#allocation6 + $0x98] sm:$0xff]  ;;  %v11866_v60 = vcombine.low %v3570_v9, %v3574_v42 }
 0x437   :  { %v11842_v39 = vadd.f32 %v3532_v34, %v3530_v30  ;;  %v3526_v11 = vadd.f32 1.0, %v10389_v3  ;;  %13369 = vst [vmem:[#allocation99_spill] sm:$0xff] %v11856_v26  ;;  %13370 = vst [vmem:[#allocation100_spill] sm:$0xff] %v11858_v29  ;;  %v3582_v30 = vld [vmem:[#allocation6 + $0xb8] sm:$0xff]  ;;  %v11864_v34 = vcombine.low %v3569_v59, %v3573_v21  ;;  %v11868_v3 = vcombine.high %v3577_v18, %v3581_v43  ;;  %v3593_v42 = vld [vmem:[#allocation6 + $0x110] sm:$0xff] }
 0x438   :  { %10390 = vtanh.f32 %v11840_v8  ;;  %v3527_v4 = vmul.f32 0.5, %v3525_v63  ;;  %13372 = vst [vmem:[#allocation103_spill] sm:$0xff] %v11866_v60  ;;  %v11870_v63 = vcombine.high %v3578_v14, %v3582_v30  ;;  %v11878_v59 = vcombine.low %v3578_v14, %v3582_v30 }
 0x439   :  { %10392 = vtanh.f32 %v11842_v39  ;;  %v3528_v35 = vmul.f32 0.5, %v3526_v11  ;;  %13371 = vst [vmem:[#allocation102_spill] sm:$0xff] %v11864_v34  ;;  %13373 = vst [vmem:[#allocation20_spill] sm:$0xff] %v11868_v3  ;;  %v3585_v11 = vld [vmem:[#allocation6 + $0xd0] sm:$0xff] }
 0x43a   :  { %13374 = vst [vmem:[#allocation31_spill] sm:$0xff] %v11870_v63  ;;  %13376 = vst [vmem:[#allocation33_spill] sm:$0xff] %v11878_v59 }
 0x442   :  { %v10391_v20 = vpop.eup %10390 }
 0x443   :  { %v10393_v46 = vpop.eup %10392  ;;  %v11846_v54 = vmul.f32 %v10391_v20, %v3527_v4  ;;  %v3589_v4 = vld [vmem:[#allocation6 + $0xf0] sm:$0xff]  ;;  %v3586_v20 = vld [vmem:[#allocation6 + $0xd8] sm:$0xff] }
 0x444   :  { %v11848_v48 = vmul.f32 %v10393_v46, %v3528_v35  ;;  %v3590_v35 = vld [vmem:[#allocation6 + $0xf8] sm:$0xff]  ;;  %v11876_v46 = vcombine.low %v3577_v18, %v3581_v43  ;;  %v11882_v21 = vcombine.high %v3585_v11, %v3589_v4  ;;  %v11888_v18 = vcombine.low %v3585_v11, %v3589_v4 }
 0x445   :  { %v11854_v25 = vpack.c.bf16 %v11846_v54, %v11846_v54  ;;  %v11884_v9 = vcombine.high %v3586_v20, %v3590_v35  ;;  %v11890_v43 = vcombine.low %v3586_v20, %v3590_v35 }
 0x446   :  { %v3558_v57 = vpack.c.bf16 %v11848_v48, %v11848_v48  ;;  %13375 = vst [vmem:[#allocation22_spill] sm:$0xff] %v11876_v46  ;;  %13377 = vst [vmem:[#allocation32_spill] sm:$0xff] %v11882_v21 }
 0x447   :  { %13378 = vst [vmem:[#allocation72_spill] sm:$0xff] %v11884_v9  ;;  %13379 = vst [vmem:[#allocation34_spill] sm:$0xff] %v11888_v18 }
 0x448   :  { %4359 = vmatprep.mubr.bf16.mxu0 %v3558_v57  ;;  %4400 = vmatprep.mubr.bf16.mxu1 %v3558_v57  ;;  %13380 = vst [vmem:[#allocation74_spill] sm:$0xff] %v11890_v43 }
 0x449   :  { %4360 = vmatmul.mubr.bf16.vlgmr.msra.gmra.mrb[48].mxu0 %v11854_v25  ;;  %4401 = vmatmul.mubr.bf16.vlgmr.msra.gmra.mrb[64].mxu1 %v11854_v25 }
 0x44a   :  { %4410 = vmatpush1.bf16.msra.mxu0 %v11822_v47  ;;  %4451 = vmatpush1.bf16.msra.mxu1 %v11824_v12 }
 0x44b   :  { %4441 = vmatprep.mubr.bf16.mxu0 %v3558_v57  ;;  %4482 = vmatprep.mubr.bf16.mxu1 %v3558_v57  ;;  %v3597_v57 = vld [vmem:[#allocation6 + $0x130] sm:$0xff] }
 0x44c   :  { %4411 = vmatprep.subr.bf16.mxu0 %v11856_v26  ;;  %4452 = vmatprep.subr.bf16.mxu1 %v11858_v29  ;;  %v3594_v29 = vld [vmem:[#allocation6 + $0x118] sm:$0xff]  ;;  %v11894_v14 = vcombine.high %v3593_v42, %v3597_v57  ;;  %v11900_v11 = vcombine.low %v3593_v42, %v3597_v57 }
 0x44d   :  { %v3598_v26 = vld [vmem:[#allocation6 + $0x138] sm:$0xff] }
 0x44e   :  { %4412 = vmatpush1.bf16.msra.mxu0 %v11864_v34  ;;  %4453 = vmatpush1.bf16.msra.mxu1 %v11866_v60  ;;  %13381 = vst [vmem:[#allocation108_spill] sm:$0xff] %v11894_v14  ;;  %v11896_v30 = vcombine.high %v3594_v29, %v3598_v26  ;;  %v3602_v60 = vld [vmem:[#allocation6 + $0x158] sm:$0xff]  ;;  %13383 = vst [vmem:[#allocation110_spill] sm:$0xff] %v11900_v11  ;;  %v11902_v4 = vcombine.low %v3594_v29, %v3598_v26 }
 0x44f   :  { %4413 = vmatprep.subr.bf16.mxu0 %v11868_v3  ;;  %4454 = vmatprep.subr.bf16.mxu1 %v11870_v63  ;;  %v3601_v63 = vld [vmem:[#allocation6 + $0x150] sm:$0xff]  ;;  %v3606_v34 = vld [vmem:[#allocation6 + $0x178] sm:$0xff] }
 0x450   :  { %13382 = vst [vmem:[#allocation109_spill] sm:$0xff] %v11896_v30  ;;  %v3605_v3 = vld [vmem:[#allocation6 + $0x170] sm:$0xff]  ;;  %13384 = vst [vmem:[#allocation111_spill] sm:$0xff] %v11902_v4  ;;  %v11908_v35 = vcombine.high %v3602_v60, %v3606_v34  ;;  %v11914_v26 = vcombine.low %v3602_v60, %v3606_v34 }
 0x451   :  { %v11906_v20 = vcombine.high %v3601_v63, %v3605_v3  ;;  %v11912_v42 = vcombine.low %v3601_v63, %v3605_v3 }
 0x452   :  { %4414 = vmatpush1.bf16.msra.mxu0 %v11876_v46  ;;  %4455 = vmatpush1.bf16.msra.mxu1 %v11878_v59  ;;  %13386 = vst [vmem:[#allocation113_spill] sm:$0xff] %v11908_v35  ;;  %v3610_v59 = vld [vmem:[#allocation6 + $0x198] sm:$0xff]  ;;  %13388 = vst [vmem:[#allocation115_spill] sm:$0xff] %v11914_v26 }
 0x453   :  { %4415 = vmatprep.subr.bf16.mxu0 %v11882_v21  ;;  %4456 = vmatprep.subr.bf16.mxu1 %v11884_v9  ;;  %13385 = vst [vmem:[#allocation112_spill] sm:$0xff] %v11906_v20  ;;  %v3609_v9 = vld [vmem:[#allocation6 + $0x190] sm:$0xff]  ;;  %v3614_v46 = vld [vmem:[#allocation6 + $0x1b8] sm:$0xff]  ;;  %13387 = vst [vmem:[#allocation114_spill] sm:$0xff] %v11912_v42 }
 0x454   :  { %v3613_v21 = vld [vmem:[#allocation6 + $0x1b0] sm:$0xff]  ;;  %v11920_v57 = vcombine.high %v3610_v59, %v3614_v46  ;;  %v11926_v34 = vcombine.low %v3610_v59, %v3614_v46 }
 0x455   :  { %v11918_v29 = vcombine.high %v3609_v9, %v3613_v21  ;;  %v11924_v3 = vcombine.low %v3609_v9, %v3613_v21 }
 0x456   :  { %4416 = vmatpush1.bf16.msra.mxu0 %v11888_v18  ;;  %4457 = vmatpush1.bf16.msra.mxu1 %v11890_v43  ;;  %13390 = vst [vmem:[#allocation117_spill] sm:$0xff] %v11920_v57  ;;  %v3618_v43 = vld [vmem:[#allocation6 + $0x1d8] sm:$0xff]  ;;  %13392 = vst [vmem:[#allocation119_spill] sm:$0xff] %v11926_v34 }
 0x457   :  { %4417 = vmatprep.subr.bf16.mxu0 %v11894_v14  ;;  %4458 = vmatprep.subr.bf16.mxu1 %v11896_v30  ;;  %13389 = vst [vmem:[#allocation116_spill] sm:$0xff] %v11918_v29  ;;  %v3617_v30 = vld [vmem:[#allocation6 + $0x1d0] sm:$0xff]  ;;  %v3622_v18 = vld [vmem:[#allocation6 + $0x1f8] sm:$0xff]  ;;  %13391 = vst [vmem:[#allocation118_spill] sm:$0xff] %v11924_v3 }
 0x458   :  { %v3621_v14 = vld [vmem:[#allocation6 + $0x1f0] sm:$0xff]  ;;  %v11932_v63 = vcombine.high %v3618_v43, %v3622_v18  ;;  %v11938_v46 = vcombine.low %v3618_v43, %v3622_v18 }
 0x459   :  { %v11930_v60 = vcombine.high %v3617_v30, %v3621_v14  ;;  %v11936_v21 = vcombine.low %v3617_v30, %v3621_v14 }
 0x45a   :  { %4418 = vmatpush1.bf16.msra.mxu0 %v11900_v11  ;;  %4459 = vmatpush1.bf16.msra.mxu1 %v11902_v4  ;;  %13394 = vst [vmem:[#allocation121_spill] sm:$0xff] %v11932_v63  ;;  %v3626_v4 = vld [vmem:[#allocation6 + $0x218] sm:$0xff]  ;;  %13396 = vst [vmem:[#allocation123_spill] sm:$0xff] %v11938_v46 }
 0x45b   :  { %4419 = vmatprep.subr.bf16.mxu0 %v11906_v20  ;;  %4460 = vmatprep.subr.bf16.mxu1 %v11908_v35  ;;  %13393 = vst [vmem:[#allocation120_spill] sm:$0xff] %v11930_v60  ;;  %v3625_v35 = vld [vmem:[#allocation6 + $0x210] sm:$0xff]  ;;  %v3630_v11 = vld [vmem:[#allocation6 + $0x238] sm:$0xff]  ;;  %13395 = vst [vmem:[#allocation122_spill] sm:$0xff] %v11936_v21 }
 0x45c   :  { %v3629_v20 = vld [vmem:[#allocation6 + $0x230] sm:$0xff]  ;;  %v11944_v9 = vcombine.high %v3626_v4, %v3630_v11  ;;  %v11950_v18 = vcombine.low %v3626_v4, %v3630_v11 }
 0x45d   :  { %v11942_v59 = vcombine.high %v3625_v35, %v3629_v20  ;;  %v11948_v14 = vcombine.low %v3625_v35, %v3629_v20 }
 0x45e   :  { %4420 = vmatpush1.bf16.msra.mxu0 %v11912_v42  ;;  %4461 = vmatpush1.bf16.msra.mxu1 %v11914_v26  ;;  %13398 = vst [vmem:[#allocation125_spill] sm:$0xff] %v11944_v9  ;;  %v3634_v26 = vld [vmem:[#allocation6 + $0x258] sm:$0xff]  ;;  %13400 = vst [vmem:[#allocation127_spill] sm:$0xff] %v11950_v18 }
 0x45f   :  { %4421 = vmatprep.subr.bf16.mxu0 %v11918_v29  ;;  %4462 = vmatprep.subr.bf16.mxu1 %v11920_v57  ;;  %13397 = vst [vmem:[#allocation124_spill] sm:$0xff] %v11942_v59  ;;  %v3633_v57 = vld [vmem:[#allocation6 + $0x250] sm:$0xff]  ;;  %v3638_v42 = vld [vmem:[#allocation6 + $0x278] sm:$0xff]  ;;  %13399 = vst [vmem:[#allocation126_spill] sm:$0xff] %v11948_v14 }
 0x460   :  { %v3637_v29 = vld [vmem:[#allocation6 + $0x270] sm:$0xff]  ;;  %v11956_v30 = vcombine.high %v3634_v26, %v3638_v42  ;;  %v11962_v11 = vcombine.low %v3634_v26, %v3638_v42 }
 0x461   :  { %v11954_v43 = vcombine.high %v3633_v57, %v3637_v29  ;;  %v11960_v20 = vcombine.low %v3633_v57, %v3637_v29 }
 0x462   :  { %4422 = vmatpush1.bf16.msra.mxu0 %v11924_v3  ;;  %4463 = vmatpush1.bf16.msra.mxu1 %v11926_v34  ;;  %13402 = vst [vmem:[#allocation129_spill] sm:$0xff] %v11956_v30  ;;  %v3642_v34 = vld [vmem:[#allocation6 + $0x298] sm:$0xff]  ;;  %13404 = vst [vmem:[#allocation131_spill] sm:$0xff] %v11962_v11 }
 0x463   :  { %4423 = vmatprep.subr.bf16.mxu0 %v11930_v60  ;;  %4464 = vmatprep.subr.bf16.mxu1 %v11932_v63  ;;  %13401 = vst [vmem:[#allocation128_spill] sm:$0xff] %v11954_v43  ;;  %v3641_v63 = vld [vmem:[#allocation6 + $0x290] sm:$0xff]  ;;  %v3646_v3 = vld [vmem:[#allocation6 + $0x2b8] sm:$0xff]  ;;  %13403 = vst [vmem:[#allocation130_spill] sm:$0xff] %v11960_v20 }
 0x464   :  { %v3645_v60 = vld [vmem:[#allocation6 + $0x2b0] sm:$0xff]  ;;  %v11968_v35 = vcombine.high %v3642_v34, %v3646_v3  ;;  %v11974_v42 = vcombine.low %v3642_v34, %v3646_v3 }
 0x465   :  { %v11966_v4 = vcombine.high %v3641_v63, %v3645_v60  ;;  %v11972_v29 = vcombine.low %v3641_v63, %v3645_v60 }
 0x466   :  { %4424 = vmatpush1.bf16.msra.mxu0 %v11936_v21  ;;  %4465 = vmatpush1.bf16.msra.mxu1 %v11938_v46  ;;  %13406 = vst [vmem:[#allocation133_spill] sm:$0xff] %v11968_v35  ;;  %v3650_v46 = vld [vmem:[#allocation6 + $0x2d8] sm:$0xff]  ;;  %13408 = vst [vmem:[#allocation135_spill] sm:$0xff] %v11974_v42 }
 0x467   :  { %4425 = vmatprep.subr.bf16.mxu0 %v11942_v59  ;;  %4466 = vmatprep.subr.bf16.mxu1 %v11944_v9  ;;  %13405 = vst [vmem:[#allocation132_spill] sm:$0xff] %v11966_v4  ;;  %v3649_v9 = vld [vmem:[#allocation6 + $0x2d0] sm:$0xff]  ;;  %v3654_v21 = vld [vmem:[#allocation6 + $0x2f8] sm:$0xff]  ;;  %13407 = vst [vmem:[#allocation134_spill] sm:$0xff] %v11972_v29 }
 0x468   :  { %v3653_v59 = vld [vmem:[#allocation6 + $0x2f0] sm:$0xff]  ;;  %v11980_v57 = vcombine.high %v3650_v46, %v3654_v21  ;;  %v11986_v3 = vcombine.low %v3650_v46, %v3654_v21 }
 0x469   :  { %v11978_v26 = vcombine.high %v3649_v9, %v3653_v59  ;;  %v11984_v60 = vcombine.low %v3649_v9, %v3653_v59 }
 0x46a   :  { %4426 = vmatpush1.bf16.msra.mxu0 %v11948_v14  ;;  %4467 = vmatpush1.bf16.msra.mxu1 %v11950_v18  ;;  %13410 = vst [vmem:[#allocation137_spill] sm:$0xff] %v11980_v57  ;;  %v3658_v18 = vld [vmem:[#allocation6 + $0x318] sm:$0xff]  ;;  %13412 = vst [vmem:[#allocation139_spill] sm:$0xff] %v11986_v3 }
 0x46b   :  { %4427 = vmatprep.subr.bf16.mxu0 %v11954_v43  ;;  %4468 = vmatprep.subr.bf16.mxu1 %v11956_v30  ;;  %13409 = vst [vmem:[#allocation136_spill] sm:$0xff] %v11978_v26  ;;  %v3657_v30 = vld [vmem:[#allocation6 + $0x310] sm:$0xff]  ;;  %v3662_v14 = vld [vmem:[#allocation6 + $0x338] sm:$0xff]  ;;  %13411 = vst [vmem:[#allocation138_spill] sm:$0xff] %v11984_v60 }
 0x46c   :  { %v3661_v43 = vld [vmem:[#allocation6 + $0x330] sm:$0xff]  ;;  %v11992_v63 = vcombine.high %v3658_v18, %v3662_v14  ;;  %v11998_v21 = vcombine.low %v3658_v18, %v3662_v14 }
 0x46d   :  { %v11990_v34 = vcombine.high %v3657_v30, %v3661_v43  ;;  %v11996_v59 = vcombine.low %v3657_v30, %v3661_v43 }
 0x46e   :  { %4428 = vmatpush1.bf16.msra.mxu0 %v11960_v20  ;;  %4469 = vmatpush1.bf16.msra.mxu1 %v11962_v11  ;;  %13414 = vst [vmem:[#allocation141_spill] sm:$0xff] %v11992_v63  ;;  %v3666_v11 = vld [vmem:[#allocation6 + $0x358] sm:$0xff] }
 0x46f   :  { %4429 = vmatprep.subr.bf16.mxu0 %v11966_v4  ;;  %4470 = vmatprep.subr.bf16.mxu1 %v11968_v35  ;;  %13413 = vst [vmem:[#allocation140_spill] sm:$0xff] %v11990_v34  ;;  %v3665_v35 = vld [vmem:[#allocation6 + $0x350] sm:$0xff]  ;;  %v3670_v20 = vld [vmem:[#allocation6 + $0x378] sm:$0xff] }
 0x470   :  { %v3669_v4 = vld [vmem:[#allocation6 + $0x370] sm:$0xff]  ;;  %v12004_v9 = vcombine.high %v3666_v11, %v3670_v20  ;;  %v12010_v14 = vcombine.low %v3666_v11, %v3670_v20 }
 0x471   :  { %v12002_v46 = vcombine.high %v3665_v35, %v3669_v4  ;;  %v12008_v43 = vcombine.low %v3665_v35, %v3669_v4 }
 0x472   :  { %4430 = vmatpush1.bf16.msra.mxu0 %v11972_v29  ;;  %4471 = vmatpush1.bf16.msra.mxu1 %v11974_v42  ;;  %13415 = vst [vmem:[#allocation142_spill] sm:$0xff] %v12004_v9  ;;  %v3674_v42 = vld [vmem:[#allocation6 + $0x398] sm:$0xff] }
 0x473   :  { %4431 = vmatprep.subr.bf16.mxu0 %v11978_v26  ;;  %4472 = vmatprep.subr.bf16.mxu1 %v11980_v57  ;;  %v3673_v57 = vld [vmem:[#allocation6 + $0x390] sm:$0xff]  ;;  %v3678_v29 = vld [vmem:[#allocation6 + $0x3b8] sm:$0xff]  ;;  %13416 = vst [vmem:[#allocation143_spill] sm:$0xff] %v12008_v43 }
 0x474   :  { %v3677_v26 = vld [vmem:[#allocation6 + $0x3b0] sm:$0xff]  ;;  %v12016_v30 = vcombine.high %v3674_v42, %v3678_v29  ;;  %v12022_v20 = vcombine.low %v3674_v42, %v3678_v29  ;;  %v13449_v42 = vld [vmem:[#allocation41_spill] sm:$0xff] }
 0x475   :  { %v12014_v18 = vcombine.high %v3673_v57, %v3677_v26  ;;  %v12020_v4 = vcombine.low %v3673_v57, %v3677_v26 }
 0x476   :  { %4432 = vmatpush1.bf16.msra.mxu0 %v11984_v60  ;;  %4473 = vmatpush1.bf16.msra.mxu1 %v11986_v3  ;;  %v3682_v3 = vld [vmem:[#allocation6 + $0x3d8] sm:$0xff] }
 0x477   :  { %4433 = vmatprep.subr.bf16.mxu0 %v11990_v34  ;;  %4474 = vmatprep.subr.bf16.mxu1 %v11992_v63  ;;  %v3681_v63 = vld [vmem:[#allocation6 + $0x3d0] sm:$0xff]  ;;  %v3686_v60 = vld [vmem:[#allocation6 + $0x3f8] sm:$0xff] }
 0x478   :  { %v3685_v34 = vld [vmem:[#allocation6 + $0x3f0] sm:$0xff]  ;;  %v12028_v35 = vcombine.high %v3682_v3, %v3686_v60 }
 0x479   :  { %v12026_v11 = vcombine.high %v3681_v63, %v3685_v34 }
 0x47a   :  { %4434 = vmatpush1.bf16.msra.mxu0 %v11996_v59  ;;  %4475 = vmatpush1.bf16.msra.mxu1 %v11998_v21 }
 0x47b   :  { %4435 = vmatprep.subr.bf16.mxu0 %v12002_v46  ;;  %4476 = vmatprep.subr.bf16.mxu1 %v12004_v9  ;;  %v12032_v9 = vcombine.low %v3681_v63, %v3685_v34 }
 0x47e   :  { %4436 = vmatpush1.bf16.msra.mxu0 %v12008_v43  ;;  %4477 = vmatpush1.bf16.msra.mxu1 %v12010_v14  ;;  %v12034_v43 = vcombine.low %v3682_v3, %v3686_v60 }
 0x47f   :  { %4437 = vmatprep.subr.bf16.mxu0 %v12014_v18  ;;  %4478 = vmatprep.subr.bf16.mxu1 %v12016_v30 }
 0x482   :  { %4438 = vmatpush1.bf16.msra.mxu0 %v12020_v4  ;;  %4479 = vmatpush1.bf16.msra.mxu1 %v12022_v20 }
 0x483   :  { %4439 = vmatprep.subr.bf16.mxu0 %v12026_v11  ;;  %4480 = vmatprep.subr.bf16.mxu1 %v12028_v35 }
 0x486   :  { %4440 = vmatpush1.bf16.msra.mxu0 %v12032_v9  ;;  %4481 = vmatpush1.bf16.msra.mxu1 %v12034_v43 }
 0x487   :  { %5323 = vmatprep.subr.bf16.mxu0 %v11630_v45  ;;  %5364 = vmatprep.subr.bf16.mxu1 %v11634_v52  ;;  %v13418_v45 = vld [vmem:[#allocation53_spill] sm:$0xff]  ;;  %v13420_v52 = vld [vmem:[#allocation55_spill] sm:$0xff] }
 0x489   :  { %4442 = vmatmul.mubr.bf16.vlgmr.msra.gmra.mrb[52].mxu0 %v11854_v25  ;;  %4483 = vmatmul.mubr.bf16.vlgmr.msra.gmra.mrb[68].mxu1 %v11854_v25  ;;  %v13448_v25 = vld [vmem:[#allocation30_spill] sm:$0xff] }
 0x48a   :  { %5324 = vmatpush1.bf16.msra.mxu0 %v11628_v56  ;;  %5365 = vmatpush1.bf16.msra.mxu1 %v11632_v17  ;;  %v13417_v56 = vld [vmem:[#allocation56_spill] sm:$0xff]  ;;  %v13419_v17 = vld [vmem:[#allocation54_spill] sm:$0xff] }
 0x48b   :  { %5325 = vmatprep.subr.bf16.mxu0 %v11636_v58  ;;  %5366 = vmatprep.subr.bf16.mxu1 %v11639_v28  ;;  %v13421_v58 = vld [vmem:[#allocation67_spill] sm:$0xff] }
 0x48c   :  { %v13422_v28 = vld [vmem:[#allocation59_spill] sm:$0xff] }
 0x48e   :  { %5326 = vmatpush1.bf16.msra.mxu0 %v11643_v5  ;;  %5367 = vmatpush1.bf16.msra.mxu1 %v11647_v33  ;;  %v13423_v5 = vld [vmem:[#allocation62_spill] sm:$0xff]  ;;  %v13424_v33 = vld [vmem:[#allocation68_spill] sm:$0xff] }
 0x48f   :  { %5327 = vmatprep.subr.bf16.mxu0 %v11649_v41  ;;  %5368 = vmatprep.subr.bf16.mxu1 %v11652_v27  ;;  %v13425_v41 = vld [vmem:[#allocation70_spill] sm:$0xff]  ;;  %v13426_v27 = vld [vmem:[#allocation71_spill] sm:$0xff] }
 0x492   :  { %5328 = vmatpush1.bf16.msra.mxu0 %v11655_v10  ;;  %5369 = vmatpush1.bf16.msra.mxu1 %v11659_v7  ;;  %v13427_v10 = vld [vmem:[#allocation69_spill] sm:$0xff] }
 0x493   :  { %5329 = vmatprep.subr.bf16.mxu0 %v11661_v40  ;;  %5370 = vmatprep.subr.bf16.mxu1 %v11664_v19  ;;  %v13428_v7 = vld [vmem:[#allocation73_spill] sm:$0xff]  ;;  %v13429_v40 = vld [vmem:[#allocation76_spill] sm:$0xff] }
 0x494   :  { %v13430_v19 = vld [vmem:[#allocation77_spill] sm:$0xff] }
 0x496   :  { %5330 = vmatpush1.bf16.msra.mxu0 %v11667_v37  ;;  %5371 = vmatpush1.bf16.msra.mxu1 %v11671_v53  ;;  %v13431_v37 = vld [vmem:[#allocation75_spill] sm:$0xff]  ;;  %v13432_v53 = vld [vmem:[#allocation78_spill] sm:$0xff] }
 0x497   :  { %5331 = vmatprep.subr.bf16.mxu0 %v11673_v44  ;;  %5372 = vmatprep.subr.bf16.mxu1 %v11676_v51  ;;  %v13433_v44 = vld [vmem:[#allocation80_spill] sm:$0xff]  ;;  %v13434_v51 = vld [vmem:[#allocation81_spill] sm:$0xff] }
 0x49a   :  { %5332 = vmatpush1.bf16.msra.mxu0 %v11679_v50  ;;  %5373 = vmatpush1.bf16.msra.mxu1 %v11683_v1  ;;  %v13435_v50 = vld [vmem:[#allocation79_spill] sm:$0xff]  ;;  %v13436_v1 = vld [vmem:[#allocation85_spill] sm:$0xff] }
 0x49b   :  { %5333 = vmatprep.subr.bf16.mxu0 %v11685_v2  ;;  %5374 = vmatprep.subr.bf16.mxu1 %v11688_v6  ;;  %v13437_v2 = vld [vmem:[#allocation88_spill] sm:$0xff]  ;;  %v13438_v6 = vld [vmem:[#allocation89_spill] sm:$0xff] }
 0x49e   :  { %5334 = vmatpush1.bf16.msra.mxu0 %v11691_v49  ;;  %5375 = vmatpush1.bf16.msra.mxu1 %v11695_v13  ;;  %v13439_v49 = vld [vmem:[#allocation87_spill] sm:$0xff]  ;;  %v13440_v13 = vld [vmem:[#allocation90_spill] sm:$0xff] }
 0x49f   :  { %5335 = vmatprep.subr.bf16.mxu0 %v11697_v22  ;;  %5376 = vmatprep.subr.bf16.mxu1 %v11700_v23  ;;  %v13441_v22 = vld [vmem:[#allocation92_spill] sm:$0xff]  ;;  %v13442_v23 = vld [vmem:[#allocation93_spill] sm:$0xff] }
 0x4a2   :  { %5336 = vmatpush1.bf16.msra.mxu0 %v11703_v61  ;;  %5377 = vmatpush1.bf16.msra.mxu1 %v11707_v62  ;;  %v13443_v61 = vld [vmem:[#allocation91_spill] sm:$0xff]  ;;  %v13444_v62 = vld [vmem:[#allocation97_spill] sm:$0xff] }
 0x4a3   :  { %5337 = vmatprep.subr.bf16.mxu0 %v11709_v38  ;;  %5378 = vmatprep.subr.bf16.mxu1 %v11712_v55  ;;  %v13445_v38 = vld [vmem:[#allocation101_spill] sm:$0xff] }
 0x4a6   :  { %5338 = vmatpush1.bf16.msra.mxu0 %v11715_v0  ;;  %5379 = vmatpush1.bf16.msra.mxu1 %v11719_v16  ;;  %v13446_v16 = vld [vmem:[#allocation28_spill] sm:$0xff] }
 0x4a7   :  { %5339 = vmatprep.subr.bf16.mxu0 %v11724_v36  ;;  %5380 = vmatprep.subr.bf16.mxu1 %v11730_v32 }
 0x4aa   :  { %5340 = vmatpush1.bf16.msra.mxu0 %v11726_v24  ;;  %5381 = vmatpush1.bf16.msra.mxu1 %v11728_v31  ;;  %v13447_v24 = vld [vmem:[#allocation39_spill] sm:$0xff] }
 0x4ab   :  { %5341 = vmatprep.subr.bf16.mxu0 %v11736_v15  ;;  %5382 = vmatprep.subr.bf16.mxu1 %v13417_v56 }
 0x4ae   :  { %5342 = vmatpush1.bf16.msra.mxu0 %v13418_v45  ;;  %5383 = vmatpush1.bf16.msra.mxu1 %v13419_v17 }
 0x4af   :  { %5343 = vmatprep.subr.bf16.mxu0 %v13420_v52  ;;  %5384 = vmatprep.subr.bf16.mxu1 %v13421_v58 }
 0x4b2   :  { %5344 = vmatpush1.bf16.msra.mxu0 %v13422_v28  ;;  %5385 = vmatpush1.bf16.msra.mxu1 %v13423_v5  ;;  %v13450_v28 = vld [vmem:[#allocation40_spill] sm:$0xff] }
 0x4b3   :  { %5345 = vmatprep.subr.bf16.mxu0 %v13424_v33  ;;  %5386 = vmatprep.subr.bf16.mxu1 %v13425_v41  ;;  %v13451_v33 = vld [vmem:[#allocation84_spill] sm:$0xff] }
 0x4b6   :  { %5346 = vmatpush1.bf16.msra.mxu0 %v13426_v27  ;;  %5387 = vmatpush1.bf16.msra.mxu1 %v13427_v10 }
 0x4b7   :  { %5347 = vmatprep.subr.bf16.mxu0 %v13428_v7  ;;  %5388 = vmatprep.subr.bf16.mxu1 %v13429_v40  ;;  %v13452_v7 = vld [vmem:[#allocation42_spill] sm:$0xff] }
 0x4ba   :  { %5348 = vmatpush1.bf16.msra.mxu0 %v13430_v19  ;;  %5389 = vmatpush1.bf16.msra.mxu1 %v13431_v37  ;;  %v13453_v19 = vld [vmem:[#allocation86_spill] sm:$0xff] }
 0x4bb   :  { %5349 = vmatprep.subr.bf16.mxu0 %v13432_v53  ;;  %5390 = vmatprep.subr.bf16.mxu1 %v13433_v44 }
 0x4be   :  { %5350 = vmatpush1.bf16.msra.mxu0 %v13434_v51  ;;  %5391 = vmatpush1.bf16.msra.mxu1 %v13435_v50 }
 0x4bf   :  { %5351 = vmatprep.subr.bf16.mxu0 %v13436_v1  ;;  %5392 = vmatprep.subr.bf16.mxu1 %v13437_v2 }
 0x4c2   :  { %5352 = vmatpush1.bf16.msra.mxu0 %v13438_v6  ;;  %5393 = vmatpush1.bf16.msra.mxu1 %v13439_v49 }
 0x4c3   :  { %5353 = vmatprep.subr.bf16.mxu0 %v13440_v13  ;;  %5394 = vmatprep.subr.bf16.mxu1 %v13441_v22 }
 0x4c6   :  { %5354 = vmatpush1.bf16.msra.mxu0 %v13442_v23  ;;  %5395 = vmatpush1.bf16.msra.mxu1 %v13443_v61 }
 0x4c7   :  { %5405 = vmatprep.subr.bf16.mxu0 %v13444_v62  ;;  %5446 = vmatprep.subr.bf16.mxu1 %v13445_v38 }
 0x51c   :  { %v4361_v55 = vpop.f32.mrb[48].mxu0  ;;  %v4402_v0 = vpop.f32.mrb[64].mxu1 }
 0x51d   :  { %v4491_v36 = vadd.f32 %v4361_v55, %v13446_v16  ;;  %v4493_v31 = vadd.f32 %v4402_v0, %v13447_v24  ;;  %v4363_v32 = vpop.f32.mrb[49].mxu0  ;;  %v4404_v15 = vpop.f32.mrb[65].mxu1 }
 0x51e   :  { %v4492_v29 = vadd.f32 %v4363_v32, %v13448_v25  ;;  %v4494_v26 = vadd.f32 %v4404_v15, %v13449_v42  ;;  %v4365_v57 = vpop.f32.mrb[50].mxu0  ;;  %v4406_v60 = vpop.f32.mrb[66].mxu1 }
 0x51f   :  { %v4366_v3 = vpop.f32.mrb[51].mxu0  ;;  %v4407_v34 = vpop.f32.mrb[67].mxu1  ;;  %v4507_v63 = vmul.f32 0.5, %v4493_v31  ;;  %v4499_v45 = vmul.f32 0.5, %v4491_v36 }
 0x520   :  { %v4508_v56 = vmul.f32 0.5, %v4494_v26  ;;  %v4500_v17 = vmul.f32 0.5, %v4492_v29 }
 0x521   :  { %10394 = vtanh.f32 %v4507_v63 }
 0x522   :  { %10396 = vtanh.f32 %v4508_v56 }
 0x523   :  { %10398 = vtanh.f32 %v4499_v45 }
 0x524   :  { %10400 = vtanh.f32 %v4500_v17 }
 0x52b   :  { %v10395_v51 = vpop.eup %10394 }
 0x52c   :  { %v10397_v2 = vpop.eup %10396  ;;  %v4511_v13 = vadd.f32 1.0, %v10395_v51  ;;  %v13466_v51 = vld [vmem:[#allocation34_spill] sm:$0xff] }
 0x52d   :  { %v10399_v6 = vpop.eup %10398  ;;  %v4512_v23 = vadd.f32 1.0, %v10397_v2  ;;  %v13469_v2 = vld [vmem:[#allocation109_spill] sm:$0xff] }
 0x52e   :  { %v10401_v49 = vpop.eup %10400  ;;  %v4503_v62 = vadd.f32 1.0, %v10399_v6  ;;  %v4513_v55 = vmul.f32 0.5, %v4511_v13  ;;  %v13470_v6 = vld [vmem:[#allocation110_spill] sm:$0xff]  ;;  %v13472_v13 = vld [vmem:[#allocation112_spill] sm:$0xff] }
 0x52f   :  { %v4504_v38 = vadd.f32 1.0, %v10401_v49  ;;  %v4514_v0 = vmul.f32 0.5, %v4512_v23  ;;  %v13471_v49 = vld [vmem:[#allocation111_spill] sm:$0xff]  ;;  %v13474_v23 = vld [vmem:[#allocation114_spill] sm:$0xff] }
 0x530   :  { %v4505_v16 = vmul.f32 0.5, %v4503_v62  ;;  %v4525_v32 = vmul.f32 %v4513_v55, %v11840_v8  ;;  %v13476_v62 = vld [vmem:[#allocation116_spill] sm:$0xff]  ;;  %v13478_v55 = vld [vmem:[#allocation118_spill] sm:$0xff] }
 0x531   :  { %v4506_v24 = vmul.f32 0.5, %v4504_v38  ;;  %v4526_v25 = vmul.f32 %v4514_v0, %v11842_v39  ;;  %v3539_v39 = vmax.f32 %v11846_v54, 0.0  ;;  %v13456_v54 = vld [vmem:[#allocation99_spill] sm:$0xff]  ;;  %v13477_v38 = vld [vmem:[#allocation117_spill] sm:$0xff] }
 0x532   :  { %v13479_v0 = vld [vmem:[#allocation119_spill] sm:$0xff] }
 0x55c   :  { %v4443_v52 = vpop.f32.mrb[52].mxu0  ;;  %v4484_v58 = vpop.f32.mrb[68].mxu1 }
 0x55d   :  { %v4495_v5 = vadd.f32 %v4443_v52, %v13450_v28  ;;  %v4497_v41 = vadd.f32 %v4484_v58, %v13451_v33  ;;  %v4445_v27 = vpop.f32.mrb[53].mxu0  ;;  %v4486_v10 = vpop.f32.mrb[69].mxu1 }
 0x55e   :  { %v4496_v40 = vadd.f32 %v4445_v27, %v13452_v7  ;;  %v4498_v37 = vadd.f32 %v4486_v10, %v13453_v19  ;;  %v4447_v53 = vpop.f32.mrb[54].mxu0  ;;  %v4488_v44 = vpop.f32.mrb[70].mxu1  ;;  %v13458_v7 = vld [vmem:[#allocation102_spill] sm:$0xff]  ;;  %v13460_v19 = vld [vmem:[#allocation20_spill] sm:$0xff] }
 0x55f   :  { %10402 = vtanh.f32 %v4495_v5  ;;  %v4448_v50 = vpop.f32.mrb[55].mxu0  ;;  %v4489_v1 = vpop.f32.mrb[71].mxu1  ;;  %v4517_v22 = vmul.f32 0.5, %v4497_v41  ;;  %v3540_v5 = vmax.f32 %v11848_v48, 0.0  ;;  %v13457_v48 = vld [vmem:[#allocation100_spill] sm:$0xff]  ;;  %v13462_v53 = vld [vmem:[#allocation22_spill] sm:$0xff] }
 0x560   :  { %10404 = vtanh.f32 %v4496_v40  ;;  %v4518_v61 = vmul.f32 0.5, %v4498_v37  ;;  %v13459_v40 = vld [vmem:[#allocation103_spill] sm:$0xff]  ;;  %v13463_v44 = vld [vmem:[#allocation33_spill] sm:$0xff]  ;;  %v13467_v50 = vld [vmem:[#allocation74_spill] sm:$0xff] }
 0x561   :  { %10406 = vtanh.f32 %v4517_v22  ;;  %v13461_v37 = vld [vmem:[#allocation31_spill] sm:$0xff]  ;;  %v13468_v1 = vld [vmem:[#allocation108_spill] sm:$0xff]  ;;  %v13473_v22 = vld [vmem:[#allocation113_spill] sm:$0xff] }
 0x562   :  { %10408 = vtanh.f32 %v4518_v61  ;;  %v13475_v61 = vld [vmem:[#allocation115_spill] sm:$0xff] }
 0x569   :  { %v10403_v36 = vpop.eup %10402 }
 0x56a   :  { %v10405_v31 = vpop.eup %10404  ;;  %v4527_v15 = vmul.f32 %v10403_v36, %v4505_v16  ;;  %v13480_v16 = vld [vmem:[#allocation120_spill] sm:$0xff]  ;;  %v13481_v36 = vld [vmem:[#allocation121_spill] sm:$0xff] }
 0x56b   :  { %v4528_v29 = vmul.f32 %v10405_v31, %v4506_v24  ;;  %v10407_v57 = vpop.eup %10406  ;;  %v13482_v24 = vld [vmem:[#allocation122_spill] sm:$0xff]  ;;  %v13483_v31 = vld [vmem:[#allocation123_spill] sm:$0xff] }
 0x56c   :  { %v12118_v42 = vadd.f32 %v4527_v15, %v4525_v32  ;;  %v10409_v60 = vpop.eup %10408  ;;  %v4521_v3 = vadd.f32 1.0, %v10407_v57  ;;  %v13484_v32 = vld [vmem:[#allocation124_spill] sm:$0xff]  ;;  %v13485_v15 = vld [vmem:[#allocation125_spill] sm:$0xff] }
 0x56d   :  { %v12120_v26 = vadd.f32 %v4528_v29, %v4526_v25  ;;  %v4522_v34 = vadd.f32 1.0, %v10409_v60  ;;  %v13486_v25 = vld [vmem:[#allocation126_spill] sm:$0xff]  ;;  %v13487_v29 = vld [vmem:[#allocation127_spill] sm:$0xff]  ;;  %v13488_v57 = vld [vmem:[#allocation128_spill] sm:$0xff] }
 0x56e   :  { %10410 = vtanh.f32 %v12118_v42  ;;  %v4523_v63 = vmul.f32 0.5, %v4521_v3  ;;  %v13489_v60 = vld [vmem:[#allocation129_spill] sm:$0xff]  ;;  %v13490_v3 = vld [vmem:[#allocation130_spill] sm:$0xff] }
 0x56f   :  { %10412 = vtanh.f32 %v12120_v26  ;;  %v4524_v45 = vmul.f32 0.5, %v4522_v34  ;;  %v13491_v34 = vld [vmem:[#allocation131_spill] sm:$0xff] }
 0x578   :  { %v10411_v56 = vpop.eup %10410 }
 0x579   :  { %v10413_v8 = vpop.eup %10412  ;;  %v4533_v17 = vmul.f32 %v10411_v56, %v4523_v63  ;;  %v13492_v63 = vld [vmem:[#allocation132_spill] sm:$0xff]  ;;  %v13493_v56 = vld [vmem:[#allocation133_spill] sm:$0xff] }
 0x57a   :  { %v4534_v52 = vmul.f32 %v10413_v8, %v4524_v45  ;;  %v13494_v45 = vld [vmem:[#allocation134_spill] sm:$0xff]  ;;  %v13495_v8 = vld [vmem:[#allocation135_spill] sm:$0xff] }
 0x57b   :  { %v4535_v58 = vmax.f32 %v4533_v17, 0.0  ;;  %v12126_v41 = vpack.c.bf16 %v4533_v17, %v4533_v17  ;;  %v13496_v17 = vld [vmem:[#allocation136_spill] sm:$0xff] }
 0x57c   :  { %v4554_v28 = vpack.c.bf16 %v4534_v52, %v4534_v52  ;;  %v4536_v33 = vmax.f32 %v4534_v52, 0.0  ;;  %v13497_v52 = vld [vmem:[#allocation137_spill] sm:$0xff] }
 0x57d   :  { %v12128_v27 = vpack.c.bf16 %v4535_v58, %v3539_v39  ;;  %v13498_v39 = vld [vmem:[#allocation138_spill] sm:$0xff]  ;;  %v13499_v58 = vld [vmem:[#allocation139_spill] sm:$0xff] }
 0x57e   :  { %5355 = vmatprep.mubr.bf16.mxu0 %v4554_v28  ;;  %5396 = vmatprep.mubr.bf16.mxu1 %v4554_v28  ;;  %v12130_v10 = vpack.c.bf16 %v4536_v33, %v3540_v5  ;;  %v13501_v5 = vld [vmem:[#allocation141_spill] sm:$0xff]  ;;  %v13502_v33 = vld [vmem:[#allocation142_spill] sm:$0xff] }
 0x57f   :  { %13454 = vst [vmem:[#allocation144_spill] sm:$0xff] %v12128_v27  ;;  %5356 = vmatmul.mubr.bf16.vlgmr.msra.gmra.mrb[56].mxu0 %v12126_v41  ;;  %5397 = vmatmul.mubr.bf16.vlgmr.msra.gmra.mrb[72].mxu1 %v12126_v41  ;;  %v5660_v27 = vld [vmem:[#allocation6 + $0x368] sm:$0xff] }
 0x580   :  { %13455 = vst [vmem:[#allocation145_spill] sm:$0xff] %v12130_v10  ;;  %5406 = vmatpush1.bf16.msra.mxu0 %v11822_v47  ;;  %5447 = vmatpush1.bf16.msra.mxu1 %v11824_v12  ;;  %v13464_v47 = vld [vmem:[#allocation32_spill] sm:$0xff] }
 0x581   :  { %5437 = vmatprep.mubr.bf16.mxu0 %v4554_v28  ;;  %5478 = vmatprep.mubr.bf16.mxu1 %v4554_v28  ;;  %v13465_v12 = vld [vmem:[#allocation72_spill] sm:$0xff] }
 0x582   :  { %5407 = vmatprep.subr.bf16.mxu0 %v13456_v54  ;;  %5448 = vmatprep.subr.bf16.mxu1 %v13457_v48  ;;  %v13500_v28 = vld [vmem:[#allocation140_spill] sm:$0xff]  ;;  %v13503_v54 = vld [vmem:[#allocation143_spill] sm:$0xff]  ;;  %v5564_v48 = vld [vmem:[#allocation6 + $0x68] sm:$0xff] }
 0x583   :  { %v5667_v10 = vld [vmem:[#allocation6 + $0x3a0] sm:$0xff] }
 0x584   :  { %5408 = vmatpush1.bf16.msra.mxu0 %v13458_v7  ;;  %5449 = vmatpush1.bf16.msra.mxu1 %v13459_v40  ;;  %v5567_v7 = vld [vmem:[#allocation6 + $0x80] sm:$0xff] }
 0x585   :  { %5409 = vmatprep.subr.bf16.mxu0 %v13460_v19  ;;  %5450 = vmatprep.subr.bf16.mxu1 %v13461_v37  ;;  %v5571_v40 = vld [vmem:[#allocation6 + $0xa0] sm:$0xff]  ;;  %v5568_v19 = vld [vmem:[#allocation6 + $0x88] sm:$0xff] }
 0x586   :  { %v5572_v37 = vld [vmem:[#allocation6 + $0xa8] sm:$0xff] }
 0x588   :  { %5410 = vmatpush1.bf16.msra.mxu0 %v13462_v53  ;;  %5451 = vmatpush1.bf16.msra.mxu1 %v13463_v44 }
 0x589   :  { %5411 = vmatprep.subr.bf16.mxu0 %v13464_v47  ;;  %5452 = vmatprep.subr.bf16.mxu1 %v13465_v12  ;;  %v12219_v47 = vcombine.high %v5567_v7, %v5571_v40  ;;  %v12222_v12 = vcombine.high %v5568_v19, %v5572_v37 }
 0x58c   :  { %5412 = vmatpush1.bf16.msra.mxu0 %v13466_v51  ;;  %5453 = vmatpush1.bf16.msra.mxu1 %v13467_v50  ;;  %v5575_v51 = vld [vmem:[#allocation6 + $0xc0] sm:$0xff] }
 0x58d   :  { %5413 = vmatprep.subr.bf16.mxu0 %v13468_v1  ;;  %5454 = vmatprep.subr.bf16.mxu1 %v13469_v2  ;;  %v5579_v50 = vld [vmem:[#allocation6 + $0xe0] sm:$0xff]  ;;  %v5576_v1 = vld [vmem:[#allocation6 + $0xc8] sm:$0xff] }
 0x58e   :  { %v5580_v2 = vld [vmem:[#allocation6 + $0xe8] sm:$0xff] }
 0x590   :  { %5414 = vmatpush1.bf16.msra.mxu0 %v13470_v6  ;;  %5455 = vmatpush1.bf16.msra.mxu1 %v13471_v49  ;;  %v12225_v6 = vcombine.low %v5567_v7, %v5571_v40  ;;  %v12229_v49 = vcombine.low %v5568_v19, %v5572_v37  ;;  %v5620_v7 = vld [vmem:[#allocation6 + $0x228] sm:$0xff] }
 0x591   :  { %5415 = vmatprep.subr.bf16.mxu0 %v13472_v13  ;;  %5456 = vmatprep.subr.bf16.mxu1 %v13473_v22  ;;  %v12231_v13 = vcombine.high %v5575_v51, %v5579_v50  ;;  %v12234_v22 = vcombine.high %v5576_v1, %v5580_v2 }
 0x594   :  { %5416 = vmatpush1.bf16.msra.mxu0 %v13474_v23  ;;  %5457 = vmatpush1.bf16.msra.mxu1 %v13475_v61  ;;  %v5583_v23 = vld [vmem:[#allocation6 + $0x100] sm:$0xff] }
 0x595   :  { %5417 = vmatprep.subr.bf16.mxu0 %v13476_v62  ;;  %5458 = vmatprep.subr.bf16.mxu1 %v13477_v38  ;;  %v5587_v61 = vld [vmem:[#allocation6 + $0x120] sm:$0xff]  ;;  %v5584_v62 = vld [vmem:[#allocation6 + $0x108] sm:$0xff] }
 0x596   :  { %v5588_v38 = vld [vmem:[#allocation6 + $0x128] sm:$0xff] }
 0x598   :  { %5418 = vmatpush1.bf16.msra.mxu0 %v13478_v55  ;;  %5459 = vmatpush1.bf16.msra.mxu1 %v13479_v0  ;;  %v12237_v55 = vcombine.low %v5575_v51, %v5579_v50  ;;  %v12241_v0 = vcombine.low %v5576_v1, %v5580_v2  ;;  %v5623_v51 = vld [vmem:[#allocation6 + $0x240] sm:$0xff]  ;;  %v5624_v1 = vld [vmem:[#allocation6 + $0x248] sm:$0xff] }
 0x599   :  { %5419 = vmatprep.subr.bf16.mxu0 %v13480_v16  ;;  %5460 = vmatprep.subr.bf16.mxu1 %v13481_v36  ;;  %v12243_v16 = vcombine.high %v5583_v23, %v5587_v61  ;;  %v12246_v36 = vcombine.high %v5584_v62, %v5588_v38  ;;  %v5627_v50 = vld [vmem:[#allocation6 + $0x260] sm:$0xff] }
 0x59a   :  { %v12306_v2 = vcombine.high %v5623_v51, %v5627_v50 }
 0x59c   :  { %5420 = vmatpush1.bf16.msra.mxu0 %v13482_v24  ;;  %5461 = vmatpush1.bf16.msra.mxu1 %v13483_v31  ;;  %v5591_v24 = vld [vmem:[#allocation6 + $0x140] sm:$0xff] }
 0x59d   :  { %5421 = vmatprep.subr.bf16.mxu0 %v13484_v32  ;;  %5462 = vmatprep.subr.bf16.mxu1 %v13485_v15  ;;  %v5595_v31 = vld [vmem:[#allocation6 + $0x160] sm:$0xff]  ;;  %v5592_v32 = vld [vmem:[#allocation6 + $0x148] sm:$0xff] }
 0x59e   :  { %v5596_v15 = vld [vmem:[#allocation6 + $0x168] sm:$0xff] }
 0x5a0   :  { %5422 = vmatpush1.bf16.msra.mxu0 %v13486_v25  ;;  %5463 = vmatpush1.bf16.msra.mxu1 %v13487_v29  ;;  %v12249_v25 = vcombine.low %v5583_v23, %v5587_v61  ;;  %v12253_v29 = vcombine.low %v5584_v62, %v5588_v38  ;;  %v5628_v23 = vld [vmem:[#allocation6 + $0x268] sm:$0xff]  ;;  %v12308_v61 = vcombine.low %v5623_v51, %v5627_v50  ;;  %v5647_v51 = vld [vmem:[#allocation6 + $0x300] sm:$0xff] }
 0x5a1   :  { %5423 = vmatprep.subr.bf16.mxu0 %v13488_v57  ;;  %5464 = vmatprep.subr.bf16.mxu1 %v13489_v60  ;;  %v12255_v57 = vcombine.high %v5591_v24, %v5595_v31  ;;  %v12258_v60 = vcombine.high %v5592_v32, %v5596_v15  ;;  %v12310_v62 = vcombine.low %v5624_v1, %v5628_v23  ;;  %v5651_v50 = vld [vmem:[#allocation6 + $0x320] sm:$0xff] }
 0x5a2   :  { %13504 = vst [vmem:[#allocation146_spill] sm:$0xff] %v12308_v61  ;;  %v12312_v38 = vcombine.high %v5624_v1, %v5628_v23  ;;  %v5648_v1 = vld [vmem:[#allocation6 + $0x308] sm:$0xff]  ;;  %v12342_v23 = vcombine.high %v5647_v51, %v5651_v50 }
 0x5a3   :  { %13505 = vst [vmem:[#allocation147_spill] sm:$0xff] %v12310_v62 }
 0x5a4   :  { %5424 = vmatpush1.bf16.msra.mxu0 %v13490_v3  ;;  %5465 = vmatpush1.bf16.msra.mxu1 %v13491_v34  ;;  %v5599_v3 = vld [vmem:[#allocation6 + $0x180] sm:$0xff]  ;;  %13506 = vst [vmem:[#allocation148_spill] sm:$0xff] %v12312_v38  ;;  %13515 = vst [vmem:[#allocation83_spill] sm:$0xff] %v12342_v23 }
 0x5a5   :  { %5425 = vmatprep.subr.bf16.mxu0 %v13492_v63  ;;  %5466 = vmatprep.subr.bf16.mxu1 %v13493_v56  ;;  %v5603_v34 = vld [vmem:[#allocation6 + $0x1a0] sm:$0xff]  ;;  %v5600_v63 = vld [vmem:[#allocation6 + $0x188] sm:$0xff] }
 0x5a6   :  { %v5604_v56 = vld [vmem:[#allocation6 + $0x1a8] sm:$0xff] }
 0x5a8   :  { %5426 = vmatpush1.bf16.msra.mxu0 %v13494_v45  ;;  %5467 = vmatpush1.bf16.msra.mxu1 %v13495_v8  ;;  %v12261_v45 = vcombine.low %v5591_v24, %v5595_v31  ;;  %v12265_v8 = vcombine.low %v5592_v32, %v5596_v15  ;;  %v5631_v24 = vld [vmem:[#allocation6 + $0x280] sm:$0xff]  ;;  %v5632_v32 = vld [vmem:[#allocation6 + $0x288] sm:$0xff] }
 0x5a9   :  { %5427 = vmatprep.subr.bf16.mxu0 %v13496_v17  ;;  %5468 = vmatprep.subr.bf16.mxu1 %v13497_v52  ;;  %v12267_v17 = vcombine.high %v5599_v3, %v5603_v34  ;;  %v12270_v52 = vcombine.high %v5600_v63, %v5604_v56  ;;  %v5635_v31 = vld [vmem:[#allocation6 + $0x2a0] sm:$0xff] }
 0x5aa   :  { %v12318_v15 = vcombine.high %v5631_v24, %v5635_v31 }
 0x5ac   :  { %5428 = vmatpush1.bf16.msra.mxu0 %v13498_v39  ;;  %5469 = vmatpush1.bf16.msra.mxu1 %v13499_v58  ;;  %v5607_v39 = vld [vmem:[#allocation6 + $0x1c0] sm:$0xff]  ;;  %13507 = vst [vmem:[#allocation149_spill] sm:$0xff] %v12318_v15 }
 0x5ad   :  { %5429 = vmatprep.subr.bf16.mxu0 %v13500_v28  ;;  %5470 = vmatprep.subr.bf16.mxu1 %v13501_v5  ;;  %v5611_v58 = vld [vmem:[#allocation6 + $0x1e0] sm:$0xff]  ;;  %v5608_v28 = vld [vmem:[#allocation6 + $0x1c8] sm:$0xff] }
 0x5ae   :  { %v5612_v5 = vld [vmem:[#allocation6 + $0x1e8] sm:$0xff] }
 0x5b0   :  { %5430 = vmatpush1.bf16.msra.mxu0 %v11996_v59  ;;  %5471 = vmatpush1.bf16.msra.mxu1 %v11998_v21  ;;  %v5551_v59 = vld [vmem:[#allocation6] sm:$0xff] }
 0x5b1   :  { %5431 = vmatprep.subr.bf16.mxu0 %v12002_v46  ;;  %5472 = vmatprep.subr.bf16.mxu1 %v13502_v33  ;;  %v5555_v21 = vld [vmem:[#allocation6 + $0x20] sm:$0xff]  ;;  %v5552_v46 = vld [vmem:[#allocation6 + $0x8] sm:$0xff]  ;;  %v12273_v33 = vcombine.low %v5599_v3, %v5603_v34  ;;  %v12320_v34 = vcombine.low %v5631_v24, %v5635_v31  ;;  %v12344_v31 = vcombine.low %v5647_v51, %v5651_v50 }
 0x5b2   :  { %v5636_v3 = vld [vmem:[#allocation6 + $0x2a8] sm:$0xff] }
 0x5b3   :  { %13508 = vst [vmem:[#allocation24_spill] sm:$0xff] %v12320_v34  ;;  %v5652_v24 = vld [vmem:[#allocation6 + $0x328] sm:$0xff]  ;;  %13516 = vst [vmem:[#allocation56_spill] sm:$0xff] %v12344_v31 }
 0x5b4   :  { %5432 = vmatpush1.bf16.msra.mxu0 %v13503_v54  ;;  %5473 = vmatpush1.bf16.msra.mxu1 %v12010_v14  ;;  %v12198_v14 = vcombine.low %v5551_v59, %v5555_v21  ;;  %v12277_v54 = vcombine.low %v5600_v63, %v5604_v56  ;;  %v12322_v63 = vcombine.low %v5632_v32, %v5636_v3 }
 0x5b5   :  { %5433 = vmatprep.subr.bf16.mxu0 %v12014_v18  ;;  %5474 = vmatprep.subr.bf16.mxu1 %v12016_v30  ;;  %v12200_v18 = vcombine.high %v5551_v59, %v5555_v21  ;;  %v5556_v30 = vld [vmem:[#allocation6 + $0x28] sm:$0xff]  ;;  %v12279_v59 = vcombine.high %v5607_v39, %v5611_v58  ;;  %v12282_v21 = vcombine.high %v5608_v28, %v5612_v5 }
 0x5b6   :  { %13509 = vst [vmem:[#allocation35_spill] sm:$0xff] %v12322_v63  ;;  %v12324_v56 = vcombine.high %v5632_v32, %v5636_v3  ;;  %v12346_v32 = vcombine.low %v5648_v1, %v5652_v24  ;;  %v12348_v3 = vcombine.high %v5648_v1, %v5652_v24  ;;  %v5663_v24 = vld [vmem:[#allocation6 + $0x380] sm:$0xff] }
 0x5b8   :  { %5434 = vmatpush1.bf16.msra.mxu0 %v12020_v4  ;;  %5475 = vmatpush1.bf16.msra.mxu1 %v12022_v20  ;;  %v5559_v4 = vld [vmem:[#allocation6 + $0x40] sm:$0xff]  ;;  %13510 = vst [vmem:[#allocation26_spill] sm:$0xff] %v12324_v56  ;;  %13517 = vst [vmem:[#allocation53_spill] sm:$0xff] %v12346_v32 }
 0x5b9   :  { %5435 = vmatprep.subr.bf16.mxu0 %v12026_v11  ;;  %5476 = vmatprep.subr.bf16.mxu1 %v12028_v35  ;;  %v5563_v20 = vld [vmem:[#allocation6 + $0x60] sm:$0xff]  ;;  %v12202_v11 = vcombine.low %v5552_v46, %v5556_v30  ;;  %v12204_v35 = vcombine.high %v5552_v46, %v5556_v30  ;;  %v12285_v46 = vcombine.low %v5607_v39, %v5611_v58 }
 0x5ba   :  { %v12213_v53 = vcombine.low %v5559_v4, %v5563_v20  ;;  %v12289_v30 = vcombine.low %v5608_v28, %v5612_v5  ;;  %v5639_v39 = vld [vmem:[#allocation6 + $0x2c0] sm:$0xff]  ;;  %v5640_v28 = vld [vmem:[#allocation6 + $0x2c8] sm:$0xff]  ;;  %13518 = vst [vmem:[#allocation54_spill] sm:$0xff] %v12348_v3 }
 0x5bb   :  { %v5643_v58 = vld [vmem:[#allocation6 + $0x2e0] sm:$0xff] }
 0x5bc   :  { %5436 = vmatpush1.bf16.msra.mxu0 %v12032_v9  ;;  %5477 = vmatpush1.bf16.msra.mxu1 %v12034_v43  ;;  %v12206_v9 = vcombine.high %v5559_v4, %v5563_v20  ;;  %v5560_v43 = vld [vmem:[#allocation6 + $0x48] sm:$0xff]  ;;  %v5615_v4 = vld [vmem:[#allocation6 + $0x200] sm:$0xff]  ;;  %v12330_v5 = vcombine.high %v5639_v39, %v5643_v58 }
 0x5bd   :  { %6319 = vmatprep.subr.bf16.mxu0 %v12200_v18  ;;  %6360 = vmatprep.subr.bf16.mxu1 %v12204_v35  ;;  %v12217_v44 = vcombine.low %v5560_v43, %v5564_v48  ;;  %v5619_v20 = vld [vmem:[#allocation6 + $0x220] sm:$0xff] }
 0x5be   :  { %v12296_v40 = vcombine.low %v5615_v4, %v5619_v20  ;;  %13511 = vst [vmem:[#allocation37_spill] sm:$0xff] %v12330_v5 }
 0x5bf   :  { %5438 = vmatmul.mubr.bf16.vlgmr.msra.gmra.mrb[60].mxu0 %v12126_v41  ;;  %5479 = vmatmul.mubr.bf16.vlgmr.msra.gmra.mrb[76].mxu1 %v12126_v41  ;;  %v12209_v41 = vcombine.high %v5560_v43, %v5564_v48  ;;  %v5616_v43 = vld [vmem:[#allocation6 + $0x208] sm:$0xff]  ;;  %v12294_v48 = vcombine.high %v5615_v4, %v5619_v20  ;;  %v12332_v20 = vcombine.low %v5639_v39, %v5643_v58  ;;  %v5655_v39 = vld [vmem:[#allocation6 + $0x340] sm:$0xff] }
 0x5c0   :  { %6320 = vmatpush1.bf16.msra.mxu0 %v12198_v14  ;;  %6361 = vmatpush1.bf16.msra.mxu1 %v12202_v11  ;;  %v12298_v19 = vcombine.low %v5616_v43, %v5620_v7  ;;  %v12300_v37 = vcombine.high %v5616_v43, %v5620_v7  ;;  %v5644_v4 = vld [vmem:[#allocation6 + $0x2e8] sm:$0xff]  ;;  %v5659_v58 = vld [vmem:[#allocation6 + $0x360] sm:$0xff] }
 0x5c1   :  { %6321 = vmatprep.subr.bf16.mxu0 %v12206_v9  ;;  %6362 = vmatprep.subr.bf16.mxu1 %v12209_v41  ;;  %13512 = vst [vmem:[#allocation36_spill] sm:$0xff] %v12332_v20  ;;  %v12334_v43 = vcombine.low %v5640_v28, %v5644_v4  ;;  %v12336_v7 = vcombine.high %v5640_v28, %v5644_v4  ;;  %v5656_v28 = vld [vmem:[#allocation6 + $0x348] sm:$0xff] }
 0x5c2   :  { %v12354_v4 = vcombine.high %v5655_v39, %v5659_v58  ;;  %v12356_v51 = vcombine.low %v5655_v39, %v5659_v58  ;;  %v12358_v50 = vcombine.low %v5656_v28, %v5660_v27  ;;  %v12360_v1 = vcombine.high %v5656_v28, %v5660_v27  ;;  %v5671_v28 = vld [vmem:[#allocation6 + $0x3c0] sm:$0xff] }
 0x5c3   :  { %13513 = vst [vmem:[#allocation82_spill] sm:$0xff] %v12334_v43  ;;  %13514 = vst [vmem:[#allocation38_spill] sm:$0xff] %v12336_v7  ;;  %v12368_v39 = vcombine.low %v5663_v24, %v5667_v10 }
 0x5c4   :  { %6322 = vmatpush1.bf16.msra.mxu0 %v12213_v53  ;;  %6363 = vmatpush1.bf16.msra.mxu1 %v12217_v44  ;;  %13519 = vst [vmem:[#allocation55_spill] sm:$0xff] %v12354_v4  ;;  %13520 = vst [vmem:[#allocation67_spill] sm:$0xff] %v12356_v51 }
 0x5c5   :  { %6323 = vmatprep.subr.bf16.mxu0 %v12219_v47  ;;  %6364 = vmatprep.subr.bf16.mxu1 %v12222_v12  ;;  %13521 = vst [vmem:[#allocation59_spill] sm:$0xff] %v12358_v50  ;;  %13522 = vst [vmem:[#allocation62_spill] sm:$0xff] %v12360_v1 }
 0x5c6   :  { %13524 = vst [vmem:[#allocation70_spill] sm:$0xff] %v12368_v39 }
 0x5c8   :  { %6324 = vmatpush1.bf16.msra.mxu0 %v12225_v6  ;;  %6365 = vmatpush1.bf16.msra.mxu1 %v12229_v49 }
 0x5c9   :  { %6325 = vmatprep.subr.bf16.mxu0 %v12231_v13  ;;  %6366 = vmatprep.subr.bf16.mxu1 %v12234_v22 }
 0x5cc   :  { %6326 = vmatpush1.bf16.msra.mxu0 %v12237_v55  ;;  %6367 = vmatpush1.bf16.msra.mxu1 %v12241_v0 }
 0x5cd   :  { %6327 = vmatprep.subr.bf16.mxu0 %v12243_v16  ;;  %6368 = vmatprep.subr.bf16.mxu1 %v12246_v36 }
 0x5d0   :  { %6328 = vmatpush1.bf16.msra.mxu0 %v12249_v25  ;;  %6369 = vmatpush1.bf16.msra.mxu1 %v12253_v29 }
 0x5d1   :  { %6329 = vmatprep.subr.bf16.mxu0 %v12255_v57  ;;  %6370 = vmatprep.subr.bf16.mxu1 %v12258_v60 }
 0x5d4   :  { %6330 = vmatpush1.bf16.msra.mxu0 %v12261_v45  ;;  %6371 = vmatpush1.bf16.msra.mxu1 %v12265_v8 }
 0x5d5   :  { %6331 = vmatprep.subr.bf16.mxu0 %v12267_v17  ;;  %6372 = vmatprep.subr.bf16.mxu1 %v12270_v52 }
 0x5d8   :  { %6332 = vmatpush1.bf16.msra.mxu0 %v12273_v33  ;;  %6373 = vmatpush1.bf16.msra.mxu1 %v12277_v54 }
 0x5d9   :  { %6333 = vmatprep.subr.bf16.mxu0 %v12279_v59  ;;  %6374 = vmatprep.subr.bf16.mxu1 %v12282_v21 }
 0x5dc   :  { %6334 = vmatpush1.bf16.msra.mxu0 %v12285_v46  ;;  %6375 = vmatpush1.bf16.msra.mxu1 %v12289_v30 }
 0x5dd   :  { %6335 = vmatprep.subr.bf16.mxu0 %v12294_v48  ;;  %6376 = vmatprep.subr.bf16.mxu1 %v12300_v37 }
 0x5e0   :  { %6336 = vmatpush1.bf16.msra.mxu0 %v12296_v40  ;;  %6377 = vmatpush1.bf16.msra.mxu1 %v12298_v19 }
 0x5e1   :  { %6337 = vmatprep.subr.bf16.mxu0 %v12306_v2  ;;  %6378 = vmatprep.subr.bf16.mxu1 %v12312_v38 }
 0x5e4   :  { %6338 = vmatpush1.bf16.msra.mxu0 %v12308_v61  ;;  %6379 = vmatpush1.bf16.msra.mxu1 %v12310_v62  ;;  %v13538_v62 = vld [vmem:[#allocation94_spill] sm:$0xff] }
 0x5e5   :  { %6339 = vmatprep.subr.bf16.mxu0 %v12318_v15  ;;  %6380 = vmatprep.subr.bf16.mxu1 %v12324_v56 }
 0x5e8   :  { %6340 = vmatpush1.bf16.msra.mxu0 %v12320_v34  ;;  %6381 = vmatpush1.bf16.msra.mxu1 %v12322_v63 }
 0x5e9   :  { %6341 = vmatprep.subr.bf16.mxu0 %v12330_v5  ;;  %6382 = vmatprep.subr.bf16.mxu1 %v12336_v7  ;;  %v13535_v7 = vld [vmem:[#allocation18_spill] sm:$0xff] }
 0x5ec   :  { %6342 = vmatpush1.bf16.msra.mxu0 %v12332_v20  ;;  %6383 = vmatpush1.bf16.msra.mxu1 %v12334_v43 }
 0x5ed   :  { %6343 = vmatprep.subr.bf16.mxu0 %v12342_v23  ;;  %6384 = vmatprep.subr.bf16.mxu1 %v12348_v3  ;;  %v5668_v3 = vld [vmem:[#allocation6 + $0x3a8] sm:$0xff]  ;;  %v13534_v23 = vld [vmem:[#allocation43_spill] sm:$0xff] }
 0x5f0   :  { %6344 = vmatpush1.bf16.msra.mxu0 %v12344_v31  ;;  %6385 = vmatpush1.bf16.msra.mxu1 %v12346_v32  ;;  %v5664_v31 = vld [vmem:[#allocation6 + $0x388] sm:$0xff]  ;;  %v12366_v32 = vcombine.high %v5663_v24, %v5667_v10 }
 0x5f1   :  { %6345 = vmatprep.subr.bf16.mxu0 %v12354_v4  ;;  %6386 = vmatprep.subr.bf16.mxu1 %v12360_v1  ;;  %v12370_v58 = vcombine.low %v5664_v31, %v5668_v3  ;;  %v12372_v27 = vcombine.high %v5664_v31, %v5668_v3  ;;  %v5672_v1 = vld [vmem:[#allocation6 + $0x3c8] sm:$0xff]  ;;  %v5553_v3 = vld [vmem:[#allocation6 + $0x10] sm:$0xff] }
 0x5f2   :  { %13523 = vst [vmem:[#allocation68_spill] sm:$0xff] %v12366_v32  ;;  %v5676_v4 = vld [vmem:[#allocation6 + $0x3e8] sm:$0xff] }
 0x5f3   :  { %13525 = vst [vmem:[#allocation71_spill] sm:$0xff] %v12370_v58  ;;  %13526 = vst [vmem:[#allocation69_spill] sm:$0xff] %v12372_v27  ;;  %v12382_v24 = vcombine.low %v5672_v1, %v5676_v4  ;;  %v12384_v31 = vcombine.high %v5672_v1, %v5676_v4 }
 0x5f4   :  { %6346 = vmatpush1.bf16.msra.mxu0 %v12356_v51  ;;  %6387 = vmatpush1.bf16.msra.mxu1 %v12358_v50  ;;  %v5675_v51 = vld [vmem:[#allocation6 + $0x3e0] sm:$0xff] }
 0x5f5   :  { %6347 = vmatprep.subr.bf16.mxu0 %v12366_v32  ;;  %6388 = vmatprep.subr.bf16.mxu1 %v12372_v27  ;;  %v12378_v50 = vcombine.high %v5671_v28, %v5675_v51  ;;  %v12380_v10 = vcombine.low %v5671_v28, %v5675_v51  ;;  %13529 = vst [vmem:[#allocation77_spill] sm:$0xff] %v12382_v24  ;;  %13530 = vst [vmem:[#allocation75_spill] sm:$0xff] %v12384_v31  ;;  %v5554_v27 = vld [vmem:[#allocation6 + $0x18] sm:$0xff] }
 0x5f6   :  { %v5558_v32 = vld [vmem:[#allocation6 + $0x38] sm:$0xff] }
 0x5f7   :  { %13527 = vst [vmem:[#allocation73_spill] sm:$0xff] %v12378_v50  ;;  %13528 = vst [vmem:[#allocation76_spill] sm:$0xff] %v12380_v10  ;;  %v12394_v28 = vcombine.low %v5554_v27, %v5558_v32  ;;  %v12396_v4 = vcombine.high %v5554_v27, %v5558_v32 }
 0x5f8   :  { %6348 = vmatpush1.bf16.msra.mxu0 %v12368_v39  ;;  %6389 = vmatpush1.bf16.msra.mxu1 %v12370_v58  ;;  %v5557_v39 = vld [vmem:[#allocation6 + $0x30] sm:$0xff] }
 0x5f9   :  { %6349 = vmatprep.subr.bf16.mxu0 %v12378_v50  ;;  %6390 = vmatprep.subr.bf16.mxu1 %v12384_v31  ;;  %v12390_v58 = vcombine.high %v5553_v3, %v5557_v39  ;;  %v12392_v51 = vcombine.low %v5553_v3, %v5557_v39  ;;  %13532 = vst [vmem:[#allocation80_spill] sm:$0xff] %v12396_v4  ;;  %v13533_v31 = vld [vmem:[#allocation17_spill] sm:$0xff] }
 0x5fa   :  { %v13536_v39 = vld [vmem:[#allocation45_spill] sm:$0xff] }
 0x5fb   :  { %13531 = vst [vmem:[#allocation78_spill] sm:$0xff] %v12390_v58 }
 0x5fc   :  { %6350 = vmatpush1.bf16.msra.mxu0 %v12380_v10  ;;  %6391 = vmatpush1.bf16.msra.mxu1 %v12382_v24 }
 0x5fd   :  { %6401 = vmatprep.subr.bf16.mxu0 %v12390_v58  ;;  %6442 = vmatprep.subr.bf16.mxu1 %v12396_v4 }
 0x652   :  { %v5357_v1 = vpop.f32.mrb[56].mxu0  ;;  %v5398_v10 = vpop.f32.mrb[72].mxu1 }
 0x653   :  { %v5487_v50 = vadd.f32 %v5357_v1, %v13533_v31  ;;  %v5489_v43 = vadd.f32 %v5398_v10, %v13534_v23  ;;  %v5359_v24 = vpop.f32.mrb[57].mxu0  ;;  %v5400_v20 = vpop.f32.mrb[73].mxu1  ;;  %v13537_v10 = vld [vmem:[#allocation44_spill] sm:$0xff] }
 0x654   :  { %v5488_v5 = vadd.f32 %v5359_v24, %v13535_v7  ;;  %v5490_v3 = vadd.f32 %v5400_v20, %v13536_v39  ;;  %v5361_v63 = vpop.f32.mrb[58].mxu0  ;;  %v5402_v34 = vpop.f32.mrb[74].mxu1  ;;  %v13540_v39 = vld [vmem:[#allocation95_spill] sm:$0xff] }
 0x655   :  { %v5362_v32 = vpop.f32.mrb[59].mxu0  ;;  %v5403_v27 = vpop.f32.mrb[75].mxu1  ;;  %v5503_v56 = vmul.f32 0.5, %v5489_v43  ;;  %v5495_v15 = vmul.f32 0.5, %v5487_v50  ;;  %v13539_v63 = vld [vmem:[#allocation46_spill] sm:$0xff] }
 0x656   :  { %v5504_v58 = vmul.f32 0.5, %v5490_v3  ;;  %v5496_v4 = vmul.f32 0.5, %v5488_v5 }
 0x657   :  { %10414 = vtanh.f32 %v5503_v56 }
 0x658   :  { %10416 = vtanh.f32 %v5504_v58 }
 0x659   :  { %10418 = vtanh.f32 %v5495_v15 }
 0x65a   :  { %10420 = vtanh.f32 %v5496_v4 }
 0x661   :  { %v10415_v50 = vpop.eup %10414 }
 0x662   :  { %v10417_v15 = vpop.eup %10416  ;;  %v5507_v27 = vadd.f32 1.0, %v10415_v50 }
 0x663   :  { %v10419_v58 = vpop.eup %10418 }
 0x664   :  { %v10421_v4 = vpop.eup %10420  ;;  %v5509_v38 = vmul.f32 0.5, %v5507_v27 }
 0x665   :  { %v5500_v61 = vadd.f32 1.0, %v10421_v4 }
 0x692   :  { %v5439_v31 = vpop.f32.mrb[60].mxu0  ;;  %v5480_v23 = vpop.f32.mrb[76].mxu1 }
 0x693   :  { %v5491_v1 = vadd.f32 %v5439_v31, %v13537_v10  ;;  %v5493_v7 = vadd.f32 %v5480_v23, %v13538_v62  ;;  %v5441_v24 = vpop.f32.mrb[61].mxu0  ;;  %v5482_v20 = vpop.f32.mrb[77].mxu1  ;;  %v5508_v10 = vadd.f32 1.0, %v10417_v15  ;;  %v5499_v23 = vadd.f32 1.0, %v10419_v58 }
 0x694   :  { %v5492_v34 = vadd.f32 %v5441_v24, %v13539_v63  ;;  %v5494_v32 = vadd.f32 %v5482_v20, %v13540_v39  ;;  %v5443_v43 = vpop.f32.mrb[62].mxu0  ;;  %v5484_v3 = vpop.f32.mrb[78].mxu1  ;;  %v5502_v39 = vmul.f32 0.5, %v5500_v61 }
 0x695   :  { %10422 = vtanh.f32 %v5491_v1  ;;  %v5444_v56 = vpop.f32.mrb[63].mxu0  ;;  %v5485_v5 = vpop.f32.mrb[79].mxu1  ;;  %v5513_v31 = vmul.f32 0.5, %v5493_v7  ;;  %v5510_v24 = vmul.f32 0.5, %v5508_v10  ;;  %v5501_v20 = vmul.f32 0.5, %v5499_v23  ;;  %v5565_v10 = vld [vmem:[#allocation6 + $0x70] sm:$0xff] }
 0x696   :  { %10424 = vtanh.f32 %v5492_v34  ;;  %v5514_v62 = vmul.f32 0.5, %v5494_v32  ;;  %v5521_v43 = vmul.f32 %v5509_v38, %v12118_v42  ;;  %v5566_v23 = vld [vmem:[#allocation6 + $0x78] sm:$0xff] }
 0x697   :  { %10426 = vtanh.f32 %v5513_v31  ;;  %v5522_v34 = vmul.f32 %v5510_v24, %v12120_v26  ;;  %v5561_v31 = vld [vmem:[#allocation6 + $0x50] sm:$0xff] }
 0x698   :  { %10428 = vtanh.f32 %v5514_v62  ;;  %v5562_v62 = vld [vmem:[#allocation6 + $0x58] sm:$0xff] }
 0x69f   :  { %v10423_v63 = vpop.eup %10422 }
 0x6a0   :  { %v10425_v1 = vpop.eup %10424  ;;  %v5523_v3 = vmul.f32 %v10423_v63, %v5501_v20  ;;  %v5569_v63 = vld [vmem:[#allocation6 + $0x90] sm:$0xff] }
 0x6a1   :  { %v5524_v56 = vmul.f32 %v10425_v1, %v5502_v39  ;;  %v10427_v32 = vpop.eup %10426  ;;  %v12426_v39 = vcombine.high %v5561_v31, %v5565_v10  ;;  %v12428_v1 = vcombine.high %v5562_v62, %v5566_v23 }
 0x6a2   :  { %v12410_v50 = vadd.f32 %v5523_v3, %v5521_v43  ;;  %v10429_v5 = vpop.eup %10428  ;;  %v5517_v15 = vadd.f32 1.0, %v10427_v32  ;;  %v5573_v43 = vld [vmem:[#allocation6 + $0xb0] sm:$0xff]  ;;  %v5570_v3 = vld [vmem:[#allocation6 + $0x98] sm:$0xff]  ;;  %v12436_v32 = vcombine.low %v5562_v62, %v5566_v23 }
 0x6a3   :  { %v12412_v7 = vadd.f32 %v5524_v56, %v5522_v34  ;;  %v5518_v58 = vadd.f32 1.0, %v10429_v5  ;;  %13541 = vst [vmem:[#allocation81_spill] sm:$0xff] %v12426_v39  ;;  %13542 = vst [vmem:[#allocation79_spill] sm:$0xff] %v12428_v1  ;;  %v5574_v34 = vld [vmem:[#allocation6 + $0xb8] sm:$0xff]  ;;  %v12434_v56 = vcombine.low %v5561_v31, %v5565_v10  ;;  %v12438_v5 = vcombine.high %v5569_v63, %v5573_v43  ;;  %v5585_v23 = vld [vmem:[#allocation6 + $0x110] sm:$0xff] }
 0x6a4   :  { %10430 = vtanh.f32 %v12410_v50  ;;  %v5519_v61 = vmul.f32 0.5, %v5517_v15  ;;  %13544 = vst [vmem:[#allocation88_spill] sm:$0xff] %v12436_v32  ;;  %v12440_v15 = vcombine.high %v5570_v3, %v5574_v34  ;;  %v12448_v31 = vcombine.low %v5570_v3, %v5574_v34 }
 0x6a5   :  { %10432 = vtanh.f32 %v12412_v7  ;;  %v5520_v27 = vmul.f32 0.5, %v5518_v58  ;;  %13543 = vst [vmem:[#allocation85_spill] sm:$0xff] %v12434_v56  ;;  %13545 = vst [vmem:[#allocation89_spill] sm:$0xff] %v12438_v5  ;;  %v5577_v58 = vld [vmem:[#allocation6 + $0xd0] sm:$0xff] }
 0x6a6   :  { %13546 = vst [vmem:[#allocation87_spill] sm:$0xff] %v12440_v15  ;;  %13548 = vst [vmem:[#allocation92_spill] sm:$0xff] %v12448_v31 }
 0x6ae   :  { %v10431_v4 = vpop.eup %10430 }
 0x6af   :  { %v10433_v42 = vpop.eup %10432  ;;  %v12416_v38 = vmul.f32 %v10431_v4, %v5519_v61  ;;  %v5581_v61 = vld [vmem:[#allocation6 + $0xf0] sm:$0xff]  ;;  %v5578_v4 = vld [vmem:[#allocation6 + $0xd8] sm:$0xff] }
 0x6b0   :  { %v12418_v26 = vmul.f32 %v10433_v42, %v5520_v27  ;;  %v5582_v27 = vld [vmem:[#allocation6 + $0xf8] sm:$0xff]  ;;  %v12446_v42 = vcombine.low %v5569_v63, %v5573_v43  ;;  %v12452_v10 = vcombine.high %v5577_v58, %v5581_v61  ;;  %v12458_v63 = vcombine.low %v5577_v58, %v5581_v61 }
 0x6b1   :  { %v12424_v20 = vpack.c.bf16 %v12416_v38, %v12416_v38  ;;  %v12454_v62 = vcombine.high %v5578_v4, %v5582_v27  ;;  %v12460_v43 = vcombine.low %v5578_v4, %v5582_v27 }
 0x6b2   :  { %v5550_v24 = vpack.c.bf16 %v12418_v26, %v12418_v26  ;;  %13547 = vst [vmem:[#allocation90_spill] sm:$0xff] %v12446_v42  ;;  %13549 = vst [vmem:[#allocation93_spill] sm:$0xff] %v12452_v10 }
 0x6b3   :  { %13550 = vst [vmem:[#allocation91_spill] sm:$0xff] %v12454_v62  ;;  %13551 = vst [vmem:[#allocation97_spill] sm:$0xff] %v12458_v63 }
 0x6b4   :  { %6351 = vmatprep.mubr.bf16.mxu0 %v5550_v24  ;;  %6392 = vmatprep.mubr.bf16.mxu1 %v5550_v24  ;;  %13552 = vst [vmem:[#allocation101_spill] sm:$0xff] %v12460_v43 }
 0x6b5   :  { %6352 = vmatmul.mubr.bf16.vlgmr.msra.gmra.mrb[64].mxu0 %v12424_v20  ;;  %6393 = vmatmul.mubr.bf16.vlgmr.msra.gmra.mrb[80].mxu1 %v12424_v20 }
 0x6b6   :  { %6402 = vmatpush1.bf16.msra.mxu0 %v12392_v51  ;;  %6443 = vmatpush1.bf16.msra.mxu1 %v12394_v28 }
 0x6b7   :  { %6433 = vmatprep.mubr.bf16.mxu0 %v5550_v24  ;;  %6474 = vmatprep.mubr.bf16.mxu1 %v5550_v24  ;;  %v5589_v24 = vld [vmem:[#allocation6 + $0x130] sm:$0xff] }
 0x6b8   :  { %6403 = vmatprep.subr.bf16.mxu0 %v12426_v39  ;;  %6444 = vmatprep.subr.bf16.mxu1 %v12428_v1  ;;  %v5586_v1 = vld [vmem:[#allocation6 + $0x118] sm:$0xff]  ;;  %v12464_v3 = vcombine.high %v5585_v23, %v5589_v24  ;;  %v12470_v58 = vcombine.low %v5585_v23, %v5589_v24 }
 0x6b9   :  { %v5590_v39 = vld [vmem:[#allocation6 + $0x138] sm:$0xff] }
 0x6ba   :  { %6404 = vmatpush1.bf16.msra.mxu0 %v12434_v56  ;;  %6445 = vmatpush1.bf16.msra.mxu1 %v12436_v32  ;;  %13553 = vst [vmem:[#allocation28_spill] sm:$0xff] %v12464_v3  ;;  %v12466_v34 = vcombine.high %v5586_v1, %v5590_v39  ;;  %v5594_v32 = vld [vmem:[#allocation6 + $0x158] sm:$0xff]  ;;  %13555 = vst [vmem:[#allocation30_spill] sm:$0xff] %v12470_v58  ;;  %v12472_v61 = vcombine.low %v5586_v1, %v5590_v39 }
 0x6bb   :  { %6405 = vmatprep.subr.bf16.mxu0 %v12438_v5  ;;  %6446 = vmatprep.subr.bf16.mxu1 %v12440_v15  ;;  %v5593_v15 = vld [vmem:[#allocation6 + $0x150] sm:$0xff]  ;;  %v5598_v56 = vld [vmem:[#allocation6 + $0x178] sm:$0xff] }
 0x6bc   :  { %13554 = vst [vmem:[#allocation39_spill] sm:$0xff] %v12466_v34  ;;  %v5597_v5 = vld [vmem:[#allocation6 + $0x170] sm:$0xff]  ;;  %13556 = vst [vmem:[#allocation41_spill] sm:$0xff] %v12472_v61  ;;  %v12478_v27 = vcombine.high %v5594_v32, %v5598_v56  ;;  %v12484_v39 = vcombine.low %v5594_v32, %v5598_v56 }
 0x6bd   :  { %v12476_v4 = vcombine.high %v5593_v15, %v5597_v5  ;;  %v12482_v23 = vcombine.low %v5593_v15, %v5597_v5 }
 0x6be   :  { %6406 = vmatpush1.bf16.msra.mxu0 %v12446_v42  ;;  %6447 = vmatpush1.bf16.msra.mxu1 %v12448_v31  ;;  %13558 = vst [vmem:[#allocation84_spill] sm:$0xff] %v12478_v27  ;;  %v5602_v31 = vld [vmem:[#allocation6 + $0x198] sm:$0xff]  ;;  %13560 = vst [vmem:[#allocation86_spill] sm:$0xff] %v12484_v39 }
 0x6bf   :  { %6407 = vmatprep.subr.bf16.mxu0 %v12452_v10  ;;  %6448 = vmatprep.subr.bf16.mxu1 %v12454_v62  ;;  %13557 = vst [vmem:[#allocation40_spill] sm:$0xff] %v12476_v4  ;;  %v5601_v62 = vld [vmem:[#allocation6 + $0x190] sm:$0xff]  ;;  %v5606_v42 = vld [vmem:[#allocation6 + $0x1b8] sm:$0xff]  ;;  %13559 = vst [vmem:[#allocation42_spill] sm:$0xff] %v12482_v23 }
 0x6c0   :  { %v5605_v10 = vld [vmem:[#allocation6 + $0x1b0] sm:$0xff]  ;;  %v12490_v24 = vcombine.high %v5602_v31, %v5606_v42  ;;  %v12496_v56 = vcombine.low %v5602_v31, %v5606_v42 }
 0x6c1   :  { %v12488_v1 = vcombine.high %v5601_v62, %v5605_v10  ;;  %v12494_v5 = vcombine.low %v5601_v62, %v5605_v10 }
 0x6c2   :  { %6408 = vmatpush1.bf16.msra.mxu0 %v12458_v63  ;;  %6449 = vmatpush1.bf16.msra.mxu1 %v12460_v43  ;;  %13562 = vst [vmem:[#allocation100_spill] sm:$0xff] %v12490_v24  ;;  %v5610_v43 = vld [vmem:[#allocation6 + $0x1d8] sm:$0xff]  ;;  %13564 = vst [vmem:[#allocation103_spill] sm:$0xff] %v12496_v56 }
 0x6c3   :  { %6409 = vmatprep.subr.bf16.mxu0 %v12464_v3  ;;  %6450 = vmatprep.subr.bf16.mxu1 %v12466_v34  ;;  %13561 = vst [vmem:[#allocation99_spill] sm:$0xff] %v12488_v1  ;;  %v5609_v34 = vld [vmem:[#allocation6 + $0x1d0] sm:$0xff]  ;;  %v5614_v63 = vld [vmem:[#allocation6 + $0x1f8] sm:$0xff]  ;;  %13563 = vst [vmem:[#allocation102_spill] sm:$0xff] %v12494_v5 }
 0x6c4   :  { %v5613_v3 = vld [vmem:[#allocation6 + $0x1f0] sm:$0xff]  ;;  %v12502_v15 = vcombine.high %v5610_v43, %v5614_v63  ;;  %v12508_v42 = vcombine.low %v5610_v43, %v5614_v63 }
 0x6c5   :  { %v12500_v32 = vcombine.high %v5609_v34, %v5613_v3  ;;  %v12506_v10 = vcombine.low %v5609_v34, %v5613_v3 }
 0x6c6   :  { %6410 = vmatpush1.bf16.msra.mxu0 %v12470_v58  ;;  %6451 = vmatpush1.bf16.msra.mxu1 %v12472_v61  ;;  %13566 = vst [vmem:[#allocation31_spill] sm:$0xff] %v12502_v15  ;;  %v5618_v61 = vld [vmem:[#allocation6 + $0x218] sm:$0xff]  ;;  %13568 = vst [vmem:[#allocation33_spill] sm:$0xff] %v12508_v42 }
 0x6c7   :  { %6411 = vmatprep.subr.bf16.mxu0 %v12476_v4  ;;  %6452 = vmatprep.subr.bf16.mxu1 %v12478_v27  ;;  %13565 = vst [vmem:[#allocation20_spill] sm:$0xff] %v12500_v32  ;;  %v5617_v27 = vld [vmem:[#allocation6 + $0x210] sm:$0xff]  ;;  %v5622_v58 = vld [vmem:[#allocation6 + $0x238] sm:$0xff]  ;;  %13567 = vst [vmem:[#allocation22_spill] sm:$0xff] %v12506_v10 }
 0x6c8   :  { %v5621_v4 = vld [vmem:[#allocation6 + $0x230] sm:$0xff]  ;;  %v12514_v62 = vcombine.high %v5618_v61, %v5622_v58  ;;  %v12520_v63 = vcombine.low %v5618_v61, %v5622_v58 }
 0x6c9   :  { %v12512_v31 = vcombine.high %v5617_v27, %v5621_v4  ;;  %v12518_v3 = vcombine.low %v5617_v27, %v5621_v4 }
 0x6ca   :  { %6412 = vmatpush1.bf16.msra.mxu0 %v12482_v23  ;;  %6453 = vmatpush1.bf16.msra.mxu1 %v12484_v39  ;;  %13570 = vst [vmem:[#allocation72_spill] sm:$0xff] %v12514_v62  ;;  %v5626_v39 = vld [vmem:[#allocation6 + $0x258] sm:$0xff]  ;;  %13572 = vst [vmem:[#allocation74_spill] sm:$0xff] %v12520_v63 }
 0x6cb   :  { %6413 = vmatprep.subr.bf16.mxu0 %v12488_v1  ;;  %6454 = vmatprep.subr.bf16.mxu1 %v12490_v24  ;;  %13569 = vst [vmem:[#allocation32_spill] sm:$0xff] %v12512_v31  ;;  %v5625_v24 = vld [vmem:[#allocation6 + $0x250] sm:$0xff]  ;;  %v5630_v23 = vld [vmem:[#allocation6 + $0x278] sm:$0xff]  ;;  %13571 = vst [vmem:[#allocation34_spill] sm:$0xff] %v12518_v3 }
 0x6cc   :  { %v5629_v1 = vld [vmem:[#allocation6 + $0x270] sm:$0xff]  ;;  %v12526_v34 = vcombine.high %v5626_v39, %v5630_v23  ;;  %v12532_v58 = vcombine.low %v5626_v39, %v5630_v23 }
 0x6cd   :  { %v12524_v43 = vcombine.high %v5625_v24, %v5629_v1  ;;  %v12530_v4 = vcombine.low %v5625_v24, %v5629_v1 }
 0x6ce   :  { %6414 = vmatpush1.bf16.msra.mxu0 %v12494_v5  ;;  %6455 = vmatpush1.bf16.msra.mxu1 %v12496_v56  ;;  %13574 = vst [vmem:[#allocation109_spill] sm:$0xff] %v12526_v34  ;;  %v5634_v56 = vld [vmem:[#allocation6 + $0x298] sm:$0xff]  ;;  %13576 = vst [vmem:[#allocation111_spill] sm:$0xff] %v12532_v58 }
 0x6cf   :  { %6415 = vmatprep.subr.bf16.mxu0 %v12500_v32  ;;  %6456 = vmatprep.subr.bf16.mxu1 %v12502_v15  ;;  %13573 = vst [vmem:[#allocation108_spill] sm:$0xff] %v12524_v43  ;;  %v5633_v15 = vld [vmem:[#allocation6 + $0x290] sm:$0xff]  ;;  %v5638_v5 = vld [vmem:[#allocation6 + $0x2b8] sm:$0xff]  ;;  %13575 = vst [vmem:[#allocation110_spill] sm:$0xff] %v12530_v4 }
 0x6d0   :  { %v5637_v32 = vld [vmem:[#allocation6 + $0x2b0] sm:$0xff]  ;;  %v12538_v27 = vcombine.high %v5634_v56, %v5638_v5  ;;  %v12544_v23 = vcombine.low %v5634_v56, %v5638_v5 }
 0x6d1   :  { %v12536_v61 = vcombine.high %v5633_v15, %v5637_v32  ;;  %v12542_v1 = vcombine.low %v5633_v15, %v5637_v32 }
 0x6d2   :  { %6416 = vmatpush1.bf16.msra.mxu0 %v12506_v10  ;;  %6457 = vmatpush1.bf16.msra.mxu1 %v12508_v42  ;;  %13578 = vst [vmem:[#allocation113_spill] sm:$0xff] %v12538_v27  ;;  %v5642_v42 = vld [vmem:[#allocation6 + $0x2d8] sm:$0xff]  ;;  %13580 = vst [vmem:[#allocation115_spill] sm:$0xff] %v12544_v23 }
 0x6d3   :  { %6417 = vmatprep.subr.bf16.mxu0 %v12512_v31  ;;  %6458 = vmatprep.subr.bf16.mxu1 %v12514_v62  ;;  %13577 = vst [vmem:[#allocation112_spill] sm:$0xff] %v12536_v61  ;;  %v5641_v62 = vld [vmem:[#allocation6 + $0x2d0] sm:$0xff]  ;;  %v5646_v10 = vld [vmem:[#allocation6 + $0x2f8] sm:$0xff]  ;;  %13579 = vst [vmem:[#allocation114_spill] sm:$0xff] %v12542_v1 }
 0x6d4   :  { %v5645_v31 = vld [vmem:[#allocation6 + $0x2f0] sm:$0xff]  ;;  %v12550_v24 = vcombine.high %v5642_v42, %v5646_v10  ;;  %v12556_v5 = vcombine.low %v5642_v42, %v5646_v10 }
 0x6d5   :  { %v12548_v39 = vcombine.high %v5641_v62, %v5645_v31  ;;  %v12554_v32 = vcombine.low %v5641_v62, %v5645_v31 }
 0x6d6   :  { %6418 = vmatpush1.bf16.msra.mxu0 %v12518_v3  ;;  %6459 = vmatpush1.bf16.msra.mxu1 %v12520_v63  ;;  %13582 = vst [vmem:[#allocation117_spill] sm:$0xff] %v12550_v24  ;;  %v5650_v63 = vld [vmem:[#allocation6 + $0x318] sm:$0xff]  ;;  %13584 = vst [vmem:[#allocation119_spill] sm:$0xff] %v12556_v5 }
 0x6d7   :  { %6419 = vmatprep.subr.bf16.mxu0 %v12524_v43  ;;  %6460 = vmatprep.subr.bf16.mxu1 %v12526_v34  ;;  %13581 = vst [vmem:[#allocation116_spill] sm:$0xff] %v12548_v39  ;;  %v5649_v34 = vld [vmem:[#allocation6 + $0x310] sm:$0xff]  ;;  %v5654_v3 = vld [vmem:[#allocation6 + $0x338] sm:$0xff]  ;;  %13583 = vst [vmem:[#allocation118_spill] sm:$0xff] %v12554_v32 }
 0x6d8   :  { %v5653_v43 = vld [vmem:[#allocation6 + $0x330] sm:$0xff]  ;;  %v12562_v15 = vcombine.high %v5650_v63, %v5654_v3  ;;  %v12568_v10 = vcombine.low %v5650_v63, %v5654_v3 }
 0x6d9   :  { %v12560_v56 = vcombine.high %v5649_v34, %v5653_v43  ;;  %v12566_v31 = vcombine.low %v5649_v34, %v5653_v43 }
 0x6da   :  { %6420 = vmatpush1.bf16.msra.mxu0 %v12530_v4  ;;  %6461 = vmatpush1.bf16.msra.mxu1 %v12532_v58  ;;  %13586 = vst [vmem:[#allocation121_spill] sm:$0xff] %v12562_v15  ;;  %v5658_v58 = vld [vmem:[#allocation6 + $0x358] sm:$0xff] }
 0x6db   :  { %6421 = vmatprep.subr.bf16.mxu0 %v12536_v61  ;;  %6462 = vmatprep.subr.bf16.mxu1 %v12538_v27  ;;  %13585 = vst [vmem:[#allocation120_spill] sm:$0xff] %v12560_v56  ;;  %v5657_v27 = vld [vmem:[#allocation6 + $0x350] sm:$0xff]  ;;  %v5662_v4 = vld [vmem:[#allocation6 + $0x378] sm:$0xff] }
 0x6dc   :  { %v5661_v61 = vld [vmem:[#allocation6 + $0x370] sm:$0xff]  ;;  %v12574_v62 = vcombine.high %v5658_v58, %v5662_v4  ;;  %v12580_v3 = vcombine.low %v5658_v58, %v5662_v4 }
 0x6dd   :  { %v12572_v42 = vcombine.high %v5657_v27, %v5661_v61  ;;  %v12578_v43 = vcombine.low %v5657_v27, %v5661_v61 }
 0x6de   :  { %6422 = vmatpush1.bf16.msra.mxu0 %v12542_v1  ;;  %6463 = vmatpush1.bf16.msra.mxu1 %v12544_v23  ;;  %13587 = vst [vmem:[#allocation122_spill] sm:$0xff] %v12574_v62  ;;  %v5666_v23 = vld [vmem:[#allocation6 + $0x398] sm:$0xff] }
 0x6df   :  { %6423 = vmatprep.subr.bf16.mxu0 %v12548_v39  ;;  %6464 = vmatprep.subr.bf16.mxu1 %v12550_v24  ;;  %v5665_v24 = vld [vmem:[#allocation6 + $0x390] sm:$0xff]  ;;  %v5670_v1 = vld [vmem:[#allocation6 + $0x3b8] sm:$0xff]  ;;  %13588 = vst [vmem:[#allocation123_spill] sm:$0xff] %v12578_v43 }
 0x6e0   :  { %v5669_v39 = vld [vmem:[#allocation6 + $0x3b0] sm:$0xff]  ;;  %v12586_v34 = vcombine.high %v5666_v23, %v5670_v1  ;;  %v12592_v4 = vcombine.low %v5666_v23, %v5670_v1 }
 0x6e1   :  { %v12584_v63 = vcombine.high %v5665_v24, %v5669_v39  ;;  %v12590_v61 = vcombine.low %v5665_v24, %v5669_v39  ;;  %v13621_v23 = vld [vmem:[#allocation50_spill] sm:$0xff] }
 0x6e2   :  { %6424 = vmatpush1.bf16.msra.mxu0 %v12554_v32  ;;  %6465 = vmatpush1.bf16.msra.mxu1 %v12556_v5  ;;  %v5674_v5 = vld [vmem:[#allocation6 + $0x3d8] sm:$0xff] }
 0x6e3   :  { %6425 = vmatprep.subr.bf16.mxu0 %v12560_v56  ;;  %6466 = vmatprep.subr.bf16.mxu1 %v12562_v15  ;;  %v5673_v15 = vld [vmem:[#allocation6 + $0x3d0] sm:$0xff]  ;;  %v5678_v32 = vld [vmem:[#allocation6 + $0x3f8] sm:$0xff] }
 0x6e4   :  { %v5677_v56 = vld [vmem:[#allocation6 + $0x3f0] sm:$0xff]  ;;  %v12598_v27 = vcombine.high %v5674_v5, %v5678_v32 }
 0x6e5   :  { %v12596_v58 = vcombine.high %v5673_v15, %v5677_v56 }
 0x6e6   :  { %6426 = vmatpush1.bf16.msra.mxu0 %v12566_v31  ;;  %6467 = vmatpush1.bf16.msra.mxu1 %v12568_v10 }
 0x6e7   :  { %6427 = vmatprep.subr.bf16.mxu0 %v12572_v42  ;;  %6468 = vmatprep.subr.bf16.mxu1 %v12574_v62  ;;  %v12602_v62 = vcombine.low %v5673_v15, %v5677_v56 }
 0x6ea   :  { %6428 = vmatpush1.bf16.msra.mxu0 %v12578_v43  ;;  %6469 = vmatpush1.bf16.msra.mxu1 %v12580_v3  ;;  %v12604_v43 = vcombine.low %v5674_v5, %v5678_v32 }
 0x6eb   :  { %6429 = vmatprep.subr.bf16.mxu0 %v12584_v63  ;;  %6470 = vmatprep.subr.bf16.mxu1 %v12586_v34 }
 0x6ee   :  { %6430 = vmatpush1.bf16.msra.mxu0 %v12590_v61  ;;  %6471 = vmatpush1.bf16.msra.mxu1 %v12592_v4 }
 0x6ef   :  { %6431 = vmatprep.subr.bf16.mxu0 %v12596_v58  ;;  %6472 = vmatprep.subr.bf16.mxu1 %v12598_v27 }
 0x6f2   :  { %6432 = vmatpush1.bf16.msra.mxu0 %v12602_v62  ;;  %6473 = vmatpush1.bf16.msra.mxu1 %v12604_v43 }
 0x6f3   :  { %7315 = vmatprep.subr.bf16.mxu0 %v12200_v18  ;;  %7356 = vmatprep.subr.bf16.mxu1 %v12204_v35  ;;  %v13590_v18 = vld [vmem:[#allocation146_spill] sm:$0xff]  ;;  %v13592_v35 = vld [vmem:[#allocation149_spill] sm:$0xff] }
 0x6f5   :  { %6434 = vmatmul.mubr.bf16.vlgmr.msra.gmra.mrb[68].mxu0 %v12424_v20  ;;  %6475 = vmatmul.mubr.bf16.vlgmr.msra.gmra.mrb[84].mxu1 %v12424_v20  ;;  %v13620_v20 = vld [vmem:[#allocation21_spill] sm:$0xff] }
 0x6f6   :  { %7316 = vmatpush1.bf16.msra.mxu0 %v12198_v14  ;;  %7357 = vmatpush1.bf16.msra.mxu1 %v12202_v11  ;;  %v13589_v14 = vld [vmem:[#allocation148_spill] sm:$0xff]  ;;  %v13591_v11 = vld [vmem:[#allocation147_spill] sm:$0xff] }
 0x6f7   :  { %7317 = vmatprep.subr.bf16.mxu0 %v12206_v9  ;;  %7358 = vmatprep.subr.bf16.mxu1 %v12209_v41  ;;  %v13593_v9 = vld [vmem:[#allocation26_spill] sm:$0xff]  ;;  %v13594_v41 = vld [vmem:[#allocation24_spill] sm:$0xff] }
 0x6fa   :  { %7318 = vmatpush1.bf16.msra.mxu0 %v12213_v53  ;;  %7359 = vmatpush1.bf16.msra.mxu1 %v12217_v44  ;;  %v13595_v53 = vld [vmem:[#allocation35_spill] sm:$0xff]  ;;  %v13596_v44 = vld [vmem:[#allocation37_spill] sm:$0xff] }
 0x6fb   :  { %7319 = vmatprep.subr.bf16.mxu0 %v12219_v47  ;;  %7360 = vmatprep.subr.bf16.mxu1 %v12222_v12  ;;  %v13597_v47 = vld [vmem:[#allocation38_spill] sm:$0xff]  ;;  %v13598_v12 = vld [vmem:[#allocation36_spill] sm:$0xff] }
 0x6fe   :  { %7320 = vmatpush1.bf16.msra.mxu0 %v12225_v6  ;;  %7361 = vmatpush1.bf16.msra.mxu1 %v12229_v49  ;;  %v13599_v6 = vld [vmem:[#allocation82_spill] sm:$0xff]  ;;  %v13600_v49 = vld [vmem:[#allocation83_spill] sm:$0xff] }
 0x6ff   :  { %7321 = vmatprep.subr.bf16.mxu0 %v12231_v13  ;;  %7362 = vmatprep.subr.bf16.mxu1 %v12234_v22  ;;  %v13601_v13 = vld [vmem:[#allocation54_spill] sm:$0xff]  ;;  %v13602_v22 = vld [vmem:[#allocation56_spill] sm:$0xff] }
 0x702   :  { %7322 = vmatpush1.bf16.msra.mxu0 %v12237_v55  ;;  %7363 = vmatpush1.bf16.msra.mxu1 %v12241_v0  ;;  %v13603_v55 = vld [vmem:[#allocation53_spill] sm:$0xff]  ;;  %v13604_v0 = vld [vmem:[#allocation55_spill] sm:$0xff] }
 0x703   :  { %7323 = vmatprep.subr.bf16.mxu0 %v12243_v16  ;;  %7364 = vmatprep.subr.bf16.mxu1 %v12246_v36  ;;  %v13605_v16 = vld [vmem:[#allocation62_spill] sm:$0xff]  ;;  %v13606_v36 = vld [vmem:[#allocation67_spill] sm:$0xff] }
 0x706   :  { %7324 = vmatpush1.bf16.msra.mxu0 %v12249_v25  ;;  %7365 = vmatpush1.bf16.msra.mxu1 %v12253_v29  ;;  %v13607_v25 = vld [vmem:[#allocation59_spill] sm:$0xff]  ;;  %v13608_v29 = vld [vmem:[#allocation68_spill] sm:$0xff] }
 0x707   :  { %7325 = vmatprep.subr.bf16.mxu0 %v12255_v57  ;;  %7366 = vmatprep.subr.bf16.mxu1 %v12258_v60  ;;  %v13609_v57 = vld [vmem:[#allocation69_spill] sm:$0xff]  ;;  %v13610_v60 = vld [vmem:[#allocation70_spill] sm:$0xff] }
 0x70a   :  { %7326 = vmatpush1.bf16.msra.mxu0 %v12261_v45  ;;  %7367 = vmatpush1.bf16.msra.mxu1 %v12265_v8  ;;  %v13611_v45 = vld [vmem:[#allocation71_spill] sm:$0xff]  ;;  %v13612_v8 = vld [vmem:[#allocation73_spill] sm:$0xff] }
 0x70b   :  { %7327 = vmatprep.subr.bf16.mxu0 %v12267_v17  ;;  %7368 = vmatprep.subr.bf16.mxu1 %v12270_v52  ;;  %v13613_v17 = vld [vmem:[#allocation75_spill] sm:$0xff]  ;;  %v13614_v52 = vld [vmem:[#allocation76_spill] sm:$0xff] }
 0x70e   :  { %7328 = vmatpush1.bf16.msra.mxu0 %v12273_v33  ;;  %7369 = vmatpush1.bf16.msra.mxu1 %v12277_v54  ;;  %v13615_v33 = vld [vmem:[#allocation77_spill] sm:$0xff]  ;;  %v13616_v54 = vld [vmem:[#allocation78_spill] sm:$0xff] }
 0x70f   :  { %7329 = vmatprep.subr.bf16.mxu0 %v12279_v59  ;;  %7370 = vmatprep.subr.bf16.mxu1 %v12282_v21  ;;  %v13617_v59 = vld [vmem:[#allocation80_spill] sm:$0xff] }
 0x712   :  { %7330 = vmatpush1.bf16.msra.mxu0 %v12285_v46  ;;  %7371 = vmatpush1.bf16.msra.mxu1 %v12289_v30  ;;  %v13618_v30 = vld [vmem:[#allocation19_spill] sm:$0xff] }
 0x713   :  { %7331 = vmatprep.subr.bf16.mxu0 %v12294_v48  ;;  %7372 = vmatprep.subr.bf16.mxu1 %v12300_v37 }
 0x716   :  { %7332 = vmatpush1.bf16.msra.mxu0 %v12296_v40  ;;  %7373 = vmatpush1.bf16.msra.mxu1 %v12298_v19  ;;  %v13619_v40 = vld [vmem:[#allocation47_spill] sm:$0xff] }
 0x717   :  { %7333 = vmatprep.subr.bf16.mxu0 %v12306_v2  ;;  %7374 = vmatprep.subr.bf16.mxu1 %v13589_v14 }
 0x71a   :  { %7334 = vmatpush1.bf16.msra.mxu0 %v13590_v18  ;;  %7375 = vmatpush1.bf16.msra.mxu1 %v13591_v11 }
 0x71b   :  { %7335 = vmatprep.subr.bf16.mxu0 %v13592_v35  ;;  %7376 = vmatprep.subr.bf16.mxu1 %v13593_v9 }
 0x71e   :  { %7336 = vmatpush1.bf16.msra.mxu0 %v13594_v41  ;;  %7377 = vmatpush1.bf16.msra.mxu1 %v13595_v53  ;;  %v13622_v41 = vld [vmem:[#allocation48_spill] sm:$0xff] }
 0x71f   :  { %7337 = vmatprep.subr.bf16.mxu0 %v13596_v44  ;;  %7378 = vmatprep.subr.bf16.mxu1 %v13597_v47  ;;  %v13623_v44 = vld [vmem:[#allocation96_spill] sm:$0xff] }
 0x722   :  { %7338 = vmatpush1.bf16.msra.mxu0 %v13598_v12  ;;  %7379 = vmatpush1.bf16.msra.mxu1 %v13599_v6 }
 0x723   :  { %7339 = vmatprep.subr.bf16.mxu0 %v13600_v49  ;;  %7380 = vmatprep.subr.bf16.mxu1 %v13601_v13  ;;  %v13624_v49 = vld [vmem:[#allocation51_spill] sm:$0xff] }
 0x726   :  { %7340 = vmatpush1.bf16.msra.mxu0 %v13602_v22  ;;  %7381 = vmatpush1.bf16.msra.mxu1 %v13603_v55  ;;  %v13625_v22 = vld [vmem:[#allocation98_spill] sm:$0xff] }
 0x727   :  { %7341 = vmatprep.subr.bf16.mxu0 %v13604_v0  ;;  %7382 = vmatprep.subr.bf16.mxu1 %v13605_v16 }
 0x72a   :  { %7342 = vmatpush1.bf16.msra.mxu0 %v13606_v36  ;;  %7383 = vmatpush1.bf16.msra.mxu1 %v13607_v25 }
 0x72b   :  { %7343 = vmatprep.subr.bf16.mxu0 %v13608_v29  ;;  %7384 = vmatprep.subr.bf16.mxu1 %v13609_v57 }
 0x72e   :  { %7344 = vmatpush1.bf16.msra.mxu0 %v13610_v60  ;;  %7385 = vmatpush1.bf16.msra.mxu1 %v13611_v45 }
 0x72f   :  { %7345 = vmatprep.subr.bf16.mxu0 %v13612_v8  ;;  %7386 = vmatprep.subr.bf16.mxu1 %v13613_v17 }
 0x732   :  { %7346 = vmatpush1.bf16.msra.mxu0 %v13614_v52  ;;  %7387 = vmatpush1.bf16.msra.mxu1 %v13615_v33 }
 0x733   :  { %7397 = vmatprep.subr.bf16.mxu0 %v13616_v54  ;;  %7438 = vmatprep.subr.bf16.mxu1 %v13617_v59 }
 0x788   :  { %v6353_v21 = vpop.f32.mrb[64].mxu0  ;;  %v6394_v46 = vpop.f32.mrb[80].mxu1 }
 0x789   :  { %v6483_v48 = vadd.f32 %v6353_v21, %v13618_v30  ;;  %v6485_v19 = vadd.f32 %v6394_v46, %v13619_v40  ;;  %v6355_v37 = vpop.f32.mrb[65].mxu0  ;;  %v6396_v2 = vpop.f32.mrb[81].mxu1 }
 0x78a   :  { %v6484_v1 = vadd.f32 %v6355_v37, %v13620_v20  ;;  %v6486_v39 = vadd.f32 %v6396_v2, %v13621_v23  ;;  %v6357_v24 = vpop.f32.mrb[66].mxu0  ;;  %v6398_v32 = vpop.f32.mrb[82].mxu1 }
 0x78b   :  { %v6358_v5 = vpop.f32.mrb[67].mxu0  ;;  %v6399_v56 = vpop.f32.mrb[83].mxu1  ;;  %v6499_v15 = vmul.f32 0.5, %v6485_v19  ;;  %v6491_v18 = vmul.f32 0.5, %v6483_v48 }
 0x78c   :  { %v6500_v14 = vmul.f32 0.5, %v6486_v39  ;;  %v6492_v11 = vmul.f32 0.5, %v6484_v1 }
 0x78d   :  { %10434 = vtanh.f32 %v6499_v15 }
 0x78e   :  { %10436 = vtanh.f32 %v6500_v14 }
 0x78f   :  { %10438 = vtanh.f32 %v6491_v18 }
 0x790   :  { %10440 = vtanh.f32 %v6492_v11 }
 0x797   :  { %v10435_v36 = vpop.eup %10434 }
 0x798   :  { %v10437_v57 = vpop.eup %10436  ;;  %v6503_v8 = vadd.f32 1.0, %v10435_v36  ;;  %v13636_v36 = vld [vmem:[#allocation97_spill] sm:$0xff] }
 0x799   :  { %v10439_v60 = vpop.eup %10438  ;;  %v6504_v52 = vadd.f32 1.0, %v10437_v57  ;;  %v13639_v57 = vld [vmem:[#allocation39_spill] sm:$0xff] }
 0x79a   :  { %v10441_v45 = vpop.eup %10440  ;;  %v6495_v54 = vadd.f32 1.0, %v10439_v60  ;;  %v6505_v21 = vmul.f32 0.5, %v6503_v8  ;;  %v13640_v60 = vld [vmem:[#allocation30_spill] sm:$0xff]  ;;  %v13642_v8 = vld [vmem:[#allocation40_spill] sm:$0xff] }
 0x79b   :  { %v6496_v59 = vadd.f32 1.0, %v10441_v45  ;;  %v6506_v46 = vmul.f32 0.5, %v6504_v52  ;;  %v13641_v45 = vld [vmem:[#allocation41_spill] sm:$0xff]  ;;  %v13644_v52 = vld [vmem:[#allocation42_spill] sm:$0xff] }
 0x79c   :  { %v6497_v30 = vmul.f32 0.5, %v6495_v54  ;;  %v6517_v37 = vmul.f32 %v6505_v21, %v12410_v50  ;;  %v13646_v54 = vld [vmem:[#allocation99_spill] sm:$0xff]  ;;  %v13648_v21 = vld [vmem:[#allocation102_spill] sm:$0xff] }
 0x79d   :  { %v6498_v40 = vmul.f32 0.5, %v6496_v59  ;;  %v6518_v20 = vmul.f32 %v6506_v46, %v12412_v7  ;;  %v5531_v7 = vmax.f32 %v12416_v38, 0.0  ;;  %v13626_v38 = vld [vmem:[#allocation81_spill] sm:$0xff]  ;;  %v13647_v59 = vld [vmem:[#allocation100_spill] sm:$0xff]  ;;  %v13649_v46 = vld [vmem:[#allocation103_spill] sm:$0xff] }
 0x7c8   :  { %v6435_v35 = vpop.f32.mrb[68].mxu0  ;;  %v6476_v9 = vpop.f32.mrb[84].mxu1 }
 0x7c9   :  { %v6487_v53 = vadd.f32 %v6435_v35, %v13622_v41  ;;  %v6489_v47 = vadd.f32 %v6476_v9, %v13623_v44  ;;  %v6437_v12 = vpop.f32.mrb[69].mxu0  ;;  %v6478_v6 = vpop.f32.mrb[85].mxu1 }
 0x7ca   :  { %v6488_v13 = vadd.f32 %v6437_v12, %v13624_v49  ;;  %v6490_v55 = vadd.f32 %v6478_v6, %v13625_v22  ;;  %v6439_v0 = vpop.f32.mrb[70].mxu0  ;;  %v6480_v16 = vpop.f32.mrb[86].mxu1  ;;  %v13628_v49 = vld [vmem:[#allocation85_spill] sm:$0xff] }
 0x7cb   :  { %10442 = vtanh.f32 %v6487_v53  ;;  %v6440_v25 = vpop.f32.mrb[71].mxu0  ;;  %v6481_v29 = vpop.f32.mrb[87].mxu1  ;;  %v6509_v17 = vmul.f32 0.5, %v6489_v47  ;;  %v5532_v53 = vmax.f32 %v12418_v26, 0.0  ;;  %v13627_v26 = vld [vmem:[#allocation79_spill] sm:$0xff]  ;;  %v13630_v22 = vld [vmem:[#allocation89_spill] sm:$0xff] }
 0x7cc   :  { %10444 = vtanh.f32 %v6488_v13  ;;  %v6510_v33 = vmul.f32 0.5, %v6490_v55  ;;  %v13629_v13 = vld [vmem:[#allocation88_spill] sm:$0xff]  ;;  %v13631_v55 = vld [vmem:[#allocation87_spill] sm:$0xff]  ;;  %v13632_v0 = vld [vmem:[#allocation90_spill] sm:$0xff] }
 0x7cd   :  { %10446 = vtanh.f32 %v6509_v17  ;;  %v13633_v16 = vld [vmem:[#allocation92_spill] sm:$0xff]  ;;  %v13637_v25 = vld [vmem:[#allocation101_spill] sm:$0xff] }
 0x7ce   :  { %10448 = vtanh.f32 %v6510_v33  ;;  %v13638_v29 = vld [vmem:[#allocation28_spill] sm:$0xff]  ;;  %v13645_v33 = vld [vmem:[#allocation86_spill] sm:$0xff] }
 0x7cf   :  { %v13643_v17 = vld [vmem:[#allocation84_spill] sm:$0xff] }
 0x7d5   :  { %v10443_v48 = vpop.eup %10442 }
 0x7d6   :  { %v10445_v19 = vpop.eup %10444  ;;  %v6519_v2 = vmul.f32 %v10443_v48, %v6497_v30  ;;  %v13650_v30 = vld [vmem:[#allocation20_spill] sm:$0xff]  ;;  %v13651_v48 = vld [vmem:[#allocation31_spill] sm:$0xff] }
 0x7d7   :  { %v6520_v1 = vmul.f32 %v10445_v19, %v6498_v40  ;;  %v10447_v24 = vpop.eup %10446  ;;  %v13652_v40 = vld [vmem:[#allocation22_spill] sm:$0xff]  ;;  %v13653_v19 = vld [vmem:[#allocation33_spill] sm:$0xff] }
 0x7d8   :  { %v12688_v23 = vadd.f32 %v6519_v2, %v6517_v37  ;;  %v10449_v32 = vpop.eup %10448  ;;  %v6513_v5 = vadd.f32 1.0, %v10447_v24  ;;  %v13654_v37 = vld [vmem:[#allocation32_spill] sm:$0xff] }
 0x7d9   :  { %v12690_v39 = vadd.f32 %v6520_v1, %v6518_v20  ;;  %v6514_v56 = vadd.f32 1.0, %v10449_v32  ;;  %v13655_v2 = vld [vmem:[#allocation72_spill] sm:$0xff]  ;;  %v13656_v20 = vld [vmem:[#allocation34_spill] sm:$0xff]  ;;  %v13659_v32 = vld [vmem:[#allocation109_spill] sm:$0xff] }
 0x7da   :  { %10450 = vtanh.f32 %v12688_v23  ;;  %v6515_v15 = vmul.f32 0.5, %v6513_v5  ;;  %v13657_v1 = vld [vmem:[#allocation74_spill] sm:$0xff]  ;;  %v13658_v24 = vld [vmem:[#allocation108_spill] sm:$0xff] }
 0x7db   :  { %10452 = vtanh.f32 %v12690_v39  ;;  %v6516_v18 = vmul.f32 0.5, %v6514_v56  ;;  %v13660_v5 = vld [vmem:[#allocation110_spill] sm:$0xff]  ;;  %v13661_v56 = vld [vmem:[#allocation111_spill] sm:$0xff] }
 0x7e4   :  { %v10451_v14 = vpop.eup %10450 }
 0x7e5   :  { %v10453_v50 = vpop.eup %10452  ;;  %v6525_v11 = vmul.f32 %v10451_v14, %v6515_v15  ;;  %v13662_v15 = vld [vmem:[#allocation112_spill] sm:$0xff]  ;;  %v13663_v14 = vld [vmem:[#allocation113_spill] sm:$0xff] }
 0x7e6   :  { %v6526_v35 = vmul.f32 %v10453_v50, %v6516_v18  ;;  %v13664_v18 = vld [vmem:[#allocation114_spill] sm:$0xff]  ;;  %v13665_v50 = vld [vmem:[#allocation115_spill] sm:$0xff] }
 0x7e7   :  { %v6527_v9 = vmax.f32 %v6525_v11, 0.0  ;;  %v12696_v47 = vpack.c.bf16 %v6525_v11, %v6525_v11  ;;  %v13666_v11 = vld [vmem:[#allocation116_spill] sm:$0xff] }
 0x7e8   :  { %v6546_v41 = vpack.c.bf16 %v6526_v35, %v6526_v35  ;;  %v6528_v44 = vmax.f32 %v6526_v35, 0.0  ;;  %v13667_v35 = vld [vmem:[#allocation117_spill] sm:$0xff] }
 0x7e9   :  { %v12698_v12 = vpack.c.bf16 %v6527_v9, %v5531_v7  ;;  %v13668_v7 = vld [vmem:[#allocation118_spill] sm:$0xff]  ;;  %v13669_v9 = vld [vmem:[#allocation119_spill] sm:$0xff] }
 0x7ea   :  { %7347 = vmatprep.mubr.bf16.mxu0 %v6546_v41  ;;  %7388 = vmatprep.mubr.bf16.mxu1 %v6546_v41  ;;  %v12700_v6 = vpack.c.bf16 %v6528_v44, %v5532_v53  ;;  %v13671_v53 = vld [vmem:[#allocation121_spill] sm:$0xff]  ;;  %v13672_v44 = vld [vmem:[#allocation122_spill] sm:$0xff] }
 0x7eb   :  { %7348 = vmatmul.mubr.bf16.vlgmr.msra.gmra.mrb[72].mxu0 %v12696_v47  ;;  %7389 = vmatmul.mubr.bf16.vlgmr.msra.gmra.mrb[88].mxu1 %v12696_v47 }
 0x7ec   :  { %7398 = vmatpush1.bf16.msra.mxu0 %v12392_v51  ;;  %7439 = vmatpush1.bf16.msra.mxu1 %v12394_v28  ;;  %v13634_v51 = vld [vmem:[#allocation93_spill] sm:$0xff]  ;;  %v13635_v28 = vld [vmem:[#allocation91_spill] sm:$0xff] }
 0x7ed   :  { %7429 = vmatprep.mubr.bf16.mxu0 %v6546_v41  ;;  %7470 = vmatprep.mubr.bf16.mxu1 %v6546_v41  ;;  %v13670_v41 = vld [vmem:[#allocation120_spill] sm:$0xff] }
 0x7ee   :  { %7399 = vmatprep.subr.bf16.mxu0 %v13626_v38  ;;  %7440 = vmatprep.subr.bf16.mxu1 %v13627_v26  ;;  %v13673_v38 = vld [vmem:[#allocation123_spill] sm:$0xff] }
 0x7f0   :  { %7400 = vmatpush1.bf16.msra.mxu0 %v13628_v49  ;;  %7441 = vmatpush1.bf16.msra.mxu1 %v13629_v13  ;;  %v7556_v13 = vld [vmem:[#allocation6 + $0x68] sm:$0xff] }
 0x7f1   :  { %7401 = vmatprep.subr.bf16.mxu0 %v13630_v22  ;;  %7442 = vmatprep.subr.bf16.mxu1 %v13631_v55  ;;  %v7563_v22 = vld [vmem:[#allocation6 + $0xa0] sm:$0xff]  ;;  %v7560_v55 = vld [vmem:[#allocation6 + $0x88] sm:$0xff] }
 0x7f4   :  { %7402 = vmatpush1.bf16.msra.mxu0 %v13632_v0  ;;  %7443 = vmatpush1.bf16.msra.mxu1 %v13633_v16  ;;  %v7564_v0 = vld [vmem:[#allocation6 + $0xa8] sm:$0xff] }
 0x7f5   :  { %7403 = vmatprep.subr.bf16.mxu0 %v13634_v51  ;;  %7444 = vmatprep.subr.bf16.mxu1 %v13635_v28  ;;  %v10057_v28 = vcombine.high %v7560_v55, %v7564_v0 }
 0x7f8   :  { %7404 = vmatpush1.bf16.msra.mxu0 %v13636_v36  ;;  %7445 = vmatpush1.bf16.msra.mxu1 %v13637_v25  ;;  %v7567_v36 = vld [vmem:[#allocation6 + $0xc0] sm:$0xff] }
 0x7f9   :  { %7405 = vmatprep.subr.bf16.mxu0 %v13638_v29  ;;  %7446 = vmatprep.subr.bf16.mxu1 %v13639_v57  ;;  %v7571_v25 = vld [vmem:[#allocation6 + $0xe0] sm:$0xff]  ;;  %v7568_v29 = vld [vmem:[#allocation6 + $0xc8] sm:$0xff] }
 0x7fa   :  { %v7572_v57 = vld [vmem:[#allocation6 + $0xe8] sm:$0xff] }
 0x7fc   :  { %7406 = vmatpush1.bf16.msra.mxu0 %v13640_v60  ;;  %7447 = vmatpush1.bf16.msra.mxu1 %v13641_v45  ;;  %v10056_v45 = vcombine.low %v7560_v55, %v7564_v0  ;;  %v7620_v55 = vld [vmem:[#allocation6 + $0x268] sm:$0xff] }
 0x7fd   :  { %7407 = vmatprep.subr.bf16.mxu0 %v13642_v8  ;;  %7448 = vmatprep.subr.bf16.mxu1 %v13643_v17  ;;  %v10063_v8 = vcombine.high %v7567_v36, %v7571_v25  ;;  %v10065_v17 = vcombine.high %v7568_v29, %v7572_v57 }
 0x800   :  { %7408 = vmatpush1.bf16.msra.mxu0 %v13644_v52  ;;  %7449 = vmatpush1.bf16.msra.mxu1 %v13645_v33  ;;  %v7575_v52 = vld [vmem:[#allocation6 + $0x100] sm:$0xff] }
 0x801   :  { %7409 = vmatprep.subr.bf16.mxu0 %v13646_v54  ;;  %7450 = vmatprep.subr.bf16.mxu1 %v13647_v59  ;;  %v7579_v33 = vld [vmem:[#allocation6 + $0x120] sm:$0xff]  ;;  %v7576_v54 = vld [vmem:[#allocation6 + $0x108] sm:$0xff] }
 0x802   :  { %v7580_v59 = vld [vmem:[#allocation6 + $0x128] sm:$0xff] }
 0x804   :  { %7410 = vmatpush1.bf16.msra.mxu0 %v13648_v21  ;;  %7451 = vmatpush1.bf16.msra.mxu1 %v13649_v46  ;;  %v10062_v21 = vcombine.low %v7567_v36, %v7571_v25  ;;  %v10064_v46 = vcombine.low %v7568_v29, %v7572_v57  ;;  %v7624_v36 = vld [vmem:[#allocation6 + $0x288] sm:$0xff] }
 0x805   :  { %7411 = vmatprep.subr.bf16.mxu0 %v13650_v30  ;;  %7452 = vmatprep.subr.bf16.mxu1 %v13651_v48  ;;  %v10071_v30 = vcombine.high %v7575_v52, %v7579_v33  ;;  %v10073_v48 = vcombine.high %v7576_v54, %v7580_v59  ;;  %v7628_v29 = vld [vmem:[#allocation6 + $0x2a8] sm:$0xff] }
 0x808   :  { %7412 = vmatpush1.bf16.msra.mxu0 %v13652_v40  ;;  %7453 = vmatpush1.bf16.msra.mxu1 %v13653_v19  ;;  %v7583_v40 = vld [vmem:[#allocation6 + $0x140] sm:$0xff] }
 0x809   :  { %7413 = vmatprep.subr.bf16.mxu0 %v13654_v37  ;;  %7454 = vmatprep.subr.bf16.mxu1 %v13655_v2  ;;  %v7587_v19 = vld [vmem:[#allocation6 + $0x160] sm:$0xff]  ;;  %v7584_v37 = vld [vmem:[#allocation6 + $0x148] sm:$0xff] }
 0x80a   :  { %v7588_v2 = vld [vmem:[#allocation6 + $0x168] sm:$0xff] }
 0x80c   :  { %7414 = vmatpush1.bf16.msra.mxu0 %v13656_v20  ;;  %7455 = vmatpush1.bf16.msra.mxu1 %v13657_v1  ;;  %v10070_v20 = vcombine.low %v7575_v52, %v7579_v33  ;;  %v10072_v1 = vcombine.low %v7576_v54, %v7580_v59  ;;  %v7632_v52 = vld [vmem:[#allocation6 + $0x2c8] sm:$0xff] }
 0x80d   :  { %7415 = vmatprep.subr.bf16.mxu0 %v13658_v24  ;;  %7456 = vmatprep.subr.bf16.mxu1 %v13659_v32  ;;  %v10079_v24 = vcombine.high %v7583_v40, %v7587_v19  ;;  %v10081_v32 = vcombine.high %v7584_v37, %v7588_v2  ;;  %v7636_v54 = vld [vmem:[#allocation6 + $0x2e8] sm:$0xff] }
 0x810   :  { %7416 = vmatpush1.bf16.msra.mxu0 %v13660_v5  ;;  %7457 = vmatpush1.bf16.msra.mxu1 %v13661_v56  ;;  %v7591_v5 = vld [vmem:[#allocation6 + $0x180] sm:$0xff] }
 0x811   :  { %7417 = vmatprep.subr.bf16.mxu0 %v13662_v15  ;;  %7458 = vmatprep.subr.bf16.mxu1 %v13663_v14  ;;  %v7595_v56 = vld [vmem:[#allocation6 + $0x1a0] sm:$0xff]  ;;  %v7592_v15 = vld [vmem:[#allocation6 + $0x188] sm:$0xff] }
 0x812   :  { %v7596_v14 = vld [vmem:[#allocation6 + $0x1a8] sm:$0xff] }
 0x814   :  { %7418 = vmatpush1.bf16.msra.mxu0 %v13664_v18  ;;  %7459 = vmatpush1.bf16.msra.mxu1 %v13665_v50  ;;  %v10078_v18 = vcombine.low %v7583_v40, %v7587_v19  ;;  %v10080_v50 = vcombine.low %v7584_v37, %v7588_v2  ;;  %v7640_v40 = vld [vmem:[#allocation6 + $0x308] sm:$0xff] }
 0x815   :  { %7419 = vmatprep.subr.bf16.mxu0 %v13666_v11  ;;  %7460 = vmatprep.subr.bf16.mxu1 %v13667_v35  ;;  %v10087_v11 = vcombine.high %v7591_v5, %v7595_v56  ;;  %v10089_v35 = vcombine.high %v7592_v15, %v7596_v14  ;;  %v7644_v37 = vld [vmem:[#allocation6 + $0x328] sm:$0xff] }
 0x818   :  { %7420 = vmatpush1.bf16.msra.mxu0 %v13668_v7  ;;  %7461 = vmatpush1.bf16.msra.mxu1 %v13669_v9  ;;  %v7599_v7 = vld [vmem:[#allocation6 + $0x1c0] sm:$0xff] }
 0x819   :  { %7421 = vmatprep.subr.bf16.mxu0 %v13670_v41  ;;  %7462 = vmatprep.subr.bf16.mxu1 %v13671_v53  ;;  %v7603_v9 = vld [vmem:[#allocation6 + $0x1e0] sm:$0xff]  ;;  %v7600_v41 = vld [vmem:[#allocation6 + $0x1c8] sm:$0xff] }
 0x81a   :  { %v7604_v53 = vld [vmem:[#allocation6 + $0x1e8] sm:$0xff] }
 0x81c   :  { %7422 = vmatpush1.bf16.msra.mxu0 %v12566_v31  ;;  %7463 = vmatpush1.bf16.msra.mxu1 %v12568_v10  ;;  %v7543_v31 = vld [vmem:[#allocation6] sm:$0xff] }
 0x81d   :  { %7423 = vmatprep.subr.bf16.mxu0 %v12572_v42  ;;  %7464 = vmatprep.subr.bf16.mxu1 %v13672_v44  ;;  %v7547_v10 = vld [vmem:[#allocation6 + $0x20] sm:$0xff]  ;;  %v7544_v42 = vld [vmem:[#allocation6 + $0x8] sm:$0xff]  ;;  %v10086_v44 = vcombine.low %v7591_v5, %v7595_v56 }
 0x81e   :  { %v7648_v5 = vld [vmem:[#allocation6 + $0x348] sm:$0xff] }
 0x820   :  { %7424 = vmatpush1.bf16.msra.mxu0 %v13673_v38  ;;  %7465 = vmatpush1.bf16.msra.mxu1 %v12580_v3  ;;  %v10038_v3 = vcombine.low %v7543_v31, %v7547_v10  ;;  %v10088_v38 = vcombine.low %v7592_v15, %v7596_v14  ;;  %v7652_v15 = vld [vmem:[#allocation6 + $0x368] sm:$0xff] }
 0x821   :  { %7425 = vmatprep.subr.bf16.mxu0 %v12584_v63  ;;  %7466 = vmatprep.subr.bf16.mxu1 %v12586_v34  ;;  %v10039_v63 = vcombine.high %v7543_v31, %v7547_v10  ;;  %v7548_v34 = vld [vmem:[#allocation6 + $0x28] sm:$0xff]  ;;  %v10095_v31 = vcombine.high %v7599_v7, %v7603_v9  ;;  %v10097_v10 = vcombine.high %v7600_v41, %v7604_v53 }
 0x822   :  { %v10040_v26 = vcombine.low %v7544_v42, %v7548_v34 }
 0x824   :  { %7426 = vmatpush1.bf16.msra.mxu0 %v12590_v61  ;;  %7467 = vmatpush1.bf16.msra.mxu1 %v12592_v4  ;;  %v7551_v61 = vld [vmem:[#allocation6 + $0x40] sm:$0xff] }
 0x825   :  { %7427 = vmatprep.subr.bf16.mxu0 %v12596_v58  ;;  %7468 = vmatprep.subr.bf16.mxu1 %v12598_v27  ;;  %v7555_v4 = vld [vmem:[#allocation6 + $0x60] sm:$0xff]  ;;  %v10041_v58 = vcombine.high %v7544_v42, %v7548_v34  ;;  %v7552_v27 = vld [vmem:[#allocation6 + $0x48] sm:$0xff]  ;;  %v10094_v42 = vcombine.low %v7599_v7, %v7603_v9 }
 0x826   :  { %v10047_v49 = vcombine.high %v7551_v61, %v7555_v4  ;;  %v10048_v16 = vcombine.low %v7552_v27, %v7556_v13  ;;  %v7611_v34 = vld [vmem:[#allocation6 + $0x220] sm:$0xff]  ;;  %v7656_v7 = vld [vmem:[#allocation6 + $0x388] sm:$0xff] }
 0x828   :  { %7428 = vmatpush1.bf16.msra.mxu0 %v12602_v62  ;;  %7469 = vmatpush1.bf16.msra.mxu1 %v12604_v43  ;;  %v7559_v62 = vld [vmem:[#allocation6 + $0x80] sm:$0xff]  ;;  %v10049_v43 = vcombine.high %v7552_v27, %v7556_v13 }
 0x829   :  { %8311 = vmatprep.subr.bf16.mxu0 %v10039_v63  ;;  %8352 = vmatprep.subr.bf16.mxu1 %v10041_v58  ;;  %v10055_v51 = vcombine.high %v7559_v62, %v7563_v22  ;;  %v10054_v60 = vcombine.low %v7559_v62, %v7563_v22  ;;  %v7607_v63 = vld [vmem:[#allocation6 + $0x200] sm:$0xff] }
 0x82a   :  { %v10102_v58 = vcombine.low %v7607_v63, %v7611_v34  ;;  %v7615_v13 = vld [vmem:[#allocation6 + $0x240] sm:$0xff] }
 0x82b   :  { %7430 = vmatmul.mubr.bf16.vlgmr.msra.gmra.mrb[76].mxu0 %v12696_v47  ;;  %7471 = vmatmul.mubr.bf16.vlgmr.msra.gmra.mrb[92].mxu1 %v12696_v47  ;;  %v10046_v47 = vcombine.low %v7551_v61, %v7555_v4  ;;  %v7608_v61 = vld [vmem:[#allocation6 + $0x208] sm:$0xff]  ;;  %v10103_v4 = vcombine.high %v7607_v63, %v7611_v34  ;;  %v7619_v62 = vld [vmem:[#allocation6 + $0x260] sm:$0xff] }
 0x82c   :  { %8312 = vmatpush1.bf16.msra.mxu0 %v10038_v3  ;;  %8353 = vmatpush1.bf16.msra.mxu1 %v10040_v26  ;;  %v10096_v3 = vcombine.low %v7600_v41, %v7604_v53  ;;  %v7612_v26 = vld [vmem:[#allocation6 + $0x228] sm:$0xff]  ;;  %v10111_v22 = vcombine.high %v7615_v13, %v7619_v62  ;;  %v10110_v0 = vcombine.low %v7615_v13, %v7619_v62  ;;  %v12776_v13 = vld [vmem:[#allocation6 + $0x38] sm:$0xff] }
 0x82d   :  { %8313 = vmatprep.subr.bf16.mxu0 %v10047_v49  ;;  %8354 = vmatprep.subr.bf16.mxu1 %v10049_v43  ;;  %v10104_v49 = vcombine.low %v7608_v61, %v7612_v26  ;;  %v10105_v27 = vcombine.high %v7608_v61, %v7612_v26  ;;  %v7616_v43 = vld [vmem:[#allocation6 + $0x248] sm:$0xff]  ;;  %v12768_v26 = vld [vmem:[#allocation6 + $0x10] sm:$0xff] }
 0x82e   :  { %v7660_v41 = vld [vmem:[#allocation6 + $0x3a8] sm:$0xff] }
 0x82f   :  { %v7668_v63 = vld [vmem:[#allocation6 + $0x3e8] sm:$0xff] }
 0x830   :  { %8314 = vmatpush1.bf16.msra.mxu0 %v10046_v47  ;;  %8355 = vmatpush1.bf16.msra.mxu1 %v10048_v16  ;;  %v10112_v47 = vcombine.low %v7616_v43, %v7620_v55  ;;  %v10113_v16 = vcombine.high %v7616_v43, %v7620_v55 }
 0x831   :  { %8315 = vmatprep.subr.bf16.mxu0 %v10055_v51  ;;  %8356 = vmatprep.subr.bf16.mxu1 %v10057_v28  ;;  %v7623_v51 = vld [vmem:[#allocation6 + $0x280] sm:$0xff] }
 0x832   :  { %v7627_v28 = vld [vmem:[#allocation6 + $0x2a0] sm:$0xff] }
 0x833   :  { %v10119_v25 = vcombine.high %v7623_v51, %v7627_v28  ;;  %v10118_v57 = vcombine.low %v7623_v51, %v7627_v28  ;;  %v13675_v51 = vld [vmem:[#allocation57_spill] sm:$0xff] }
 0x834   :  { %8316 = vmatpush1.bf16.msra.mxu0 %v10054_v60  ;;  %8357 = vmatpush1.bf16.msra.mxu1 %v10056_v45  ;;  %v10120_v60 = vcombine.low %v7624_v36, %v7628_v29  ;;  %v10121_v45 = vcombine.high %v7624_v36, %v7628_v29  ;;  %v13676_v29 = vld [vmem:[#allocation25_spill] sm:$0xff] }
 0x835   :  { %8317 = vmatprep.subr.bf16.mxu0 %v10063_v8  ;;  %8358 = vmatprep.subr.bf16.mxu1 %v10065_v17  ;;  %v7631_v8 = vld [vmem:[#allocation6 + $0x2c0] sm:$0xff] }
 0x836   :  { %v7635_v17 = vld [vmem:[#allocation6 + $0x2e0] sm:$0xff] }
 0x837   :  { %v10127_v33 = vcombine.high %v7631_v8, %v7635_v17  ;;  %v10126_v59 = vcombine.low %v7631_v8, %v7635_v17 }
 0x838   :  { %8318 = vmatpush1.bf16.msra.mxu0 %v10062_v21  ;;  %8359 = vmatpush1.bf16.msra.mxu1 %v10064_v46  ;;  %v10128_v21 = vcombine.low %v7632_v52, %v7636_v54  ;;  %v10129_v46 = vcombine.high %v7632_v52, %v7636_v54 }
 0x839   :  { %8319 = vmatprep.subr.bf16.mxu0 %v10071_v30  ;;  %8360 = vmatprep.subr.bf16.mxu1 %v10073_v48  ;;  %v7639_v30 = vld [vmem:[#allocation6 + $0x300] sm:$0xff] }
 0x83a   :  { %v7643_v48 = vld [vmem:[#allocation6 + $0x320] sm:$0xff] }
 0x83b   :  { %v10135_v19 = vcombine.high %v7639_v30, %v7643_v48  ;;  %v10134_v2 = vcombine.low %v7639_v30, %v7643_v48 }
 0x83c   :  { %8320 = vmatpush1.bf16.msra.mxu0 %v10070_v20  ;;  %8361 = vmatpush1.bf16.msra.mxu1 %v10072_v1  ;;  %v10136_v20 = vcombine.low %v7640_v40, %v7644_v37  ;;  %v10137_v1 = vcombine.high %v7640_v40, %v7644_v37  ;;  %v13678_v40 = vld [vmem:[#allocation58_spill] sm:$0xff]  ;;  %v13679_v37 = vld [vmem:[#allocation104_spill] sm:$0xff] }
 0x83d   :  { %8321 = vmatprep.subr.bf16.mxu0 %v10079_v24  ;;  %8362 = vmatprep.subr.bf16.mxu1 %v10081_v32  ;;  %v7647_v24 = vld [vmem:[#allocation6 + $0x340] sm:$0xff] }
 0x83e   :  { %v7651_v32 = vld [vmem:[#allocation6 + $0x360] sm:$0xff] }
 0x83f   :  { %v10143_v56 = vcombine.high %v7647_v24, %v7651_v32  ;;  %v10142_v14 = vcombine.low %v7647_v24, %v7651_v32  ;;  %v13680_v24 = vld [vmem:[#allocation61_spill] sm:$0xff] }
 0x840   :  { %8322 = vmatpush1.bf16.msra.mxu0 %v10078_v18  ;;  %8363 = vmatpush1.bf16.msra.mxu1 %v10080_v50  ;;  %v10144_v18 = vcombine.low %v7648_v5, %v7652_v15  ;;  %v10145_v50 = vcombine.high %v7648_v5, %v7652_v15  ;;  %v13681_v5 = vld [vmem:[#allocation105_spill] sm:$0xff] }
 0x841   :  { %8323 = vmatprep.subr.bf16.mxu0 %v10087_v11  ;;  %8364 = vmatprep.subr.bf16.mxu1 %v10089_v35  ;;  %v7655_v11 = vld [vmem:[#allocation6 + $0x380] sm:$0xff] }
 0x842   :  { %v7659_v35 = vld [vmem:[#allocation6 + $0x3a0] sm:$0xff] }
 0x843   :  { %v10151_v9 = vcombine.high %v7655_v11, %v7659_v35  ;;  %v10150_v53 = vcombine.low %v7655_v11, %v7659_v35 }
 0x844   :  { %8324 = vmatpush1.bf16.msra.mxu0 %v10086_v44  ;;  %8365 = vmatpush1.bf16.msra.mxu1 %v10088_v38  ;;  %v10152_v44 = vcombine.low %v7656_v7, %v7660_v41  ;;  %v10153_v38 = vcombine.high %v7656_v7, %v7660_v41 }
 0x845   :  { %8325 = vmatprep.subr.bf16.mxu0 %v10095_v31  ;;  %8366 = vmatprep.subr.bf16.mxu1 %v10097_v10  ;;  %v7663_v31 = vld [vmem:[#allocation6 + $0x3c0] sm:$0xff] }
 0x846   :  { %v7667_v10 = vld [vmem:[#allocation6 + $0x3e0] sm:$0xff] }
 0x847   :  { %v10158_v34 = vcombine.low %v7663_v31, %v7667_v10 }
 0x848   :  { %8326 = vmatpush1.bf16.msra.mxu0 %v10094_v42  ;;  %8367 = vmatpush1.bf16.msra.mxu1 %v10096_v3  ;;  %v7664_v42 = vld [vmem:[#allocation6 + $0x3c8] sm:$0xff]  ;;  %v10159_v3 = vcombine.high %v7663_v31, %v7667_v10 }
 0x849   :  { %8327 = vmatprep.subr.bf16.mxu0 %v10103_v4  ;;  %8368 = vmatprep.subr.bf16.mxu1 %v10105_v27  ;;  %v10160_v61 = vcombine.low %v7664_v42, %v7668_v63  ;;  %v10161_v4 = vcombine.high %v7664_v42, %v7668_v63 }
 0x84c   :  { %8328 = vmatpush1.bf16.msra.mxu0 %v10102_v58  ;;  %8369 = vmatpush1.bf16.msra.mxu1 %v10104_v49  ;;  %v12770_v58 = vld [vmem:[#allocation6 + $0x30] sm:$0xff]  ;;  %v12772_v49 = vld [vmem:[#allocation6 + $0x18] sm:$0xff] }
 0x84d   :  { %8329 = vmatprep.subr.bf16.mxu0 %v10111_v22  ;;  %8370 = vmatprep.subr.bf16.mxu1 %v10113_v16  ;;  %v10043_v27 = vcombine.high %v12768_v26, %v12770_v58  ;;  %v10042_v62 = vcombine.low %v12768_v26, %v12770_v58  ;;  %v10044_v43 = vcombine.low %v12772_v49, %v12776_v13 }
 0x84e   :  { %v10045_v22 = vcombine.high %v12772_v49, %v12776_v13 }
 0x850   :  { %8330 = vmatpush1.bf16.msra.mxu0 %v10110_v0  ;;  %8371 = vmatpush1.bf16.msra.mxu1 %v10112_v47  ;;  %v13674_v47 = vld [vmem:[#allocation23_spill] sm:$0xff] }
 0x851   :  { %8331 = vmatprep.subr.bf16.mxu0 %v10119_v25  ;;  %8372 = vmatprep.subr.bf16.mxu1 %v10121_v45 }
 0x854   :  { %8332 = vmatpush1.bf16.msra.mxu0 %v10118_v57  ;;  %8373 = vmatpush1.bf16.msra.mxu1 %v10120_v60  ;;  %v13677_v60 = vld [vmem:[#allocation60_spill] sm:$0xff] }
 0x855   :  { %8333 = vmatprep.subr.bf16.mxu0 %v10127_v33  ;;  %8374 = vmatprep.subr.bf16.mxu1 %v10129_v46 }
 0x858   :  { %8334 = vmatpush1.bf16.msra.mxu0 %v10126_v59  ;;  %8375 = vmatpush1.bf16.msra.mxu1 %v10128_v21 }
 0x859   :  { %8335 = vmatprep.subr.bf16.mxu0 %v10135_v19  ;;  %8376 = vmatprep.subr.bf16.mxu1 %v10137_v1 }
 0x85c   :  { %8336 = vmatpush1.bf16.msra.mxu0 %v10134_v2  ;;  %8377 = vmatpush1.bf16.msra.mxu1 %v10136_v20 }
 0x85d   :  { %8337 = vmatprep.subr.bf16.mxu0 %v10143_v56  ;;  %8378 = vmatprep.subr.bf16.mxu1 %v10145_v50 }
 0x860   :  { %8338 = vmatpush1.bf16.msra.mxu0 %v10142_v14  ;;  %8379 = vmatpush1.bf16.msra.mxu1 %v10144_v18 }
 0x861   :  { %8339 = vmatprep.subr.bf16.mxu0 %v10151_v9  ;;  %8380 = vmatprep.subr.bf16.mxu1 %v10153_v38 }
 0x864   :  { %8340 = vmatpush1.bf16.msra.mxu0 %v10150_v53  ;;  %8381 = vmatpush1.bf16.msra.mxu1 %v10152_v44 }
 0x865   :  { %8341 = vmatprep.subr.bf16.mxu0 %v10159_v3  ;;  %8382 = vmatprep.subr.bf16.mxu1 %v10161_v4 }
 0x868   :  { %8342 = vmatpush1.bf16.msra.mxu0 %v10158_v34  ;;  %8383 = vmatpush1.bf16.msra.mxu1 %v10160_v61 }
 0x869   :  { %8393 = vmatprep.subr.bf16.mxu0 %v10043_v27  ;;  %8434 = vmatprep.subr.bf16.mxu1 %v10045_v22 }
 0x8be   :  { %v7349_v55 = vpop.f32.mrb[72].mxu0  ;;  %v7390_v0 = vpop.f32.mrb[88].mxu1 }
 0x8bf   :  { %v7479_v16 = vadd.f32 %v7349_v55, %v13674_v47  ;;  %v7481_v28 = vadd.f32 %v7390_v0, %v13675_v51  ;;  %v7351_v36 = vpop.f32.mrb[73].mxu0  ;;  %v7392_v25 = vpop.f32.mrb[89].mxu1 }
 0x8c0   :  { %v7480_v57 = vadd.f32 %v7351_v36, %v13676_v29  ;;  %v7482_v45 = vadd.f32 %v7392_v25, %v13677_v60  ;;  %v7353_v8 = vpop.f32.mrb[74].mxu0  ;;  %v7394_v17 = vpop.f32.mrb[90].mxu1 }
 0x8c1   :  { %v7354_v52 = vpop.f32.mrb[75].mxu0  ;;  %v7395_v33 = vpop.f32.mrb[91].mxu1  ;;  %v7495_v54 = vmul.f32 0.5, %v7481_v28  ;;  %v7487_v21 = vmul.f32 0.5, %v7479_v16  ;;  %v7553_v8 = vld [vmem:[#allocation6 + $0x50] sm:$0xff] }
 0x8c2   :  { %v7496_v59 = vmul.f32 0.5, %v7482_v45  ;;  %v7488_v46 = vmul.f32 0.5, %v7480_v57  ;;  %v7557_v17 = vld [vmem:[#allocation6 + $0x70] sm:$0xff]  ;;  %v7554_v52 = vld [vmem:[#allocation6 + $0x58] sm:$0xff] }
 0x8c3   :  { %10454 = vtanh.f32 %v7495_v54  ;;  %v7558_v33 = vld [vmem:[#allocation6 + $0x78] sm:$0xff] }
 0x8c4   :  { %10456 = vtanh.f32 %v7496_v59 }
 0x8c5   :  { %10458 = vtanh.f32 %v7487_v21  ;;  %v7561_v21 = vld [vmem:[#allocation6 + $0x90] sm:$0xff] }
 0x8c6   :  { %10460 = vtanh.f32 %v7488_v46  ;;  %v10051_v46 = vcombine.high %v7553_v8, %v7557_v17 }
 0x8cd   :  { %v10455_v18 = vpop.eup %10454 }
 0x8ce   :  { %v10457_v35 = vpop.eup %10456  ;;  %v7499_v41 = vadd.f32 1.0, %v10455_v18 }
 0x8cf   :  { %v10459_v7 = vpop.eup %10458  ;;  %v7500_v44 = vadd.f32 1.0, %v10457_v35 }
 0x8d0   :  { %v10461_v9 = vpop.eup %10460  ;;  %v7491_v31 = vadd.f32 1.0, %v10459_v7  ;;  %v7501_v42 = vmul.f32 0.5, %v7499_v41  ;;  %v7585_v7 = vld [vmem:[#allocation6 + $0x150] sm:$0xff]  ;;  %v7586_v41 = vld [vmem:[#allocation6 + $0x158] sm:$0xff] }
 0x8d1   :  { %v7492_v10 = vadd.f32 1.0, %v10461_v9  ;;  %v7502_v3 = vmul.f32 0.5, %v7500_v44  ;;  %v7589_v9 = vld [vmem:[#allocation6 + $0x170] sm:$0xff] }
 0x8d2   :  { %v7493_v63 = vmul.f32 0.5, %v7491_v31  ;;  %v7513_v27 = vmul.f32 %v7501_v42, %v12688_v23  ;;  %v10083_v31 = vcombine.high %v7585_v7, %v7589_v9  ;;  %v7593_v42 = vld [vmem:[#allocation6 + $0x190] sm:$0xff] }
 0x8d3   :  { %v7494_v61 = vmul.f32 0.5, %v7492_v10  ;;  %v7514_v55 = vmul.f32 %v7502_v3, %v12690_v39  ;;  %v7597_v3 = vld [vmem:[#allocation6 + $0x1b0] sm:$0xff] }
 0x8fe   :  { %v7431_v30 = vpop.f32.mrb[76].mxu0  ;;  %v7472_v48 = vpop.f32.mrb[92].mxu1 }
 0x8ff   :  { %v7483_v19 = vadd.f32 %v7431_v30, %v13678_v40  ;;  %v7485_v2 = vadd.f32 %v7472_v48, %v13679_v37  ;;  %v7433_v20 = vpop.f32.mrb[77].mxu0  ;;  %v7474_v1 = vpop.f32.mrb[93].mxu1  ;;  %v10053_v30 = vcombine.high %v7554_v52, %v7558_v33  ;;  %v7565_v48 = vld [vmem:[#allocation6 + $0xb0] sm:$0xff]  ;;  %v7562_v40 = vld [vmem:[#allocation6 + $0x98] sm:$0xff]  ;;  %v10050_v37 = vcombine.low %v7553_v8, %v7557_v17 }
 0x900   :  { %v7484_v32 = vadd.f32 %v7433_v20, %v13680_v24  ;;  %v7486_v56 = vadd.f32 %v7474_v1, %v13681_v5  ;;  %v7435_v15 = vpop.f32.mrb[78].mxu0  ;;  %v7476_v14 = vpop.f32.mrb[94].mxu1  ;;  %v10059_v20 = vcombine.high %v7561_v21, %v7565_v48  ;;  %v7569_v24 = vld [vmem:[#allocation6 + $0xd0] sm:$0xff]  ;;  %v7570_v5 = vld [vmem:[#allocation6 + $0xd8] sm:$0xff]  ;;  %v10058_v26 = vcombine.low %v7561_v21, %v7565_v48 }
 0x901   :  { %10462 = vtanh.f32 %v7483_v19  ;;  %v7436_v50 = vpop.f32.mrb[79].mxu0  ;;  %v7477_v11 = vpop.f32.mrb[95].mxu1  ;;  %v7505_v53 = vmul.f32 0.5, %v7485_v2  ;;  %v7566_v19 = vld [vmem:[#allocation6 + $0xb8] sm:$0xff]  ;;  %v10052_v2 = vcombine.low %v7554_v52, %v7558_v33 }
 0x902   :  { %10464 = vtanh.f32 %v7484_v32  ;;  %v7506_v38 = vmul.f32 0.5, %v7486_v56  ;;  %v10061_v1 = vcombine.high %v7562_v40, %v7566_v19  ;;  %v7573_v32 = vld [vmem:[#allocation6 + $0xf0] sm:$0xff]  ;;  %v7574_v56 = vld [vmem:[#allocation6 + $0xf8] sm:$0xff]  ;;  %v10060_v58 = vcombine.low %v7562_v40, %v7566_v19 }
 0x903   :  { %10466 = vtanh.f32 %v7505_v53  ;;  %v10067_v49 = vcombine.high %v7569_v24, %v7573_v32  ;;  %v10069_v13 = vcombine.high %v7570_v5, %v7574_v56  ;;  %v7578_v15 = vld [vmem:[#allocation6 + $0x118] sm:$0xff]  ;;  %v10066_v18 = vcombine.low %v7569_v24, %v7573_v32  ;;  %v7629_v24 = vld [vmem:[#allocation6 + $0x2b0] sm:$0xff] }
 0x904   :  { %10468 = vtanh.f32 %v7506_v38  ;;  %v7582_v14 = vld [vmem:[#allocation6 + $0x138] sm:$0xff]  ;;  %v10068_v50 = vcombine.low %v7570_v5, %v7574_v56 }
 0x905   :  { %v10077_v35 = vcombine.high %v7578_v15, %v7582_v14  ;;  %v7590_v53 = vld [vmem:[#allocation6 + $0x178] sm:$0xff]  ;;  %v10076_v38 = vcombine.low %v7578_v15, %v7582_v14 }
 0x906   :  { %v10085_v10 = vcombine.high %v7586_v41, %v7590_v53  ;;  %v7610_v8 = vld [vmem:[#allocation6 + $0x218] sm:$0xff] }
 0x907   :  { %v7614_v17 = vld [vmem:[#allocation6 + $0x238] sm:$0xff] }
 0x908   :  { %v10109_v21 = vcombine.high %v7610_v8, %v7614_v17  ;;  %v7618_v48 = vld [vmem:[#allocation6 + $0x258] sm:$0xff] }
 0x909   :  { %v7622_v40 = vld [vmem:[#allocation6 + $0x278] sm:$0xff] }
 0x90a   :  { %v7626_v32 = vld [vmem:[#allocation6 + $0x298] sm:$0xff] }
 0x90b   :  { %v10463_v34 = vpop.eup %10462  ;;  %v7630_v5 = vld [vmem:[#allocation6 + $0x2b8] sm:$0xff] }
 0x90c   :  { %v10465_v4 = vpop.eup %10464  ;;  %v7515_v22 = vmul.f32 %v10463_v34, %v7493_v63  ;;  %v7594_v63 = vld [vmem:[#allocation6 + $0x198] sm:$0xff] }
 0x90d   :  { %v7516_v0 = vmul.f32 %v10465_v4, %v7494_v61  ;;  %v10467_v51 = vpop.eup %10466  ;;  %v7598_v34 = vld [vmem:[#allocation6 + $0x1b8] sm:$0xff]  ;;  %v10082_v61 = vcombine.low %v7585_v7, %v7589_v9  ;;  %v10084_v4 = vcombine.low %v7586_v41, %v7590_v53  ;;  %v7645_v7 = vld [vmem:[#allocation6 + $0x330] sm:$0xff] }
 0x90e   :  { %v12794_v47 = vadd.f32 %v7515_v22, %v7513_v27  ;;  %v10469_v28 = vpop.eup %10468  ;;  %v7509_v36 = vadd.f32 1.0, %v10467_v51  ;;  %v10091_v27 = vcombine.high %v7593_v42, %v7597_v3  ;;  %v10093_v22 = vcombine.high %v7594_v63, %v7598_v34  ;;  %v7602_v51 = vld [vmem:[#allocation6 + $0x1d8] sm:$0xff] }
 0x90f   :  { %v12796_v16 = vadd.f32 %v7516_v0, %v7514_v55  ;;  %v7510_v25 = vadd.f32 1.0, %v10469_v28  ;;  %v7601_v55 = vld [vmem:[#allocation6 + $0x1d0] sm:$0xff]  ;;  %v7606_v28 = vld [vmem:[#allocation6 + $0x1f8] sm:$0xff] }
 0x910   :  { %10470 = vtanh.f32 %v12794_v47  ;;  %v7511_v29 = vmul.f32 0.5, %v7509_v36  ;;  %v7605_v0 = vld [vmem:[#allocation6 + $0x1f0] sm:$0xff]  ;;  %v10090_v36 = vcombine.low %v7593_v42, %v7597_v3  ;;  %v10100_v33 = vcombine.low %v7602_v51, %v7606_v28  ;;  %v7638_v15 = vld [vmem:[#allocation6 + $0x2f8] sm:$0xff] }
 0x911   :  { %10472 = vtanh.f32 %v12796_v16  ;;  %v7512_v60 = vmul.f32 0.5, %v7510_v25  ;;  %v10092_v25 = vcombine.low %v7594_v63, %v7598_v34  ;;  %v10098_v52 = vcombine.low %v7601_v55, %v7605_v0  ;;  %v7642_v9 = vld [vmem:[#allocation6 + $0x318] sm:$0xff]  ;;  %v7653_v42 = vld [vmem:[#allocation6 + $0x370] sm:$0xff] }
 0x912   :  { %v7646_v41 = vld [vmem:[#allocation6 + $0x338] sm:$0xff] }
 0x913   :  { %v7650_v3 = vld [vmem:[#allocation6 + $0x358] sm:$0xff] }
 0x914   :  { %v7654_v63 = vld [vmem:[#allocation6 + $0x378] sm:$0xff] }
 0x91a   :  { %v10471_v57 = vpop.eup %10470 }
 0x91b   :  { %v10473_v23 = vpop.eup %10472  ;;  %v12800_v45 = vmul.f32 %v10471_v57, %v7511_v29  ;;  %v10099_v29 = vcombine.high %v7601_v55, %v7605_v0  ;;  %v10101_v57 = vcombine.high %v7602_v51, %v7606_v28  ;;  %v7661_v55 = vld [vmem:[#allocation6 + $0x3b0] sm:$0xff]  ;;  %v7658_v0 = vld [vmem:[#allocation6 + $0x398] sm:$0xff] }
 0x91c   :  { %v12802_v39 = vmul.f32 %v10473_v23, %v7512_v60  ;;  %v7609_v60 = vld [vmem:[#allocation6 + $0x210] sm:$0xff]  ;;  %v7662_v51 = vld [vmem:[#allocation6 + $0x3b8] sm:$0xff] }
 0x91d   :  { %v12808_v59 = vpack.c.bf16 %v12800_v45, %v12800_v45  ;;  %v7613_v23 = vld [vmem:[#allocation6 + $0x230] sm:$0xff] }
 0x91e   :  { %v7542_v54 = vpack.c.bf16 %v12802_v39, %v12802_v39  ;;  %v10106_v19 = vcombine.low %v7609_v60, %v7613_v23 }
 0x920   :  { %8343 = vmatprep.mubr.bf16.mxu0 %v7542_v54  ;;  %8384 = vmatprep.mubr.bf16.mxu1 %v7542_v54 }
 0x921   :  { %8344 = vmatmul.mubr.bf16.vlgmr.msra.gmra.mrb[80].mxu0 %v12808_v59  ;;  %8385 = vmatmul.mubr.bf16.vlgmr.msra.gmra.mrb[96].mxu1 %v12808_v59 }
 0x922   :  { %8394 = vmatpush1.bf16.msra.mxu0 %v10042_v62  ;;  %8435 = vmatpush1.bf16.msra.mxu1 %v10044_v43  ;;  %v7577_v62 = vld [vmem:[#allocation6 + $0x110] sm:$0xff] }
 0x923   :  { %8425 = vmatprep.mubr.bf16.mxu0 %v7542_v54  ;;  %8466 = vmatprep.mubr.bf16.mxu1 %v7542_v54  ;;  %v7581_v43 = vld [vmem:[#allocation6 + $0x130] sm:$0xff]  ;;  %v10107_v54 = vcombine.high %v7609_v60, %v7613_v23  ;;  %v7666_v23 = vld [vmem:[#allocation6 + $0x3d8] sm:$0xff] }
 0x924   :  { %8395 = vmatprep.subr.bf16.mxu0 %v10051_v46  ;;  %8436 = vmatprep.subr.bf16.mxu1 %v10053_v30  ;;  %v10075_v11 = vcombine.high %v7577_v62, %v7581_v43  ;;  %v10074_v44 = vcombine.low %v7577_v62, %v7581_v43  ;;  %v7617_v46 = vld [vmem:[#allocation6 + $0x250] sm:$0xff]  ;;  %v7634_v43 = vld [vmem:[#allocation6 + $0x2d8] sm:$0xff] }
 0x925   :  { %v7621_v30 = vld [vmem:[#allocation6 + $0x270] sm:$0xff] }
 0x926   :  { %8396 = vmatpush1.bf16.msra.mxu0 %v10050_v37  ;;  %8437 = vmatpush1.bf16.msra.mxu1 %v10052_v2  ;;  %v10108_v37 = vcombine.low %v7610_v8, %v7614_v17  ;;  %v10115_v2 = vcombine.high %v7617_v46, %v7621_v30  ;;  %v10114_v56 = vcombine.low %v7617_v46, %v7621_v30  ;;  %v7637_v62 = vld [vmem:[#allocation6 + $0x2f0] sm:$0xff]  ;;  %v7670_v8 = vld [vmem:[#allocation6 + $0x3f8] sm:$0xff]  ;;  %v10272_v30 = vld [vmem:[#allocation9 + $0x4] ss:$8 sps:$4 sm:$0xff]  }
 0x927   :  { %8397 = vmatprep.subr.bf16.mxu0 %v10059_v20  ;;  %8438 = vmatprep.subr.bf16.mxu1 %v10061_v1  ;;  %v10117_v20 = vcombine.high %v7618_v48, %v7622_v40  ;;  %v7625_v1 = vld [vmem:[#allocation6 + $0x290] sm:$0xff]  ;;  %v10164_v46 = vcombine.low %v7666_v23, %v7670_v8 }
 0x928   :  { %v10122_v14 = vcombine.low %v7625_v1, %v7629_v24  ;;  %v7669_v60 = vld [vmem:[#allocation6 + $0x3f0] sm:$0xff] }
 0x92a   :  { %8398 = vmatpush1.bf16.msra.mxu0 %v10058_v26  ;;  %8439 = vmatpush1.bf16.msra.mxu1 %v10060_v58  ;;  %v10116_v26 = vcombine.low %v7618_v48, %v7622_v40  ;;  %v10123_v58 = vcombine.high %v7625_v1, %v7629_v24  ;;  %v10270_v48 = vld [vmem:[#allocation9] ss:$8 sps:$4 sm:$0xff]   ;;  %v10275_v40 = vld [vmem:[#allocation9 + $0x14] ss:$8 sps:$4 sm:$0xff]   ;;  %v10279_v24 = vld [vmem:[#allocation9 + $0x30] ss:$8 sps:$4 sm:$0xff]  }
 0x92b   :  { %8399 = vmatprep.subr.bf16.mxu0 %v10067_v49  ;;  %8440 = vmatprep.subr.bf16.mxu1 %v10069_v13  ;;  %v10125_v49 = vcombine.high %v7626_v32, %v7630_v5  ;;  %v7633_v13 = vld [vmem:[#allocation6 + $0x2d0] sm:$0xff] }
 0x92c   :  { %v10130_v53 = vcombine.low %v7633_v13, %v7637_v62  ;;  %v10281_v1 = vld [vmem:[#allocation9 + $0x34] ss:$8 sps:$4 sm:$0xff]  }
 0x92e   :  { %8400 = vmatpush1.bf16.msra.mxu0 %v10066_v18  ;;  %8441 = vmatpush1.bf16.msra.mxu1 %v10068_v50  ;;  %v10124_v18 = vcombine.low %v7626_v32, %v7630_v5  ;;  %v10131_v50 = vcombine.high %v7633_v13, %v7637_v62  ;;  %v10284_v32 = vld [vmem:[#allocation9 + $0x44] ss:$8 sps:$4 sm:$0xff]   ;;  %v10282_v5 = vld [vmem:[#allocation9 + $0x40] ss:$8 sps:$4 sm:$0xff]   ;;  %v10291_v13 = vld [vmem:[#allocation9 + $0x70] ss:$8 sps:$4 sm:$0xff]  }
 0x92f   :  { %8401 = vmatprep.subr.bf16.mxu0 %v10075_v11  ;;  %8442 = vmatprep.subr.bf16.mxu1 %v10077_v35  ;;  %v10133_v11 = vcombine.high %v7634_v43, %v7638_v15  ;;  %v7641_v35 = vld [vmem:[#allocation6 + $0x310] sm:$0xff]  ;;  %v10296_v62 = vld [vmem:[#allocation9 + $0x84] ss:$8 sps:$4 sm:$0xff]  }
 0x930   :  { %v10138_v34 = vcombine.low %v7641_v35, %v7645_v7 }
 0x932   :  { %8402 = vmatpush1.bf16.msra.mxu0 %v10074_v44  ;;  %8443 = vmatpush1.bf16.msra.mxu1 %v10076_v38  ;;  %v10132_v44 = vcombine.low %v7634_v43, %v7638_v15  ;;  %v10139_v38 = vcombine.high %v7641_v35, %v7645_v7  ;;  %v10294_v43 = vld [vmem:[#allocation9 + $0x80] ss:$8 sps:$4 sm:$0xff]   ;;  %v10299_v15 = vld [vmem:[#allocation9 + $0x94] ss:$8 sps:$4 sm:$0xff]   ;;  %v10303_v35 = vld [vmem:[#allocation9 + $0xb0] ss:$8 sps:$4 sm:$0xff]  }
 0x933   :  { %8403 = vmatprep.subr.bf16.mxu0 %v10083_v31  ;;  %8444 = vmatprep.subr.bf16.mxu1 %v10085_v10  ;;  %v10141_v31 = vcombine.high %v7642_v9, %v7646_v41  ;;  %v7649_v10 = vld [vmem:[#allocation6 + $0x350] sm:$0xff]  ;;  %v10308_v7 = vld [vmem:[#allocation9 + $0xc4] ss:$8 sps:$4 sm:$0xff]  }
 0x934   :  { %v10146_v28 = vcombine.low %v7649_v10, %v7653_v42 }
 0x936   :  { %8404 = vmatpush1.bf16.msra.mxu0 %v10082_v61  ;;  %8445 = vmatpush1.bf16.msra.mxu1 %v10084_v4  ;;  %v10140_v61 = vcombine.low %v7642_v9, %v7646_v41  ;;  %v10147_v4 = vcombine.high %v7649_v10, %v7653_v42  ;;  %v10306_v9 = vld [vmem:[#allocation9 + $0xc0] ss:$8 sps:$4 sm:$0xff]   ;;  %v10311_v41 = vld [vmem:[#allocation9 + $0xd4] ss:$8 sps:$4 sm:$0xff]   ;;  %v10315_v10 = vld [vmem:[#allocation9 + $0xf0] ss:$8 sps:$4 sm:$0xff]  }
 0x937   :  { %8405 = vmatprep.subr.bf16.mxu0 %v10091_v27  ;;  %8446 = vmatprep.subr.bf16.mxu1 %v10093_v22  ;;  %v10149_v27 = vcombine.high %v7650_v3, %v7654_v63  ;;  %v7657_v22 = vld [vmem:[#allocation6 + $0x390] sm:$0xff]  ;;  %v13683_v42 = vld [vmem:[#allocation49_spill] sm:$0xff] }
 0x938   :  { %v10154_v17 = vcombine.low %v7657_v22, %v7661_v55 }
 0x93a   :  { %8406 = vmatpush1.bf16.msra.mxu0 %v10090_v36  ;;  %8447 = vmatpush1.bf16.msra.mxu1 %v10092_v25  ;;  %v10148_v36 = vcombine.low %v7650_v3, %v7654_v63  ;;  %v10155_v25 = vcombine.high %v7657_v22, %v7661_v55  ;;  %v13684_v3 = vld [vmem:[#allocation145_spill] sm:$0xff]  ;;  %v13685_v63 = vld [vmem:[#allocation144_spill] sm:$0xff]  ;;  %v10322_v22 = vld [vmem:[#allocation11 + $0x50] sm:$0xff]  }
 0x93b   :  { %8407 = vmatprep.subr.bf16.mxu0 %v10099_v29  ;;  %8448 = vmatprep.subr.bf16.mxu1 %v10101_v57  ;;  %v10157_v29 = vcombine.high %v7658_v0, %v7662_v51  ;;  %v7665_v57 = vld [vmem:[#allocation6 + $0x3d0] sm:$0xff] }
 0x93c   :  { %v10323_v55 = vld [vmem:[#allocation11 + $0x10] sm:$0xff]  }
 0x93e   :  { %8408 = vmatpush1.bf16.msra.mxu0 %v10098_v52  ;;  %8449 = vmatpush1.bf16.msra.mxu1 %v10100_v33  ;;  %v10156_v52 = vcombine.low %v7658_v0, %v7662_v51  ;;  %v10163_v33 = vcombine.high %v7665_v57, %v7669_v60  ;;  %v10324_v0 = vld [vmem:[#allocation11 + $0x58] sm:$0xff]  }
 0x93f   :  { %8409 = vmatprep.subr.bf16.mxu0 %v10107_v54  ;;  %8450 = vmatprep.subr.bf16.mxu1 %v10109_v21  ;;  %v10165_v54 = vcombine.high %v7666_v23, %v7670_v8  ;;  %v10162_v21 = vcombine.low %v7665_v57, %v7669_v60  ;;  %v10325_v51 = vld [vmem:[#allocation11 + $0x18] sm:$0xff]  }
 0x940   :  { %v13686_v57 = vld [vmem:[#allocation27_spill] sm:$0xff] }
 0x941   :  { %v13687_v23 = vld [vmem:[#allocation63_spill] sm:$0xff] }
 0x942   :  { %8410 = vmatpush1.bf16.msra.mxu0 %v10106_v19  ;;  %8451 = vmatpush1.bf16.msra.mxu1 %v10108_v37  ;;  %v13682_v19 = vld [vmem:[#allocation52_spill] sm:$0xff]  ;;  %v10273_v37 = vld [vmem:[#allocation9 + $0x10] ss:$8 sps:$4 sm:$0xff]  }
 0x943   :  { %8411 = vmatprep.subr.bf16.mxu0 %v10115_v2  ;;  %8452 = vmatprep.subr.bf16.mxu1 %v10117_v20  ;;  %v10278_v2 = vld [vmem:[#allocation9 + $0x24] ss:$8 sps:$4 sm:$0xff]   ;;  %v10276_v20 = vld [vmem:[#allocation9 + $0x20] ss:$8 sps:$4 sm:$0xff]  }
 0x946   :  { %8412 = vmatpush1.bf16.msra.mxu0 %v10114_v56  ;;  %8453 = vmatpush1.bf16.msra.mxu1 %v10116_v26  ;;  %v10287_v56 = vld [vmem:[#allocation9 + $0x54] ss:$8 sps:$4 sm:$0xff]   ;;  %v10290_v26 = vld [vmem:[#allocation9 + $0x64] ss:$8 sps:$4 sm:$0xff]  }
 0x947   :  { %8413 = vmatprep.subr.bf16.mxu0 %v10123_v58  ;;  %8454 = vmatprep.subr.bf16.mxu1 %v10125_v49  ;;  %v10288_v58 = vld [vmem:[#allocation9 + $0x60] ss:$8 sps:$4 sm:$0xff]   ;;  %v10293_v49 = vld [vmem:[#allocation9 + $0x74] ss:$8 sps:$4 sm:$0xff]  }
 0x94a   :  { %8414 = vmatpush1.bf16.msra.mxu0 %v10122_v14  ;;  %8455 = vmatpush1.bf16.msra.mxu1 %v10124_v18  ;;  %v10297_v14 = vld [vmem:[#allocation9 + $0x90] ss:$8 sps:$4 sm:$0xff]   ;;  %v10302_v18 = vld [vmem:[#allocation9 + $0xa4] ss:$8 sps:$4 sm:$0xff]  }
 0x94b   :  { %8415 = vmatprep.subr.bf16.mxu0 %v10131_v50  ;;  %8456 = vmatprep.subr.bf16.mxu1 %v10133_v11  ;;  %v10300_v50 = vld [vmem:[#allocation9 + $0xa0] ss:$8 sps:$4 sm:$0xff]   ;;  %v10305_v11 = vld [vmem:[#allocation9 + $0xb4] ss:$8 sps:$4 sm:$0xff]  }
 0x94e   :  { %8416 = vmatpush1.bf16.msra.mxu0 %v10130_v53  ;;  %8457 = vmatpush1.bf16.msra.mxu1 %v10132_v44  ;;  %v10309_v53 = vld [vmem:[#allocation9 + $0xd0] ss:$8 sps:$4 sm:$0xff]   ;;  %v10314_v44 = vld [vmem:[#allocation9 + $0xe4] ss:$8 sps:$4 sm:$0xff]  }
 0x94f   :  { %8417 = vmatprep.subr.bf16.mxu0 %v10139_v38  ;;  %8458 = vmatprep.subr.bf16.mxu1 %v10141_v31  ;;  %v10312_v38 = vld [vmem:[#allocation9 + $0xe0] ss:$8 sps:$4 sm:$0xff]   ;;  %v10317_v31 = vld [vmem:[#allocation9 + $0xf4] ss:$8 sps:$4 sm:$0xff]  }
 0x952   :  { %8418 = vmatpush1.bf16.msra.mxu0 %v10138_v34  ;;  %8459 = vmatpush1.bf16.msra.mxu1 %v10140_v61  ;;  %v10318_v34 = vld [vmem:[#allocation11 + $0x40] sm:$0xff]  }
 0x953   :  { %8419 = vmatprep.subr.bf16.mxu0 %v10147_v4  ;;  %8460 = vmatprep.subr.bf16.mxu1 %v10149_v27  ;;  %v10319_v61 = vld [vmem:[#allocation11] sm:$0xff]   ;;  %v10320_v4 = vld [vmem:[#allocation11 + $0x48] sm:$0xff]  }
 0x954   :  { %v10321_v27 = vld [vmem:[#allocation11 + $0x8] sm:$0xff]  }
 0x956   :  { %8420 = vmatpush1.bf16.msra.mxu0 %v10146_v28  ;;  %8461 = vmatpush1.bf16.msra.mxu1 %v10148_v36  ;;  %v10326_v28 = vld [vmem:[#allocation11 + $0x60] sm:$0xff]   ;;  %v10329_v36 = vld [vmem:[#allocation11 + $0x28] sm:$0xff]  }
 0x957   :  { %8421 = vmatprep.subr.bf16.mxu0 %v10155_v25  ;;  %8462 = vmatprep.subr.bf16.mxu1 %v10157_v29 }
 0x95a   :  { %8422 = vmatpush1.bf16.msra.mxu0 %v10154_v17  ;;  %8463 = vmatpush1.bf16.msra.mxu1 %v10156_v52 }
 0x95b   :  { %8423 = vmatprep.subr.bf16.mxu0 %v10163_v33  ;;  %8464 = vmatprep.subr.bf16.mxu1 %v10165_v54  ;;  %v13688_v33 = vld [vmem:[#allocation29_spill] sm:$0xff] }
 0x95e   :  { %8424 = vmatpush1.bf16.msra.mxu0 %v10162_v21  ;;  %8465 = vmatpush1.bf16.msra.mxu1 %v10164_v46  ;;  %v13689_v21 = vld [vmem:[#allocation65_spill] sm:$0xff] }
 0x95f   :  { %8758 = vmatprep.subr.bf16.mxu0 %v10272_v30  ;;  %10216 = vmatprep.subr.bf16.mxu1 %v10318_v34 }
 0x961   :  { %8426 = vmatmul.mubr.bf16.vlgmr.msra.gmra.mrb[84].mxu0 %v12808_v59  ;;  %8467 = vmatmul.mubr.bf16.vlgmr.msra.gmra.mrb[100].mxu1 %v12808_v59  ;;  %v10285_v59 = vld [vmem:[#allocation9 + $0x50] ss:$8 sps:$4 sm:$0xff]  }
 0x962   :  { %8759 = vmatpush1.bf16.msra.mxu0 %v10270_v48  ;;  %8790 = vmatprep.mubr.bf16.mxu0 %v13682_v19 }
 0x963   :  { %8760 = vmatprep.subr.bf16.mxu0 %v10275_v40  ;;  %10217 = vmatpush3.bf16.msra.mxu1 %v10319_v61  ;;  %v10330_v40 = vld [vmem:[#allocation11 + $0x70] sm:$0xff]  }
 0x964   :  { %10218 = vmatprep.subr.bf16.mxu1 %v10320_v4 }
 0x966   :  { %8761 = vmatpush1.bf16.msra.mxu0 %v10273_v37 }
 0x967   :  { %8762 = vmatprep.subr.bf16.mxu0 %v10278_v2  ;;  %10219 = vmatpush3.bf16.msra.mxu1 %v10321_v27  ;;  %v10331_v2 = vld [vmem:[#allocation11 + $0x30] sm:$0xff]  }
 0x968   :  { %10220 = vmatprep.subr.bf16.mxu1 %v10322_v22 }
 0x96a   :  { %8763 = vmatpush1.bf16.msra.mxu0 %v10276_v20  ;;  %v10332_v20 = vld [vmem:[#allocation11 + $0x78] sm:$0xff]  }
 0x96b   :  { %8764 = vmatprep.subr.bf16.mxu0 %v10281_v1  ;;  %10221 = vmatpush3.bf16.msra.mxu1 %v10323_v55  ;;  %v10333_v1 = vld [vmem:[#allocation11 + $0x38] sm:$0xff]  }
 0x96c   :  { %10222 = vmatprep.subr.bf16.mxu1 %v10324_v0 }
 0x96e   :  { %8765 = vmatpush1.bf16.msra.mxu0 %v10279_v24 }
 0x96f   :  { %8766 = vmatprep.subr.bf16.mxu0 %v10284_v32  ;;  %10223 = vmatpush3.bf16.msra.mxu1 %v10325_v51 }
 0x970   :  { %10224 = vmatprep.subr.bf16.mxu1 %v10326_v28 }
 0x972   :  { %8767 = vmatpush1.bf16.msra.mxu0 %v10282_v5 }
 0x973   :  { %8768 = vmatprep.subr.bf16.mxu0 %v10287_v56 }
 0x976   :  { %8769 = vmatpush1.bf16.msra.mxu0 %v10285_v59 }
 0x977   :  { %8770 = vmatprep.subr.bf16.mxu0 %v10290_v26 }
 0x97a   :  { %8771 = vmatpush1.bf16.msra.mxu0 %v10288_v58  ;;  %v13690_v58 = vld [vmem:[#allocation64_spill] sm:$0xff] }
 0x97b   :  { %8772 = vmatprep.subr.bf16.mxu0 %v10293_v49 }
 0x97e   :  { %8773 = vmatpush1.bf16.msra.mxu0 %v10291_v13  ;;  %v13691_v13 = vld [vmem:[#allocation106_spill] sm:$0xff] }
 0x97f   :  { %8774 = vmatprep.subr.bf16.mxu0 %v10296_v62 }
 0x982   :  { %8775 = vmatpush1.bf16.msra.mxu0 %v10294_v43 }
 0x983   :  { %8776 = vmatprep.subr.bf16.mxu0 %v10299_v15 }
 0x986   :  { %8777 = vmatpush1.bf16.msra.mxu0 %v10297_v14  ;;  %v13692_v14 = vld [vmem:[#allocation66_spill] sm:$0xff] }
 0x987   :  { %8778 = vmatprep.subr.bf16.mxu0 %v10302_v18 }
 0x98a   :  { %8779 = vmatpush1.bf16.msra.mxu0 %v10300_v50  ;;  %v13693_v50 = vld [vmem:[#allocation107_spill] sm:$0xff] }
 0x98b   :  { %8780 = vmatprep.subr.bf16.mxu0 %v10305_v11 }
 0x98e   :  { %8781 = vmatpush1.bf16.msra.mxu0 %v10303_v35 }
 0x98f   :  { %8782 = vmatprep.subr.bf16.mxu0 %v10308_v7 }
 0x992   :  { %8783 = vmatpush1.bf16.msra.mxu0 %v10306_v9 }
 0x993   :  { %8784 = vmatprep.subr.bf16.mxu0 %v10311_v41 }
 0x996   :  { %8785 = vmatpush1.bf16.msra.mxu0 %v10309_v53 }
 0x997   :  { %8786 = vmatprep.subr.bf16.mxu0 %v10314_v44 }
 0x99a   :  { %8787 = vmatpush1.bf16.msra.mxu0 %v10312_v38 }
 0x99b   :  { %8788 = vmatprep.subr.bf16.mxu0 %v10317_v31 }
 0x99e   :  { %8789 = vmatpush1.bf16.msra.mxu0 %v10315_v10 }
 0x9a1   :  { %8791 = vmatmul.mubr.bf16.vlgmr.msra.gmra.mrb[88].mxu0 %v13683_v42 }
 0x9a2   :  { %8800 = vmatprep.mubr.bf16.mxu0 %v13684_v3 }
 0x9a9   :  { %8801 = vmatmul.mubr.bf16.gmra.mrb[92].mxu0 %v13685_v63 }
 0x9aa   :  { %8810 = vmatprep.mubr.bf16.mxu0 %v12700_v6  ;;  %v10327_v6 = vld [vmem:[#allocation11 + $0x20] sm:$0xff]  }
 0x9ab   :  { %10225 = vmatpush3.bf16.msra.mxu1 %v10327_v6 }
 0x9b1   :  { %8811 = vmatmul.mubr.bf16.gmra.mrb[96].mxu0 %v12698_v12  ;;  %v10328_v12 = vld [vmem:[#allocation11 + $0x68] sm:$0xff]  }
 0x9b2   :  { %10226 = vmatprep.subr.bf16.mxu1 %v10328_v12 }
 0x9b3   :  { %10227 = vmatpush3.bf16.msra.mxu1 %v10329_v36 }
 0x9b4   :  { %10228 = vmatprep.subr.bf16.mxu1 %v10330_v40 }
 0x9b7   :  { %10229 = vmatpush3.bf16.msra.mxu1 %v10331_v2  ;;  %v13694_v2 = vld [vmem:[#allocation16_spill] sm:$0xff] }
 0x9b8   :  { %10230 = vmatprep.subr.bf16.mxu1 %v10332_v20  ;;  %v13695_v20 = vsub.s32 0, %v13694_v2 }
 0x9bb   :  { %10231 = vmatpush3.bf16.msra.mxu1 %v10333_v1 }
 0x9f4   :  { %v8345_v25 = vpop.f32.mrb[80].mxu0  ;;  %v8386_v29 = vpop.f32.mrb[96].mxu1 }
 0x9f5   :  { %v8475_v60 = vadd.f32 %v8345_v25, %v13686_v57  ;;  %v8477_v8 = vadd.f32 %v8386_v29, %v13687_v23  ;;  %v8347_v17 = vpop.f32.mrb[81].mxu0  ;;  %v8388_v52 = vpop.f32.mrb[97].mxu1 }
 0x9f6   :  { %v8476_v54 = vadd.f32 %v8347_v17, %v13688_v33  ;;  %v8478_v46 = vadd.f32 %v8388_v52, %v13689_v21  ;;  %v8349_v30 = vpop.f32.mrb[82].mxu0  ;;  %v8390_v48 = vpop.f32.mrb[98].mxu1 }
 0x9f7   :  { %v8350_v19 = vpop.f32.mrb[83].mxu0  ;;  %v8391_v37 = vpop.f32.mrb[99].mxu1  ;;  %v8491_v24 = vmul.f32 0.5, %v8477_v8  ;;  %v8483_v5 = vmul.f32 0.5, %v8475_v60 }
 0x9f8   :  { %v8492_v32 = vmul.f32 0.5, %v8478_v46  ;;  %v8484_v56 = vmul.f32 0.5, %v8476_v54  ;;  %v8586_v37 = vld [vmem:[%s12871_s5] sm:$0x3] }
 0x9f9   :  { %10474 = vtanh.f32 %v8491_v24  ;;  %v8591_v1 = vrot.slane %v8586_v37, %v13695_v20  ;;  %v13696_v24 = vsub.s32 1, %v13694_v2 }
 0x9fa   :  { %10476 = vtanh.f32 %v8492_v32 }
 0x9fb   :  { %10478 = vtanh.f32 %v8483_v5  ;;  %v8595_v32 = vrot.slane %v8586_v37, %v13696_v24 }
 0x9fc   :  { %10480 = vtanh.f32 %v8484_v56 }
 0xa03   :  { %v10475_v9 = vpop.eup %10474 }
 0xa04   :  { %v10477_v44 = vpop.eup %10476  ;;  %v8495_v10 = vadd.f32 1.0, %v10475_v9 }
 0xa05   :  { %v10479_v38 = vpop.eup %10478  ;;  %v8496_v3 = vadd.f32 1.0, %v10477_v44 }
 0xa06   :  { %v10481_v31 = vpop.eup %10480  ;;  %v8487_v34 = vadd.f32 1.0, %v10479_v38  ;;  %v8497_v4 = vmul.f32 0.5, %v8495_v10 }
 0xa07   :  { %v8488_v61 = vadd.f32 1.0, %v10481_v31  ;;  %v8498_v27 = vmul.f32 0.5, %v8496_v3 }
 0xa08   :  { %v8489_v22 = vmul.f32 0.5, %v8487_v34  ;;  %v8509_v28 = vmul.f32 %v8497_v4, %v12794_v47  ;;  %v7523_v47 = vmax.f32 %v12800_v45, 0.0 }
 0xa09   :  { %v8490_v0 = vmul.f32 0.5, %v8488_v61  ;;  %v8510_v12 = vmul.f32 %v8498_v27, %v12796_v16  ;;  %v7524_v16 = vmax.f32 %v12802_v39, 0.0 }
 0xa34   :  { %v8427_v59 = vpop.f32.mrb[84].mxu0  ;;  %v8468_v26 = vpop.f32.mrb[100].mxu1 }
 0xa35   :  { %v8479_v49 = vadd.f32 %v8427_v59, %v13690_v58  ;;  %v8481_v62 = vadd.f32 %v8468_v26, %v13691_v13  ;;  %v8429_v43 = vpop.f32.mrb[85].mxu0  ;;  %v8470_v15 = vpop.f32.mrb[101].mxu1 }
 0xa36   :  { %v8480_v18 = vadd.f32 %v8429_v43, %v13692_v14  ;;  %v8482_v11 = vadd.f32 %v8470_v15, %v13693_v50  ;;  %v8431_v35 = vpop.f32.mrb[86].mxu0  ;;  %v8472_v7 = vpop.f32.mrb[102].mxu1 }
 0xa37   :  { %10482 = vtanh.f32 %v8479_v49  ;;  %v8432_v41 = vpop.f32.mrb[87].mxu0  ;;  %v8473_v53 = vpop.f32.mrb[103].mxu1  ;;  %v8501_v42 = vmul.f32 0.5, %v8481_v62 }
 0xa38   :  { %10484 = vtanh.f32 %v8480_v18  ;;  %v8502_v63 = vmul.f32 0.5, %v8482_v11 }
 0xa39   :  { %10486 = vtanh.f32 %v8501_v42 }
 0xa3a   :  { %10488 = vtanh.f32 %v8502_v63 }
 0xa41   :  { %v10483_v55 = vpop.eup %10482 }
 0xa42   :  { %v10485_v51 = vpop.eup %10484  ;;  %v8511_v6 = vmul.f32 %v10483_v55, %v8489_v22 }
 0xa43   :  { %v8512_v36 = vmul.f32 %v10485_v51, %v8490_v0  ;;  %v10487_v57 = vpop.eup %10486 }
 0xa44   :  { %v8513_v25 = vadd.f32 %v8511_v6, %v8509_v28  ;;  %v10489_v60 = vpop.eup %10488  ;;  %v8505_v23 = vadd.f32 1.0, %v10487_v57 }
 0xa45   :  { %v8514_v29 = vadd.f32 %v8512_v36, %v8510_v12  ;;  %v8506_v8 = vadd.f32 1.0, %v10489_v60 }
 0xa46   :  { %10490 = vtanh.f32 %v8513_v25  ;;  %v8507_v17 = vmul.f32 0.5, %v8505_v23 }
 0xa47   :  { %10492 = vtanh.f32 %v8514_v29  ;;  %v8508_v33 = vmul.f32 0.5, %v8506_v8 }
 0xa50   :  { %v10491_v52 = vpop.eup %10490 }
 0xa51   :  { %v10493_v54 = vpop.eup %10492  ;;  %v8517_v21 = vmul.f32 %v10491_v52, %v8507_v17 }
 0xa52   :  { %v8518_v46 = vmul.f32 %v10493_v54, %v8508_v33 }
 0xa53   :  { %v8519_v30 = vmax.f32 %v8517_v21, 0.0 }
 0xa54   :  { %v8520_v48 = vmax.f32 %v8518_v46, 0.0 }
 0xa55   :  { %v8552_v40 = vpack.c.bf16 %v8519_v30, %v7523_v47 }
 0xa56   :  { %v8553_v19 = vpack.c.bf16 %v8520_v48, %v7524_v16 }
 0xa58   :  { %8820 = vmatprep.mubr.bf16.mxu0 %v8553_v19  ;;  %v10198_v19 = vld [vmem:[%s12873_s7] ss:$0 sm:$0xff]  ;;  %s10615_s7 = smov [#allocation12]  }
 0xa59   :  { %8821 = vmatmul.mubr.bf16.gmra.mrb[100].mxu0 %v8552_v40 }
 0xa74   :  { %v8792_v5 = vpop.f32.mrb[88].mxu0 }
 0xa75   :  { %v8793_v45 = vadd.f32 %v8792_v5, %v8591_v1  ;;  %v8794_v56 = vpop.f32.mrb[89].mxu0 }
 0xa76   :  { %v8795_v59 = vadd.f32 %v8794_v56, %v8595_v32  ;;  %v8796_v39 = vpop.f32.mrb[90].mxu0 }
 0xa77   :  { %v8797_v26 = vadd.f32 %v8796_v39, %v8591_v1  ;;  %v8798_v58 = vpop.f32.mrb[91].mxu0  ;;  %v8831_v13 = vmax.f32 %v8793_v45, 0.0 }
 0xa78   :  { %v8799_v49 = vadd.f32 %v8798_v58, %v8595_v32  ;;  %v8832_v43 = vmax.f32 %v8795_v59, 0.0 }
 0xa79   :  { %v8833_v62 = vmax.f32 %v8797_v26, 0.0 }
 0xa7a   :  { %v8834_v15 = vmax.f32 %v8799_v49, 0.0 }
 0xa7b   :  { %v8847_v14 = vpack.c.bf16 %v8833_v62, %v8831_v13  ;;  %v10215_v13 = vld [vmem:[%s12874_s8] ss:$0 sm:$0xff]  ;;  %s9091_s8 = sshll.u32 %s10615_s7, 4  ;;  %s9092_s8 = int_to_ptr.vmem [resolvable:$true] %s9091_s8 }
 0xa7c   :  { %v8848_v18 = vpack.c.bf16 %v8834_v15, %v8832_v43  ;;  %v8802_v50 = vpop.f32.mrb[92].mxu0  ;;  %s10576_s23 = scalar_lea.vmem %s9092_s8, 1024  ;;  %p10581_p11 = scmp.lt.s32.totalorder %s9092_s8, %s9092_s8 }
 0xa7d   :  { %v8803_v11 = vadd.f32 %v8802_v50, %v8591_v1  ;;  %v8804_v35 = vpop.f32.mrb[93].mxu0  ;;  %p10577_p10 = scmp.ne.s32.totalorder %s9092_s8, %s10576_s23  ;;  %p10582_p12 = scmp.lt.s32.totalorder %s10576_s23, %s10576_s23 }
 0xa7e   :  { %v8805_v7 = vadd.f32 %v8804_v35, %v8595_v32  ;;  %v8806_v9 = vpop.f32.mrb[94].mxu0  ;;  %9022 = vmatprep.mubr.bf16.mxu1 %v8848_v18 }
 0xa7f   :  { %v8807_v41 = vadd.f32 %v8806_v9, %v8591_v1  ;;  %v8808_v53 = vpop.f32.mrb[95].mxu0  ;;  %9023 = vmatmul.mubr.bf16.vlgmr.msra.gmra.mrb[104].mxu1 %v8847_v14  ;;  %v8835_v38 = vmax.f32 %v8803_v11, 0.0  ;;  %p10583_p13 = por %p10582_p12, %p10581_p11 }
 0xa80   :  { %v8809_v44 = vadd.f32 %v8808_v53, %v8595_v32  ;;  %v8836_v10 = vmax.f32 %v8805_v7, 0.0 }
 0xa81   :  { %v8837_v31 = vmax.f32 %v8807_v41, 0.0  ;;  %p10584_p0 = pnand %p10583_p13, %p10577_p10 }
 0xa82   :  { %v8838_v42 = vmax.f32 %v8809_v44, 0.0 }
 0xa83   :  { %v8849_v3 = vpack.c.bf16 %v8837_v31, %v8835_v38 }
 0xa84   :  { %v8850_v63 = vpack.c.bf16 %v8838_v42, %v8836_v10  ;;  %v8812_v34 = vpop.f32.mrb[96].mxu0 }
 0xa85   :  { %v8813_v61 = vadd.f32 %v8812_v34, %v8591_v1  ;;  %v8814_v4 = vpop.f32.mrb[97].mxu0 }
 0xa86   :  { %v8815_v27 = vadd.f32 %v8814_v4, %v8595_v32  ;;  %v8816_v22 = vpop.f32.mrb[98].mxu0  ;;  %9030 = vmatprep.mubr.bf16.mxu1 %v8850_v63 }
 0xa87   :  { %v8817_v55 = vadd.f32 %v8816_v22, %v8591_v1  ;;  %v8818_v0 = vpop.f32.mrb[99].mxu0  ;;  %9031 = vmatmul.mubr.bf16.gmra.mrb[108].mxu1 %v8849_v3  ;;  %v8839_v28 = vmax.f32 %v8813_v61, 0.0 }
 0xa88   :  { %v8819_v51 = vadd.f32 %v8818_v0, %v8595_v32  ;;  %v8840_v12 = vmax.f32 %v8815_v27, 0.0 }
 0xa89   :  { %v8841_v6 = vmax.f32 %v8817_v55, 0.0 }
 0xa8a   :  { %v8842_v36 = vmax.f32 %v8819_v51, 0.0 }
 0xa8b   :  { %v8851_v25 = vpack.c.bf16 %v8841_v6, %v8839_v28 }
 0xa8c   :  { %v8852_v29 = vpack.c.bf16 %v8842_v36, %v8840_v12 }
 0xa8e   :  { %9038 = vmatprep.mubr.bf16.mxu1 %v8852_v29 }
 0xa8f   :  { %9039 = vmatmul.mubr.bf16.gmra.mrb[112].mxu1 %v8851_v25 }
 0xb2c   :  { %v8822_v57 = vpop.f32.mrb[100].mxu0 }
 0xb2d   :  { %v8823_v60 = vadd.f32 %v8822_v57, %v8591_v1  ;;  %v8824_v23 = vpop.f32.mrb[101].mxu0 }
 0xb2e   :  { %v8825_v8 = vadd.f32 %v8824_v23, %v8595_v32  ;;  %v8826_v17 = vpop.f32.mrb[102].mxu0 }
 0xb2f   :  { %v8827_v52 = vadd.f32 %v8826_v17, %v8591_v1  ;;  %v8828_v33 = vpop.f32.mrb[103].mxu0  ;;  %v8843_v21 = vmax.f32 %v8823_v60, 0.0 }
 0xb30   :  { %v8829_v54 = vadd.f32 %v8828_v33, %v8595_v32  ;;  %v8844_v47 = vmax.f32 %v8825_v8, 0.0 }
 0xb31   :  { %v8845_v46 = vmax.f32 %v8827_v52, 0.0 }
 0xb32   :  { %v8846_v30 = vmax.f32 %v8829_v54, 0.0 }
 0xb33   :  { %v8853_v16 = vpack.c.bf16 %v8845_v46, %v8843_v21 }
 0xb34   :  { %v8854_v48 = vpack.c.bf16 %v8846_v30, %v8844_v47 }
 0xb36   :  { %9046 = vmatprep.mubr.bf16.mxu1 %v8854_v48 }
 0xb37   :  { %9047 = vmatmul.mubr.bf16.gmra.mrb[116].mxu1 %v8853_v16 }
 0xb52   :  { %v10232_v40 = vpop.f32.mrb[104].mxu1 }
 0xb53   :  { %v10233_v37 = vpop.f32.mrb[105].mxu1 }
 0xb54   :  { %v10234_v2 = vadd.f32 %v10233_v37, %v10232_v40  ;;  %v10235_v20 = vpop.f32.mrb[106].mxu1 }
 0xb55   :  { %v10236_v24 = vpop.f32.mrb[107].mxu1 }
 0xb56   :  { %v9025_v1 = vadd.f32 %v10234_v2, %v10198_v19  ;;  %v10237_v5 = vadd.f32 %v10236_v24, %v10235_v20 }
 0xb58   :  { %10494 = vtanh.f32 %v9025_v1  ;;  %v9028_v32 = vadd.f32 %v10237_v5, %v10198_v19 }
 0xb5a   :  { %10496 = vtanh.f32 %v9028_v32  ;;  %v10238_v45 = vpop.f32.mrb[108].mxu1 }
 0xb5b   :  { %v10239_v56 = vpop.f32.mrb[109].mxu1 }
 0xb5c   :  { %v10240_v59 = vadd.f32 %v10239_v56, %v10238_v45  ;;  %v10241_v39 = vpop.f32.mrb[110].mxu1 }
 0xb5d   :  { %v10242_v26 = vpop.f32.mrb[111].mxu1 }
 0xb5e   :  { %v9033_v58 = vadd.f32 %v10240_v59, %v10198_v19  ;;  %v10243_v49 = vadd.f32 %v10242_v26, %v10241_v39 }
 0xb60   :  { %10498 = vtanh.f32 %v9033_v58  ;;  %v9036_v62 = vadd.f32 %v10243_v49, %v10198_v19 }
 0xb62   :  { %v10495_v43 = vpop.eup %10494  ;;  %10500 = vtanh.f32 %v9036_v62  ;;  %v10244_v15 = vpop.f32.mrb[112].mxu1 }
 0xb63   :  { %v9070_v14 = vmul.f32 %v10495_v43, %v10215_v13  ;;  %v10245_v18 = vpop.f32.mrb[113].mxu1 }
 0xb64   :  { %v10497_v50 = vpop.eup %10496  ;;  %v10246_v11 = vadd.f32 %v10245_v18, %v10244_v15  ;;  %v10247_v35 = vpop.f32.mrb[114].mxu1 }
 0xb65   :  { %9078 = vst [vmem:[#allocation12] sm:$0xff] %v9070_v14  ;;  %v9071_v7 = vmul.f32 %v10497_v50, %v10215_v13  ;;  %v10248_v9 = vpop.f32.mrb[115].mxu1 }
 0xb66   :  { %v9041_v41 = vadd.f32 %v10246_v11, %v10198_v19  ;;  %v10249_v53 = vadd.f32 %v10248_v9, %v10247_v35 }
 0xb67   :  { %9079 = vst [vmem:[#allocation12 + $0x8] sm:$0xff] %v9071_v7 }
 0xb68   :  { %10502 = vtanh.f32 %v9041_v41  ;;  %v9044_v44 = vadd.f32 %v10249_v53, %v10198_v19 }
 0xb6a   :  { %v10499_v38 = vpop.eup %10498  ;;  %10504 = vtanh.f32 %v9044_v44 }
 0xb6b   :  { %v9072_v31 = vmul.f32 %v10499_v38, %v10215_v13 }
 0xb6c   :  { %v10501_v10 = vpop.eup %10500 }
 0xb6d   :  { %9080 = vst [vmem:[#allocation12 + $0x10] sm:$0xff] %v9072_v31  ;;  %v9073_v42 = vmul.f32 %v10501_v10, %v10215_v13 }
 0xb6f   :  { %9081 = vst [vmem:[#allocation12 + $0x18] sm:$0xff] %v9073_v42 }
 0xb72   :  { %v10503_v3 = vpop.eup %10502 }
 0xb73   :  { %v9074_v63 = vmul.f32 %v10503_v3, %v10215_v13 }
 0xb74   :  { %v10505_v34 = vpop.eup %10504 }
 0xb75   :  { %9082 = vst [vmem:[#allocation12 + $0x20] sm:$0xff] %v9074_v63  ;;  %v9075_v61 = vmul.f32 %v10505_v34, %v10215_v13 }
 0xb77   :  { %9083 = vst [vmem:[#allocation12 + $0x28] sm:$0xff] %v9075_v61 }
 0xc0a   :  { %v10250_v4 = vpop.f32.mrb[116].mxu1 }
 0xc0b   :  { %v10251_v27 = vpop.f32.mrb[117].mxu1 }
 0xc0c   :  { %v10252_v22 = vadd.f32 %v10251_v27, %v10250_v4  ;;  %v10253_v55 = vpop.f32.mrb[118].mxu1 }
 0xc0d   :  { %v10254_v0 = vpop.f32.mrb[119].mxu1 }
 0xc0e   :  { %v9049_v51 = vadd.f32 %v10252_v22, %v10198_v19  ;;  %v10255_v28 = vadd.f32 %v10254_v0, %v10253_v55 }
 0xc10   :  { %10506 = vtanh.f32 %v9049_v51  ;;  %v9052_v6 = vadd.f32 %v10255_v28, %v10198_v19 }
 0xc12   :  { %10508 = vtanh.f32 %v9052_v6 }
 0xc1a   :  { %v10507_v12 = vpop.eup %10506 }
 0xc1b   :  { %v9076_v36 = vmul.f32 %v10507_v12, %v10215_v13 }
 0xc1c   :  { %v10509_v25 = vpop.eup %10508 }
 0xc1d   :  { %9084 = vst [vmem:[#allocation12 + $0x30] sm:$0xff] %v9076_v36  ;;  %v9077_v29 = vmul.f32 %v10509_v25, %v10215_v13 }
 0xc1f   :  { %9085 = vst [vmem:[#allocation12 + $0x38] sm:$0xff] %v9077_v29 }
 0xc20   :  { %10587 = shalt.err (!%p10584_p0)
}
 0xc21   :  { %s10588_s27 = scalar_lea.hbm %s12875_s9, 1024 }
 0xc22   :  { %p10589_p1 = scmp.ne.s32.totalorder %s12875_s9, %s10588_s27  ;;  %p10592_p2 = scmp.lt.u32.totalorder %s10588_s27, %s12875_s9 }
 0xc24   :  { %p10594_p3 = pnand %p10592_p2, %p10589_p1 }
 0xc26   :  { %10597 = shalt.err (!%p10594_p3)
}
 0xc27   :  { %9097 = dma.vmem_to_hbm [thread:$0]  %s9092_s8, 1024, %s12875_s9, [#allocation8], %s10605_s19, %s10605_s19, %s10606_s20  }
 0xc28   :  { %10602 = dma.done.wait [#allocation8], 1024  }
 0xc29   :  { %10603 = vsyncadd [#allocation8], 4294966272 }
 0xc2a   :  { %9101 = vsyncpa [#allocation7], 1 }
 0xc2b   :  { %9102 = vsyncpa [#allocation10], 1 }
 0xc2c   :  { %9103 = vsyncpa [#allocation8], 1 }

</bundles_post_ra>
